<compile_context>
chip_gen: v5e
topology: v5e:2x2
jax: 0.10.0
libtpu: 0.0.40
codegen_flags: <defaults>
</compile_context>

<pallas_src>
import jax
import jax.numpy as jnp
from jax.experimental import pallas as pl
from jax.experimental.pallas import tpu as pltpu

# Model dims from the PyTorch module
INPUT_DIM = 72 * 3      # 216
HIDDEN_DIM = 100
LAYER_DIM = 2           # implemented explicitly as two stacked cells
OUTPUT_DIM = 7

# Padded (TPU-friendly) dims
DP = 256                # input features padded to 2 lane tiles (fills MXU depth)
HP = 128                # hidden padded to one 128-lane tile
GP = 4 * HP             # 4 gates, each 128 wide -> 512
OP = 128                # logits padded to a full lane tile
UNROLL_CAP = 8          # cap recurrent-loop unroll for larger T


def _lstm_kernel(x_ref, wx0_ref, wh0_ref, b0_ref,
                 w1_ref, b1_ref,
                 wfc_ref, bfc_ref,
                 out_ref,
                 xproj_ref):
    """Whole-sequence 2-layer LSTM + final Linear, single invocation.

    x_ref:     (T*BP, DP)     time-major, batch padded & flattened
    wx0_ref:   (DP, GP)       layer-0 input weights (gates [i,f,g,o], each HP wide)
    wh0_ref:   (HP, GP)       layer-0 recurrent weights
    b0_ref:    (1,  GP)       layer-0 combined bias (b_ih + b_hh)
    w1_ref:    (2*HP, GP)     fused layer-1 weights: [wx1; wh1] stacked on K
    b1_ref:    (1,  GP)       layer-1 combined bias
    wfc_ref:   (HP, OP), bfc_ref: (1, OP)
    out_ref:   (BP, OP)       logits (padded)
    xproj_ref: (T*BP, GP)     VMEM scratch for the hoisted input projection
    """
    TB = xproj_ref.shape[0]
    BP = out_ref.shape[0]
    T = TB // BP

    # --- Hoisted, non-recurrent projection: one big MXU matmul for all T,
    #     layer-0 bias folded in (not re-added every step). ---
    xproj_ref[...] = (
        jnp.dot(x_ref[...], wx0_ref[...], preferred_element_type=jnp.float32)
        + b0_ref[...]
    )

    # Hoisted bias broadcast for layer 1 (JAX does not CSE broadcast_in_dim).
    b1b = jnp.broadcast_to(b1_ref[...], (BP, GP))

    def gate_math(gates, c_prev):
        # PyTorch gate order [i, f, g, o]; each gate is a 128-lane-aligned slice.
        i = jax.nn.sigmoid(gates[:, 0 * HP:1 * HP])
        f = jax.nn.sigmoid(gates[:, 1 * HP:2 * HP])
        g = jnp.tanh(gates[:, 2 * HP:3 * HP])
        o = jax.nn.sigmoid(gates[:, 3 * HP:4 * HP])
        c_new = f * c_prev + i * g
        h_new = o * jnp.tanh(c_new)
        return h_new, c_new

    def body(t, carry):
        h0, c0, h1, c1 = carry
        row = pl.multiple_of(t * BP, BP)     # sublane-aligned dynamic slice
        # Layer 0: only the recurrent matmul remains on the critical path.
        g0 = xproj_ref[pl.ds(row, BP), :] + jnp.dot(
            h0, wh0_ref[...], preferred_element_type=jnp.float32)
        h0, c0 = gate_math(g0, c0)
        # Layer 1: single fused matmul, K = 2*HP = 256 (lane-aligned concat).
        hcat = jnp.concatenate([h0, h1], axis=1)
        g1 = jnp.dot(hcat, w1_ref[...], preferred_element_type=jnp.float32) + b1b
        h1, c1 = gate_math(g1, c1)
        return (h0, c0, h1, c1)

    zeros = jnp.zeros((BP, HP), jnp.float32)
    _, _, h1, _ = jax.lax.fori_loop(0, T, body, (zeros, zeros, zeros, zeros),
                                    unroll=min(T, UNROLL_CAP))

    # Final Linear on the last layer-1 hidden state; lane-dense (128-wide) store.
    out_ref[...] = (jnp.dot(h1, wfc_ref[...], preferred_element_type=jnp.float32)
                    + bfc_ref[...])


def pack_params(params):
    """Pad / pack parameters for the kernel.  Call ONCE and cache the result
    (removes per-call XLA pad/concat ops, which rival the kernel at this size)."""
    H, D, O = HIDDEN_DIM, INPUT_DIM, OUTPUT_DIM

    def pad_gate_cols(w):
        # (.., 4H) -> (.., 4*HP): pad each of the [i,f,g,o] blocks to HP lanes.
        parts = [w[..., k * H:(k + 1) * H] for k in range(4)]
        pad_width = [(0, 0)] * (w.ndim - 1) + [(0, HP - H)]
        return jnp.concatenate([jnp.pad(p, pad_width) for p in parts], axis=-1)

    wx0p = pad_gate_cols(jnp.pad(params["wx0"], ((0, DP - D), (0, 0))))   # (DP, GP)
    wh0p = pad_gate_cols(jnp.pad(params["wh0"], ((0, HP - H), (0, 0))))   # (HP, GP)
    b0p = pad_gate_cols(params["b0"])                                     # (1, GP)
    wx1p = pad_gate_cols(jnp.pad(params["wx1"], ((0, HP - H), (0, 0))))   # (HP, GP)
    wh1p = pad_gate_cols(jnp.pad(params["wh1"], ((0, HP - H), (0, 0))))   # (HP, GP)
    w1p = jnp.concatenate([wx1p, wh1p], axis=0)                           # (2HP, GP)
    b1p = pad_gate_cols(params["b1"])                                     # (1, GP)
    wfcp = jnp.pad(params["wfc"], ((0, HP - H), (0, OP - O)))             # (HP, OP)
    bfcp = jnp.pad(params["bfc"], ((0, 0), (0, OP - O)))                  # (1, OP)

    return {"wx0": wx0p, "wh0": wh0p, "b0": b0p,
            "w1": w1p, "b1": b1p, "wfc": wfcp, "bfc": bfcp}


@jax.jit
def lstm_classifier_forward(x, packed):
    """x: (B, T, D) float32, packed: output of pack_params. Returns (B, OUTPUT_DIM)."""
    B, T, D = x.shape
    BP = ((B + 7) // 8) * 8           # batch padded to a sublane multiple

    # Per-call work is only this tiny activation reshuffle (weights are pre-packed).
    x_tm = jnp.transpose(x, (1, 0, 2))                        # (T, B, D)
    x_tm = jnp.pad(x_tm, ((0, 0), (0, BP - B), (0, DP - D)))  # (T, BP, DP)
    x2d = x_tm.reshape(T * BP, DP)

    vmem = pl.BlockSpec(memory_space=pltpu.MemorySpace.VMEM)
    out_padded = pl.pallas_call(
        _lstm_kernel,
        out_shape=jax.ShapeDtypeStruct((BP, OP), jnp.float32),
        in_specs=[vmem] * 8,
        out_specs=vmem,
        scratch_shapes=[pltpu.VMEM((T * BP, GP), jnp.float32)],
    )(x2d, packed["wx0"], packed["wh0"], packed["b0"],
      packed["w1"], packed["b1"], packed["wfc"], packed["bfc"])

    return out_padded[:B, :OUTPUT_DIM]


def init_params(key):
    """Deterministic parameter init matching nn.LSTM/nn.Linear shapes.

    PyTorch stores W_ih: (4H, in), W_hh: (4H, H); we keep transposed copies so
    the kernel does inp @ W.  Bias = b_ih + b_hh combined (identical math).
    """
    H, D, O = HIDDEN_DIM, INPUT_DIM, OUTPUT_DIM
    k = 1.0 / jnp.sqrt(jnp.float32(H))
    keys = jax.random.split(key, 9)
    u = lambda kk, shp: jax.random.uniform(kk, shp, jnp.float32, -k, k)
    return {
        "wx0": u(keys[0], (D, 4 * H)),
        "wh0": u(keys[1], (H, 4 * H)),
        "b0":  u(keys[2], (1, 4 * H)),
        "wx1": u(keys[3], (H, 4 * H)),
        "wh1": u(keys[4], (H, 4 * H)),
        "b1":  u(keys[5], (1, 4 * H)),
        "wfc": u(keys[6], (H, O)),
        "bfc": u(keys[7], (1, O)),
    }


def lstm_classifier_ref(x, params):
    """Pure-JAX reference (mirrors torch.nn.LSTM + Linear forward)."""
    B, T, D = x.shape
    H = HIDDEN_DIM

    def cell(inp, h, c, wx, wh, b):
        g = inp @ wx + h @ wh + b
        i = jax.nn.sigmoid(g[:, 0:H])
        f = jax.nn.sigmoid(g[:, H:2 * H])
        gg = jnp.tanh(g[:, 2 * H:3 * H])
        o = jax.nn.sigmoid(g[:, 3 * H:4 * H])
        c_new = f * c + i * gg
        return o * jnp.tanh(c_new), c_new

    h0 = jnp.zeros((B, H), jnp.float32)
    c0 = jnp.zeros((B, H), jnp.float32)
    h1 = jnp.zeros((B, H), jnp.float32)
    c1 = jnp.zeros((B, H), jnp.float32)
    for t in range(T):
        h0, c0 = cell(x[:, t, :], h0, c0, params["wx0"], params["wh0"], params["b0"])
        h1, c1 = cell(h0, h1, c1, params["wx1"], params["wh1"], params["b1"])
    return h1 @ params["wfc"] + params["bfc"]


if __name__ == "__main__":
    key = jax.random.PRNGKey(0)
    kx, kp = jax.random.split(key)

    B, T = 2, 8
    x = jax.random.normal(kx, (B, T, INPUT_DIM), jnp.float32)
    params = init_params(kp)

    # Pack / pad weights once; reuse the packed pytree across forward calls.
    packed = jax.block_until_ready(pack_params(params))

    out = lstm_classifier_forward(x, packed)
    out = jax.block_until_ready(out)

    ref = lstm_classifier_ref(x, params)
    assert out.shape == (B, OUTPUT_DIM)
    assert jnp.allclose(out, ref, atol=1e-4, rtol=1e-4), "mismatch vs JAX reference"

    print("KERNEL_OK")
</pallas_src>

<mosaic_0001>
module attributes {stable_mosaic.version = 11 : i64} {
  func.func @_lstm_kernel(%arg0: memref<64x256xf32, #tpu.memory_space<vmem>>, %arg1: memref<256x512xf32, #tpu.memory_space<vmem>>, %arg2: memref<128x512xf32, #tpu.memory_space<vmem>>, %arg3: memref<1x512xf32, #tpu.memory_space<vmem>>, %arg4: memref<256x512xf32, #tpu.memory_space<vmem>>, %arg5: memref<1x512xf32, #tpu.memory_space<vmem>>, %arg6: memref<128x128xf32, #tpu.memory_space<vmem>>, %arg7: memref<1x128xf32, #tpu.memory_space<vmem>>, %arg8: memref<8x128xf32, #tpu.memory_space<vmem>>, %arg9: memref<64x512xf32, #tpu.memory_space<vmem>>) attributes {dimension_semantics = [], scalar_prefetch = 0 : i64, scratch_operands = 1 : i64, tpu.core_type = #tpu.core_type<tc>} {
    %c0 = arith.constant 0 : index
    %c0_0 = arith.constant 0 : index
    %0 = vector.load %arg0[%c0, %c0_0] : memref<64x256xf32, #tpu.memory_space<vmem>>, vector<64x256xf32>
    %c0_1 = arith.constant 0 : index
    %c0_2 = arith.constant 0 : index
    %1 = vector.load %arg1[%c0_1, %c0_2] : memref<256x512xf32, #tpu.memory_space<vmem>>, vector<256x512xf32>
    %cst = arith.constant dense<0.000000e+00> : vector<64x512xf32>
    %2 = tpu.matmul %0, %1, %cst {dimension_numbers = #tpu.dot_dimension_numbers<[1], [0], [0], [1], [0, 0, 1, 1], [], []>} : vector<64x256xf32>, vector<256x512xf32>, vector<64x512xf32> -> vector<64x512xf32>
    %c0_3 = arith.constant 0 : index
    %c0_4 = arith.constant 0 : index
    %3 = vector.load %arg3[%c0_3, %c0_4] : memref<1x512xf32, #tpu.memory_space<vmem>>, vector<1x512xf32>
    %4 = vector.broadcast %3 : vector<1x512xf32> to vector<64x512xf32>
    %5 = arith.addf %2, %4 : vector<64x512xf32>
    %c0_5 = arith.constant 0 : index
    %c0_6 = arith.constant 0 : index
    %6 = vector.load %arg9[%c0_5, %c0_6] : memref<64x512xf32, #tpu.memory_space<vmem>>, vector<64x512xf32>
    tpu.vector_store %arg9[%c0_5, %c0_6], %5 {strides = array<i32>} : memref<64x512xf32, #tpu.memory_space<vmem>>, vector<64x512xf32>,
    %c0_7 = arith.constant 0 : index
    %c0_8 = arith.constant 0 : index
    %7 = vector.load %arg5[%c0_7, %c0_8] : memref<1x512xf32, #tpu.memory_space<vmem>>, vector<1x512xf32>
    %8 = vector.shape_cast %7 : vector<1x512xf32> to vector<1x512xf32>
    %9 = vector.broadcast %8 : vector<1x512xf32> to vector<8x512xf32>
    %cst_9 = arith.constant 0.000000e+00 : f32
    %10 = vector.broadcast %cst_9 : f32 to vector<8x128xf32>
    %c0_i32 = arith.constant 0 : i32
    %c8_i32 = arith.constant 8 : i32
    %11 = arith.muli %c0_i32, %c8_i32 : i32
    %12 = tpu.assume_multiple %11, 8 : i32
    %13 = arith.index_cast %12 : i32 to index
    %c0_10 = arith.constant 0 : index
    %14 = vector.load %arg9[%13, %c0_10] : memref<64x512xf32, #tpu.memory_space<vmem>>, vector<8x512xf32>
    %c0_11 = arith.constant 0 : index
    %c0_12 = arith.constant 0 : index
    %15 = vector.load %arg2[%c0_11, %c0_12] : memref<128x512xf32, #tpu.memory_space<vmem>>, vector<128x512xf32>
    %cst_13 = arith.constant dense<0.000000e+00> : vector<8x512xf32>
    %16 = tpu.matmul %10, %15, %cst_13 {dimension_numbers = #tpu.dot_dimension_numbers<[1], [0], [0], [1], [0, 0, 1, 1], [], []>} : vector<8x128xf32>, vector<128x512xf32>, vector<8x512xf32> -> vector<8x512xf32>
    %17 = arith.addf %14, %16 : vector<8x512xf32>
    %18 = vector.extract_strided_slice %17 {offsets = [0, 0], sizes = [8, 128], strides = [1, 1]} : vector<8x512xf32> to vector<8x128xf32>
    %19 = arith.negf %18 : vector<8x128xf32>
    %20 = math.exp %19 : vector<8x128xf32>
    %cst_14 = arith.constant 1.000000e+00 : f32
    %21 = vector.broadcast %cst_14 : f32 to vector<8x128xf32>
    %22 = arith.addf %21, %20 : vector<8x128xf32>
    %23 = arith.divf %21, %22 : vector<8x128xf32>
    %24 = vector.extract_strided_slice %17 {offsets = [0, 128], sizes = [8, 128], strides = [1, 1]} : vector<8x512xf32> to vector<8x128xf32>
    %25 = arith.negf %24 : vector<8x128xf32>
    %26 = math.exp %25 : vector<8x128xf32>
    %cst_15 = arith.constant 1.000000e+00 : f32
    %27 = vector.broadcast %cst_15 : f32 to vector<8x128xf32>
    %28 = arith.addf %27, %26 : vector<8x128xf32>
    %29 = arith.divf %27, %28 : vector<8x128xf32>
    %30 = vector.extract_strided_slice %17 {offsets = [0, 256], sizes = [8, 128], strides = [1, 1]} : vector<8x512xf32> to vector<8x128xf32>
    %31 = math.tanh %30 : vector<8x128xf32>
    %32 = vector.extract_strided_slice %17 {offsets = [0, 384], sizes = [8, 128], strides = [1, 1]} : vector<8x512xf32> to vector<8x128xf32>
    %33 = arith.negf %32 : vector<8x128xf32>
    %34 = math.exp %33 : vector<8x128xf32>
    %cst_16 = arith.constant 1.000000e+00 : f32
    %35 = vector.broadcast %cst_16 : f32 to vector<8x128xf32>
    %36 = arith.addf %35, %34 : vector<8x128xf32>
    %37 = arith.divf %35, %36 : vector<8x128xf32>
    %38 = arith.mulf %29, %10 : vector<8x128xf32>
    %39 = arith.mulf %23, %31 : vector<8x128xf32>
    %40 = arith.addf %38, %39 : vector<8x128xf32>
    %41 = math.tanh %40 : vector<8x128xf32>
    %42 = arith.mulf %37, %41 : vector<8x128xf32>
    %43 = tpu.concatenate %42, %10 in 1 : vector<8x128xf32>, vector<8x128xf32> -> vector<8x256xf32>
    %c0_17 = arith.constant 0 : index
    %c0_18 = arith.constant 0 : index
    %44 = vector.load %arg4[%c0_17, %c0_18] : memref<256x512xf32, #tpu.memory_space<vmem>>, vector<256x512xf32>
    %cst_19 = arith.constant dense<0.000000e+00> : vector<8x512xf32>
    %45 = tpu.matmul %43, %44, %cst_19 {dimension_numbers = #tpu.dot_dimension_numbers<[1], [0], [0], [1], [0, 0, 1, 1], [], []>} : vector<8x256xf32>, vector<256x512xf32>, vector<8x512xf32> -> vector<8x512xf32>
    %46 = arith.addf %45, %9 : vector<8x512xf32>
    %47 = vector.extract_strided_slice %46 {offsets = [0, 0], sizes = [8, 128], strides = [1, 1]} : vector<8x512xf32> to vector<8x128xf32>
    %48 = arith.negf %47 : vector<8x128xf32>
    %49 = math.exp %48 : vector<8x128xf32>
    %cst_20 = arith.constant 1.000000e+00 : f32
    %50 = vector.broadcast %cst_20 : f32 to vector<8x128xf32>
    %51 = arith.addf %50, %49 : vector<8x128xf32>
    %52 = arith.divf %50, %51 : vector<8x128xf32>
    %53 = vector.extract_strided_slice %46 {offsets = [0, 128], sizes = [8, 128], strides = [1, 1]} : vector<8x512xf32> to vector<8x128xf32>
    %54 = arith.negf %53 : vector<8x128xf32>
    %55 = math.exp %54 : vector<8x128xf32>
    %cst_21 = arith.constant 1.000000e+00 : f32
    %56 = vector.broadcast %cst_21 : f32 to vector<8x128xf32>
    %57 = arith.addf %56, %55 : vector<8x128xf32>
    %58 = arith.divf %56, %57 : vector<8x128xf32>
    %59 = vector.extract_strided_slice %46 {offsets = [0, 256], sizes = [8, 128], strides = [1, 1]} : vector<8x512xf32> to vector<8x128xf32>
    %60 = math.tanh %59 : vector<8x128xf32>
    %61 = vector.extract_strided_slice %46 {offsets = [0, 384], sizes = [8, 128], strides = [1, 1]} : vector<8x512xf32> to vector<8x128xf32>
    %62 = arith.negf %61 : vector<8x128xf32>
    %63 = math.exp %62 : vector<8x128xf32>
    %cst_22 = arith.constant 1.000000e+00 : f32
    %64 = vector.broadcast %cst_22 : f32 to vector<8x128xf32>
    %65 = arith.addf %64, %63 : vector<8x128xf32>
    %66 = arith.divf %64, %65 : vector<8x128xf32>
    %67 = arith.mulf %58, %10 : vector<8x128xf32>
    %68 = arith.mulf %52, %60 : vector<8x128xf32>
    %69 = arith.addf %67, %68 : vector<8x128xf32>
    %70 = math.tanh %69 : vector<8x128xf32>
    %71 = arith.mulf %66, %70 : vector<8x128xf32>
    %c1_i32 = arith.constant 1 : i32
    %c8_i32_23 = arith.constant 8 : i32
    %72 = arith.muli %c1_i32, %c8_i32_23 : i32
    %73 = tpu.assume_multiple %72, 8 : i32
    %74 = arith.index_cast %73 : i32 to index
    %c0_24 = arith.constant 0 : index
    %75 = vector.load %arg9[%74, %c0_24] : memref<64x512xf32, #tpu.memory_space<vmem>>, vector<8x512xf32>
    %c0_25 = arith.constant 0 : index
    %c0_26 = arith.constant 0 : index
    %76 = vector.load %arg2[%c0_25, %c0_26] : memref<128x512xf32, #tpu.memory_space<vmem>>, vector<128x512xf32>
    %cst_27 = arith.constant dense<0.000000e+00> : vector<8x512xf32>
    %77 = tpu.matmul %42, %76, %cst_27 {dimension_numbers = #tpu.dot_dimension_numbers<[1], [0], [0], [1], [0, 0, 1, 1], [], []>} : vector<8x128xf32>, vector<128x512xf32>, vector<8x512xf32> -> vector<8x512xf32>
    %78 = arith.addf %75, %77 : vector<8x512xf32>
    %79 = vector.extract_strided_slice %78 {offsets = [0, 0], sizes = [8, 128], strides = [1, 1]} : vector<8x512xf32> to vector<8x128xf32>
    %80 = arith.negf %79 : vector<8x128xf32>
    %81 = math.exp %80 : vector<8x128xf32>
    %cst_28 = arith.constant 1.000000e+00 : f32
    %82 = vector.broadcast %cst_28 : f32 to vector<8x128xf32>
    %83 = arith.addf %82, %81 : vector<8x128xf32>
    %84 = arith.divf %82, %83 : vector<8x128xf32>
    %85 = vector.extract_strided_slice %78 {offsets = [0, 128], sizes = [8, 128], strides = [1, 1]} : vector<8x512xf32> to vector<8x128xf32>
    %86 = arith.negf %85 : vector<8x128xf32>
    %87 = math.exp %86 : vector<8x128xf32>
    %cst_29 = arith.constant 1.000000e+00 : f32
    %88 = vector.broadcast %cst_29 : f32 to vector<8x128xf32>
    %89 = arith.addf %88, %87 : vector<8x128xf32>
    %90 = arith.divf %88, %89 : vector<8x128xf32>
    %91 = vector.extract_strided_slice %78 {offsets = [0, 256], sizes = [8, 128], strides = [1, 1]} : vector<8x512xf32> to vector<8x128xf32>
    %92 = math.tanh %91 : vector<8x128xf32>
    %93 = vector.extract_strided_slice %78 {offsets = [0, 384], sizes = [8, 128], strides = [1, 1]} : vector<8x512xf32> to vector<8x128xf32>
    %94 = arith.negf %93 : vector<8x128xf32>
    %95 = math.exp %94 : vector<8x128xf32>
    %cst_30 = arith.constant 1.000000e+00 : f32
    %96 = vector.broadcast %cst_30 : f32 to vector<8x128xf32>
    %97 = arith.addf %96, %95 : vector<8x128xf32>
    %98 = arith.divf %96, %97 : vector<8x128xf32>
    %99 = arith.mulf %90, %40 : vector<8x128xf32>
    %100 = arith.mulf %84, %92 : vector<8x128xf32>
    %101 = arith.addf %99, %100 : vector<8x128xf32>
    %102 = math.tanh %101 : vector<8x128xf32>
    %103 = arith.mulf %98, %102 : vector<8x128xf32>
    %104 = tpu.concatenate %103, %71 in 1 : vector<8x128xf32>, vector<8x128xf32> -> vector<8x256xf32>
    %c0_31 = arith.constant 0 : index
    %c0_32 = arith.constant 0 : index
    %105 = vector.load %arg4[%c0_31, %c0_32] : memref<256x512xf32, #tpu.memory_space<vmem>>, vector<256x512xf32>
    %cst_33 = arith.constant dense<0.000000e+00> : vector<8x512xf32>
    %106 = tpu.matmul %104, %105, %cst_33 {dimension_numbers = #tpu.dot_dimension_numbers<[1], [0], [0], [1], [0, 0, 1, 1], [], []>} : vector<8x256xf32>, vector<256x512xf32>, vector<8x512xf32> -> vector<8x512xf32>
    %107 = arith.addf %106, %9 : vector<8x512xf32>
    %108 = vector.extract_strided_slice %107 {offsets = [0, 0], sizes = [8, 128], strides = [1, 1]} : vector<8x512xf32> to vector<8x128xf32>
    %109 = arith.negf %108 : vector<8x128xf32>
    %110 = math.exp %109 : vector<8x128xf32>
    %cst_34 = arith.constant 1.000000e+00 : f32
    %111 = vector.broadcast %cst_34 : f32 to vector<8x128xf32>
    %112 = arith.addf %111, %110 : vector<8x128xf32>
    %113 = arith.divf %111, %112 : vector<8x128xf32>
    %114 = vector.extract_strided_slice %107 {offsets = [0, 128], sizes = [8, 128], strides = [1, 1]} : vector<8x512xf32> to vector<8x128xf32>
    %115 = arith.negf %114 : vector<8x128xf32>
    %116 = math.exp %115 : vector<8x128xf32>
    %cst_35 = arith.constant 1.000000e+00 : f32
    %117 = vector.broadcast %cst_35 : f32 to vector<8x128xf32>
    %118 = arith.addf %117, %116 : vector<8x128xf32>
    %119 = arith.divf %117, %118 : vector<8x128xf32>
    %120 = vector.extract_strided_slice %107 {offsets = [0, 256], sizes = [8, 128], strides = [1, 1]} : vector<8x512xf32> to vector<8x128xf32>
    %121 = math.tanh %120 : vector<8x128xf32>
    %122 = vector.extract_strided_slice %107 {offsets = [0, 384], sizes = [8, 128], strides = [1, 1]} : vector<8x512xf32> to vector<8x128xf32>
    %123 = arith.negf %122 : vector<8x128xf32>
    %124 = math.exp %123 : vector<8x128xf32>
    %cst_36 = arith.constant 1.000000e+00 : f32
    %125 = vector.broadcast %cst_36 : f32 to vector<8x128xf32>
    %126 = arith.addf %125, %124 : vector<8x128xf32>
    %127 = arith.divf %125, %126 : vector<8x128xf32>
    %128 = arith.mulf %119, %69 : vector<8x128xf32>
    %129 = arith.mulf %113, %121 : vector<8x128xf32>
    %130 = arith.addf %128, %129 : vector<8x128xf32>
    %131 = math.tanh %130 : vector<8x128xf32>
    %132 = arith.mulf %127, %131 : vector<8x128xf32>
    %c2_i32 = arith.constant 2 : i32
    %c8_i32_37 = arith.constant 8 : i32
    %133 = arith.muli %c2_i32, %c8_i32_37 : i32
    %134 = tpu.assume_multiple %133, 8 : i32
    %135 = arith.index_cast %134 : i32 to index
    %c0_38 = arith.constant 0 : index
    %136 = vector.load %arg9[%135, %c0_38] : memref<64x512xf32, #tpu.memory_space<vmem>>, vector<8x512xf32>
    %c0_39 = arith.constant 0 : index
    %c0_40 = arith.constant 0 : index
    %137 = vector.load %arg2[%c0_39, %c0_40] : memref<128x512xf32, #tpu.memory_space<vmem>>, vector<128x512xf32>
    %cst_41 = arith.constant dense<0.000000e+00> : vector<8x512xf32>
    %138 = tpu.matmul %103, %137, %cst_41 {dimension_numbers = #tpu.dot_dimension_numbers<[1], [0], [0], [1], [0, 0, 1, 1], [], []>} : vector<8x128xf32>, vector<128x512xf32>, vector<8x512xf32> -> vector<8x512xf32>
    %139 = arith.addf %136, %138 : vector<8x512xf32>
    %140 = vector.extract_strided_slice %139 {offsets = [0, 0], sizes = [8, 128], strides = [1, 1]} : vector<8x512xf32> to vector<8x128xf32>
    %141 = arith.negf %140 : vector<8x128xf32>
    %142 = math.exp %141 : vector<8x128xf32>
    %cst_42 = arith.constant 1.000000e+00 : f32
    %143 = vector.broadcast %cst_42 : f32 to vector<8x128xf32>
    %144 = arith.addf %143, %142 : vector<8x128xf32>
    %145 = arith.divf %143, %144 : vector<8x128xf32>
    %146 = vector.extract_strided_slice %139 {offsets = [0, 128], sizes = [8, 128], strides = [1, 1]} : vector<8x512xf32> to vector<8x128xf32>
    %147 = arith.negf %146 : vector<8x128xf32>
    %148 = math.exp %147 : vector<8x128xf32>
    %cst_43 = arith.constant 1.000000e+00 : f32
    %149 = vector.broadcast %cst_43 : f32 to vector<8x128xf32>
    %150 = arith.addf %149, %148 : vector<8x128xf32>
    %151 = arith.divf %149, %150 : vector<8x128xf32>
    %152 = vector.extract_strided_slice %139 {offsets = [0, 256], sizes = [8, 128], strides = [1, 1]} : vector<8x512xf32> to vector<8x128xf32>
    %153 = math.tanh %152 : vector<8x128xf32>
    %154 = vector.extract_strided_slice %139 {offsets = [0, 384], sizes = [8, 128], strides = [1, 1]} : vector<8x512xf32> to vector<8x128xf32>
    %155 = arith.negf %154 : vector<8x128xf32>
    %156 = math.exp %155 : vector<8x128xf32>
    %cst_44 = arith.constant 1.000000e+00 : f32
    %157 = vector.broadcast %cst_44 : f32 to vector<8x128xf32>
    %158 = arith.addf %157, %156 : vector<8x128xf32>
    %159 = arith.divf %157, %158 : vector<8x128xf32>
    %160 = arith.mulf %151, %101 : vector<8x128xf32>
    %161 = arith.mulf %145, %153 : vector<8x128xf32>
    %162 = arith.addf %160, %161 : vector<8x128xf32>
    %163 = math.tanh %162 : vector<8x128xf32>
    %164 = arith.mulf %159, %163 : vector<8x128xf32>
    %165 = tpu.concatenate %164, %132 in 1 : vector<8x128xf32>, vector<8x128xf32> -> vector<8x256xf32>
    %c0_45 = arith.constant 0 : index
    %c0_46 = arith.constant 0 : index
    %166 = vector.load %arg4[%c0_45, %c0_46] : memref<256x512xf32, #tpu.memory_space<vmem>>, vector<256x512xf32>
    %cst_47 = arith.constant dense<0.000000e+00> : vector<8x512xf32>
    %167 = tpu.matmul %165, %166, %cst_47 {dimension_numbers = #tpu.dot_dimension_numbers<[1], [0], [0], [1], [0, 0, 1, 1], [], []>} : vector<8x256xf32>, vector<256x512xf32>, vector<8x512xf32> -> vector<8x512xf32>
    %168 = arith.addf %167, %9 : vector<8x512xf32>
    %169 = vector.extract_strided_slice %168 {offsets = [0, 0], sizes = [8, 128], strides = [1, 1]} : vector<8x512xf32> to vector<8x128xf32>
    %170 = arith.negf %169 : vector<8x128xf32>
    %171 = math.exp %170 : vector<8x128xf32>
    %cst_48 = arith.constant 1.000000e+00 : f32
    %172 = vector.broadcast %cst_48 : f32 to vector<8x128xf32>
    %173 = arith.addf %172, %171 : vector<8x128xf32>
    %174 = arith.divf %172, %173 : vector<8x128xf32>
    %175 = vector.extract_strided_slice %168 {offsets = [0, 128], sizes = [8, 128], strides = [1, 1]} : vector<8x512xf32> to vector<8x128xf32>
    %176 = arith.negf %175 : vector<8x128xf32>
    %177 = math.exp %176 : vector<8x128xf32>
    %cst_49 = arith.constant 1.000000e+00 : f32
    %178 = vector.broadcast %cst_49 : f32 to vector<8x128xf32>
    %179 = arith.addf %178, %177 : vector<8x128xf32>
    %180 = arith.divf %178, %179 : vector<8x128xf32>
    %181 = vector.extract_strided_slice %168 {offsets = [0, 256], sizes = [8, 128], strides = [1, 1]} : vector<8x512xf32> to vector<8x128xf32>
    %182 = math.tanh %181 : vector<8x128xf32>
    %183 = vector.extract_strided_slice %168 {offsets = [0, 384], sizes = [8, 128], strides = [1, 1]} : vector<8x512xf32> to vector<8x128xf32>
    %184 = arith.negf %183 : vector<8x128xf32>
    %185 = math.exp %184 : vector<8x128xf32>
    %cst_50 = arith.constant 1.000000e+00 : f32
    %186 = vector.broadcast %cst_50 : f32 to vector<8x128xf32>
    %187 = arith.addf %186, %185 : vector<8x128xf32>
    %188 = arith.divf %186, %187 : vector<8x128xf32>
    %189 = arith.mulf %180, %130 : vector<8x128xf32>
    %190 = arith.mulf %174, %182 : vector<8x128xf32>
    %191 = arith.addf %189, %190 : vector<8x128xf32>
    %192 = math.tanh %191 : vector<8x128xf32>
    %193 = arith.mulf %188, %192 : vector<8x128xf32>
    %c3_i32 = arith.constant 3 : i32
    %c8_i32_51 = arith.constant 8 : i32
    %194 = arith.muli %c3_i32, %c8_i32_51 : i32
    %195 = tpu.assume_multiple %194, 8 : i32
    %196 = arith.index_cast %195 : i32 to index
    %c0_52 = arith.constant 0 : index
    %197 = vector.load %arg9[%196, %c0_52] : memref<64x512xf32, #tpu.memory_space<vmem>>, vector<8x512xf32>
    %c0_53 = arith.constant 0 : index
    %c0_54 = arith.constant 0 : index
    %198 = vector.load %arg2[%c0_53, %c0_54] : memref<128x512xf32, #tpu.memory_space<vmem>>, vector<128x512xf32>
    %cst_55 = arith.constant dense<0.000000e+00> : vector<8x512xf32>
    %199 = tpu.matmul %164, %198, %cst_55 {dimension_numbers = #tpu.dot_dimension_numbers<[1], [0], [0], [1], [0, 0, 1, 1], [], []>} : vector<8x128xf32>, vector<128x512xf32>, vector<8x512xf32> -> vector<8x512xf32>
    %200 = arith.addf %197, %199 : vector<8x512xf32>
    %201 = vector.extract_strided_slice %200 {offsets = [0, 0], sizes = [8, 128], strides = [1, 1]} : vector<8x512xf32> to vector<8x128xf32>
    %202 = arith.negf %201 : vector<8x128xf32>
    %203 = math.exp %202 : vector<8x128xf32>
    %cst_56 = arith.constant 1.000000e+00 : f32
    %204 = vector.broadcast %cst_56 : f32 to vector<8x128xf32>
    %205 = arith.addf %204, %203 : vector<8x128xf32>
    %206 = arith.divf %204, %205 : vector<8x128xf32>
    %207 = vector.extract_strided_slice %200 {offsets = [0, 128], sizes = [8, 128], strides = [1, 1]} : vector<8x512xf32> to vector<8x128xf32>
    %208 = arith.negf %207 : vector<8x128xf32>
    %209 = math.exp %208 : vector<8x128xf32>
    %cst_57 = arith.constant 1.000000e+00 : f32
    %210 = vector.broadcast %cst_57 : f32 to vector<8x128xf32>
    %211 = arith.addf %210, %209 : vector<8x128xf32>
    %212 = arith.divf %210, %211 : vector<8x128xf32>
    %213 = vector.extract_strided_slice %200 {offsets = [0, 256], sizes = [8, 128], strides = [1, 1]} : vector<8x512xf32> to vector<8x128xf32>
    %214 = math.tanh %213 : vector<8x128xf32>
    %215 = vector.extract_strided_slice %200 {offsets = [0, 384], sizes = [8, 128], strides = [1, 1]} : vector<8x512xf32> to vector<8x128xf32>
    %216 = arith.negf %215 : vector<8x128xf32>
    %217 = math.exp %216 : vector<8x128xf32>
    %cst_58 = arith.constant 1.000000e+00 : f32
    %218 = vector.broadcast %cst_58 : f32 to vector<8x128xf32>
    %219 = arith.addf %218, %217 : vector<8x128xf32>
    %220 = arith.divf %218, %219 : vector<8x128xf32>
    %221 = arith.mulf %212, %162 : vector<8x128xf32>
    %222 = arith.mulf %206, %214 : vector<8x128xf32>
    %223 = arith.addf %221, %222 : vector<8x128xf32>
    %224 = math.tanh %223 : vector<8x128xf32>
    %225 = arith.mulf %220, %224 : vector<8x128xf32>
    %226 = tpu.concatenate %225, %193 in 1 : vector<8x128xf32>, vector<8x128xf32> -> vector<8x256xf32>
    %c0_59 = arith.constant 0 : index
    %c0_60 = arith.constant 0 : index
    %227 = vector.load %arg4[%c0_59, %c0_60] : memref<256x512xf32, #tpu.memory_space<vmem>>, vector<256x512xf32>
    %cst_61 = arith.constant dense<0.000000e+00> : vector<8x512xf32>
    %228 = tpu.matmul %226, %227, %cst_61 {dimension_numbers = #tpu.dot_dimension_numbers<[1], [0], [0], [1], [0, 0, 1, 1], [], []>} : vector<8x256xf32>, vector<256x512xf32>, vector<8x512xf32> -> vector<8x512xf32>
    %229 = arith.addf %228, %9 : vector<8x512xf32>
    %230 = vector.extract_strided_slice %229 {offsets = [0, 0], sizes = [8, 128], strides = [1, 1]} : vector<8x512xf32> to vector<8x128xf32>
    %231 = arith.negf %230 : vector<8x128xf32>
    %232 = math.exp %231 : vector<8x128xf32>
    %cst_62 = arith.constant 1.000000e+00 : f32
    %233 = vector.broadcast %cst_62 : f32 to vector<8x128xf32>
    %234 = arith.addf %233, %232 : vector<8x128xf32>
    %235 = arith.divf %233, %234 : vector<8x128xf32>
    %236 = vector.extract_strided_slice %229 {offsets = [0, 128], sizes = [8, 128], strides = [1, 1]} : vector<8x512xf32> to vector<8x128xf32>
    %237 = arith.negf %236 : vector<8x128xf32>
    %238 = math.exp %237 : vector<8x128xf32>
    %cst_63 = arith.constant 1.000000e+00 : f32
    %239 = vector.broadcast %cst_63 : f32 to vector<8x128xf32>
    %240 = arith.addf %239, %238 : vector<8x128xf32>
    %241 = arith.divf %239, %240 : vector<8x128xf32>
    %242 = vector.extract_strided_slice %229 {offsets = [0, 256], sizes = [8, 128], strides = [1, 1]} : vector<8x512xf32> to vector<8x128xf32>
    %243 = math.tanh %242 : vector<8x128xf32>
    %244 = vector.extract_strided_slice %229 {offsets = [0, 384], sizes = [8, 128], strides = [1, 1]} : vector<8x512xf32> to vector<8x128xf32>
    %245 = arith.negf %244 : vector<8x128xf32>
    %246 = math.exp %245 : vector<8x128xf32>
    %cst_64 = arith.constant 1.000000e+00 : f32
    %247 = vector.broadcast %cst_64 : f32 to vector<8x128xf32>
    %248 = arith.addf %247, %246 : vector<8x128xf32>
    %249 = arith.divf %247, %248 : vector<8x128xf32>
    %250 = arith.mulf %241, %191 : vector<8x128xf32>
    %251 = arith.mulf %235, %243 : vector<8x128xf32>
    %252 = arith.addf %250, %251 : vector<8x128xf32>
    %253 = math.tanh %252 : vector<8x128xf32>
    %254 = arith.mulf %249, %253 : vector<8x128xf32>
    %c4_i32 = arith.constant 4 : i32
    %c8_i32_65 = arith.constant 8 : i32
    %255 = arith.muli %c4_i32, %c8_i32_65 : i32
    %256 = tpu.assume_multiple %255, 8 : i32
    %257 = arith.index_cast %256 : i32 to index
    %c0_66 = arith.constant 0 : index
    %258 = vector.load %arg9[%257, %c0_66] : memref<64x512xf32, #tpu.memory_space<vmem>>, vector<8x512xf32>
    %c0_67 = arith.constant 0 : index
    %c0_68 = arith.constant 0 : index
    %259 = vector.load %arg2[%c0_67, %c0_68] : memref<128x512xf32, #tpu.memory_space<vmem>>, vector<128x512xf32>
    %cst_69 = arith.constant dense<0.000000e+00> : vector<8x512xf32>
    %260 = tpu.matmul %225, %259, %cst_69 {dimension_numbers = #tpu.dot_dimension_numbers<[1], [0], [0], [1], [0, 0, 1, 1], [], []>} : vector<8x128xf32>, vector<128x512xf32>, vector<8x512xf32> -> vector<8x512xf32>
    %261 = arith.addf %258, %260 : vector<8x512xf32>
    %262 = vector.extract_strided_slice %261 {offsets = [0, 0], sizes = [8, 128], strides = [1, 1]} : vector<8x512xf32> to vector<8x128xf32>
    %263 = arith.negf %262 : vector<8x128xf32>
    %264 = math.exp %263 : vector<8x128xf32>
    %cst_70 = arith.constant 1.000000e+00 : f32
    %265 = vector.broadcast %cst_70 : f32 to vector<8x128xf32>
    %266 = arith.addf %265, %264 : vector<8x128xf32>
    %267 = arith.divf %265, %266 : vector<8x128xf32>
    %268 = vector.extract_strided_slice %261 {offsets = [0, 128], sizes = [8, 128], strides = [1, 1]} : vector<8x512xf32> to vector<8x128xf32>
    %269 = arith.negf %268 : vector<8x128xf32>
    %270 = math.exp %269 : vector<8x128xf32>
    %cst_71 = arith.constant 1.000000e+00 : f32
    %271 = vector.broadcast %cst_71 : f32 to vector<8x128xf32>
    %272 = arith.addf %271, %270 : vector<8x128xf32>
    %273 = arith.divf %271, %272 : vector<8x128xf32>
    %274 = vector.extract_strided_slice %261 {offsets = [0, 256], sizes = [8, 128], strides = [1, 1]} : vector<8x512xf32> to vector<8x128xf32>
    %275 = math.tanh %274 : vector<8x128xf32>
    %276 = vector.extract_strided_slice %261 {offsets = [0, 384], sizes = [8, 128], strides = [1, 1]} : vector<8x512xf32> to vector<8x128xf32>
    %277 = arith.negf %276 : vector<8x128xf32>
    %278 = math.exp %277 : vector<8x128xf32>
    %cst_72 = arith.constant 1.000000e+00 : f32
    %279 = vector.broadcast %cst_72 : f32 to vector<8x128xf32>
    %280 = arith.addf %279, %278 : vector<8x128xf32>
    %281 = arith.divf %279, %280 : vector<8x128xf32>
    %282 = arith.mulf %273, %223 : vector<8x128xf32>
    %283 = arith.mulf %267, %275 : vector<8x128xf32>
    %284 = arith.addf %282, %283 : vector<8x128xf32>
    %285 = math.tanh %284 : vector<8x128xf32>
    %286 = arith.mulf %281, %285 : vector<8x128xf32>
    %287 = tpu.concatenate %286, %254 in 1 : vector<8x128xf32>, vector<8x128xf32> -> vector<8x256xf32>
    %c0_73 = arith.constant 0 : index
    %c0_74 = arith.constant 0 : index
    %288 = vector.load %arg4[%c0_73, %c0_74] : memref<256x512xf32, #tpu.memory_space<vmem>>, vector<256x512xf32>
    %cst_75 = arith.constant dense<0.000000e+00> : vector<8x512xf32>
    %289 = tpu.matmul %287, %288, %cst_75 {dimension_numbers = #tpu.dot_dimension_numbers<[1], [0], [0], [1], [0, 0, 1, 1], [], []>} : vector<8x256xf32>, vector<256x512xf32>, vector<8x512xf32> -> vector<8x512xf32>
    %290 = arith.addf %289, %9 : vector<8x512xf32>
    %291 = vector.extract_strided_slice %290 {offsets = [0, 0], sizes = [8, 128], strides = [1, 1]} : vector<8x512xf32> to vector<8x128xf32>
    %292 = arith.negf %291 : vector<8x128xf32>
    %293 = math.exp %292 : vector<8x128xf32>
    %cst_76 = arith.constant 1.000000e+00 : f32
    %294 = vector.broadcast %cst_76 : f32 to vector<8x128xf32>
    %295 = arith.addf %294, %293 : vector<8x128xf32>
    %296 = arith.divf %294, %295 : vector<8x128xf32>
    %297 = vector.extract_strided_slice %290 {offsets = [0, 128], sizes = [8, 128], strides = [1, 1]} : vector<8x512xf32> to vector<8x128xf32>
    %298 = arith.negf %297 : vector<8x128xf32>
    %299 = math.exp %298 : vector<8x128xf32>
    %cst_77 = arith.constant 1.000000e+00 : f32
    %300 = vector.broadcast %cst_77 : f32 to vector<8x128xf32>
    %301 = arith.addf %300, %299 : vector<8x128xf32>
    %302 = arith.divf %300, %301 : vector<8x128xf32>
    %303 = vector.extract_strided_slice %290 {offsets = [0, 256], sizes = [8, 128], strides = [1, 1]} : vector<8x512xf32> to vector<8x128xf32>
    %304 = math.tanh %303 : vector<8x128xf32>
    %305 = vector.extract_strided_slice %290 {offsets = [0, 384], sizes = [8, 128], strides = [1, 1]} : vector<8x512xf32> to vector<8x128xf32>
    %306 = arith.negf %305 : vector<8x128xf32>
    %307 = math.exp %306 : vector<8x128xf32>
    %cst_78 = arith.constant 1.000000e+00 : f32
    %308 = vector.broadcast %cst_78 : f32 to vector<8x128xf32>
    %309 = arith.addf %308, %307 : vector<8x128xf32>
    %310 = arith.divf %308, %309 : vector<8x128xf32>
    %311 = arith.mulf %302, %252 : vector<8x128xf32>
    %312 = arith.mulf %296, %304 : vector<8x128xf32>
    %313 = arith.addf %311, %312 : vector<8x128xf32>
    %314 = math.tanh %313 : vector<8x128xf32>
    %315 = arith.mulf %310, %314 : vector<8x128xf32>
    %c5_i32 = arith.constant 5 : i32
    %c8_i32_79 = arith.constant 8 : i32
    %316 = arith.muli %c5_i32, %c8_i32_79 : i32
    %317 = tpu.assume_multiple %316, 8 : i32
    %318 = arith.index_cast %317 : i32 to index
    %c0_80 = arith.constant 0 : index
    %319 = vector.load %arg9[%318, %c0_80] : memref<64x512xf32, #tpu.memory_space<vmem>>, vector<8x512xf32>
    %c0_81 = arith.constant 0 : index
    %c0_82 = arith.constant 0 : index
    %320 = vector.load %arg2[%c0_81, %c0_82] : memref<128x512xf32, #tpu.memory_space<vmem>>, vector<128x512xf32>
    %cst_83 = arith.constant dense<0.000000e+00> : vector<8x512xf32>
    %321 = tpu.matmul %286, %320, %cst_83 {dimension_numbers = #tpu.dot_dimension_numbers<[1], [0], [0], [1], [0, 0, 1, 1], [], []>} : vector<8x128xf32>, vector<128x512xf32>, vector<8x512xf32> -> vector<8x512xf32>
    %322 = arith.addf %319, %321 : vector<8x512xf32>
    %323 = vector.extract_strided_slice %322 {offsets = [0, 0], sizes = [8, 128], strides = [1, 1]} : vector<8x512xf32> to vector<8x128xf32>
    %324 = arith.negf %323 : vector<8x128xf32>
    %325 = math.exp %324 : vector<8x128xf32>
    %cst_84 = arith.constant 1.000000e+00 : f32
    %326 = vector.broadcast %cst_84 : f32 to vector<8x128xf32>
    %327 = arith.addf %326, %325 : vector<8x128xf32>
    %328 = arith.divf %326, %327 : vector<8x128xf32>
    %329 = vector.extract_strided_slice %322 {offsets = [0, 128], sizes = [8, 128], strides = [1, 1]} : vector<8x512xf32> to vector<8x128xf32>
    %330 = arith.negf %329 : vector<8x128xf32>
    %331 = math.exp %330 : vector<8x128xf32>
    %cst_85 = arith.constant 1.000000e+00 : f32
    %332 = vector.broadcast %cst_85 : f32 to vector<8x128xf32>
    %333 = arith.addf %332, %331 : vector<8x128xf32>
    %334 = arith.divf %332, %333 : vector<8x128xf32>
    %335 = vector.extract_strided_slice %322 {offsets = [0, 256], sizes = [8, 128], strides = [1, 1]} : vector<8x512xf32> to vector<8x128xf32>
    %336 = math.tanh %335 : vector<8x128xf32>
    %337 = vector.extract_strided_slice %322 {offsets = [0, 384], sizes = [8, 128], strides = [1, 1]} : vector<8x512xf32> to vector<8x128xf32>
    %338 = arith.negf %337 : vector<8x128xf32>
    %339 = math.exp %338 : vector<8x128xf32>
    %cst_86 = arith.constant 1.000000e+00 : f32
    %340 = vector.broadcast %cst_86 : f32 to vector<8x128xf32>
    %341 = arith.addf %340, %339 : vector<8x128xf32>
    %342 = arith.divf %340, %341 : vector<8x128xf32>
    %343 = arith.mulf %334, %284 : vector<8x128xf32>
    %344 = arith.mulf %328, %336 : vector<8x128xf32>
    %345 = arith.addf %343, %344 : vector<8x128xf32>
    %346 = math.tanh %345 : vector<8x128xf32>
    %347 = arith.mulf %342, %346 : vector<8x128xf32>
    %348 = tpu.concatenate %347, %315 in 1 : vector<8x128xf32>, vector<8x128xf32> -> vector<8x256xf32>
    %c0_87 = arith.constant 0 : index
    %c0_88 = arith.constant 0 : index
    %349 = vector.load %arg4[%c0_87, %c0_88] : memref<256x512xf32, #tpu.memory_space<vmem>>, vector<256x512xf32>
    %cst_89 = arith.constant dense<0.000000e+00> : vector<8x512xf32>
    %350 = tpu.matmul %348, %349, %cst_89 {dimension_numbers = #tpu.dot_dimension_numbers<[1], [0], [0], [1], [0, 0, 1, 1], [], []>} : vector<8x256xf32>, vector<256x512xf32>, vector<8x512xf32> -> vector<8x512xf32>
    %351 = arith.addf %350, %9 : vector<8x512xf32>
    %352 = vector.extract_strided_slice %351 {offsets = [0, 0], sizes = [8, 128], strides = [1, 1]} : vector<8x512xf32> to vector<8x128xf32>
    %353 = arith.negf %352 : vector<8x128xf32>
    %354 = math.exp %353 : vector<8x128xf32>
    %cst_90 = arith.constant 1.000000e+00 : f32
    %355 = vector.broadcast %cst_90 : f32 to vector<8x128xf32>
    %356 = arith.addf %355, %354 : vector<8x128xf32>
    %357 = arith.divf %355, %356 : vector<8x128xf32>
    %358 = vector.extract_strided_slice %351 {offsets = [0, 128], sizes = [8, 128], strides = [1, 1]} : vector<8x512xf32> to vector<8x128xf32>
    %359 = arith.negf %358 : vector<8x128xf32>
    %360 = math.exp %359 : vector<8x128xf32>
    %cst_91 = arith.constant 1.000000e+00 : f32
    %361 = vector.broadcast %cst_91 : f32 to vector<8x128xf32>
    %362 = arith.addf %361, %360 : vector<8x128xf32>
    %363 = arith.divf %361, %362 : vector<8x128xf32>
    %364 = vector.extract_strided_slice %351 {offsets = [0, 256], sizes = [8, 128], strides = [1, 1]} : vector<8x512xf32> to vector<8x128xf32>
    %365 = math.tanh %364 : vector<8x128xf32>
    %366 = vector.extract_strided_slice %351 {offsets = [0, 384], sizes = [8, 128], strides = [1, 1]} : vector<8x512xf32> to vector<8x128xf32>
    %367 = arith.negf %366 : vector<8x128xf32>
    %368 = math.exp %367 : vector<8x128xf32>
    %cst_92 = arith.constant 1.000000e+00 : f32
    %369 = vector.broadcast %cst_92 : f32 to vector<8x128xf32>
    %370 = arith.addf %369, %368 : vector<8x128xf32>
    %371 = arith.divf %369, %370 : vector<8x128xf32>
    %372 = arith.mulf %363, %313 : vector<8x128xf32>
    %373 = arith.mulf %357, %365 : vector<8x128xf32>
    %374 = arith.addf %372, %373 : vector<8x128xf32>
    %375 = math.tanh %374 : vector<8x128xf32>
    %376 = arith.mulf %371, %375 : vector<8x128xf32>
    %c6_i32 = arith.constant 6 : i32
    %c8_i32_93 = arith.constant 8 : i32
    %377 = arith.muli %c6_i32, %c8_i32_93 : i32
    %378 = tpu.assume_multiple %377, 8 : i32
    %379 = arith.index_cast %378 : i32 to index
    %c0_94 = arith.constant 0 : index
    %380 = vector.load %arg9[%379, %c0_94] : memref<64x512xf32, #tpu.memory_space<vmem>>, vector<8x512xf32>
    %c0_95 = arith.constant 0 : index
    %c0_96 = arith.constant 0 : index
    %381 = vector.load %arg2[%c0_95, %c0_96] : memref<128x512xf32, #tpu.memory_space<vmem>>, vector<128x512xf32>
    %cst_97 = arith.constant dense<0.000000e+00> : vector<8x512xf32>
    %382 = tpu.matmul %347, %381, %cst_97 {dimension_numbers = #tpu.dot_dimension_numbers<[1], [0], [0], [1], [0, 0, 1, 1], [], []>} : vector<8x128xf32>, vector<128x512xf32>, vector<8x512xf32> -> vector<8x512xf32>
    %383 = arith.addf %380, %382 : vector<8x512xf32>
    %384 = vector.extract_strided_slice %383 {offsets = [0, 0], sizes = [8, 128], strides = [1, 1]} : vector<8x512xf32> to vector<8x128xf32>
    %385 = arith.negf %384 : vector<8x128xf32>
    %386 = math.exp %385 : vector<8x128xf32>
    %cst_98 = arith.constant 1.000000e+00 : f32
    %387 = vector.broadcast %cst_98 : f32 to vector<8x128xf32>
    %388 = arith.addf %387, %386 : vector<8x128xf32>
    %389 = arith.divf %387, %388 : vector<8x128xf32>
    %390 = vector.extract_strided_slice %383 {offsets = [0, 128], sizes = [8, 128], strides = [1, 1]} : vector<8x512xf32> to vector<8x128xf32>
    %391 = arith.negf %390 : vector<8x128xf32>
    %392 = math.exp %391 : vector<8x128xf32>
    %cst_99 = arith.constant 1.000000e+00 : f32
    %393 = vector.broadcast %cst_99 : f32 to vector<8x128xf32>
    %394 = arith.addf %393, %392 : vector<8x128xf32>
    %395 = arith.divf %393, %394 : vector<8x128xf32>
    %396 = vector.extract_strided_slice %383 {offsets = [0, 256], sizes = [8, 128], strides = [1, 1]} : vector<8x512xf32> to vector<8x128xf32>
    %397 = math.tanh %396 : vector<8x128xf32>
    %398 = vector.extract_strided_slice %383 {offsets = [0, 384], sizes = [8, 128], strides = [1, 1]} : vector<8x512xf32> to vector<8x128xf32>
    %399 = arith.negf %398 : vector<8x128xf32>
    %400 = math.exp %399 : vector<8x128xf32>
    %cst_100 = arith.constant 1.000000e+00 : f32
    %401 = vector.broadcast %cst_100 : f32 to vector<8x128xf32>
    %402 = arith.addf %401, %400 : vector<8x128xf32>
    %403 = arith.divf %401, %402 : vector<8x128xf32>
    %404 = arith.mulf %395, %345 : vector<8x128xf32>
    %405 = arith.mulf %389, %397 : vector<8x128xf32>
    %406 = arith.addf %404, %405 : vector<8x128xf32>
    %407 = math.tanh %406 : vector<8x128xf32>
    %408 = arith.mulf %403, %407 : vector<8x128xf32>
    %409 = tpu.concatenate %408, %376 in 1 : vector<8x128xf32>, vector<8x128xf32> -> vector<8x256xf32>
    %c0_101 = arith.constant 0 : index
    %c0_102 = arith.constant 0 : index
    %410 = vector.load %arg4[%c0_101, %c0_102] : memref<256x512xf32, #tpu.memory_space<vmem>>, vector<256x512xf32>
    %cst_103 = arith.constant dense<0.000000e+00> : vector<8x512xf32>
    %411 = tpu.matmul %409, %410, %cst_103 {dimension_numbers = #tpu.dot_dimension_numbers<[1], [0], [0], [1], [0, 0, 1, 1], [], []>} : vector<8x256xf32>, vector<256x512xf32>, vector<8x512xf32> -> vector<8x512xf32>
    %412 = arith.addf %411, %9 : vector<8x512xf32>
    %413 = vector.extract_strided_slice %412 {offsets = [0, 0], sizes = [8, 128], strides = [1, 1]} : vector<8x512xf32> to vector<8x128xf32>
    %414 = arith.negf %413 : vector<8x128xf32>
    %415 = math.exp %414 : vector<8x128xf32>
    %cst_104 = arith.constant 1.000000e+00 : f32
    %416 = vector.broadcast %cst_104 : f32 to vector<8x128xf32>
    %417 = arith.addf %416, %415 : vector<8x128xf32>
    %418 = arith.divf %416, %417 : vector<8x128xf32>
    %419 = vector.extract_strided_slice %412 {offsets = [0, 128], sizes = [8, 128], strides = [1, 1]} : vector<8x512xf32> to vector<8x128xf32>
    %420 = arith.negf %419 : vector<8x128xf32>
    %421 = math.exp %420 : vector<8x128xf32>
    %cst_105 = arith.constant 1.000000e+00 : f32
    %422 = vector.broadcast %cst_105 : f32 to vector<8x128xf32>
    %423 = arith.addf %422, %421 : vector<8x128xf32>
    %424 = arith.divf %422, %423 : vector<8x128xf32>
    %425 = vector.extract_strided_slice %412 {offsets = [0, 256], sizes = [8, 128], strides = [1, 1]} : vector<8x512xf32> to vector<8x128xf32>
    %426 = math.tanh %425 : vector<8x128xf32>
    %427 = vector.extract_strided_slice %412 {offsets = [0, 384], sizes = [8, 128], strides = [1, 1]} : vector<8x512xf32> to vector<8x128xf32>
    %428 = arith.negf %427 : vector<8x128xf32>
    %429 = math.exp %428 : vector<8x128xf32>
    %cst_106 = arith.constant 1.000000e+00 : f32
    %430 = vector.broadcast %cst_106 : f32 to vector<8x128xf32>
    %431 = arith.addf %430, %429 : vector<8x128xf32>
    %432 = arith.divf %430, %431 : vector<8x128xf32>
    %433 = arith.mulf %424, %374 : vector<8x128xf32>
    %434 = arith.mulf %418, %426 : vector<8x128xf32>
    %435 = arith.addf %433, %434 : vector<8x128xf32>
    %436 = math.tanh %435 : vector<8x128xf32>
    %437 = arith.mulf %432, %436 : vector<8x128xf32>
    %c7_i32 = arith.constant 7 : i32
    %c8_i32_107 = arith.constant 8 : i32
    %438 = arith.muli %c7_i32, %c8_i32_107 : i32
    %439 = tpu.assume_multiple %438, 8 : i32
    %440 = arith.index_cast %439 : i32 to index
    %c0_108 = arith.constant 0 : index
    %441 = vector.load %arg9[%440, %c0_108] : memref<64x512xf32, #tpu.memory_space<vmem>>, vector<8x512xf32>
    %c0_109 = arith.constant 0 : index
    %c0_110 = arith.constant 0 : index
    %442 = vector.load %arg2[%c0_109, %c0_110] : memref<128x512xf32, #tpu.memory_space<vmem>>, vector<128x512xf32>
    %cst_111 = arith.constant dense<0.000000e+00> : vector<8x512xf32>
    %443 = tpu.matmul %408, %442, %cst_111 {dimension_numbers = #tpu.dot_dimension_numbers<[1], [0], [0], [1], [0, 0, 1, 1], [], []>} : vector<8x128xf32>, vector<128x512xf32>, vector<8x512xf32> -> vector<8x512xf32>
    %444 = arith.addf %441, %443 : vector<8x512xf32>
    %445 = vector.extract_strided_slice %444 {offsets = [0, 0], sizes = [8, 128], strides = [1, 1]} : vector<8x512xf32> to vector<8x128xf32>
    %446 = arith.negf %445 : vector<8x128xf32>
    %447 = math.exp %446 : vector<8x128xf32>
    %cst_112 = arith.constant 1.000000e+00 : f32
    %448 = vector.broadcast %cst_112 : f32 to vector<8x128xf32>
    %449 = arith.addf %448, %447 : vector<8x128xf32>
    %450 = arith.divf %448, %449 : vector<8x128xf32>
    %451 = vector.extract_strided_slice %444 {offsets = [0, 128], sizes = [8, 128], strides = [1, 1]} : vector<8x512xf32> to vector<8x128xf32>
    %452 = arith.negf %451 : vector<8x128xf32>
    %453 = math.exp %452 : vector<8x128xf32>
    %cst_113 = arith.constant 1.000000e+00 : f32
    %454 = vector.broadcast %cst_113 : f32 to vector<8x128xf32>
    %455 = arith.addf %454, %453 : vector<8x128xf32>
    %456 = arith.divf %454, %455 : vector<8x128xf32>
    %457 = vector.extract_strided_slice %444 {offsets = [0, 256], sizes = [8, 128], strides = [1, 1]} : vector<8x512xf32> to vector<8x128xf32>
    %458 = math.tanh %457 : vector<8x128xf32>
    %459 = vector.extract_strided_slice %444 {offsets = [0, 384], sizes = [8, 128], strides = [1, 1]} : vector<8x512xf32> to vector<8x128xf32>
    %460 = arith.negf %459 : vector<8x128xf32>
    %461 = math.exp %460 : vector<8x128xf32>
    %cst_114 = arith.constant 1.000000e+00 : f32
    %462 = vector.broadcast %cst_114 : f32 to vector<8x128xf32>
    %463 = arith.addf %462, %461 : vector<8x128xf32>
    %464 = arith.divf %462, %463 : vector<8x128xf32>
    %465 = arith.mulf %456, %406 : vector<8x128xf32>
    %466 = arith.mulf %450, %458 : vector<8x128xf32>
    %467 = arith.addf %465, %466 : vector<8x128xf32>
    %468 = math.tanh %467 : vector<8x128xf32>
    %469 = arith.mulf %464, %468 : vector<8x128xf32>
    %470 = tpu.concatenate %469, %437 in 1 : vector<8x128xf32>, vector<8x128xf32> -> vector<8x256xf32>
    %c0_115 = arith.constant 0 : index
    %c0_116 = arith.constant 0 : index
    %471 = vector.load %arg4[%c0_115, %c0_116] : memref<256x512xf32, #tpu.memory_space<vmem>>, vector<256x512xf32>
    %cst_117 = arith.constant dense<0.000000e+00> : vector<8x512xf32>
    %472 = tpu.matmul %470, %471, %cst_117 {dimension_numbers = #tpu.dot_dimension_numbers<[1], [0], [0], [1], [0, 0, 1, 1], [], []>} : vector<8x256xf32>, vector<256x512xf32>, vector<8x512xf32> -> vector<8x512xf32>
    %473 = arith.addf %472, %9 : vector<8x512xf32>
    %474 = vector.extract_strided_slice %473 {offsets = [0, 0], sizes = [8, 128], strides = [1, 1]} : vector<8x512xf32> to vector<8x128xf32>
    %475 = arith.negf %474 : vector<8x128xf32>
    %476 = math.exp %475 : vector<8x128xf32>
    %cst_118 = arith.constant 1.000000e+00 : f32
    %477 = vector.broadcast %cst_118 : f32 to vector<8x128xf32>
    %478 = arith.addf %477, %476 : vector<8x128xf32>
    %479 = arith.divf %477, %478 : vector<8x128xf32>
    %480 = vector.extract_strided_slice %473 {offsets = [0, 128], sizes = [8, 128], strides = [1, 1]} : vector<8x512xf32> to vector<8x128xf32>
    %481 = arith.negf %480 : vector<8x128xf32>
    %482 = math.exp %481 : vector<8x128xf32>
    %cst_119 = arith.constant 1.000000e+00 : f32
    %483 = vector.broadcast %cst_119 : f32 to vector<8x128xf32>
    %484 = arith.addf %483, %482 : vector<8x128xf32>
    %485 = arith.divf %483, %484 : vector<8x128xf32>
    %486 = vector.extract_strided_slice %473 {offsets = [0, 256], sizes = [8, 128], strides = [1, 1]} : vector<8x512xf32> to vector<8x128xf32>
    %487 = math.tanh %486 : vector<8x128xf32>
    %488 = vector.extract_strided_slice %473 {offsets = [0, 384], sizes = [8, 128], strides = [1, 1]} : vector<8x512xf32> to vector<8x128xf32>
    %489 = arith.negf %488 : vector<8x128xf32>
    %490 = math.exp %489 : vector<8x128xf32>
    %cst_120 = arith.constant 1.000000e+00 : f32
    %491 = vector.broadcast %cst_120 : f32 to vector<8x128xf32>
    %492 = arith.addf %491, %490 : vector<8x128xf32>
    %493 = arith.divf %491, %492 : vector<8x128xf32>
    %494 = arith.mulf %485, %435 : vector<8x128xf32>
    %495 = arith.mulf %479, %487 : vector<8x128xf32>
    %496 = arith.addf %494, %495 : vector<8x128xf32>
    %497 = math.tanh %496 : vector<8x128xf32>
    %498 = arith.mulf %493, %497 : vector<8x128xf32>
    %c8_i32_121 = arith.constant 8 : i32
    %c0_122 = arith.constant 0 : index
    %c0_123 = arith.constant 0 : index
    %499 = vector.load %arg6[%c0_122, %c0_123] : memref<128x128xf32, #tpu.memory_space<vmem>>, vector<128x128xf32>
    %cst_124 = arith.constant dense<0.000000e+00> : vector<8x128xf32>
    %500 = tpu.matmul %498, %499, %cst_124 {dimension_numbers = #tpu.dot_dimension_numbers<[1], [0], [0], [1], [0, 0, 1, 1], [], []>} : vector<8x128xf32>, vector<128x128xf32>, vector<8x128xf32> -> vector<8x128xf32>
    %c0_125 = arith.constant 0 : index
    %c0_126 = arith.constant 0 : index
    %501 = vector.load %arg7[%c0_125, %c0_126] : memref<1x128xf32, #tpu.memory_space<vmem>>, vector<1x128xf32>
    %502 = vector.broadcast %501 : vector<1x128xf32> to vector<8x128xf32>
    %503 = arith.addf %500, %502 : vector<8x128xf32>
    %c0_127 = arith.constant 0 : index
    %c0_128 = arith.constant 0 : index
    %504 = vector.load %arg8[%c0_127, %c0_128] : memref<8x128xf32, #tpu.memory_space<vmem>>, vector<8x128xf32>
    tpu.vector_store %arg8[%c0_127, %c0_128], %503 {strides = array<i32>} : memref<8x128xf32, #tpu.memory_space<vmem>>, vector<8x128xf32>,
    return
  }
}

</mosaic_0001>

<bundles_post_ra>
// kernel: lstm_classifier_forward.1
= control target key start
LH: loop header
LB: loop body
LE: loop exit
PB: predicated region body
PF: predicated region fallthrough
CT: control target
= control target key end

     0   :  { %13 = vsyncpa [#allocation4], 0  ;;  %s8792_s0 = inlined_call_operand.vmem [shape: f32[64,256], index: 0, kind: input, shape index: {}]   ;;  %s8793_s1 = inlined_call_operand.hbm [shape: f32[256,512], index: 1, kind: input, shape index: {}]   ;;  %s8794_s2 = inlined_call_operand.hbm [shape: f32[128,512], index: 2, kind: input, shape index: {}]   ;;  %s8795_s3 = inlined_call_operand.vmem [shape: f32[1,512], index: 3, kind: input, shape index: {}]   ;;  %s8796_s4 = inlined_call_operand.hbm [shape: f32[256,512], index: 4, kind: input, shape index: {}]   ;;  %s8797_s5 = inlined_call_operand.vmem [shape: f32[1,512], index: 5, kind: input, shape index: {}]   ;;  %s8798_s6 = inlined_call_operand.vmem [shape: f32[128,128], index: 6, kind: input, shape index: {}]   ;;  %s8799_s7 = inlined_call_operand.vmem [shape: f32[1,128], index: 7, kind: input, shape index: {}]   ;;  %s8800_s8 = inlined_call_operand.vmem [shape: f32[8,128], index: 8, kind: output, shape index: {}]  }
   0x1   :  { %14 = vsyncpa [#allocation6], 0  ;;  %s34_s29 = sshll.u32 %s8794_s2, 4  ;;  %s4857_s30 = smov [#allocation5]   ;;  %s35_s29 = int_to_ptr.hbm [resolvable:$true] %s34_s29 }
   0x2   :  { %s36_s9 = sshll.u32 %s4857_s30, 4  ;;  %s21_s12 = sshll.u32 %s8793_s1, 4  ;;  %s37_s9 = int_to_ptr.vmem [resolvable:$true] %s36_s9  ;;  %s22_s12 = int_to_ptr.hbm [resolvable:$true] %s21_s12 }
   0x3   :  { %s4858_s13 = smov 512   ;;  %s4859_s14 = smov 32  }
   0x4   :  { %42 = dma.hbm_to_vmem [thread:$0]  %s35_s29, 8192, %s37_s9, [#allocation6], %s4858_s13, %s4858_s13, %s4859_s14  }
   0x5   :  { %s4860_s15 = smov [#allocation3]   ;;  %s49_s19 = sshll.u32 %s8796_s4, 4  ;;  %s50_s19 = int_to_ptr.hbm [resolvable:$true] %s49_s19 }
   0x6   :  { %s23_s16 = sshll.u32 %s4860_s15, 4  ;;  %s4861_s2 = smov [#allocation7]   ;;  %s24_s16 = int_to_ptr.vmem [resolvable:$true] %s23_s16 }
   0x7   :  { %29 = dma.hbm_to_vmem [thread:$0]  %s22_s12, 16384, %s24_s16, [#allocation4], %s4858_s13, %s4858_s13, %s4859_s14  }
   0x8   :  { %s51_s20 = sshll.u32 %s4861_s2, 4  ;;  %s52_s20 = int_to_ptr.vmem [resolvable:$true] %s51_s20 }
   0x9   :  { %57 = dma.hbm_to_vmem [thread:$0]  %s50_s19, 16384, %s52_s20, [#allocation6], %s4858_s13, %s4858_s13, %s4859_s14  }
   0xa   :  { %4853 = dma.done.wait [#allocation4], 16384  }
   0xb   :  { %4854 = vsyncadd [#allocation4], 4294950912 }
   0xc   :  { %4855 = dma.done.wait [#allocation6], 24576  }
   0xd   :  { %4856 = vsyncadd [#allocation6], 4294942720  ;;  %v152_v0 = vld [vmem:[#allocation3 + $0x1e0] sm:$0xff]  ;;  %v153_v2 = vld [vmem:[#allocation3 + $0x1e8] sm:$0xff] }
   0xe   :  { %v216_v1 = vld [vmem:[#allocation3 + $0x3e0] sm:$0xff]  ;;  %230 = vmatpush.msra.mxu0 %v152_v0  ;;  %v217_v3 = vld [vmem:[#allocation3 + $0x3e8] sm:$0xff]  ;;  %312 = vmatpush.msra.mxu2 %v153_v2  ;;  %v154_v2 = vld [vmem:[#allocation3 + $0x1f0] sm:$0xff] }
   0xf   :  { %271 = vmatpush.msra.mxu1 %v216_v1  ;;  %v148_v4 = vld [vmem:[#allocation3 + $0x1c0] sm:$0xff]  ;;  %353 = vmatpush.msra.mxu3 %v217_v3  ;;  %v149_v6 = vld [vmem:[#allocation3 + $0x1c8] sm:$0xff]  ;;  %v218_v3 = vld [vmem:[#allocation3 + $0x3f0] sm:$0xff] }
  0x10   :  { %v212_v5 = vld [vmem:[#allocation3 + $0x3c0] sm:$0xff]  ;;  %v213_v7 = vld [vmem:[#allocation3 + $0x3c8] sm:$0xff]  ;;  %231 = vmatpush.msra.mxu0 %v148_v4  ;;  %313 = vmatpush.msra.mxu2 %v149_v6  ;;  %v219_v4 = vld [vmem:[#allocation3 + $0x3f8] sm:$0xff] }
  0x11   :  { %v144_v8 = vld [vmem:[#allocation3 + $0x1a0] sm:$0xff]  ;;  %272 = vmatpush.msra.mxu1 %v212_v5  ;;  %v145_v10 = vld [vmem:[#allocation3 + $0x1a8] sm:$0xff]  ;;  %354 = vmatpush.msra.mxu3 %v213_v7  ;;  %v155_v5 = vld [vmem:[#allocation3 + $0x1f8] sm:$0xff] }
  0x12   :  { %v208_v9 = vld [vmem:[#allocation3 + $0x3a0] sm:$0xff]  ;;  %v209_v11 = vld [vmem:[#allocation3 + $0x3a8] sm:$0xff]  ;;  %232 = vmatpush.msra.mxu0 %v144_v8  ;;  %314 = vmatpush.msra.mxu2 %v145_v10  ;;  %v150_v6 = vld [vmem:[#allocation3 + $0x1d0] sm:$0xff] }
  0x13   :  { %v140_v12 = vld [vmem:[#allocation3 + $0x180] sm:$0xff]  ;;  %273 = vmatpush.msra.mxu1 %v208_v9  ;;  %v141_v14 = vld [vmem:[#allocation3 + $0x188] sm:$0xff]  ;;  %355 = vmatpush.msra.mxu3 %v209_v11  ;;  %v214_v7 = vld [vmem:[#allocation3 + $0x3d0] sm:$0xff] }
  0x14   :  { %v204_v13 = vld [vmem:[#allocation3 + $0x380] sm:$0xff]  ;;  %v205_v15 = vld [vmem:[#allocation3 + $0x388] sm:$0xff]  ;;  %233 = vmatpush.msra.mxu0 %v140_v12  ;;  %315 = vmatpush.msra.mxu2 %v141_v14  ;;  %v215_v8 = vld [vmem:[#allocation3 + $0x3d8] sm:$0xff] }
  0x15   :  { %v136_v16 = vld [vmem:[#allocation3 + $0x160] sm:$0xff]  ;;  %274 = vmatpush.msra.mxu1 %v204_v13  ;;  %v137_v18 = vld [vmem:[#allocation3 + $0x168] sm:$0xff]  ;;  %356 = vmatpush.msra.mxu3 %v205_v15  ;;  %v151_v9 = vld [vmem:[#allocation3 + $0x1d8] sm:$0xff] }
  0x16   :  { %v200_v17 = vld [vmem:[#allocation3 + $0x360] sm:$0xff]  ;;  %v201_v19 = vld [vmem:[#allocation3 + $0x368] sm:$0xff]  ;;  %234 = vmatpush.msra.mxu0 %v136_v16  ;;  %316 = vmatpush.msra.mxu2 %v137_v18  ;;  %v146_v10 = vld [vmem:[#allocation3 + $0x1b0] sm:$0xff] }
  0x17   :  { %v132_v20 = vld [vmem:[#allocation3 + $0x140] sm:$0xff]  ;;  %275 = vmatpush.msra.mxu1 %v200_v17  ;;  %v133_v22 = vld [vmem:[#allocation3 + $0x148] sm:$0xff]  ;;  %357 = vmatpush.msra.mxu3 %v201_v19  ;;  %v210_v11 = vld [vmem:[#allocation3 + $0x3b0] sm:$0xff] }
  0x18   :  { %v196_v21 = vld [vmem:[#allocation3 + $0x340] sm:$0xff]  ;;  %v197_v23 = vld [vmem:[#allocation3 + $0x348] sm:$0xff]  ;;  %235 = vmatpush.msra.mxu0 %v132_v20  ;;  %317 = vmatpush.msra.mxu2 %v133_v22  ;;  %v211_v12 = vld [vmem:[#allocation3 + $0x3b8] sm:$0xff] }
  0x19   :  { %v128_v24 = vld [vmem:[#allocation3 + $0x120] sm:$0xff]  ;;  %276 = vmatpush.msra.mxu1 %v196_v21  ;;  %v129_v26 = vld [vmem:[#allocation3 + $0x128] sm:$0xff]  ;;  %358 = vmatpush.msra.mxu3 %v197_v23  ;;  %v147_v13 = vld [vmem:[#allocation3 + $0x1b8] sm:$0xff] }
  0x1a   :  { %v192_v25 = vld [vmem:[#allocation3 + $0x320] sm:$0xff]  ;;  %v193_v27 = vld [vmem:[#allocation3 + $0x328] sm:$0xff]  ;;  %236 = vmatpush.msra.mxu0 %v128_v24  ;;  %318 = vmatpush.msra.mxu2 %v129_v26  ;;  %v4934_v14 = vld [vmem:[%s8792_s0 + $0x10] sm:$0xff] }
  0x1b   :  { %v124_v28 = vld [vmem:[#allocation3 + $0x100] sm:$0xff]  ;;  %277 = vmatpush.msra.mxu1 %v192_v25  ;;  %v125_v30 = vld [vmem:[#allocation3 + $0x108] sm:$0xff]  ;;  %359 = vmatpush.msra.mxu3 %v193_v27  ;;  %v4939_v15 = vld [vmem:[%s8792_s0 + $0x18] sm:$0xff] }
  0x1c   :  { %v188_v29 = vld [vmem:[#allocation3 + $0x300] sm:$0xff]  ;;  %v189_v31 = vld [vmem:[#allocation3 + $0x308] sm:$0xff]  ;;  %237 = vmatpush.msra.mxu0 %v124_v28  ;;  %319 = vmatpush.msra.mxu2 %v125_v30  ;;  %v142_v16 = vld [vmem:[#allocation3 + $0x190] sm:$0xff] }
  0x1d   :  { %v120_v32 = vld [vmem:[#allocation3 + $0xe0] sm:$0xff]  ;;  %278 = vmatpush.msra.mxu1 %v188_v29  ;;  %v121_v34 = vld [vmem:[#allocation3 + $0xe8] sm:$0xff]  ;;  %360 = vmatpush.msra.mxu3 %v189_v31  ;;  %v206_v17 = vld [vmem:[#allocation3 + $0x390] sm:$0xff] }
  0x1e   :  { %v184_v33 = vld [vmem:[#allocation3 + $0x2e0] sm:$0xff]  ;;  %v185_v35 = vld [vmem:[#allocation3 + $0x2e8] sm:$0xff]  ;;  %238 = vmatpush.msra.mxu0 %v120_v32  ;;  %320 = vmatpush.msra.mxu2 %v121_v34  ;;  %v207_v18 = vld [vmem:[#allocation3 + $0x398] sm:$0xff] }
  0x1f   :  { %v116_v36 = vld [vmem:[#allocation3 + $0xc0] sm:$0xff]  ;;  %279 = vmatpush.msra.mxu1 %v184_v33  ;;  %v117_v38 = vld [vmem:[#allocation3 + $0xc8] sm:$0xff]  ;;  %361 = vmatpush.msra.mxu3 %v185_v35  ;;  %v143_v19 = vld [vmem:[#allocation3 + $0x198] sm:$0xff] }
  0x20   :  { %v180_v37 = vld [vmem:[#allocation3 + $0x2c0] sm:$0xff]  ;;  %v181_v39 = vld [vmem:[#allocation3 + $0x2c8] sm:$0xff]  ;;  %239 = vmatpush.msra.mxu0 %v116_v36  ;;  %321 = vmatpush.msra.mxu2 %v117_v38  ;;  %v138_v20 = vld [vmem:[#allocation3 + $0x170] sm:$0xff] }
  0x21   :  { %v112_v40 = vld [vmem:[#allocation3 + $0xa0] sm:$0xff]  ;;  %280 = vmatpush.msra.mxu1 %v180_v37  ;;  %v113_v42 = vld [vmem:[#allocation3 + $0xa8] sm:$0xff]  ;;  %362 = vmatpush.msra.mxu3 %v181_v39  ;;  %v202_v21 = vld [vmem:[#allocation3 + $0x370] sm:$0xff] }
  0x22   :  { %v176_v41 = vld [vmem:[#allocation3 + $0x2a0] sm:$0xff]  ;;  %v177_v43 = vld [vmem:[#allocation3 + $0x2a8] sm:$0xff]  ;;  %240 = vmatpush.msra.mxu0 %v112_v40  ;;  %322 = vmatpush.msra.mxu2 %v113_v42  ;;  %v203_v22 = vld [vmem:[#allocation3 + $0x378] sm:$0xff] }
  0x23   :  { %v108_v44 = vld [vmem:[#allocation3 + $0x80] sm:$0xff]  ;;  %281 = vmatpush.msra.mxu1 %v176_v41  ;;  %v109_v46 = vld [vmem:[#allocation3 + $0x88] sm:$0xff]  ;;  %363 = vmatpush.msra.mxu3 %v177_v43  ;;  %v139_v23 = vld [vmem:[#allocation3 + $0x178] sm:$0xff] }
  0x24   :  { %v172_v45 = vld [vmem:[#allocation3 + $0x280] sm:$0xff]  ;;  %v173_v47 = vld [vmem:[#allocation3 + $0x288] sm:$0xff]  ;;  %241 = vmatpush.msra.mxu0 %v108_v44  ;;  %323 = vmatpush.msra.mxu2 %v109_v46  ;;  %v134_v24 = vld [vmem:[#allocation3 + $0x150] sm:$0xff] }
  0x25   :  { %v104_v48 = vld [vmem:[#allocation3 + $0x60] sm:$0xff]  ;;  %282 = vmatpush.msra.mxu1 %v172_v45  ;;  %v105_v50 = vld [vmem:[#allocation3 + $0x68] sm:$0xff]  ;;  %364 = vmatpush.msra.mxu3 %v173_v47  ;;  %v198_v25 = vld [vmem:[#allocation3 + $0x350] sm:$0xff] }
  0x26   :  { %v168_v49 = vld [vmem:[#allocation3 + $0x260] sm:$0xff]  ;;  %v169_v51 = vld [vmem:[#allocation3 + $0x268] sm:$0xff]  ;;  %242 = vmatpush.msra.mxu0 %v104_v48  ;;  %324 = vmatpush.msra.mxu2 %v105_v50  ;;  %v199_v26 = vld [vmem:[#allocation3 + $0x358] sm:$0xff] }
  0x27   :  { %v100_v52 = vld [vmem:[#allocation3 + $0x40] sm:$0xff]  ;;  %283 = vmatpush.msra.mxu1 %v168_v49  ;;  %v101_v54 = vld [vmem:[#allocation3 + $0x48] sm:$0xff]  ;;  %365 = vmatpush.msra.mxu3 %v169_v51  ;;  %v135_v27 = vld [vmem:[#allocation3 + $0x158] sm:$0xff] }
  0x28   :  { %v164_v53 = vld [vmem:[#allocation3 + $0x240] sm:$0xff]  ;;  %v165_v55 = vld [vmem:[#allocation3 + $0x248] sm:$0xff]  ;;  %243 = vmatpush.msra.mxu0 %v100_v52  ;;  %325 = vmatpush.msra.mxu2 %v101_v54  ;;  %v130_v30 = vld [vmem:[#allocation3 + $0x130] sm:$0xff] }
  0x29   :  { %v96_v56 = vld [vmem:[#allocation3 + $0x20] sm:$0xff]  ;;  %284 = vmatpush.msra.mxu1 %v164_v53  ;;  %v97_v58 = vld [vmem:[#allocation3 + $0x28] sm:$0xff]  ;;  %366 = vmatpush.msra.mxu3 %v165_v55  ;;  %v194_v31 = vld [vmem:[#allocation3 + $0x330] sm:$0xff] }
  0x2a   :  { %v160_v57 = vld [vmem:[#allocation3 + $0x220] sm:$0xff]  ;;  %v161_v59 = vld [vmem:[#allocation3 + $0x228] sm:$0xff]  ;;  %244 = vmatpush.msra.mxu0 %v96_v56  ;;  %326 = vmatpush.msra.mxu2 %v97_v58  ;;  %v195_v32 = vld [vmem:[#allocation3 + $0x338] sm:$0xff] }
  0x2b   :  { %v92_v60 = vld [vmem:[#allocation3] sm:$0xff]  ;;  %285 = vmatpush.msra.mxu1 %v160_v57  ;;  %v93_v62 = vld [vmem:[#allocation3 + $0x8] sm:$0xff]  ;;  %367 = vmatpush.msra.mxu3 %v161_v59  ;;  %v131_v33 = vld [vmem:[#allocation3 + $0x138] sm:$0xff] }
  0x2c   :  { %v156_v61 = vld [vmem:[#allocation3 + $0x200] sm:$0xff]  ;;  %v157_v63 = vld [vmem:[#allocation3 + $0x208] sm:$0xff]  ;;  %245 = vmatpush.msra.mxu0 %v92_v60  ;;  %327 = vmatpush.msra.mxu2 %v93_v62  ;;  %v126_v34 = vld [vmem:[#allocation3 + $0x110] sm:$0xff] }
  0x2d   :  { %v4920_v0 = vld [vmem:[%s8792_s0] sm:$0xff]  ;;  %v4925_v1 = vld [vmem:[%s8792_s0 + $0x8] sm:$0xff]  ;;  %286 = vmatpush.msra.mxu1 %v156_v61  ;;  %368 = vmatpush.msra.mxu3 %v157_v63  ;;  %v190_v35 = vld [vmem:[#allocation3 + $0x310] sm:$0xff] }
  0x2e   :  { %246 = vmatmul.f32.vlgmr.msra.gmra.mxu0 %v4920_v0  ;;  %287 = vmatmul.f32.vlgmr.msra.gmra.mxu1 %v4925_v1  ;;  %v4948_v28 = vld [vmem:[%s8792_s0 + $0x20] sm:$0xff]  ;;  %v4953_v29 = vld [vmem:[%s8792_s0 + $0x28] sm:$0xff]  ;;  %v191_v36 = vld [vmem:[#allocation3 + $0x318] sm:$0xff] }
  0x2f   :  { %328 = vmatmul.f32.vlgmr.msra.gmra.mxu2 %v4920_v0  ;;  %369 = vmatmul.f32.vlgmr.msra.gmra.mxu3 %v4925_v1  ;;  %v127_v37 = vld [vmem:[#allocation3 + $0x118] sm:$0xff]  ;;  %v122_v38 = vld [vmem:[#allocation3 + $0xf0] sm:$0xff]  ;;  %v4976_v56 = vld [vmem:[%s8792_s0 + $0x40] sm:$0xff] }
  0x30   :  { %394 = vmatpush.msrb.mxu0 %v154_v2  ;;  %435 = vmatpush.msrb.mxu1 %v218_v3  ;;  %v186_v39 = vld [vmem:[#allocation3 + $0x2f0] sm:$0xff]  ;;  %v187_v40 = vld [vmem:[#allocation3 + $0x2f8] sm:$0xff]  ;;  %v4981_v57 = vld [vmem:[%s8792_s0 + $0x48] sm:$0xff] }
  0x31   :  { %517 = vmatpush.msrb.mxu3 %v219_v4  ;;  %476 = vmatpush.msrb.mxu2 %v155_v5  ;;  %v123_v41 = vld [vmem:[#allocation3 + $0xf8] sm:$0xff]  ;;  %v4962_v42 = vld [vmem:[%s8792_s0 + $0x30] sm:$0xff] }
  0x32   :  { %395 = vmatpush.msrb.mxu0 %v150_v6  ;;  %436 = vmatpush.msrb.mxu1 %v214_v7  ;;  %v4967_v43 = vld [vmem:[%s8792_s0 + $0x38] sm:$0xff]  ;;  %v118_v44 = vld [vmem:[#allocation3 + $0xd0] sm:$0xff] }
  0x33   :  { %518 = vmatpush.msrb.mxu3 %v215_v8  ;;  %477 = vmatpush.msrb.mxu2 %v151_v9  ;;  %v182_v45 = vld [vmem:[#allocation3 + $0x2d0] sm:$0xff]  ;;  %v183_v46 = vld [vmem:[#allocation3 + $0x2d8] sm:$0xff] }
  0x34   :  { %396 = vmatpush.msrb.mxu0 %v146_v10  ;;  %437 = vmatpush.msrb.mxu1 %v210_v11  ;;  %v119_v47 = vld [vmem:[#allocation3 + $0xd8] sm:$0xff]  ;;  %v114_v48 = vld [vmem:[#allocation3 + $0xb0] sm:$0xff] }
  0x35   :  { %519 = vmatpush.msrb.mxu3 %v211_v12  ;;  %478 = vmatpush.msrb.mxu2 %v147_v13  ;;  %v178_v49 = vld [vmem:[#allocation3 + $0x2b0] sm:$0xff]  ;;  %v179_v50 = vld [vmem:[#allocation3 + $0x2b8] sm:$0xff] }
  0x36   :  { %249 = vmatmul.f32.gmra.mxu0 %v4934_v14  ;;  %290 = vmatmul.f32.gmra.mxu1 %v4939_v15  ;;  %v115_v51 = vld [vmem:[#allocation3 + $0xb8] sm:$0xff]  ;;  %v110_v52 = vld [vmem:[#allocation3 + $0x90] sm:$0xff] }
  0x37   :  { %331 = vmatmul.f32.gmra.mxu2 %v4934_v14  ;;  %372 = vmatmul.f32.gmra.mxu3 %v4939_v15  ;;  %v174_v53 = vld [vmem:[#allocation3 + $0x290] sm:$0xff]  ;;  %v175_v54 = vld [vmem:[#allocation3 + $0x298] sm:$0xff] }
  0x38   :  { %397 = vmatpush.msrb.mxu0 %v142_v16  ;;  %438 = vmatpush.msrb.mxu1 %v206_v17  ;;  %v111_v55 = vld [vmem:[#allocation3 + $0x98] sm:$0xff]  ;;  %v106_v58 = vld [vmem:[#allocation3 + $0x70] sm:$0xff]  ;;  %v667_v16 = vld [vmem:[#allocation5 + $0x1e0] sm:$0xff] }
  0x39   :  { %520 = vmatpush.msrb.mxu3 %v207_v18  ;;  %479 = vmatpush.msrb.mxu2 %v143_v19  ;;  %v170_v59 = vld [vmem:[#allocation3 + $0x270] sm:$0xff]  ;;  %v171_v60 = vld [vmem:[#allocation3 + $0x278] sm:$0xff]  ;;  %v5001_v17 = vld [vmem:[#allocation5 + $0x1e8] sm:$0xff] }
  0x3a   :  { %398 = vmatpush.msrb.mxu0 %v138_v20  ;;  %439 = vmatpush.msrb.mxu1 %v202_v21  ;;  %v107_v61 = vld [vmem:[#allocation3 + $0x78] sm:$0xff]  ;;  %v102_v62 = vld [vmem:[#allocation3 + $0x50] sm:$0xff]  ;;  %v663_v19 = vld [vmem:[#allocation5 + $0x1c0] sm:$0xff] }
  0x3b   :  { %521 = vmatpush.msrb.mxu3 %v203_v22  ;;  %480 = vmatpush.msrb.mxu2 %v139_v23  ;;  %v166_v63 = vld [vmem:[#allocation3 + $0x250] sm:$0xff]  ;;  %v167_v2 = vld [vmem:[#allocation3 + $0x258] sm:$0xff]  ;;  %v5005_v20 = vld [vmem:[#allocation5 + $0x1c8] sm:$0xff] }
  0x3c   :  { %399 = vmatpush.msrb.mxu0 %v134_v24  ;;  %440 = vmatpush.msrb.mxu1 %v198_v25  ;;  %v103_v3 = vld [vmem:[#allocation3 + $0x58] sm:$0xff]  ;;  %v98_v4 = vld [vmem:[#allocation3 + $0x30] sm:$0xff]  ;;  %v5013_v23 = vld [vmem:[%s8792_s0 + $0x60] sm:$0xff] }
  0x3d   :  { %522 = vmatpush.msrb.mxu3 %v199_v26  ;;  %481 = vmatpush.msrb.mxu2 %v135_v27  ;;  %v162_v5 = vld [vmem:[#allocation3 + $0x230] sm:$0xff]  ;;  %v99_v6 = vld [vmem:[#allocation3 + $0x38] sm:$0xff]  ;;  %v5018_v24 = vld [vmem:[%s8792_s0 + $0x68] sm:$0xff] }
  0x3e   :  { %252 = vmatmul.f32.gmra.mxu0 %v4948_v28  ;;  %293 = vmatmul.f32.gmra.mxu1 %v4953_v29  ;;  %v163_v7 = vld [vmem:[#allocation3 + $0x238] sm:$0xff]  ;;  %v4990_v8 = vld [vmem:[%s8792_s0 + $0x50] sm:$0xff]  ;;  %v659_v25 = vld [vmem:[#allocation5 + $0x1a0] sm:$0xff] }
  0x3f   :  { %334 = vmatmul.f32.gmra.mxu2 %v4948_v28  ;;  %375 = vmatmul.f32.gmra.mxu3 %v4953_v29  ;;  %v4995_v9 = vld [vmem:[%s8792_s0 + $0x58] sm:$0xff]  ;;  %v94_v10 = vld [vmem:[#allocation3 + $0x10] sm:$0xff]  ;;  %v5022_v26 = vld [vmem:[#allocation5 + $0x1a8] sm:$0xff] }
  0x40   :  { %400 = vmatpush.msrb.mxu0 %v130_v30  ;;  %441 = vmatpush.msrb.mxu1 %v194_v31  ;;  %v158_v11 = vld [vmem:[#allocation3 + $0x210] sm:$0xff]  ;;  %v95_v12 = vld [vmem:[#allocation3 + $0x18] sm:$0xff]  ;;  %v655_v30 = vld [vmem:[#allocation5 + $0x180] sm:$0xff] }
  0x41   :  { %523 = vmatpush.msrb.mxu3 %v195_v32  ;;  %482 = vmatpush.msrb.mxu2 %v131_v33  ;;  %v159_v13 = vld [vmem:[#allocation3 + $0x218] sm:$0xff]  ;;  %v669_v21 = vld [vmem:[#allocation5 + $0x1f0] sm:$0xff]  ;;  %v5031_v31 = vld [vmem:[#allocation5 + $0x188] sm:$0xff] }
  0x42   :  { %401 = vmatpush.msrb.mxu0 %v126_v34  ;;  %442 = vmatpush.msrb.mxu1 %v190_v35  ;;  %v5003_v18 = vld [vmem:[#allocation5 + $0x1f8] sm:$0xff]  ;;  %v665_v33 = vld [vmem:[#allocation5 + $0x1d0] sm:$0xff]  ;;  %v651_v34 = vld [vmem:[#allocation5 + $0x160] sm:$0xff] }
  0x43   :  { %524 = vmatpush.msrb.mxu3 %v191_v36  ;;  %483 = vmatpush.msrb.mxu2 %v127_v37  ;;  %v5008_v22 = vld [vmem:[#allocation5 + $0x1d8] sm:$0xff]  ;;  %v5037_v35 = vld [vmem:[#allocation5 + $0x168] sm:$0xff]  ;;  %v661_v36 = vld [vmem:[#allocation5 + $0x1b0] sm:$0xff] }
  0x44   :  { %402 = vmatpush.msrb.mxu0 %v122_v38  ;;  %443 = vmatpush.msrb.mxu1 %v186_v39  ;;  %v5027_v27 = vld [vmem:[#allocation5 + $0x1b8] sm:$0xff]  ;;  %v5045_v38 = vld [vmem:[%s8792_s0 + $0x70] sm:$0xff] }
  0x45   :  { %525 = vmatpush.msrb.mxu3 %v187_v40  ;;  %484 = vmatpush.msrb.mxu2 %v123_v41  ;;  %v5034_v32 = vld [vmem:[#allocation5 + $0x198] sm:$0xff]  ;;  %v647_v40 = vld [vmem:[#allocation5 + $0x140] sm:$0xff]  ;;  %v5054_v41 = vld [vmem:[#allocation5 + $0x148] sm:$0xff] }
  0x46   :  { %255 = vmatmul.f32.gmra.mxu0 %v4962_v42  ;;  %296 = vmatmul.f32.gmra.mxu1 %v4967_v43  ;;  %v5040_v37 = vld [vmem:[#allocation5 + $0x178] sm:$0xff] }
  0x47   :  { %337 = vmatmul.f32.gmra.mxu2 %v4962_v42  ;;  %378 = vmatmul.f32.gmra.mxu3 %v4967_v43  ;;  %v5050_v39 = vld [vmem:[%s8792_s0 + $0x78] sm:$0xff] }
  0x48   :  { %403 = vmatpush.msrb.mxu0 %v118_v44  ;;  %444 = vmatpush.msrb.mxu1 %v182_v45  ;;  %v643_v44 = vld [vmem:[#allocation5 + $0x120] sm:$0xff]  ;;  %v5061_v45 = vld [vmem:[#allocation5 + $0x128] sm:$0xff] }
  0x49   :  { %526 = vmatpush.msrb.mxu3 %v183_v46  ;;  %485 = vmatpush.msrb.mxu2 %v119_v47  ;;  %v5063_v46 = vld [vmem:[#allocation5 + $0x158] sm:$0xff]  ;;  %v657_v47 = vld [vmem:[#allocation5 + $0x190] sm:$0xff] }
  0x4a   :  { %404 = vmatpush.msrb.mxu0 %v114_v48  ;;  %445 = vmatpush.msrb.mxu1 %v178_v49  ;;  %v639_v48 = vld [vmem:[#allocation5 + $0x100] sm:$0xff]  ;;  %v5067_v49 = vld [vmem:[#allocation5 + $0x108] sm:$0xff] }
  0x4b   :  { %527 = vmatpush.msrb.mxu3 %v179_v50  ;;  %486 = vmatpush.msrb.mxu2 %v115_v51  ;;  %v5069_v50 = vld [vmem:[#allocation5 + $0x138] sm:$0xff]  ;;  %v653_v51 = vld [vmem:[#allocation5 + $0x170] sm:$0xff] }
  0x4c   :  { %405 = vmatpush.msrb.mxu0 %v110_v52  ;;  %446 = vmatpush.msrb.mxu1 %v174_v53  ;;  %v635_v52 = vld [vmem:[#allocation5 + $0xe0] sm:$0xff]  ;;  %v5078_v53 = vld [vmem:[#allocation5 + $0xe8] sm:$0xff] }
  0x4d   :  { %528 = vmatpush.msrb.mxu3 %v175_v54  ;;  %487 = vmatpush.msrb.mxu2 %v111_v55  ;;  %v5080_v54 = vld [vmem:[#allocation5 + $0x118] sm:$0xff]  ;;  %v649_v55 = vld [vmem:[#allocation5 + $0x150] sm:$0xff] }
  0x4e   :  { %258 = vmatmul.f32.gmra.mxu0 %v4976_v56  ;;  %299 = vmatmul.f32.gmra.mxu1 %v4981_v57 }
  0x4f   :  { %340 = vmatmul.f32.gmra.mxu2 %v4976_v56  ;;  %381 = vmatmul.f32.gmra.mxu3 %v4981_v57 }
  0x50   :  { %406 = vmatpush.msrb.mxu0 %v106_v58  ;;  %447 = vmatpush.msrb.mxu1 %v170_v59  ;;  %v631_v58 = vld [vmem:[#allocation5 + $0xc0] sm:$0xff]  ;;  %v5083_v59 = vld [vmem:[#allocation5 + $0xc8] sm:$0xff] }
  0x51   :  { %529 = vmatpush.msrb.mxu3 %v171_v60  ;;  %488 = vmatpush.msrb.mxu2 %v107_v61  ;;  %v5086_v60 = vld [vmem:[#allocation5 + $0xf8] sm:$0xff]  ;;  %v5094_v61 = vld [vmem:[#allocation5 + $0xa8] sm:$0xff] }
  0x52   :  { %407 = vmatpush.msrb.mxu0 %v102_v62  ;;  %448 = vmatpush.msrb.mxu1 %v166_v63  ;;  %v5096_v62 = vld [vmem:[#allocation5 + $0xd8] sm:$0xff]  ;;  %v641_v63 = vld [vmem:[#allocation5 + $0x110] sm:$0xff] }
  0x53   :  { %530 = vmatpush.msrb.mxu3 %v167_v2  ;;  %489 = vmatpush.msrb.mxu2 %v103_v3  ;;  %v623_v2 = vld [vmem:[#allocation5 + $0x80] sm:$0xff]  ;;  %v5099_v3 = vld [vmem:[#allocation5 + $0x88] sm:$0xff] }
  0x54   :  { %408 = vmatpush.msrb.mxu0 %v98_v4  ;;  %449 = vmatpush.msrb.mxu1 %v162_v5  ;;  %v5102_v4 = vld [vmem:[#allocation5 + $0xb8] sm:$0xff]  ;;  %v5110_v5 = vld [vmem:[#allocation5 + $0x68] sm:$0xff] }
  0x55   :  { %490 = vmatpush.msrb.mxu2 %v99_v6  ;;  %531 = vmatpush.msrb.mxu3 %v163_v7  ;;  %v5112_v6 = vld [vmem:[#allocation5 + $0x98] sm:$0xff]  ;;  %v633_v7 = vld [vmem:[#allocation5 + $0xd0] sm:$0xff] }
  0x56   :  { %261 = vmatmul.f32.gmra.mxu0 %v4990_v8  ;;  %302 = vmatmul.f32.gmra.mxu1 %v4995_v9 }
  0x57   :  { %343 = vmatmul.f32.gmra.mxu2 %v4990_v8  ;;  %384 = vmatmul.f32.gmra.mxu3 %v4995_v9 }
  0x58   :  { %409 = vmatpush.msrb.mxu0 %v94_v10  ;;  %450 = vmatpush.msrb.mxu1 %v158_v11  ;;  %v615_v10 = vld [vmem:[#allocation5 + $0x40] sm:$0xff]  ;;  %v5115_v11 = vld [vmem:[#allocation5 + $0x48] sm:$0xff] }
  0x59   :  { %491 = vmatpush.msrb.mxu2 %v95_v12  ;;  %532 = vmatpush.msrb.mxu3 %v159_v13  ;;  %v629_v12 = vld [vmem:[#allocation5 + $0xb0] sm:$0xff]  ;;  %v5118_v13 = vld [vmem:[#allocation5 + $0x78] sm:$0xff] }
  0x5a   :  { %671 = vmatpush.msra.mxu0 %v667_v16  ;;  %691 = vmatpush.msra.mxu1 %v5001_v17  ;;  %v5126_v16 = vld [vmem:[#allocation5 + $0x28] sm:$0xff] }
  0x5b   :  { %731 = vmatpush.msra.mxu3 %v5003_v18  ;;  %711 = vmatpush.msra.mxu2 %v669_v21  ;;  %v5129_v21 = vld [vmem:[#allocation5 + $0x58] sm:$0xff] }
  0x5c   :  { %672 = vmatpush.msra.mxu0 %v663_v19  ;;  %692 = vmatpush.msra.mxu1 %v5005_v20  ;;  %v621_v19 = vld [vmem:[#allocation5 + $0x70] sm:$0xff] }
  0x5d   :  { %732 = vmatpush.msra.mxu3 %v5008_v22  ;;  %712 = vmatpush.msra.mxu2 %v665_v33  ;;  %v5132_v33 = vld [vmem:[#allocation5 + $0x8] sm:$0xff] }
  0x5e   :  { %264 = vmatmul.f32.gmra.mxu0 %v5013_v23  ;;  %305 = vmatmul.f32.gmra.mxu1 %v5018_v24 }
  0x5f   :  { %346 = vmatmul.f32.gmra.mxu2 %v5013_v23  ;;  %387 = vmatmul.f32.gmra.mxu3 %v5018_v24 }
  0x60   :  { %673 = vmatpush.msra.mxu0 %v659_v25  ;;  %693 = vmatpush.msra.mxu1 %v5022_v26  ;;  %v617_v25 = vld [vmem:[#allocation5 + $0x50] sm:$0xff] }
  0x61   :  { %733 = vmatpush.msra.mxu3 %v5027_v27  ;;  %713 = vmatpush.msra.mxu2 %v661_v36  ;;  %v5138_v36 = vld [vmem:[#allocation5 + $0x18] sm:$0xff] }
  0x62   :  { %674 = vmatpush.msra.mxu0 %v655_v30  ;;  %694 = vmatpush.msra.mxu1 %v5031_v31  ;;  %v607_v30 = vld [vmem:[#allocation5] sm:$0xff] }
  0x63   :  { %734 = vmatpush.msra.mxu3 %v5034_v32  ;;  %714 = vmatpush.msra.mxu2 %v657_v47 }
  0x64   :  { %675 = vmatpush.msra.mxu0 %v651_v34  ;;  %695 = vmatpush.msra.mxu1 %v5037_v35  ;;  %v609_v34 = vld [vmem:[#allocation5 + $0x10] sm:$0xff] }
  0x65   :  { %735 = vmatpush.msra.mxu3 %v5040_v37  ;;  %715 = vmatpush.msra.mxu2 %v653_v51 }
  0x66   :  { %267 = vmatmul.f32.gmra.mxu0 %v5045_v38  ;;  %308 = vmatmul.f32.gmra.mxu1 %v5050_v39 }
  0x67   :  { %349 = vmatmul.f32.gmra.mxu2 %v5045_v38  ;;  %390 = vmatmul.f32.gmra.mxu3 %v5050_v39 }
  0x68   :  { %676 = vmatpush.msra.mxu0 %v647_v40  ;;  %696 = vmatpush.msra.mxu1 %v5054_v41 }
  0x69   :  { %736 = vmatpush.msra.mxu3 %v5063_v46  ;;  %716 = vmatpush.msra.mxu2 %v649_v55 }
  0x6a   :  { %677 = vmatpush.msra.mxu0 %v643_v44  ;;  %697 = vmatpush.msra.mxu1 %v5061_v45 }
  0x6b   :  { %737 = vmatpush.msra.mxu3 %v5069_v50 }
  0x6c   :  { %678 = vmatpush.msra.mxu0 %v639_v48  ;;  %698 = vmatpush.msra.mxu1 %v5067_v49 }
  0x6d   :  { %738 = vmatpush.msra.mxu3 %v5080_v54 }
  0x6e   :  { %410 = vmatmul.f32.vlgmr.msrb.gmra.mxu0 %v4920_v0  ;;  %451 = vmatmul.f32.vlgmr.msrb.gmra.mxu1 %v4925_v1 }
  0x6f   :  { %492 = vmatmul.f32.vlgmr.msrb.gmra.mxu2 %v4920_v0  ;;  %533 = vmatmul.f32.vlgmr.msrb.gmra.mxu3 %v4925_v1  ;;  %v645_v0 = vld [vmem:[#allocation5 + $0x130] sm:$0xff]  ;;  %v627_v1 = vld [vmem:[#allocation5 + $0xa0] sm:$0xff] }
  0x70   :  { %679 = vmatpush.msra.mxu0 %v635_v52  ;;  %699 = vmatpush.msra.mxu1 %v5078_v53 }
  0x71   :  { %739 = vmatpush.msra.mxu3 %v5086_v60  ;;  %717 = vmatpush.msra.mxu2 %v645_v0 }
  0x72   :  { %680 = vmatpush.msra.mxu0 %v631_v58  ;;  %700 = vmatpush.msra.mxu1 %v5083_v59 }
  0x73   :  { %740 = vmatpush.msra.mxu3 %v5096_v62  ;;  %718 = vmatpush.msra.mxu2 %v641_v63 }
  0x74   :  { %681 = vmatpush.msra.mxu0 %v627_v1  ;;  %701 = vmatpush.msra.mxu1 %v5094_v61 }
  0x75   :  { %741 = vmatpush.msra.mxu3 %v5102_v4 }
  0x76   :  { %413 = vmatmul.f32.gmra.mxu0 %v4934_v14  ;;  %454 = vmatmul.f32.gmra.mxu1 %v4939_v15 }
  0x77   :  { %495 = vmatmul.f32.gmra.mxu2 %v4934_v14  ;;  %536 = vmatmul.f32.gmra.mxu3 %v4939_v15  ;;  %v637_v14 = vld [vmem:[#allocation5 + $0xf0] sm:$0xff]  ;;  %v619_v15 = vld [vmem:[#allocation5 + $0x60] sm:$0xff] }
  0x78   :  { %682 = vmatpush.msra.mxu0 %v623_v2  ;;  %702 = vmatpush.msra.mxu1 %v5099_v3 }
  0x79   :  { %719 = vmatpush.msra.mxu2 %v637_v14  ;;  %742 = vmatpush.msra.mxu3 %v5112_v6 }
  0x7a   :  { %683 = vmatpush.msra.mxu0 %v619_v15  ;;  %703 = vmatpush.msra.mxu1 %v5110_v5 }
  0x7b   :  { %720 = vmatpush.msra.mxu2 %v633_v7  ;;  %743 = vmatpush.msra.mxu3 %v5118_v13 }
  0x7c   :  { %684 = vmatpush.msra.mxu0 %v615_v10  ;;  %704 = vmatpush.msra.mxu1 %v5115_v11 }
  0x7d   :  { %721 = vmatpush.msra.mxu2 %v629_v12  ;;  %744 = vmatpush.msra.mxu3 %v5129_v21 }
  0x7e   :  { %416 = vmatmul.f32.gmra.mxu0 %v4948_v28  ;;  %457 = vmatmul.f32.gmra.mxu1 %v4953_v29 }
  0x7f   :  { %498 = vmatmul.f32.gmra.mxu2 %v4948_v28  ;;  %539 = vmatmul.f32.gmra.mxu3 %v4953_v29  ;;  %v625_v28 = vld [vmem:[#allocation5 + $0x90] sm:$0xff]  ;;  %v611_v29 = vld [vmem:[#allocation5 + $0x20] sm:$0xff] }
  0x80   :  { %722 = vmatpush.msra.mxu2 %v625_v28  ;;  %685 = vmatpush.msra.mxu0 %v611_v29  ;;  %v5209_v28 = vld [vmem:[#allocation7 + $0x3e0] sm:$0xff]  ;;  %v5211_v29 = vld [vmem:[#allocation7 + $0x3e8] sm:$0xff] }
  0x81   :  { %705 = vmatpush.msra.mxu1 %v5126_v16 }
  0x82   :  { %723 = vmatpush.msra.mxu2 %v621_v19  ;;  %686 = vmatpush.msra.mxu0 %v607_v30  ;;  %v5219_v30 = vld [vmem:[#allocation7 + $0x3c0] sm:$0xff] }
  0x83   :  { %706 = vmatpush.msra.mxu1 %v5132_v33 }
  0x84   :  { %724 = vmatpush.msra.mxu2 %v617_v25 }
  0x85   :  { %966 = vmatpush.msrb.mxu1 %v5209_v28 }
  0x86   :  { %419 = vmatmul.f32.gmra.mxu0 %v4962_v42  ;;  %460 = vmatmul.f32.gmra.mxu1 %v4967_v43 }
  0x87   :  { %501 = vmatmul.f32.gmra.mxu2 %v4962_v42  ;;  %542 = vmatmul.f32.gmra.mxu3 %v4967_v43  ;;  %v613_v42 = vld [vmem:[#allocation5 + $0x30] sm:$0xff]  ;;  %v5135_v43 = vld [vmem:[#allocation5 + $0x38] sm:$0xff] }
  0x88   :  { %745 = vmatpush.msra.mxu3 %v5135_v43  ;;  %725 = vmatpush.msra.mxu2 %v613_v42  ;;  %v5221_v42 = vld [vmem:[#allocation7 + $0x3c8] sm:$0xff] }
  0x89   :  { %967 = vmatpush.msrb.mxu1 %v5219_v30 }
  0x8a   :  { %726 = vmatpush.msra.mxu2 %v609_v34  ;;  %746 = vmatpush.msra.mxu3 %v5138_v36  ;;  %v5225_v34 = vld [vmem:[#allocation7 + $0x3a0] sm:$0xff] }
  0x8b   :  { %968 = vmatpush.msrb.mxu1 %v5225_v34 }
  0x8c   :  { %1006 = vmatpush.msrb.mxu3 %v5211_v29 }
  0x8e   :  { %422 = vmatmul.f32.gmra.mxu0 %v4976_v56  ;;  %463 = vmatmul.f32.gmra.mxu1 %v4981_v57 }
  0x8f   :  { %504 = vmatmul.f32.gmra.mxu2 %v4976_v56  ;;  %545 = vmatmul.f32.gmra.mxu3 %v4981_v57 }
  0x90   :  { %1007 = vmatpush.msrb.mxu3 %v5221_v42 }
  0x96   :  { %425 = vmatmul.f32.gmra.mxu0 %v4990_v8  ;;  %466 = vmatmul.f32.gmra.mxu1 %v4995_v9 }
  0x97   :  { %507 = vmatmul.f32.gmra.mxu2 %v4990_v8  ;;  %548 = vmatmul.f32.gmra.mxu3 %v4995_v9  ;;  %v8801_v8 = vmov 0.0  }
  0x9e   :  { %428 = vmatmul.f32.gmra.mxu0 %v5013_v23  ;;  %469 = vmatmul.f32.gmra.mxu1 %v5018_v24 }
  0x9f   :  { %510 = vmatmul.f32.gmra.mxu2 %v5013_v23  ;;  %551 = vmatmul.f32.gmra.mxu3 %v5018_v24 }
  0xa6   :  { %431 = vmatmul.f32.gmra.mxu0 %v5045_v38  ;;  %472 = vmatmul.f32.gmra.mxu1 %v5050_v39 }
  0xa7   :  { %513 = vmatmul.f32.gmra.mxu2 %v5045_v38  ;;  %554 = vmatmul.f32.gmra.mxu3 %v5050_v39 }
  0xab   :  { %v5157_v56 = vpop.f32.mrf.mxu0  ;;  %v5159_v57 = vpop.f32.mrf.mxu1 }
  0xae   :  { %687 = vmatmul.f32.vlgmr.msra.gmra.mxu0 %v8801_v8  ;;  %707 = vmatmul.f32.vlgmr.msra.gmra.mxu1 %v8801_v8 }
  0xaf   :  { %727 = vmatmul.f32.vlgmr.msra.gmra.mxu2 %v8801_v8  ;;  %747 = vmatmul.f32.vlgmr.msra.gmra.mxu3 %v8801_v8  ;;  %v5227_v8 = vld [vmem:[#allocation7 + $0x3a8] sm:$0xff] }
  0xb0   :  { %1008 = vmatpush.msrb.mxu3 %v5227_v8 }
  0xb2   :  { %v5165_v9 = vpop.f32.mrf.mxu2  ;;  %v5167_v23 = vpop.f32.mrf.mxu3 }
  0xb3   :  { %v5169_v24 = vpop.f32.mrf.mxu0  ;;  %v5171_v38 = vpop.f32.mrf.mxu1 }
  0xb4   :  { %9298 = vst [vmem:[#allocation10_spill] sm:$0xff] %v5169_v24  ;;  %v5297_v24 = vld [vmem:[#allocation7 + $0x288] sm:$0xff] }
  0xb5   :  { %9299 = vst [vmem:[#allocation11_spill] sm:$0xff] %v5171_v38  ;;  %v5293_v38 = vld [vmem:[#allocation7 + $0x280] sm:$0xff] }
  0xb6   :  { %9335 = vst [vmem:[#allocation47_spill] sm:$0xff] %v5293_v38 }
  0xb7   :  { %9336 = vst [vmem:[#allocation48_spill] sm:$0xff] %v5297_v24 }
  0xba   :  { %v5173_v39 = vpop.f32.mrf.mxu2  ;;  %v5175_v40 = vpop.f32.mrf.mxu3 }
  0xbb   :  { %9300 = vst [vmem:[#allocation12_spill] sm:$0xff] %v5173_v39  ;;  %v5177_v44 = vpop.f32.mrf.mxu0  ;;  %v5179_v47 = vpop.f32.mrf.mxu1 }
  0xbc   :  { %9301 = vst [vmem:[#allocation13_spill] sm:$0xff] %v5175_v40 }
  0xbd   :  { %9302 = vst [vmem:[#allocation14_spill] sm:$0xff] %v5177_v44 }
  0xbe   :  { %9303 = vst [vmem:[#allocation15_spill] sm:$0xff] %v5179_v47 }
  0xc2   :  { %v5181_v48 = vpop.f32.mrf.mxu2  ;;  %v5183_v51 = vpop.f32.mrf.mxu3 }
  0xc3   :  { %9304 = vst [vmem:[#allocation16_spill] sm:$0xff] %v5181_v48  ;;  %v5185_v52 = vpop.f32.mrf.mxu0  ;;  %v5187_v55 = vpop.f32.mrf.mxu1  ;;  %v5285_v48 = vld [vmem:[#allocation7 + $0x2c8] sm:$0xff] }
  0xc4   :  { %9305 = vst [vmem:[#allocation17_spill] sm:$0xff] %v5183_v51  ;;  %v5283_v51 = vld [vmem:[#allocation7 + $0x2c0] sm:$0xff] }
  0xc5   :  { %9306 = vst [vmem:[#allocation18_spill] sm:$0xff] %v5185_v52 }
  0xc6   :  { %9307 = vst [vmem:[#allocation19_spill] sm:$0xff] %v5187_v55  ;;  %v5261_v55 = vld [vmem:[#allocation7 + $0x300] sm:$0xff] }
  0xc7   :  { %9325 = vst [vmem:[#allocation37_spill] sm:$0xff] %v5261_v55 }
  0xc8   :  { %9331 = vst [vmem:[#allocation43_spill] sm:$0xff] %v5283_v51 }
  0xc9   :  { %9332 = vst [vmem:[#allocation44_spill] sm:$0xff] %v5285_v48 }
  0xca   :  { %v5189_v58 = vpop.f32.mrf.mxu2  ;;  %v5191_v0 = vpop.f32.mrf.mxu3 }
  0xcb   :  { %9308 = vst [vmem:[#allocation20_spill] sm:$0xff] %v5189_v58  ;;  %v5193_v1 = vpop.f32.mrf.mxu0  ;;  %v5195_v63 = vpop.f32.mrf.mxu1  ;;  %v5275_v58 = vld [vmem:[#allocation7 + $0x2e8] sm:$0xff] }
  0xcc   :  { %9309 = vst [vmem:[#allocation21_spill] sm:$0xff] %v5191_v0  ;;  %v5273_v0 = vld [vmem:[#allocation7 + $0x2e0] sm:$0xff] }
  0xcd   :  { %9310 = vst [vmem:[#allocation22_spill] sm:$0xff] %v5193_v1 }
  0xce   :  { %9311 = vst [vmem:[#allocation23_spill] sm:$0xff] %v5195_v63 }
  0xcf   :  { %9329 = vst [vmem:[#allocation41_spill] sm:$0xff] %v5273_v0 }
  0xd0   :  { %9330 = vst [vmem:[#allocation42_spill] sm:$0xff] %v5275_v58 }
  0xd2   :  { %v5197_v2 = vpop.f32.mrf.mxu2  ;;  %v5199_v14 = vpop.f32.mrf.mxu3 }
  0xd3   :  { %9312 = vst [vmem:[#allocation24_spill] sm:$0xff] %v5197_v2  ;;  %v5201_v15 = vpop.f32.mrf.mxu0  ;;  %v5203_v7 = vpop.f32.mrf.mxu1  ;;  %v5253_v2 = vld [vmem:[#allocation7 + $0x348] sm:$0xff] }
  0xd4   :  { %9313 = vst [vmem:[#allocation25_spill] sm:$0xff] %v5199_v14  ;;  %v5251_v14 = vld [vmem:[#allocation7 + $0x340] sm:$0xff] }
  0xd5   :  { %9314 = vst [vmem:[#allocation26_spill] sm:$0xff] %v5201_v15 }
  0xd6   :  { %9315 = vst [vmem:[#allocation27_spill] sm:$0xff] %v5203_v7  ;;  %v5229_v7 = vld [vmem:[#allocation7 + $0x380] sm:$0xff] }
  0xd7   :  { %969 = vmatpush.msrb.mxu1 %v5229_v7 }
  0xda   :  { %v5205_v10 = vpop.f32.mrf.mxu2  ;;  %v5207_v12 = vpop.f32.mrf.mxu3 }
  0xdb   :  { %9316 = vst [vmem:[#allocation28_spill] sm:$0xff] %v5205_v10  ;;  %v5213_v19 = vpop.f32.mrf.mxu0  ;;  %v5215_v25 = vpop.f32.mrf.mxu1  ;;  %v5243_v10 = vld [vmem:[#allocation7 + $0x368] sm:$0xff] }
  0xdc   :  { %9317 = vst [vmem:[#allocation29_spill] sm:$0xff] %v5207_v12  ;;  %v5241_v12 = vld [vmem:[#allocation7 + $0x360] sm:$0xff] }
  0xdd   :  { %9318 = vst [vmem:[#allocation30_spill] sm:$0xff] %v5213_v19  ;;  %970 = vmatpush.msrb.mxu1 %v5241_v12 }
  0xde   :  { %9319 = vst [vmem:[#allocation31_spill] sm:$0xff] %v5215_v25  ;;  %v5233_v25 = vld [vmem:[#allocation7 + $0x388] sm:$0xff] }
  0xdf   :  { %1009 = vmatpush.msrb.mxu3 %v5233_v25  ;;  %971 = vmatpush.msrb.mxu1 %v5251_v14 }
  0xe1   :  { %1010 = vmatpush.msrb.mxu3 %v5243_v10 }
  0xe2   :  { %v5237_v19 = vpop.f32.mrf.mxu2  ;;  %v5239_v15 = vpop.f32.mrf.mxu3 }
  0xe3   :  { %9320 = vst [vmem:[#allocation32_spill] sm:$0xff] %v5237_v19  ;;  %v5245_v63 = vpop.f32.mrf.mxu0  ;;  %v5247_v1 = vpop.f32.mrf.mxu1  ;;  %1011 = vmatpush.msrb.mxu3 %v5253_v2  ;;  %v5259_v19 = vld [vmem:[#allocation7 + $0x328] sm:$0xff] }
  0xe4   :  { %9321 = vst [vmem:[#allocation33_spill] sm:$0xff] %v5239_v15  ;;  %v5257_v15 = vld [vmem:[#allocation7 + $0x320] sm:$0xff] }
  0xe5   :  { %9322 = vst [vmem:[#allocation34_spill] sm:$0xff] %v5245_v63  ;;  %972 = vmatpush.msrb.mxu1 %v5257_v15  ;;  %1012 = vmatpush.msrb.mxu3 %v5259_v19 }
  0xe6   :  { %9323 = vst [vmem:[#allocation35_spill] sm:$0xff] %v5247_v1  ;;  %v5265_v1 = vld [vmem:[#allocation7 + $0x308] sm:$0xff] }
  0xe7   :  { %9324 = vst [vmem:[#allocation36_spill] sm:$0xff] %v5259_v19  ;;  %973 = vmatpush.msrb.mxu1 %v5261_v55  ;;  %1013 = vmatpush.msrb.mxu3 %v5265_v1  ;;  %v5355_v55 = vld [vmem:[#allocation7 + $0x1c8] sm:$0xff]  ;;  %v5527_v19 = vld [vmem:[#allocation7 + $0x250] sm:$0xff] }
  0xe8   :  { %9326 = vst [vmem:[#allocation38_spill] sm:$0xff] %v5265_v1  ;;  %v5325_v1 = vld [vmem:[#allocation7 + $0x200] sm:$0xff] }
  0xe9   :  { %974 = vmatpush.msrb.mxu1 %v5273_v0  ;;  %1014 = vmatpush.msrb.mxu3 %v5275_v58  ;;  %9345 = vst [vmem:[#allocation57_spill] sm:$0xff] %v5325_v1 }
  0xea   :  { %v5269_v63 = vpop.f32.mrf.mxu2  ;;  %v5271_v52 = vpop.f32.mrf.mxu3  ;;  %9356 = vst [vmem:[#allocation68_spill] sm:$0xff] %v5355_v55 }
  0xeb   :  { %9327 = vst [vmem:[#allocation39_spill] sm:$0xff] %v5269_v63  ;;  %v5277_v47 = vpop.f32.mrf.mxu0  ;;  %v5279_v44 = vpop.f32.mrf.mxu1  ;;  %975 = vmatpush.msrb.mxu1 %v5283_v51  ;;  %1015 = vmatpush.msrb.mxu3 %v5285_v48  ;;  %v5291_v63 = vld [vmem:[#allocation7 + $0x2a8] sm:$0xff]  ;;  %v5305_v48 = vld [vmem:[#allocation7 + $0x260] sm:$0xff] }
  0xec   :  { %9328 = vst [vmem:[#allocation40_spill] sm:$0xff] %v5271_v52  ;;  %v5289_v52 = vld [vmem:[#allocation7 + $0x2a0] sm:$0xff]  ;;  %v5307_v51 = vld [vmem:[#allocation7 + $0x268] sm:$0xff] }
  0xed   :  { %9333 = vst [vmem:[#allocation45_spill] sm:$0xff] %v5289_v52  ;;  %976 = vmatpush.msrb.mxu1 %v5289_v52  ;;  %1016 = vmatpush.msrb.mxu3 %v5291_v63  ;;  %v5323_v52 = vld [vmem:[#allocation7 + $0x228] sm:$0xff] }
  0xee   :  { %9334 = vst [vmem:[#allocation46_spill] sm:$0xff] %v5291_v63  ;;  %v5315_v63 = vld [vmem:[#allocation7 + $0x240] sm:$0xff] }
  0xef   :  { %977 = vmatpush.msrb.mxu1 %v5293_v38  ;;  %1017 = vmatpush.msrb.mxu3 %v5297_v24  ;;  %9337 = vst [vmem:[#allocation49_spill] sm:$0xff] %v5305_v48  ;;  %v5317_v38 = vld [vmem:[#allocation7 + $0x248] sm:$0xff]  ;;  %v5321_v24 = vld [vmem:[#allocation7 + $0x220] sm:$0xff] }
  0xf0   :  { %9338 = vst [vmem:[#allocation50_spill] sm:$0xff] %v5307_v51 }
  0xf1   :  { %978 = vmatpush.msrb.mxu1 %v5305_v48  ;;  %1018 = vmatpush.msrb.mxu3 %v5307_v51  ;;  %9341 = vst [vmem:[#allocation53_spill] sm:$0xff] %v5315_v63 }
  0xf2   :  { %v5301_v40 = vpop.f32.mrf.mxu2  ;;  %v5303_v39 = vpop.f32.mrf.mxu3  ;;  %9342 = vst [vmem:[#allocation54_spill] sm:$0xff] %v5317_v38 }
  0xf3   :  { %v5309_v58 = vpop.f32.mrf.mxu0  ;;  %v5311_v0 = vpop.f32.mrf.mxu1  ;;  %979 = vmatpush.msrb.mxu1 %v5315_v63  ;;  %1019 = vmatpush.msrb.mxu3 %v5317_v38  ;;  %9343 = vst [vmem:[#allocation55_spill] sm:$0xff] %v5321_v24  ;;  %v5335_v63 = vld [vmem:[#allocation7 + $0x1e8] sm:$0xff]  ;;  %v5337_v38 = vld [vmem:[#allocation7 + $0x3f0] sm:$0xff] }
  0xf4   :  { %9339 = vst [vmem:[#allocation51_spill] sm:$0xff] %v5309_v58  ;;  %v5333_v58 = vld [vmem:[#allocation7 + $0x1e0] sm:$0xff]  ;;  %986 = vmatpush.msrb.mxu2 %v5335_v63 }
  0xf5   :  { %9340 = vst [vmem:[#allocation52_spill] sm:$0xff] %v5311_v0  ;;  %980 = vmatpush.msrb.mxu1 %v5321_v24  ;;  %1020 = vmatpush.msrb.mxu3 %v5323_v52  ;;  %v5329_v0 = vld [vmem:[#allocation7 + $0x208] sm:$0xff] }
  0xf6   :  { %9344 = vst [vmem:[#allocation56_spill] sm:$0xff] %v5323_v52  ;;  %946 = vmatpush.msrb.mxu0 %v5333_v58  ;;  %v5345_v52 = vld [vmem:[#allocation7 + $0x3f8] sm:$0xff]  ;;  %987 = vmatpush.msrb.mxu2 %v5355_v55  ;;  %v5377_v55 = vld [vmem:[#allocation7 + $0x188] sm:$0xff] }
  0xf7   :  { %9346 = vst [vmem:[#allocation58_spill] sm:$0xff] %v5329_v0  ;;  %981 = vmatpush.msrb.mxu1 %v5325_v1  ;;  %1021 = vmatpush.msrb.mxu3 %v5329_v0  ;;  %v5353_v0 = vld [vmem:[#allocation7 + $0x1c0] sm:$0xff] }
  0xf8   :  { %9347 = vst [vmem:[#allocation59_spill] sm:$0xff] %v5333_v58  ;;  %947 = vmatpush.msrb.mxu0 %v5353_v0  ;;  %v5373_v58 = vld [vmem:[#allocation7 + $0x3b8] sm:$0xff] }
  0xf9   :  { %9348 = vst [vmem:[#allocation60_spill] sm:$0xff] %v5335_v63  ;;  %1046 = vmatpush.msra.mxu1 %v5337_v38  ;;  %1086 = vmatpush.msra.mxu3 %v5345_v52  ;;  %v5369_v63 = vld [vmem:[#allocation7 + $0x3b0] sm:$0xff] }
  0xfa   :  { %9349 = vst [vmem:[#allocation61_spill] sm:$0xff] %v5337_v38  ;;  %v5339_v51 = vpop.f32.mrf.mxu2  ;;  %v5341_v48 = vpop.f32.mrf.mxu3  ;;  %v5411_v38 = vld [vmem:[#allocation7 + $0x148] sm:$0xff] }
  0xfb   :  { %9350 = vst [vmem:[#allocation62_spill] sm:$0xff] %v5339_v51  ;;  %v5347_v24 = vpop.f32.mrf.mxu0  ;;  %v5349_v1 = vpop.f32.mrf.mxu1  ;;  %v5357_v51 = vld [vmem:[#allocation7 + $0x3d0] sm:$0xff] }
  0xfc   :  { %9351 = vst [vmem:[#allocation63_spill] sm:$0xff] %v5341_v48  ;;  %v5361_v48 = vld [vmem:[#allocation7 + $0x3d8] sm:$0xff]  ;;  %1047 = vmatpush.msra.mxu1 %v5357_v51 }
  0xfd   :  { %9352 = vst [vmem:[#allocation64_spill] sm:$0xff] %v5345_v52  ;;  %1087 = vmatpush.msra.mxu3 %v5361_v48  ;;  %v5393_v52 = vld [vmem:[#allocation7 + $0x370] sm:$0xff] }
  0xfe   :  { %9353 = vst [vmem:[#allocation65_spill] sm:$0xff] %v5347_v24  ;;  %v5367_v24 = vld [vmem:[#allocation7 + $0x1a8] sm:$0xff]  ;;  %1048 = vmatpush.msra.mxu1 %v5369_v63 }
  0xff   :  { %9354 = vst [vmem:[#allocation66_spill] sm:$0xff] %v5349_v1  ;;  %v5365_v1 = vld [vmem:[#allocation7 + $0x1a0] sm:$0xff]  ;;  %988 = vmatpush.msrb.mxu2 %v5367_v24  ;;  %1088 = vmatpush.msra.mxu3 %v5373_v58 }
 0x100   :  { %9355 = vst [vmem:[#allocation67_spill] sm:$0xff] %v5353_v0  ;;  %948 = vmatpush.msrb.mxu0 %v5365_v1  ;;  %v5375_v0 = vld [vmem:[#allocation7 + $0x180] sm:$0xff] }
 0x101   :  { %9357 = vst [vmem:[#allocation69_spill] sm:$0xff] %v5357_v51  ;;  %v5383_v51 = vld [vmem:[#allocation7 + $0x398] sm:$0xff]  ;;  %989 = vmatpush.msrb.mxu2 %v5377_v55 }
 0x102   :  { %9358 = vst [vmem:[#allocation70_spill] sm:$0xff] %v5361_v48  ;;  %v5381_v48 = vld [vmem:[#allocation7 + $0x390] sm:$0xff]  ;;  %949 = vmatpush.msrb.mxu0 %v5375_v0  ;;  %1089 = vmatpush.msra.mxu3 %v5383_v51 }
 0x103   :  { %9359 = vst [vmem:[#allocation71_spill] sm:$0xff] %v5365_v1  ;;  %1049 = vmatpush.msra.mxu1 %v5381_v48  ;;  %v5391_v1 = vld [vmem:[#allocation7 + $0x168] sm:$0xff] }
 0x104   :  { %9360 = vst [vmem:[#allocation72_spill] sm:$0xff] %v5367_v24  ;;  %v5389_v24 = vld [vmem:[#allocation7 + $0x160] sm:$0xff]  ;;  %990 = vmatpush.msrb.mxu2 %v5391_v1 }
 0x105   :  { %9361 = vst [vmem:[#allocation73_spill] sm:$0xff] %v5369_v63  ;;  %v5395_v63 = vpop.f32.mrf.mxu2  ;;  %950 = vmatpush.msrb.mxu0 %v5389_v24  ;;  %1050 = vmatpush.msra.mxu1 %v5393_v52 }
 0x106   :  { %9362 = vst [vmem:[#allocation74_spill] sm:$0xff] %v5373_v58  ;;  %v5397_v58 = vpop.f32.mrf.mxu3  ;;  %991 = vmatpush.msrb.mxu2 %v5411_v38 }
 0x107   :  { %9363 = vst [vmem:[#allocation75_spill] sm:$0xff] %v5375_v0  ;;  %v5401_v0 = vld [vmem:[#allocation7 + $0x378] sm:$0xff] }
 0x108   :  { %9364 = vst [vmem:[#allocation76_spill] sm:$0xff] %v5377_v55  ;;  %v5403_v55 = vpop.f32.mrf.mxu0  ;;  %1090 = vmatpush.msra.mxu3 %v5401_v0 }
 0x109   :  { %9365 = vst [vmem:[#allocation77_spill] sm:$0xff] %v5381_v48  ;;  %v5405_v48 = vpop.f32.mrf.mxu1 }
 0x10a   :  { %9366 = vst [vmem:[#allocation78_spill] sm:$0xff] %v5383_v51  ;;  %v5409_v51 = vld [vmem:[#allocation7 + $0x140] sm:$0xff] }
 0x10b   :  { %9367 = vst [vmem:[#allocation79_spill] sm:$0xff] %v5389_v24  ;;  %951 = vmatpush.msrb.mxu0 %v5409_v51  ;;  %v5429_v24 = vld [vmem:[#allocation7 + $0x338] sm:$0xff] }
 0x10c   :  { %9368 = vst [vmem:[#allocation80_spill] sm:$0xff] %v5391_v1  ;;  %v5425_v1 = vld [vmem:[#allocation7 + $0x330] sm:$0xff] }
 0x10d   :  { %9369 = vst [vmem:[#allocation81_spill] sm:$0xff] %v5393_v52  ;;  %v5467_v52 = vld [vmem:[#allocation7 + $0xc8] sm:$0xff] }
 0x10e   :  { %9370 = vst [vmem:[#allocation82_spill] sm:$0xff] %v5395_v63  ;;  %v5413_v63 = vld [vmem:[#allocation7 + $0x350] sm:$0xff] }
 0x10f   :  { %9371 = vst [vmem:[#allocation83_spill] sm:$0xff] %v5397_v58  ;;  %v5417_v58 = vld [vmem:[#allocation7 + $0x358] sm:$0xff]  ;;  %1051 = vmatpush.msra.mxu1 %v5413_v63 }
 0x110   :  { %9372 = vst [vmem:[#allocation84_spill] sm:$0xff] %v5401_v0  ;;  %1091 = vmatpush.msra.mxu3 %v5417_v58  ;;  %v5449_v0 = vld [vmem:[#allocation7 + $0x2f0] sm:$0xff] }
 0x111   :  { %9373 = vst [vmem:[#allocation85_spill] sm:$0xff] %v5403_v55  ;;  %v5423_v55 = vld [vmem:[#allocation7 + $0x128] sm:$0xff]  ;;  %1052 = vmatpush.msra.mxu1 %v5425_v1 }
 0x112   :  { %9374 = vst [vmem:[#allocation86_spill] sm:$0xff] %v5405_v48  ;;  %v5421_v48 = vld [vmem:[#allocation7 + $0x120] sm:$0xff]  ;;  %992 = vmatpush.msrb.mxu2 %v5423_v55  ;;  %1092 = vmatpush.msra.mxu3 %v5429_v24 }
 0x113   :  { %9375 = vst [vmem:[#allocation87_spill] sm:$0xff] %v5409_v51  ;;  %952 = vmatpush.msrb.mxu0 %v5421_v48  ;;  %v5431_v51 = vld [vmem:[#allocation7 + $0x100] sm:$0xff] }
 0x114   :  { %9376 = vst [vmem:[#allocation88_spill] sm:$0xff] %v5411_v38  ;;  %v5433_v38 = vld [vmem:[#allocation7 + $0x108] sm:$0xff] }
 0x115   :  { %9377 = vst [vmem:[#allocation89_spill] sm:$0xff] %v5413_v63  ;;  %v5439_v63 = vld [vmem:[#allocation7 + $0x318] sm:$0xff]  ;;  %953 = vmatpush.msrb.mxu0 %v5431_v51  ;;  %993 = vmatpush.msrb.mxu2 %v5433_v38 }
 0x116   :  { %9378 = vst [vmem:[#allocation90_spill] sm:$0xff] %v5417_v58  ;;  %v5437_v58 = vld [vmem:[#allocation7 + $0x310] sm:$0xff]  ;;  %1093 = vmatpush.msra.mxu3 %v5439_v63 }
 0x117   :  { %9379 = vst [vmem:[#allocation91_spill] sm:$0xff] %v5421_v48  ;;  %1053 = vmatpush.msra.mxu1 %v5437_v58  ;;  %v5447_v48 = vld [vmem:[#allocation7 + $0xe8] sm:$0xff] }
 0x118   :  { %9380 = vst [vmem:[#allocation92_spill] sm:$0xff] %v5423_v55  ;;  %v5445_v55 = vld [vmem:[#allocation7 + $0xe0] sm:$0xff]  ;;  %994 = vmatpush.msrb.mxu2 %v5447_v48 }
 0x119   :  { %9381 = vst [vmem:[#allocation93_spill] sm:$0xff] %v5425_v1  ;;  %v5451_v1 = vpop.f32.mrf.mxu2  ;;  %954 = vmatpush.msrb.mxu0 %v5445_v55  ;;  %1054 = vmatpush.msra.mxu1 %v5449_v0 }
 0x11a   :  { %9382 = vst [vmem:[#allocation94_spill] sm:$0xff] %v5429_v24  ;;  %v5453_v24 = vpop.f32.mrf.mxu3  ;;  %995 = vmatpush.msrb.mxu2 %v5467_v52 }
 0x11b   :  { %9383 = vst [vmem:[#allocation95_spill] sm:$0xff] %v5431_v51  ;;  %v5457_v51 = vld [vmem:[#allocation7 + $0x2f8] sm:$0xff] }
 0x11c   :  { %9384 = vst [vmem:[#allocation96_spill] sm:$0xff] %v5433_v38  ;;  %v5459_v38 = vpop.f32.mrf.mxu0  ;;  %1094 = vmatpush.msra.mxu3 %v5457_v51 }
 0x11d   :  { %9385 = vst [vmem:[#allocation97_spill] sm:$0xff] %v5437_v58  ;;  %v5461_v58 = vpop.f32.mrf.mxu1 }
 0x11e   :  { %9386 = vst [vmem:[#allocation98_spill] sm:$0xff] %v5439_v63  ;;  %v5465_v63 = vld [vmem:[#allocation7 + $0xc0] sm:$0xff] }
 0x11f   :  { %9387 = vst [vmem:[#allocation99_spill] sm:$0xff] %v5445_v55  ;;  %955 = vmatpush.msrb.mxu0 %v5465_v63  ;;  %v5485_v55 = vld [vmem:[#allocation7 + $0x2b8] sm:$0xff] }
 0x120   :  { %9388 = vst [vmem:[#allocation100_spill] sm:$0xff] %v5447_v48  ;;  %v5481_v48 = vld [vmem:[#allocation7 + $0x2b0] sm:$0xff] }
 0x121   :  { %9389 = vst [vmem:[#allocation101_spill] sm:$0xff] %v5449_v0  ;;  %v5525_v0 = vld [vmem:[#allocation7 + $0x48] sm:$0xff] }
 0x122   :  { %9390 = vst [vmem:[#allocation102_spill] sm:$0xff] %v5451_v1  ;;  %v5469_v1 = vld [vmem:[#allocation7 + $0x2d0] sm:$0xff] }
 0x123   :  { %9391 = vst [vmem:[#allocation103_spill] sm:$0xff] %v5453_v24  ;;  %v5473_v24 = vld [vmem:[#allocation7 + $0x2d8] sm:$0xff]  ;;  %1055 = vmatpush.msra.mxu1 %v5469_v1 }
 0x124   :  { %9392 = vst [vmem:[#allocation104_spill] sm:$0xff] %v5457_v51  ;;  %1095 = vmatpush.msra.mxu3 %v5473_v24  ;;  %v9410_v51 = vmov 0.0  }
 0x125   :  { %9393 = vst [vmem:[#allocation105_spill] sm:$0xff] %v5459_v38  ;;  %v5479_v38 = vld [vmem:[#allocation7 + $0xa8] sm:$0xff]  ;;  %1056 = vmatpush.msra.mxu1 %v5481_v48  ;;  %1022 = vmatmul.f32.vlgmr.msrb.gmra.mxu3 %v9410_v51 }
 0x126   :  { %9394 = vst [vmem:[#allocation106_spill] sm:$0xff] %v5461_v58  ;;  %v5477_v58 = vld [vmem:[#allocation7 + $0xa0] sm:$0xff]  ;;  %996 = vmatpush.msrb.mxu2 %v5479_v38  ;;  %1096 = vmatpush.msra.mxu3 %v5485_v55 }
 0x127   :  { %9395 = vst [vmem:[#allocation107_spill] sm:$0xff] %v5465_v63  ;;  %956 = vmatpush.msrb.mxu0 %v5477_v58  ;;  %v5491_v63 = vld [vmem:[#allocation7 + $0x88] sm:$0xff]  ;;  %982 = vmatmul.f32.vlgmr.msrb.gmra.mxu1 %v9410_v51 }
 0x128   :  { %9396 = vst [vmem:[#allocation108_spill] sm:$0xff] %v5467_v52  ;;  %v5489_v52 = vld [vmem:[#allocation7 + $0x80] sm:$0xff]  ;;  %997 = vmatpush.msrb.mxu2 %v5491_v63 }
 0x129   :  { %9397 = vst [vmem:[#allocation109_spill] sm:$0xff] %v5469_v1  ;;  %957 = vmatpush.msrb.mxu0 %v5489_v52  ;;  %v5497_v1 = vld [vmem:[#allocation7 + $0x298] sm:$0xff] }
 0x12a   :  { %9398 = vst [vmem:[#allocation110_spill] sm:$0xff] %v5473_v24  ;;  %v5493_v24 = vld [vmem:[#allocation7 + $0x290] sm:$0xff]  ;;  %1097 = vmatpush.msra.mxu3 %v5497_v1 }
 0x12b   :  { %9399 = vst [vmem:[#allocation111_spill] sm:$0xff] %v5477_v58  ;;  %1057 = vmatpush.msra.mxu1 %v5493_v24  ;;  %v5503_v58 = vld [vmem:[#allocation7 + $0x60] sm:$0xff] }
 0x12c   :  { %9400 = vst [vmem:[#allocation112_spill] sm:$0xff] %v5479_v38  ;;  %v5501_v38 = vpop.f32.mrf.mxu3  ;;  %958 = vmatpush.msrb.mxu0 %v5503_v58 }
 0x12d   :  { %9401 = vst [vmem:[#allocation113_spill] sm:$0xff] %v5481_v48  ;;  %v5507_v48 = vld [vmem:[#allocation7 + $0x270] sm:$0xff] }
 0x12e   :  { %9402 = vst [vmem:[#allocation114_spill] sm:$0xff] %v5485_v55  ;;  %v5505_v55 = vld [vmem:[#allocation7 + $0x68] sm:$0xff]  ;;  %1058 = vmatpush.msra.mxu1 %v5507_v48 }
 0x12f   :  { %9403 = vst [vmem:[#allocation115_spill] sm:$0xff] %v5489_v52  ;;  %v5511_v52 = vpop.f32.mrf.mxu0  ;;  %998 = vmatpush.msrb.mxu2 %v5505_v55 }
 0x130   :  { %9404 = vst [vmem:[#allocation116_spill] sm:$0xff] %v5491_v63  ;;  %v5513_v63 = vpop.f32.mrf.mxu1  ;;  %1059 = vmatpush.msra.mxu1 %v5527_v19 }
 0x131   :  { %9405 = vst [vmem:[#allocation117_spill] sm:$0xff] %v5493_v24  ;;  %v5523_v24 = vld [vmem:[#allocation7 + $0x40] sm:$0xff]  ;;  %999 = vmatpush.msrb.mxu2 %v5525_v0 }
 0x132   :  { %9406 = vst [vmem:[#allocation118_spill] sm:$0xff] %v5497_v1  ;;  %v5517_v1 = vld [vmem:[#allocation7 + $0x278] sm:$0xff]  ;;  %959 = vmatpush.msrb.mxu0 %v5523_v24 }
 0x133   :  { %9407 = vst [vmem:[#allocation119_spill] sm:$0xff] %v5501_v38  ;;  %v5519_v38 = vpop.f32.mrf.mxu2  ;;  %1098 = vmatpush.msra.mxu3 %v5517_v1 }
 0x134   :  { %9408 = vst [vmem:[#allocation120_spill] sm:$0xff] %v5503_v58  ;;  %v5543_v58 = vld [vmem:[#allocation7 + $0x238] sm:$0xff] }
 0x135   :  { %9409 = vst [vmem:[#allocation121_spill] sm:$0xff] %v5505_v55  ;;  %v5539_v55 = vld [vmem:[#allocation7 + $0x230] sm:$0xff] }
 0x136   :  { %9411 = vst [vmem:[#allocation122_spill] sm:$0xff] %v5511_v52  ;;  %v5535_v52 = vld [vmem:[#allocation7 + $0x20] sm:$0xff]  ;;  %1060 = vmatpush.msra.mxu1 %v5539_v55 }
 0x137   :  { %9412 = vst [vmem:[#allocation123_spill] sm:$0xff] %v5513_v63  ;;  %v5531_v63 = vld [vmem:[#allocation7 + $0x258] sm:$0xff]  ;;  %960 = vmatpush.msrb.mxu0 %v5535_v52 }
 0x138   :  { %9413 = vst [vmem:[#allocation124_spill] sm:$0xff] %v5517_v1  ;;  %1099 = vmatpush.msra.mxu3 %v5531_v63  ;;  %v5561_v1 = vpop.f32.mrf.mxu3 }
 0x139   :  { %9414 = vst [vmem:[#allocation125_spill] sm:$0xff] %v5519_v38  ;;  %v5537_v38 = vld [vmem:[#allocation7 + $0x28] sm:$0xff] }
 0x13a   :  { %9415 = vst [vmem:[#allocation126_spill] sm:$0xff] %v5523_v24  ;;  %1000 = vmatpush.msrb.mxu2 %v5537_v38  ;;  %1100 = vmatpush.msra.mxu3 %v5543_v58  ;;  %v5549_v24 = vld [vmem:[#allocation7 + $0x8] sm:$0xff] }
 0x13b   :  { %9416 = vst [vmem:[#allocation127_spill] sm:$0xff] %v5525_v0  ;;  %v5547_v0 = vld [vmem:[#allocation7] sm:$0xff] }
 0x13c   :  { %9417 = vst [vmem:[#allocation128_spill] sm:$0xff] %v5527_v19  ;;  %961 = vmatpush.msrb.mxu0 %v5547_v0  ;;  %1001 = vmatpush.msrb.mxu2 %v5549_v24  ;;  %v5555_v19 = vld [vmem:[#allocation7 + $0x218] sm:$0xff] }
 0x13d   :  { %9418 = vst [vmem:[#allocation129_spill] sm:$0xff] %v5531_v63  ;;  %v5551_v63 = vld [vmem:[#allocation7 + $0x210] sm:$0xff]  ;;  %1101 = vmatpush.msra.mxu3 %v5555_v19 }
 0x13e   :  { %9419 = vst [vmem:[#allocation130_spill] sm:$0xff] %v5535_v52  ;;  %v5557_v52 = vld [vmem:[#allocation7 + $0x1f0] sm:$0xff]  ;;  %1061 = vmatpush.msra.mxu1 %v5551_v63  ;;  %1102 = vmatmul.f32.vlgmr.msra.gmra.mxu3 %v9410_v51 }
 0x13f   :  { %9420 = vst [vmem:[#allocation131_spill] sm:$0xff] %v5537_v38  ;;  %v5559_v38 = vld [vmem:[#allocation7 + $0x1f8] sm:$0xff]  ;;  %1026 = vmatpush.msra.mxu0 %v5557_v52  ;;  %1236 = vmatpush.msrb.mxu3 %v5003_v18  ;;  %v5594_v18 = vld [vmem:[#allocation7 + $0x190] sm:$0xff] }
 0x140   :  { %9421 = vst [vmem:[#allocation132_spill] sm:$0xff] %v5539_v55  ;;  %v5567_v55 = vpop.f32.mrf.mxu1  ;;  %1066 = vmatpush.msra.mxu2 %v5559_v38  ;;  %1196 = vmatpush.msrb.mxu1 %v5001_v17  ;;  %v5590_v17 = vld [vmem:[%s8795_s3] sm:$0xf] }
 0x141   :  { %9422 = vst [vmem:[#allocation133_spill] sm:$0xff] %v5543_v58  ;;  %v5565_v58 = vpop.f32.mrf.mxu0  ;;  %1237 = vmatpush.msrb.mxu3 %v5008_v22  ;;  %v5604_v22 = vld [vmem:[#allocation7 + $0x178] sm:$0xff]  ;;  %1062 = vmatmul.f32.vlgmr.msra.gmra.mxu1 %v9410_v51 }
 0x142   :  { %9423 = vst [vmem:[#allocation134_spill] sm:$0xff] %v5547_v0  ;;  %v5573_v0 = vld [vmem:[#allocation7 + $0x1d8] sm:$0xff]  ;;  %1197 = vmatpush.msrb.mxu1 %v5005_v20  ;;  %v5602_v20 = vld [vmem:[#allocation7 + $0x170] sm:$0xff] }
 0x143   :  { %9424 = vst [vmem:[#allocation135_spill] sm:$0xff] %v5549_v24  ;;  %v5571_v24 = vld [vmem:[#allocation7 + $0x1d0] sm:$0xff]  ;;  %1067 = vmatpush.msra.mxu2 %v5573_v0  ;;  %1238 = vmatpush.msrb.mxu3 %v5027_v27 }
 0x144   :  { %9425 = vst [vmem:[#allocation136_spill] sm:$0xff] %v5561_v1  ;;  %1027 = vmatpush.msra.mxu0 %v5571_v24  ;;  %v5579_v1 = vld [vmem:[#allocation7 + $0x1b0] sm:$0xff]  ;;  %1198 = vmatpush.msrb.mxu1 %v5022_v26 }
 0x145   :  { %9426 = vst [vmem:[#allocation137_spill] sm:$0xff] %v5565_v58  ;;  %v5581_v58 = vld [vmem:[#allocation7 + $0x1b8] sm:$0xff]  ;;  %1239 = vmatpush.msrb.mxu3 %v5034_v32 }
 0x146   :  { %9427 = vst [vmem:[#allocation138_spill] sm:$0xff] %v5567_v55  ;;  %v5583_v55 = vpop.f32.mrf.mxu2  ;;  %1028 = vmatpush.msra.mxu0 %v5579_v1  ;;  %1068 = vmatpush.msra.mxu2 %v5581_v58  ;;  %v5632_v32 = vld [vmem:[#allocation7 + $0x138] sm:$0xff] }
 0x147   :  { %9428 = vst [vmem:[#allocation139_spill] sm:$0xff] %v5573_v0  ;;  %v5596_v0 = vld [vmem:[#allocation7 + $0x198] sm:$0xff]  ;;  %1199 = vmatpush.msrb.mxu1 %v5031_v31  ;;  %1240 = vmatpush.msrb.mxu3 %v5040_v37  ;;  %v5630_v31 = vld [vmem:[#allocation7 + $0x130] sm:$0xff] }
 0x148   :  { %9429 = vst [vmem:[#allocation140_spill] sm:$0xff] %v5579_v1  ;;  %1029 = vmatpush.msra.mxu0 %v5594_v18  ;;  %1069 = vmatpush.msra.mxu2 %v5596_v0  ;;  %v5612_v1 = vpop.f32.mrf.mxu3  ;;  %v5618_v27 = vpop.f32.mrf.mxu1  ;;  %v5644_v37 = vld [vmem:[#allocation7 + $0x118] sm:$0xff] }
 0x149   :  { %9430 = vst [vmem:[#allocation141_spill] sm:$0xff] %v5581_v58  ;;  %v5610_v58 = vperm.slane %v5590_v17, 1  ;;  %v5616_v26 = vpop.f32.mrf.mxu0  ;;  %1200 = vmatpush.msrb.mxu1 %v5037_v35  ;;  %1241 = vmatpush.msrb.mxu3 %v5063_v46  ;;  %v5642_v35 = vld [vmem:[#allocation7 + $0x110] sm:$0xff]  ;;  %v5657_v46 = vld [vmem:[#allocation7 + $0xf8] sm:$0xff] }
 0x14a   :  { %9431 = vst [vmem:[#allocation142_spill] sm:$0xff] %v5583_v55  ;;  %v5607_v55 = vperm.slane %v5590_v17, 0  ;;  %1030 = vmatpush.msra.mxu0 %v5602_v20  ;;  %1070 = vmatpush.msra.mxu2 %v5604_v22 }
 0x14b   :  { %9432 = vst [vmem:[#allocation143_spill] sm:$0xff] %v5594_v18  ;;  %v5624_v18 = vld [vmem:[#allocation7 + $0x158] sm:$0xff]  ;;  %1201 = vmatpush.msrb.mxu1 %v5054_v41  ;;  %1242 = vmatpush.msrb.mxu3 %v5069_v50  ;;  %v5655_v41 = vld [vmem:[#allocation7 + $0xf0] sm:$0xff] }
 0x14c   :  { %9433 = vst [vmem:[#allocation144_spill] sm:$0xff] %v5596_v0  ;;  %v5622_v0 = vld [vmem:[#allocation7 + $0x150] sm:$0xff]  ;;  %1071 = vmatpush.msra.mxu2 %v5624_v18 }
 0x14d   :  { %9434 = vst [vmem:[#allocation145_spill] sm:$0xff] %v5607_v55  ;;  %1031 = vmatpush.msra.mxu0 %v5622_v0  ;;  %1202 = vmatpush.msrb.mxu1 %v5061_v45 }
 0x14e   :  { %9435 = vst [vmem:[#allocation146_spill] sm:$0xff] %v5610_v58  ;;  %1072 = vmatpush.msra.mxu2 %v5632_v32  ;;  %1243 = vmatpush.msrb.mxu3 %v5080_v54  ;;  %v5677_v54 = vld [vmem:[#allocation7 + $0xb0] sm:$0xff] }
 0x14f   :  { %9436 = vst [vmem:[#allocation147_spill] sm:$0xff] %v5612_v1  ;;  %1032 = vmatpush.msra.mxu0 %v5630_v31  ;;  %v5646_v1 = vpop.f32.mrf.mxu2  ;;  %1203 = vmatpush.msrb.mxu1 %v5067_v49 }
 0x150   :  { %9437 = vst [vmem:[#allocation148_spill] sm:$0xff] %v5616_v26  ;;  %v330_v26 = vadd.f32 %v5165_v9, %v5610_v58  ;;  %1073 = vmatpush.msra.mxu2 %v5644_v37  ;;  %v708_v50 = vpop.f32.mrf.mxu1  ;;  %v5667_v58 = vld [vmem:[#allocation7 + $0xd0] sm:$0xff]  ;;  %1244 = vmatpush.msrb.mxu3 %v5086_v60  ;;  %v5687_v60 = vld [vmem:[#allocation7 + $0x98] sm:$0xff] }
 0x151   :  { %9438 = vst [vmem:[#allocation149_spill] sm:$0xff] %v5618_v27  ;;  %v248_v27 = vadd.f32 %v5157_v56, %v5607_v55  ;;  %v5651_v56 = vperm.slane %v5590_v17, 3  ;;  %1033 = vmatpush.msra.mxu0 %v5642_v35  ;;  %v688_v45 = vpop.f32.mrf.mxu0  ;;  %1204 = vmatpush.msrb.mxu1 %v5078_v53  ;;  %v5685_v53 = vld [vmem:[#allocation7 + $0x90] sm:$0xff] }
 0x152   :  { %9439 = vst [vmem:[#allocation150_spill] sm:$0xff] %v5642_v35  ;;  %v371_v55 = vadd.f32 %v5167_v23, %v330_v26  ;;  %1074 = vmatpush.msra.mxu2 %v5657_v46  ;;  %v5679_v23 = vld [vmem:[#allocation7 + $0xb8] sm:$0xff]  ;;  %1245 = vmatpush.msrb.mxu3 %v5096_v62 }
 0x153   :  { %9440 = vst [vmem:[#allocation151_spill] sm:$0xff] %v5644_v37  ;;  %v289_v9 = vadd.f32 %v5159_v57, %v248_v27  ;;  %1034 = vmatpush.msra.mxu0 %v5655_v41  ;;  %v5669_v37 = vld [vmem:[#allocation7 + $0xd8] sm:$0xff]  ;;  %v494_v49 = vadd.f32 %v5301_v40, %v5651_v56  ;;  %1205 = vmatpush.msrb.mxu1 %v5083_v59  ;;  %v5694_v59 = vld [vmem:[#allocation7 + $0x70] sm:$0xff] }
 0x154   :  { %9441 = vst [vmem:[#allocation152_spill] sm:$0xff] %v5646_v1  ;;  %v5661_v1 = vpop.f32.mrf.mxu3  ;;  %v752_v57 = vadd.f32 %v708_v50, %v371_v55  ;;  %1075 = vmatpush.msra.mxu2 %v5669_v37  ;;  %1246 = vmatpush.msrb.mxu3 %v5102_v4  ;;  %v5696_v62 = vld [vmem:[#allocation7 + $0x78] sm:$0xff]  ;;  %v5704_v4 = vld [vmem:[#allocation7 + $0x50] sm:$0xff] }
 0x155   :  { %9442 = vst [vmem:[#allocation153_spill] sm:$0xff] %v5651_v56  ;;  %v751_v35 = vadd.f32 %v688_v45, %v289_v9  ;;  %1035 = vmatpush.msra.mxu0 %v5667_v58  ;;  %1206 = vmatpush.msrb.mxu1 %v5094_v61  ;;  %v535_v40 = vadd.f32 %v5303_v39, %v494_v49  ;;  %v5706_v39 = vld [vmem:[#allocation7 + $0x58] sm:$0xff]  ;;  %v5711_v9 = vperm.slane %v5590_v17, 2  ;;  %v5723_v17 = vld [vmem:[#allocation7 + $0x10] sm:$0xff] }
 0x156   :  { %9443 = vst [vmem:[#allocation154_spill] sm:$0xff] %v5661_v1  ;;  %v3863_v27 = vmul.f32 -1.442695, %v752_v57  ;;  %1076 = vmatpush.msra.mxu2 %v5679_v23  ;;  %1247 = vmatpush.msrb.mxu3 %v5112_v6  ;;  %v5717_v6 = vld [vmem:[#allocation7 + $0x38] sm:$0xff]  ;;  %v5892_v1 = vld [vmem:[#allocation5 + $0x40] sm:$0xff] }
 0x157   :  { %v3862_v26 = vmul.f32 -1.442695, %v751_v35  ;;  %1036 = vmatpush.msra.mxu0 %v5677_v54  ;;  %v5698_v55 = vpop.f32.mrf.mxu2  ;;  %1207 = vmatpush.msrb.mxu1 %v5099_v3  ;;  %v5715_v3 = vld [vmem:[#allocation7 + $0x30] sm:$0xff]  ;;  %v412_v49 = vadd.f32 %v5277_v47, %v5711_v9 }
 0x158   :  { %1077 = vmatpush.msra.mxu2 %v5687_v60  ;;  %9444 = vst [vmem:[#allocation155_spill] sm:$0xff] %v5698_v55  ;;  %1248 = vmatpush.msrb.mxu3 %v5118_v13  ;;  %v5896_v55 = vld [vmem:[#allocation5 + $0x50] sm:$0xff] }
 0x159   :  { %3917 = vpow2.f32 %v3862_v26  ;;  %1037 = vmatpush.msra.mxu0 %v5685_v53  ;;  %1208 = vmatpush.msrb.mxu1 %v5110_v5  ;;  %v5725_v5 = vld [vmem:[#allocation7 + $0x18] sm:$0xff] }
 0x15a   :  { %3919 = vpow2.f32 %v3863_v27  ;;  %1078 = vmatpush.msra.mxu2 %v5696_v62  ;;  %1249 = vmatpush.msrb.mxu3 %v5129_v21 }
 0x15b   :  { %1038 = vmatpush.msra.mxu0 %v5694_v59  ;;  %1209 = vmatpush.msrb.mxu1 %v5115_v11 }
 0x15c   :  { %v748_v35 = vpop.f32.mrf.mxu3  ;;  %1079 = vmatpush.msra.mxu2 %v5706_v39  ;;  %1250 = vmatpush.msrb.mxu3 %v5135_v43 }
 0x15d   :  { %v754_v61 = vadd.f32 %v748_v35, %v535_v40  ;;  %1039 = vmatpush.msra.mxu0 %v5704_v4  ;;  %1210 = vmatpush.msrb.mxu1 %v5126_v16  ;;  %v453_v16 = vadd.f32 %v5279_v44, %v412_v49 }
 0x15e   :  { %1080 = vmatpush.msra.mxu2 %v5717_v6  ;;  %1251 = vmatpush.msrb.mxu3 %v5138_v36 }
 0x15f   :  { %v3864_v45 = vmul.f32 -1.442695, %v754_v61  ;;  %v3918_v51 = vpop.eup %3917  ;;  %1040 = vmatpush.msra.mxu0 %v5715_v3  ;;  %1211 = vmatpush.msrb.mxu1 %v5132_v33  ;;  %v728_v11 = vpop.f32.mrf.mxu2 }
 0x160   :  { %v3920_v50 = vpop.eup %3919  ;;  %v758_v57 = vadd.f32 1.0, %v3918_v51  ;;  %1081 = vmatpush.msra.mxu2 %v5725_v5  ;;  %1383 = vmatpush.msra.mxu3 %v5211_v29  ;;  %v753_v26 = vadd.f32 %v728_v11, %v453_v16  ;;  %v9445_v51 = vld [vmem:[#allocation36_spill] sm:$0xff]  ;;  %v9446_v11 = vld [vmem:[#allocation37_spill] sm:$0xff] }
 0x161   :  { %3921 = vpow2.f32 %v3864_v45  ;;  %v5727_v13 = vadd.f32 1.0, %v3920_v50  ;;  %1041 = vmatpush.msra.mxu0 %v5723_v17  ;;  %1343 = vmatpush.msra.mxu1 %v5209_v28 }
 0x162   :  { %3923 = vrcp.f32 %v758_v57  ;;  %1384 = vmatpush.msra.mxu3 %v5221_v42  ;;  %v770_v29 = vand.u32 2147483648, %v758_v57  ;;  %v768_v40 = vand.u32 2147483647, %v758_v57  ;;  %vm764_vm2 = vweird.f32 %v758_v57 }
 0x163   :  { %3925 = vrcp.f32 %v5727_v13  ;;  %1344 = vmatpush.msra.mxu1 %v5219_v30  ;;  %v789_v30 = vand.u32 2147483648, %v5727_v13  ;;  %vm783_vm3 = vweird.f32 %v5727_v13 }
 0x164   :  { %1385 = vmatpush.msra.mxu3 %v5227_v8  ;;  %vm769_vm5 = vcmp.eq.f32.partialorder %v768_v40, 8.507059e+37 }
 0x165   :  { %1345 = vmatpush.msra.mxu1 %v5225_v34  ;;  %v787_v34 = vand.u32 2147483647, %v5727_v13  ;;  %v790_v45 = vor.u32 1.1754944e-38, %v789_v30  ;;  %v9452_v30 = vld [vmem:[#allocation45_spill] sm:$0xff] }
 0x166   :  { %1386 = vmatpush.msra.mxu3 %v5233_v25  ;;  %v771_v25 = vor.u32 1.1754944e-38, %v770_v29 }
 0x167   :  { %v3922_v21 = vpop.eup %3921  ;;  %1346 = vmatpush.msra.mxu1 %v5229_v7  ;;  %vm788_vm7 = vcmp.eq.f32.partialorder %v787_v34, 8.507059e+37  ;;  %v9455_v34 = vld [vmem:[#allocation48_spill] sm:$0xff] }
 0x168   :  { %v5743_v47 = vadd.f32 1.0, %v3922_v21  ;;  %v3924_v43 = vpop.eup %3923  ;;  %1387 = vmatpush.msra.mxu3 %v5243_v10  ;;  %v9447_v21 = vld [vmem:[#allocation38_spill] sm:$0xff] }
 0x169   :  { %v3926_v27 = vpop.eup %3925  ;;  %v760_v33 = vmul.f32 %v3924_v43, %v758_v57  ;;  %vm765_vm0 = vweird.f32 %v3924_v43  ;;  %1347 = vmatpush.msra.mxu1 %v5241_v12 }
 0x16a   :  { %3927 = vrcp.f32 %v5743_v47  ;;  %v779_v36 = vmul.f32 %v3926_v27, %v5727_v13  ;;  %vm784_vm1 = vweird.f32 %v3926_v27  ;;  %1388 = vmatpush.msra.mxu3 %v5253_v2  ;;  %vm766_vm4 = vmor %vm764_vm2, %vm765_vm0  ;;  %vm803_vm9 = vweird.f32 %v5743_v47 }
 0x16b   :  { %v761_v28 = vsub.f32 1.0, %v760_v33  ;;  %3929 = vtanh.f32 %v753_v26  ;;  %1348 = vmatpush.msra.mxu1 %v5251_v14  ;;  %vm785_vm6 = vmor %vm783_vm3, %vm784_vm1  ;;  %v9448_v26 = vld [vmem:[#allocation41_spill] sm:$0xff]  ;;  %v9449_v33 = vld [vmem:[#allocation42_spill] sm:$0xff]  ;;  %v807_v29 = vand.u32 2147483647, %v5743_v47 }
 0x16c   :  { %v780_v44 = vsub.f32 1.0, %v779_v36  ;;  %1389 = vmatpush.msra.mxu3 %v9445_v51  ;;  %v9459_v51 = vld [vmem:[#allocation54_spill] sm:$0xff]  ;;  %9485 = vst [vmem:[#allocation41_spill] sm:$0xff] %v5892_v1 }
 0x16d   :  { %v762_v42 = vmul.f32 %v3924_v43, %v761_v28  ;;  %1349 = vmatpush.msra.mxu1 %v5257_v15  ;;  %v9450_v28 = vld [vmem:[#allocation43_spill] sm:$0xff]  ;;  %vm808_vm11 = vcmp.eq.f32.partialorder %v807_v29, 8.507059e+37  ;;  %v9466_v29 = vld [vmem:[#allocation69_spill] sm:$0xff]  ;;  %9487 = vst [vmem:[#allocation42_spill] sm:$0xff] %v5896_v55 }
 0x16e   :  { %v781_v8 = vmul.f32 %v3926_v27, %v780_v44  ;;  %1390 = vmatpush.msra.mxu3 %v9447_v21  ;;  %v809_v44 = vand.u32 2147483648, %v5743_v47  ;;  %v5808_v21 = vld [vmem:[#allocation5 + $0x1b0] sm:$0xff] }
 0x16f   :  { %v763_v7 = vadd.f32 %v3924_v43, %v762_v42  ;;  %1350 = vmatpush.msra.mxu1 %v9446_v11  ;;  %v9453_v42 = vld [vmem:[#allocation46_spill] sm:$0xff]  ;;  %v9462_v11 = vld [vmem:[#allocation57_spill] sm:$0xff] }
 0x170   :  { %v3928_v35 = vpop.eup %3927  ;;  %v782_v61 = vadd.f32 %v3926_v27, %v781_v8  ;;  %1391 = vmatpush.msra.mxu3 %v9449_v33  ;;  %v9454_v8 = vld [vmem:[#allocation47_spill] sm:$0xff]  ;;  %v5816_v33 = vld [vmem:[#allocation5 + $0x190] sm:$0xff] }
 0x171   :  { %v799_v12 = vmul.f32 %v3928_v35, %v5743_v47  ;;  %v767_v10 = vsel %vm766_vm4, %v3924_v43, %v763_v7  ;;  %v3930_v50 = vpop.eup %3929  ;;  %1351 = vmatpush.msra.mxu1 %v9448_v26  ;;  %vm804_vm8 = vweird.f32 %v3928_v35  ;;  %v810_v7 = vor.u32 1.1754944e-38, %v809_v44  ;;  %v9458_v47 = vld [vmem:[#allocation53_spill] sm:$0xff]  ;;  %v5828_v44 = vld [vmem:[#allocation5 + $0x140] sm:$0xff] }
 0x172   :  { %v772_v14 = vsel %vm769_vm5, %v771_v25, %v767_v10  ;;  %v786_v57 = vsel %vm785_vm6, %v3926_v27, %v782_v61  ;;  %v9451_v27 = vld [vmem:[#allocation44_spill] sm:$0xff]  ;;  %vm805_vm10 = vmor %vm803_vm9, %vm804_vm8  ;;  %v9456_v25 = vld [vmem:[#allocation49_spill] sm:$0xff] }
 0x173   :  { %v800_v2 = vsub.f32 1.0, %v799_v12  ;;  %v791_v13 = vsel %vm788_vm7, %v790_v45, %v786_v57  ;;  %v814_v49 = vmul.f32 %v3930_v50, %v772_v14  ;;  %1352 = vmatpush.msra.mxu1 %v9450_v28  ;;  %1392 = vmatpush.msra.mxu3 %v9451_v27  ;;  %v9457_v61 = vld [vmem:[#allocation50_spill] sm:$0xff]  ;;  %v5792_v50 = vld [vmem:[#allocation5 + $0x1f0] sm:$0xff]  ;;  %v9460_v57 = vld [vmem:[#allocation55_spill] sm:$0xff] }
 0x174   :  { %v813_v16 = vmul.f32 0.0, %v791_v13  ;;  %v5796_v14 = vld [vmem:[#allocation5 + $0x1c0] sm:$0xff]  ;;  %v9461_v13 = vld [vmem:[#allocation56_spill] sm:$0xff]  ;;  %v9464_v26 = vld [vmem:[#allocation61_spill] sm:$0xff] }
 0x175   :  { %v801_v43 = vmul.f32 %v3928_v35, %v800_v2  ;;  %1353 = vmatpush.msra.mxu1 %v9452_v30  ;;  %1393 = vmatpush.msra.mxu3 %v9453_v42  ;;  %v5800_v2 = vld [vmem:[#allocation5 + $0x1d0] sm:$0xff]  ;;  %v9467_v42 = vld [vmem:[#allocation70_spill] sm:$0xff] }
 0x176   :  { %v5768_v15 = vadd.f32 %v814_v49, %v813_v16  ;;  %v5804_v49 = vld [vmem:[#allocation5 + $0x1a0] sm:$0xff]  ;;  %v5824_v28 = vld [vmem:[#allocation5 + $0x170] sm:$0xff] }
 0x177   :  { %v802_v36 = vadd.f32 %v3928_v35, %v801_v43  ;;  %1354 = vmatpush.msra.mxu1 %v9454_v8  ;;  %1394 = vmatpush.msra.mxu3 %v9455_v34  ;;  %v9463_v16 = vld [vmem:[#allocation58_spill] sm:$0xff]  ;;  %v9465_v27 = vld [vmem:[#allocation64_spill] sm:$0xff]  ;;  %v9468_v8 = vld [vmem:[#allocation73_spill] sm:$0xff] }
 0x178   :  { %3931 = vtanh.f32 %v5768_v15  ;;  %v5812_v43 = vld [vmem:[#allocation5 + $0x180] sm:$0xff]  ;;  %v5832_v30 = vld [vmem:[#allocation5 + $0x150] sm:$0xff] }
 0x179   :  { %v806_v40 = vsel %vm805_vm10, %v3928_v35, %v802_v36  ;;  %1355 = vmatpush.msra.mxu1 %v9456_v25  ;;  %1395 = vmatpush.msra.mxu3 %v9457_v61  ;;  %v5788_v35 = vld [vmem:[#allocation5 + $0x1e0] sm:$0xff]  ;;  %v5840_v34 = vld [vmem:[#allocation5 + $0x130] sm:$0xff]  ;;  %v9470_v61 = vld [vmem:[#allocation77_spill] sm:$0xff] }
 0x17a   :  { %v811_v45 = vsel %vm808_vm11, %v810_v7, %v806_v40  ;;  %v5821_v36 = vld [vmem:[#allocation5 + $0x160] sm:$0xff] }
 0x17b   :  { %1356 = vmatpush.msra.mxu1 %v9458_v47  ;;  %1396 = vmatpush.msra.mxu3 %v9459_v51  ;;  %v5836_v40 = vld [vmem:[#allocation5 + $0x120] sm:$0xff]  ;;  %v9472_v51 = vld [vmem:[#allocation81_spill] sm:$0xff] }
 0x17c   :  { %v9469_v7 = vld [vmem:[#allocation74_spill] sm:$0xff] }
 0x17d   :  { %1357 = vmatpush.msra.mxu1 %v9460_v57  ;;  %1397 = vmatpush.msra.mxu3 %v9461_v13  ;;  %v5844_v25 = vld [vmem:[#allocation5 + $0x100] sm:$0xff]  ;;  %v5856_v57 = vld [vmem:[#allocation5 + $0xf0] sm:$0xff] }
 0x17e   :  { %v3932_v12 = vpop.eup %3931  ;;  %v5852_v47 = vld [vmem:[#allocation5 + $0xe0] sm:$0xff]  ;;  %v9473_v13 = vld [vmem:[#allocation84_spill] sm:$0xff] }
 0x17f   :  { %v5782_v10 = vmul.f32 %v3932_v12, %v811_v45  ;;  %1358 = vmatpush.msra.mxu1 %v9462_v11  ;;  %1398 = vmatpush.msra.mxu3 %v9463_v16  ;;  %v5848_v12 = vld [vmem:[#allocation5 + $0x110] sm:$0xff]  ;;  %v9471_v45 = vld [vmem:[#allocation78_spill] sm:$0xff]  ;;  %v9474_v16 = vld [vmem:[#allocation89_spill] sm:$0xff] }
 0x180   :  { %v5860_v11 = vld [vmem:[#allocation5 + $0xc0] sm:$0xff] }
 0x181   :  { %962 = vmatmul.f32.vlgmr.msrb.gmra.mxu0 %v5782_v10  ;;  %1002 = vmatmul.f32.vlgmr.msrb.gmra.mxu2 %v5782_v10 }
 0x182   :  { %1176 = vmatpush.msrb.mxu0 %v5788_v35  ;;  %1212 = vmatmul.f32.vlgmr.msrb.gmra.mxu1 %v5782_v10 }
 0x183   :  { %1216 = vmatpush.msrb.mxu2 %v5792_v50  ;;  %1252 = vmatmul.f32.vlgmr.msrb.gmra.mxu3 %v5782_v10 }
 0x184   :  { %1177 = vmatpush.msrb.mxu0 %v5796_v14  ;;  %1423 = vmatpush.msrb.mxu1 %v9464_v26  ;;  %v5864_v26 = vld [vmem:[#allocation5 + $0xd0] sm:$0xff] }
 0x185   :  { %1217 = vmatpush.msrb.mxu2 %v5800_v2  ;;  %1463 = vmatpush.msrb.mxu3 %v9465_v27  ;;  %v9475_v27 = vld [vmem:[#allocation90_spill] sm:$0xff] }
 0x186   :  { %1178 = vmatpush.msrb.mxu0 %v5804_v49  ;;  %1424 = vmatpush.msrb.mxu1 %v9466_v29  ;;  %v5868_v29 = vld [vmem:[#allocation5 + $0xa0] sm:$0xff] }
 0x187   :  { %1218 = vmatpush.msrb.mxu2 %v5808_v21  ;;  %1464 = vmatpush.msrb.mxu3 %v9467_v42  ;;  %v9476_v42 = vld [vmem:[#allocation93_spill] sm:$0xff] }
 0x188   :  { %1179 = vmatpush.msrb.mxu0 %v5812_v43  ;;  %1425 = vmatpush.msrb.mxu1 %v9468_v8  ;;  %v5872_v8 = vld [vmem:[#allocation5 + $0xb0] sm:$0xff] }
 0x189   :  { %1219 = vmatpush.msrb.mxu2 %v5816_v33  ;;  %1042 = vmatmul.f32.vlgmr.msra.gmra.mxu0 %v5782_v10 }
 0x18a   :  { %1082 = vmatmul.f32.vlgmr.msra.gmra.mxu2 %v5782_v10  ;;  %1180 = vmatpush.msrb.mxu0 %v5821_v36 }
 0x18b   :  { %1220 = vmatpush.msrb.mxu2 %v5824_v28  ;;  %1465 = vmatpush.msrb.mxu3 %v9469_v7  ;;  %v9477_v7 = vld [vmem:[#allocation94_spill] sm:$0xff] }
 0x18c   :  { %1181 = vmatpush.msrb.mxu0 %v5828_v44  ;;  %1426 = vmatpush.msrb.mxu1 %v9470_v61  ;;  %v5876_v61 = vld [vmem:[#allocation5 + $0x80] sm:$0xff] }
 0x18d   :  { %1221 = vmatpush.msrb.mxu2 %v5832_v30  ;;  %1466 = vmatpush.msrb.mxu3 %v9471_v45  ;;  %v9478_v45 = vld [vmem:[#allocation97_spill] sm:$0xff] }
 0x18e   :  { %1182 = vmatpush.msrb.mxu0 %v5836_v40  ;;  %1427 = vmatpush.msrb.mxu1 %v9472_v51  ;;  %v5880_v51 = vld [vmem:[#allocation5 + $0x90] sm:$0xff] }
 0x18f   :  { %1222 = vmatpush.msrb.mxu2 %v5840_v34  ;;  %1467 = vmatpush.msrb.mxu3 %v9473_v13  ;;  %9479 = vst [vmem:[#allocation36_spill] sm:$0xff] %v5880_v51  ;;  %v9480_v13 = vld [vmem:[#allocation98_spill] sm:$0xff] }
 0x190   :  { %1183 = vmatpush.msrb.mxu0 %v5844_v25  ;;  %1428 = vmatpush.msrb.mxu1 %v9474_v16  ;;  %v5884_v16 = vld [vmem:[#allocation5 + $0x60] sm:$0xff] }
 0x191   :  { %1223 = vmatpush.msrb.mxu2 %v5848_v12  ;;  %1468 = vmatpush.msrb.mxu3 %v9475_v27  ;;  %9481 = vst [vmem:[#allocation37_spill] sm:$0xff] %v5884_v16  ;;  %v9482_v27 = vld [vmem:[#allocation101_spill] sm:$0xff] }
 0x192   :  { %1184 = vmatpush.msrb.mxu0 %v5852_v47  ;;  %1429 = vmatpush.msrb.mxu1 %v9476_v42  ;;  %v5888_v42 = vld [vmem:[#allocation5 + $0x70] sm:$0xff] }
 0x193   :  { %1224 = vmatpush.msrb.mxu2 %v5856_v57  ;;  %1469 = vmatpush.msrb.mxu3 %v9477_v7  ;;  %9483 = vst [vmem:[#allocation38_spill] sm:$0xff] %v5888_v42  ;;  %v9484_v7 = vld [vmem:[#allocation104_spill] sm:$0xff] }
 0x194   :  { %1185 = vmatpush.msrb.mxu0 %v5860_v11  ;;  %1430 = vmatpush.msrb.mxu1 %v9478_v45  ;;  %v9486_v45 = vld [vmem:[#allocation109_spill] sm:$0xff] }
 0x195   :  { %1225 = vmatpush.msrb.mxu2 %v5864_v26  ;;  %1470 = vmatpush.msrb.mxu3 %v9480_v13  ;;  %v9488_v13 = vld [vmem:[#allocation110_spill] sm:$0xff] }
 0x196   :  { %1186 = vmatpush.msrb.mxu0 %v5868_v29  ;;  %1431 = vmatpush.msrb.mxu1 %v9482_v27  ;;  %v9490_v27 = vld [vmem:[#allocation113_spill] sm:$0xff] }
 0x197   :  { %1226 = vmatpush.msrb.mxu2 %v5872_v8  ;;  %1471 = vmatpush.msrb.mxu3 %v9484_v7  ;;  %v9492_v7 = vld [vmem:[#allocation114_spill] sm:$0xff] }
 0x198   :  { %1187 = vmatpush.msrb.mxu0 %v5876_v61  ;;  %1432 = vmatpush.msrb.mxu1 %v9486_v45  ;;  %v9494_v45 = vld [vmem:[#allocation117_spill] sm:$0xff] }
 0x199   :  { %1227 = vmatpush.msrb.mxu2 %v5880_v51  ;;  %1472 = vmatpush.msrb.mxu3 %v9488_v13  ;;  %v9496_v13 = vld [vmem:[#allocation59_spill] sm:$0xff]  ;;  %v9504_v51 = vld [vmem:[#allocation72_spill] sm:$0xff] }
 0x19a   :  { %1188 = vmatpush.msrb.mxu0 %v5884_v16  ;;  %v5900_v16 = vld [vmem:[#allocation5 + $0x20] sm:$0xff]  ;;  %1433 = vmatpush.msrb.mxu1 %v9490_v27  ;;  %v9497_v27 = vld [vmem:[#allocation60_spill] sm:$0xff] }
 0x19b   :  { %1228 = vmatpush.msrb.mxu2 %v5888_v42  ;;  %9489 = vst [vmem:[#allocation43_spill] sm:$0xff] %v5900_v16  ;;  %v5904_v42 = vld [vmem:[#allocation5 + $0x30] sm:$0xff]  ;;  %1473 = vmatpush.msrb.mxu3 %v9492_v7  ;;  %v9499_v7 = vld [vmem:[#allocation67_spill] sm:$0xff] }
 0x19c   :  { %1189 = vmatpush.msrb.mxu0 %v5892_v1  ;;  %9491 = vst [vmem:[#allocation44_spill] sm:$0xff] %v5904_v42  ;;  %v5908_v1 = vld [vmem:[#allocation5] sm:$0xff]  ;;  %1434 = vmatpush.msrb.mxu1 %v9494_v45  ;;  %v9501_v45 = vld [vmem:[#allocation124_spill] sm:$0xff] }
 0x19d   :  { %1229 = vmatpush.msrb.mxu2 %v5896_v55  ;;  %9493 = vst [vmem:[#allocation45_spill] sm:$0xff] %v5908_v1  ;;  %v5912_v55 = vld [vmem:[#allocation5 + $0x10] sm:$0xff] }
 0x19e   :  { %1190 = vmatpush.msrb.mxu0 %v5900_v16  ;;  %9495 = vst [vmem:[#allocation46_spill] sm:$0xff] %v5912_v55  ;;  %1435 = vmatpush.msrb.mxu1 %v5507_v48  ;;  %v9502_v16 = vld [vmem:[#allocation71_spill] sm:$0xff] }
 0x19f   :  { %1230 = vmatpush.msrb.mxu2 %v5904_v42  ;;  %v9498_v42 = vld [vmem:[#allocation118_spill] sm:$0xff]  ;;  %v9510_v48 = vld [vmem:[#allocation79_spill] sm:$0xff] }
 0x1a0   :  { %1191 = vmatpush.msrb.mxu0 %v5908_v1  ;;  %1474 = vmatpush.msrb.mxu3 %v9498_v42  ;;  %v9500_v1 = vld [vmem:[#allocation68_spill] sm:$0xff] }
 0x1a1   :  { %1231 = vmatpush.msrb.mxu2 %v5912_v55  ;;  %1192 = vmatmul.f32.vlgmr.msrb.gmra.mxu0 %v5782_v10  ;;  %v9503_v55 = vld [vmem:[#allocation128_spill] sm:$0xff] }
 0x1a2   :  { %1232 = vmatmul.f32.vlgmr.msrb.gmra.mxu2 %v5782_v10  ;;  %1323 = vmatpush.msra.mxu0 %v9496_v13  ;;  %v9505_v10 = vld [vmem:[#allocation129_spill] sm:$0xff]  ;;  %v9506_v13 = vld [vmem:[#allocation75_spill] sm:$0xff]  ;;  %v9508_v42 = vld [vmem:[#allocation76_spill] sm:$0xff] }
 0x1a3   :  { %1363 = vmatpush.msra.mxu2 %v9497_v27  ;;  %1475 = vmatpush.msrb.mxu3 %v9501_v45  ;;  %v9507_v27 = vld [vmem:[#allocation132_spill] sm:$0xff] }
 0x1a4   :  { %1324 = vmatpush.msra.mxu0 %v9499_v7  ;;  %1436 = vmatpush.msrb.mxu1 %v9503_v55  ;;  %v9509_v7 = vld [vmem:[#allocation133_spill] sm:$0xff]  ;;  %v9512_v55 = vld [vmem:[#allocation87_spill] sm:$0xff]  ;;  %v9515_v45 = vld [vmem:[#allocation92_spill] sm:$0xff] }
 0x1a5   :  { %1364 = vmatpush.msra.mxu2 %v9500_v1  ;;  %1476 = vmatpush.msrb.mxu3 %v9505_v10  ;;  %v9511_v1 = vld [vmem:[#allocation80_spill] sm:$0xff]  ;;  %v9516_v10 = vld [vmem:[#allocation95_spill] sm:$0xff] }
 0x1a6   :  { %1325 = vmatpush.msra.mxu0 %v9502_v16  ;;  %1437 = vmatpush.msrb.mxu1 %v9507_v27  ;;  %v9514_v16 = vld [vmem:[#allocation91_spill] sm:$0xff] }
 0x1a7   :  { %1365 = vmatpush.msra.mxu2 %v9504_v51  ;;  %1477 = vmatpush.msrb.mxu3 %v9509_v7  ;;  %v9513_v51 = vld [vmem:[#allocation88_spill] sm:$0xff]  ;;  %v9518_v27 = vld [vmem:[#allocation99_spill] sm:$0xff] }
 0x1a8   :  { %1326 = vmatpush.msra.mxu0 %v9506_v13  ;;  %1438 = vmatpush.msrb.mxu1 %v5551_v63  ;;  %v9517_v13 = vld [vmem:[#allocation96_spill] sm:$0xff]  ;;  %v9520_v63 = vld [vmem:[#allocation107_spill] sm:$0xff] }
 0x1a9   :  { %1366 = vmatpush.msra.mxu2 %v9508_v42  ;;  %1478 = vmatpush.msrb.mxu3 %v5555_v19  ;;  %v9519_v42 = vld [vmem:[#allocation100_spill] sm:$0xff]  ;;  %v9522_v19 = vld [vmem:[#allocation111_spill] sm:$0xff] }
 0x1aa   :  { %1327 = vmatpush.msra.mxu0 %v9510_v48  ;;  %v9521_v7 = vld [vmem:[#allocation108_spill] sm:$0xff] }
 0x1ab   :  { %1367 = vmatpush.msra.mxu2 %v9511_v1  ;;  %v9523_v48 = vld [vmem:[#allocation112_spill] sm:$0xff]  ;;  %v9524_v1 = vld [vmem:[#allocation115_spill] sm:$0xff] }
 0x1ac   :  { %1328 = vmatpush.msra.mxu0 %v9512_v55  ;;  %v9525_v55 = vld [vmem:[#allocation116_spill] sm:$0xff] }
 0x1ad   :  { %1368 = vmatpush.msra.mxu2 %v9513_v51  ;;  %v9526_v51 = vld [vmem:[#allocation120_spill] sm:$0xff] }
 0x1ae   :  { %1329 = vmatpush.msra.mxu0 %v9514_v16  ;;  %v9527_v16 = vld [vmem:[#allocation121_spill] sm:$0xff] }
 0x1af   :  { %1369 = vmatpush.msra.mxu2 %v9515_v45  ;;  %v9528_v45 = vld [vmem:[#allocation126_spill] sm:$0xff] }
 0x1b0   :  { %1330 = vmatpush.msra.mxu0 %v9516_v10  ;;  %v9529_v10 = vld [vmem:[#allocation127_spill] sm:$0xff] }
 0x1b1   :  { %1370 = vmatpush.msra.mxu2 %v9517_v13  ;;  %v9530_v13 = vld [vmem:[#allocation130_spill] sm:$0xff] }
 0x1b2   :  { %1331 = vmatpush.msra.mxu0 %v9518_v27  ;;  %v9531_v27 = vld [vmem:[#allocation131_spill] sm:$0xff] }
 0x1b3   :  { %1371 = vmatpush.msra.mxu2 %v9519_v42  ;;  %v9532_v42 = vld [vmem:[#allocation134_spill] sm:$0xff] }
 0x1b4   :  { %1332 = vmatpush.msra.mxu0 %v9520_v63  ;;  %v9533_v63 = vld [vmem:[#allocation135_spill] sm:$0xff] }
 0x1b5   :  { %1372 = vmatpush.msra.mxu2 %v9521_v7  ;;  %v9534_v7 = vld [vmem:[#allocation139_spill] sm:$0xff] }
 0x1b6   :  { %1333 = vmatpush.msra.mxu0 %v9522_v19  ;;  %v9535_v19 = vld [vmem:[#allocation140_spill] sm:$0xff] }
 0x1b7   :  { %1373 = vmatpush.msra.mxu2 %v9523_v48  ;;  %v9536_v48 = vld [vmem:[#allocation141_spill] sm:$0xff] }
 0x1b8   :  { %1334 = vmatpush.msra.mxu0 %v9524_v1  ;;  %v9537_v1 = vld [vmem:[#allocation143_spill] sm:$0xff] }
 0x1b9   :  { %1374 = vmatpush.msra.mxu2 %v9525_v55  ;;  %v9538_v55 = vld [vmem:[#allocation144_spill] sm:$0xff] }
 0x1ba   :  { %1335 = vmatpush.msra.mxu0 %v9526_v51 }
 0x1bb   :  { %1375 = vmatpush.msra.mxu2 %v9527_v16 }
 0x1bc   :  { %1336 = vmatpush.msra.mxu0 %v9528_v45 }
 0x1bd   :  { %1376 = vmatpush.msra.mxu2 %v9529_v10 }
 0x1be   :  { %1337 = vmatpush.msra.mxu0 %v9530_v13  ;;  %v9547_v13 = vld [vmem:[#allocation62_spill] sm:$0xff] }
 0x1bf   :  { %1377 = vmatpush.msra.mxu2 %v9531_v27  ;;  %v497_v27 = vadd.f32 %v9547_v13, %v5651_v56 }
 0x1c0   :  { %1338 = vmatpush.msra.mxu0 %v9532_v42 }
 0x1c1   :  { %1378 = vmatpush.msra.mxu2 %v9533_v63 }
 0x1c2   :  { %1403 = vmatpush.msrb.mxu0 %v5557_v52  ;;  %v983_v52 = vpop.f32.mrf.mxu1 }
 0x1c3   :  { %1443 = vmatpush.msrb.mxu2 %v5559_v38  ;;  %v9540_v38 = vld [vmem:[#allocation151_spill] sm:$0xff] }
 0x1c4   :  { %1404 = vmatpush.msrb.mxu0 %v5571_v24  ;;  %v9539_v24 = vld [vmem:[#allocation150_spill] sm:$0xff] }
 0x1c5   :  { %1444 = vmatpush.msrb.mxu2 %v9534_v7 }
 0x1c6   :  { %1405 = vmatpush.msrb.mxu0 %v9535_v19 }
 0x1c7   :  { %1445 = vmatpush.msrb.mxu2 %v9536_v48  ;;  %v9548_v48 = vld [vmem:[#allocation63_spill] sm:$0xff] }
 0x1c8   :  { %1406 = vmatpush.msrb.mxu0 %v9537_v1  ;;  %v538_v1 = vadd.f32 %v9548_v48, %v497_v27 }
 0x1c9   :  { %1446 = vmatpush.msrb.mxu2 %v9538_v55 }
 0x1ca   :  { %1407 = vmatpush.msrb.mxu0 %v5602_v20  ;;  %v1023_v20 = vpop.f32.mrf.mxu3 }
 0x1cb   :  { %1447 = vmatpush.msrb.mxu2 %v5604_v22 }
 0x1cc   :  { %1408 = vmatpush.msrb.mxu0 %v5622_v0  ;;  %v1063_v0 = vpop.f32.mrf.mxu1 }
 0x1cd   :  { %1448 = vmatpush.msrb.mxu2 %v5624_v18 }
 0x1ce   :  { %1409 = vmatpush.msrb.mxu0 %v5630_v31 }
 0x1cf   :  { %1449 = vmatpush.msrb.mxu2 %v5632_v32 }
 0x1d0   :  { %1410 = vmatpush.msrb.mxu0 %v9539_v24 }
 0x1d1   :  { %1450 = vmatpush.msrb.mxu2 %v9540_v38 }
 0x1d2   :  { %1411 = vmatpush.msrb.mxu0 %v5655_v41  ;;  %v9543_v41 = vld [vmem:[#allocation146_spill] sm:$0xff] }
 0x1d3   :  { %1451 = vmatpush.msrb.mxu2 %v5657_v46  ;;  %v9544_v46 = vld [vmem:[#allocation12_spill] sm:$0xff] }
 0x1d4   :  { %1412 = vmatpush.msrb.mxu0 %v5667_v58  ;;  %v590_v58 = vld [vmem:[%s8797_s5] sm:$0xf] }
 0x1d5   :  { %1452 = vmatpush.msrb.mxu2 %v5669_v37  ;;  %v5993_v18 = vperm.slane %v590_v58, 0  ;;  %v5996_v37 = vperm.slane %v590_v58, 1  ;;  %v6002_v51 = vperm.slane %v590_v58, 3  ;;  %v6008_v24 = vperm.slane %v590_v58, 2 }
 0x1d6   :  { %1413 = vmatpush.msrb.mxu0 %v5677_v54  ;;  %v333_v54 = vadd.f32 %v9544_v46, %v9543_v41 }
 0x1d7   :  { %1453 = vmatpush.msrb.mxu2 %v5679_v23  ;;  %9541 = vst [vmem:[#allocation47_spill] sm:$0xff] %v5993_v18 }
 0x1d8   :  { %1414 = vmatpush.msrb.mxu0 %v5685_v53  ;;  %9542 = vst [vmem:[#allocation48_spill] sm:$0xff] %v5996_v37 }
 0x1d9   :  { %1454 = vmatpush.msrb.mxu2 %v5687_v60  ;;  %9546 = vst [vmem:[#allocation49_spill] sm:$0xff] %v6002_v51 }
 0x1da   :  { %1415 = vmatpush.msrb.mxu0 %v5694_v59  ;;  %9549 = vst [vmem:[#allocation50_spill] sm:$0xff] %v6008_v24 }
 0x1db   :  { %1455 = vmatpush.msrb.mxu2 %v5696_v62  ;;  %v9545_v62 = vld [vmem:[#allocation13_spill] sm:$0xff] }
 0x1dc   :  { %1416 = vmatpush.msrb.mxu0 %v5704_v4  ;;  %v374_v4 = vadd.f32 %v9545_v62, %v333_v54 }
 0x1dd   :  { %1456 = vmatpush.msrb.mxu2 %v5706_v39  ;;  %v1103_v39 = vpop.f32.mrf.mxu3 }
 0x1de   :  { %1417 = vmatpush.msrb.mxu0 %v5715_v3 }
 0x1df   :  { %1457 = vmatpush.msrb.mxu2 %v5717_v6 }
 0x1e0   :  { %1418 = vmatpush.msrb.mxu0 %v5723_v17 }
 0x1e1   :  { %1458 = vmatpush.msrb.mxu2 %v5725_v5 }
 0x1fe   :  { %v963_v22 = vpop.f32.mrf.mxu0 }
 0x1ff   :  { %v964_v31 = vadd.f32 %v963_v22, %v5993_v18  ;;  %v1213_v60 = vpop.f32.mrf.mxu1 }
 0x200   :  { %v1257_v6 = vadd.f32 %v1213_v60, %v374_v4 }
 0x201   :  { %v984_v32 = vadd.f32 %v983_v52, %v964_v31 }
 0x202   :  { %v3869_v45 = vmul.f32 -1.442695, %v1257_v6 }
 0x203   :  { %v3865_v23 = vmul.f32 -1.442695, %v984_v32 }
 0x204   :  { %v1003_v53 = vpop.f32.mrf.mxu2 }
 0x205   :  { %3933 = vpow2.f32 %v3865_v23  ;;  %v1004_v59 = vadd.f32 %v1003_v53, %v5996_v37  ;;  %v9550_v23 = vld [vmem:[#allocation145_spill] sm:$0xff]  ;;  %v9551_v53 = vld [vmem:[#allocation10_spill] sm:$0xff] }
 0x206   :  { %v1253_v7 = vpop.f32.mrf.mxu3  ;;  %v1043_v38 = vpop.f32.mrf.mxu0  ;;  %v251_v60 = vadd.f32 %v9551_v53, %v9550_v23 }
 0x207   :  { %v1024_v3 = vadd.f32 %v1023_v20, %v1004_v59  ;;  %v1259_v22 = vadd.f32 %v1253_v7, %v538_v1  ;;  %v1044_v46 = vadd.f32 %v1043_v38, %v6008_v24 }
 0x209   :  { %v3866_v17 = vmul.f32 -1.442695, %v1024_v3  ;;  %v3870_v59 = vmul.f32 -1.442695, %v1259_v22 }
 0x20b   :  { %v3934_v5 = vpop.eup %3933  ;;  %3935 = vpow2.f32 %v3866_v17  ;;  %v9552_v17 = vld [vmem:[#allocation11_spill] sm:$0xff] }
 0x20c   :  { %v1109_v16 = vadd.f32 1.0, %v3934_v5  ;;  %v292_v5 = vadd.f32 %v9552_v17, %v251_v60 }
 0x20d   :  { %v1083_v10 = vpop.f32.mrf.mxu2 }
 0x20e   :  { %3937 = vrcp.f32 %v1109_v16  ;;  %v1084_v42 = vadd.f32 %v1083_v10, %v6002_v51  ;;  %vm1115_vm13 = vweird.f32 %v1109_v16  ;;  %v1119_v27 = vand.u32 2147483647, %v1109_v16 }
 0x20f   :  { %3939 = vpow2.f32 %v3869_v45  ;;  %v1121_v45 = vand.u32 2147483648, %v1109_v16 }
 0x210   :  { %v1104_v19 = vadd.f32 %v1103_v39, %v1084_v42  ;;  %v1064_v39 = vadd.f32 %v1063_v0, %v1044_v46  ;;  %vm1120_vm1 = vcmp.eq.f32.partialorder %v1119_v27, 8.507059e+37 }
 0x211   :  { %v3936_v63 = vpop.eup %3935 }
 0x212   :  { %v1128_v55 = vadd.f32 1.0, %v3936_v63  ;;  %v3867_v52 = vmul.f32 -1.442695, %v1104_v19  ;;  %v9555_v63 = vld [vmem:[#allocation51_spill] sm:$0xff] }
 0x214   :  { %v3938_v20 = vpop.eup %3937  ;;  %3941 = vrcp.f32 %v1128_v55  ;;  %v1140_v42 = vand.u32 2147483648, %v1128_v55  ;;  %v1138_v7 = vand.u32 2147483647, %v1128_v55  ;;  %vm1134_vm0 = vweird.f32 %v1128_v55 }
 0x215   :  { %v1111_v31 = vmul.f32 %v3938_v20, %v1109_v16  ;;  %v3940_v32 = vpop.eup %3939  ;;  %3943 = vpow2.f32 %v3867_v52  ;;  %vm1116_vm12 = vweird.f32 %v3938_v20  ;;  %v1122_v52 = vor.u32 1.1754944e-38, %v1121_v45 }
 0x216   :  { %v6013_v62 = vadd.f32 1.0, %v3940_v32  ;;  %3945 = vpow2.f32 %v3870_v59  ;;  %vm6017_vm14 = vmor %vm1115_vm13, %vm1116_vm12  ;;  %v1141_v32 = vor.u32 1.1754944e-38, %v1140_v42  ;;  %vm1139_vm3 = vcmp.eq.f32.partialorder %v1138_v7, 8.507059e+37 }
 0x217   :  { %v1112_v54 = vsub.f32 1.0, %v1111_v31  ;;  %v415_v7 = vadd.f32 %v9555_v63, %v5711_v9 }
 0x218   :  { %3947 = vrcp.f32 %v6013_v62  ;;  %vm1288_vm9 = vweird.f32 %v6013_v62 }
 0x219   :  { %v1113_v4 = vmul.f32 %v3938_v20, %v1112_v54  ;;  %3949 = vtanh.f32 %v1064_v39 }
 0x21a   :  { %v3942_v58 = vpop.eup %3941 }
 0x21b   :  { %v1130_v3 = vmul.f32 %v3942_v58, %v1128_v55  ;;  %v1114_v6 = vadd.f32 %v3938_v20, %v1113_v4  ;;  %v3944_v10 = vpop.eup %3943  ;;  %vm1135_vm15 = vweird.f32 %v3942_v58 }
 0x21c   :  { %v1148_v0 = vadd.f32 1.0, %v3944_v10  ;;  %v3946_v31 = vpop.eup %3945  ;;  %vm1136_vm2 = vmor %vm1134_vm0, %vm1135_vm15 }
 0x21d   :  { %v1131_v13 = vsub.f32 1.0, %v1130_v3  ;;  %v1118_v1 = vsel %vm6017_vm14, %v3938_v20, %v1114_v6  ;;  %v6025_v3 = vadd.f32 1.0, %v3946_v31  ;;  %v9556_v31 = vld [vmem:[#allocation52_spill] sm:$0xff] }
 0x21e   :  { %v1193_v19 = vpop.f32.mrf.mxu0  ;;  %3951 = vrcp.f32 %v1148_v0  ;;  %v1123_v46 = vsel %vm1120_vm1, %v1122_v52, %v1118_v1  ;;  %v6023_v54 = vpop.eup %3947  ;;  %v1160_v10 = vand.u32 2147483648, %v1148_v0  ;;  %v1158_v42 = vand.u32 2147483647, %v1148_v0 }
 0x21f   :  { %v1132_v48 = vmul.f32 %v3942_v58, %v1131_v13  ;;  %v1256_v38 = vadd.f32 %v1193_v19, %v292_v5  ;;  %v3950_v60 = vpop.eup %3949  ;;  %v1284_v55 = vmul.f32 %v6023_v54, %v6013_v62  ;;  %vm1154_vm5 = vweird.f32 %v1148_v0 }
 0x220   :  { %v1165_v4 = vmul.f32 %v3950_v60, %v1123_v46  ;;  %vm1159_vm7 = vcmp.eq.f32.partialorder %v1158_v42, 8.507059e+37  ;;  %vm1289_vm8 = vweird.f32 %v6023_v54  ;;  %v6064_v42 = vld [vmem:[#allocation5 + $0x1d8] sm:$0xff]  ;;  %vm1308_vm1 = vweird.f32 %v6025_v3 }
 0x221   :  { %v1133_v16 = vadd.f32 %v3942_v58, %v1132_v48  ;;  %v3868_v22 = vmul.f32 -1.442695, %v1256_v38  ;;  %v1285_v13 = vsub.f32 1.0, %v1284_v55  ;;  %v1161_v48 = vor.u32 1.1754944e-38, %v1160_v10  ;;  %v6048_v55 = vld [vmem:[#allocation5 + $0x1e8] sm:$0xff]  ;;  %vm6056_vm10 = vmor %vm1288_vm9, %vm1289_vm8 }
 0x223   :  { %v1137_v53 = vsel %vm1136_vm2, %v3942_v58, %v1133_v16  ;;  %3953 = vpow2.f32 %v3868_v22  ;;  %v1286_v38 = vmul.f32 %v6023_v54, %v1285_v13 }
 0x224   :  { %v1142_v59 = vsel %vm1139_vm3, %v1141_v32, %v1137_v53  ;;  %v3952_v39 = vpop.eup %3951  ;;  %v456_v32 = vadd.f32 %v9556_v31, %v415_v7 }
 0x225   :  { %v1164_v20 = vmul.f32 0.0, %v1142_v59  ;;  %v1150_v17 = vmul.f32 %v3952_v39, %v1148_v0  ;;  %vm1155_vm4 = vweird.f32 %v3952_v39  ;;  %v1233_v52 = vpop.f32.mrf.mxu2 }
 0x226   :  { %vm1156_vm6 = vmor %vm1154_vm5, %vm1155_vm4  ;;  %v1258_v59 = vadd.f32 %v1233_v52, %v456_v32  ;;  %v6078_v32 = vld [vmem:[#allocation5 + $0x188] sm:$0xff] }
 0x227   :  { %v6029_v6 = vadd.f32 %v1165_v4, %v1164_v20  ;;  %v1151_v45 = vsub.f32 1.0, %v1150_v17  ;;  %v1287_v20 = vadd.f32 %v6023_v54, %v1286_v38  ;;  %v1294_v4 = vand.u32 2147483648, %v6013_v62  ;;  %v6051_v17 = vld [vmem:[#allocation5 + $0x1f8] sm:$0xff] }
 0x228   :  { %v6074_v38 = vld [vmem:[#allocation5 + $0x1b8] sm:$0xff] }
 0x229   :  { %v3954_v5 = vpop.eup %3953  ;;  %3955 = vtanh.f32 %v6029_v6  ;;  %v1152_v27 = vmul.f32 %v3952_v39, %v1151_v45  ;;  %v1292_v45 = vand.u32 2147483647, %v6013_v62  ;;  %v1291_v62 = vsel %vm6056_vm10, %v6023_v54, %v1287_v20  ;;  %v6081_v54 = vld [vmem:[#allocation5 + $0x198] sm:$0xff]  ;;  %v6085_v20 = vld [vmem:[#allocation5 + $0x168] sm:$0xff] }
 0x22a   :  { %3957 = vrcp.f32 %v6025_v3  ;;  %v6033_v58 = vadd.f32 1.0, %v3954_v5 }
 0x22b   :  { %v1153_v19 = vadd.f32 %v3952_v39, %v1152_v27  ;;  %v6061_v27 = vld [vmem:[#allocation5 + $0x1c8] sm:$0xff]  ;;  %vm1293_vm13 = vcmp.eq.f32.partialorder %v1292_v45, 8.507059e+37 }
 0x22c   :  { %3959 = vrcp.f32 %v6033_v58  ;;  %v1275_v13 = vand.u32 2147483648, %v6033_v58  ;;  %v1273_v7 = vand.u32 2147483647, %v6033_v58  ;;  %vm1269_vm12 = vweird.f32 %v6033_v58  ;;  %v6092_v45 = vld [vmem:[#allocation5 + $0x148] sm:$0xff] }
 0x22d   :  { %v1157_v16 = vsel %vm1156_vm6, %v3952_v39, %v1153_v19  ;;  %3961 = vtanh.f32 %v1258_v59  ;;  %v1295_v19 = vor.u32 1.1754944e-38, %v1294_v4  ;;  %v6088_v4 = vld [vmem:[#allocation5 + $0x178] sm:$0xff] }
 0x22e   :  { %v1162_v46 = vsel %vm1159_vm7, %v1161_v48, %v1157_v16  ;;  %v1276_v16 = vor.u32 1.1754944e-38, %v1275_v13  ;;  %vm1274_vm15 = vcmp.eq.f32.partialorder %v1273_v7, 8.507059e+37  ;;  %v6102_v13 = vld [vmem:[#allocation5 + $0x128] sm:$0xff]  ;;  %v1312_v7 = vand.u32 2147483647, %v6025_v3 }
 0x22f   :  { %v3956_v1 = vpop.eup %3955  ;;  %v1296_v31 = vsel %vm1293_vm13, %v1295_v19, %v1291_v62  ;;  %v6112_v62 = vld [vmem:[#allocation5 + $0x108] sm:$0xff]  ;;  %v6115_v19 = vld [vmem:[#allocation5 + $0x118] sm:$0xff] }
 0x230   :  { %v6039_v22 = vpop.eup %3957  ;;  %v1168_v53 = vmul.f32 %v3956_v1, %v1162_v46  ;;  %v6071_v1 = vld [vmem:[#allocation5 + $0x1a8] sm:$0xff]  ;;  %vm1313_vm3 = vcmp.eq.f32.partialorder %v1312_v7, 8.507059e+37  ;;  %v6152_v7 = vld [vmem:[#allocation5 + $0x78] sm:$0xff] }
 0x231   :  { %v1304_v39 = vmul.f32 %v6039_v22, %v6025_v3  ;;  %vm1309_vm0 = vweird.f32 %v6039_v22 }
 0x232   :  { %v3960_v60 = vpop.eup %3959  ;;  %1359 = vmatmul.f32.vlgmr.msra.gmra.mxu1 %v1168_v53  ;;  %1399 = vmatmul.f32.vlgmr.msra.gmra.mxu3 %v1168_v53  ;;  %vm1310_vm2 = vmor %vm1308_vm1, %vm1309_vm0 }
 0x233   :  { %v1265_v0 = vmul.f32 %v3960_v60, %v6033_v58  ;;  %1573 = vmatpush.msra.mxu1 %v6048_v55  ;;  %1613 = vmatpush.msra.mxu3 %v6051_v17  ;;  %vm1270_vm11 = vweird.f32 %v3960_v60  ;;  %v1305_v48 = vsub.f32 1.0, %v1304_v39  ;;  %v3962_v59 = vpop.eup %3961  ;;  %v1318_v39 = vmul.f32 %v1296_v31, %v5768_v15  ;;  %v6105_v15 = vld [vmem:[#allocation5 + $0x138] sm:$0xff]  ;;  %v6125_v31 = vld [vmem:[#allocation5 + $0xc8] sm:$0xff] }
 0x234   :  { %vm1271_vm14 = vmor %vm1269_vm12, %vm1270_vm11 }
 0x235   :  { %v1266_v5 = vsub.f32 1.0, %v1265_v0  ;;  %1574 = vmatpush.msra.mxu1 %v6061_v27  ;;  %1614 = vmatpush.msra.mxu3 %v6064_v42  ;;  %v1306_v0 = vmul.f32 %v6039_v22, %v1305_v48 }
 0x237   :  { %v1267_v63 = vmul.f32 %v3960_v60, %v1266_v5  ;;  %1575 = vmatpush.msra.mxu1 %v6071_v1  ;;  %1615 = vmatpush.msra.mxu3 %v6074_v38  ;;  %v1307_v10 = vadd.f32 %v6039_v22, %v1306_v0 }
 0x239   :  { %v1268_v52 = vadd.f32 %v3960_v60, %v1267_v63  ;;  %1576 = vmatpush.msra.mxu1 %v6078_v32  ;;  %1616 = vmatpush.msra.mxu3 %v6081_v54  ;;  %v1314_v63 = vand.u32 2147483648, %v6025_v3  ;;  %v1311_v48 = vsel %vm1310_vm2, %v6039_v22, %v1307_v10  ;;  %v6142_v10 = vld [vmem:[#allocation5 + $0x98] sm:$0xff] }
 0x23a   :  { %1439 = vmatmul.f32.vlgmr.msrb.gmra.mxu1 %v1168_v53  ;;  %1479 = vmatmul.f32.vlgmr.msrb.gmra.mxu3 %v1168_v53  ;;  %v6095_v53 = vld [vmem:[#allocation5 + $0x158] sm:$0xff] }
 0x23b   :  { %v1272_v46 = vsel %vm1271_vm14, %v3960_v60, %v1268_v52  ;;  %1577 = vmatpush.msra.mxu1 %v6085_v20  ;;  %1617 = vmatpush.msra.mxu3 %v6088_v4  ;;  %v6119_v52 = vld [vmem:[#allocation5 + $0xe8] sm:$0xff]  ;;  %v1315_v3 = vor.u32 1.1754944e-38, %v1314_v63 }
 0x23c   :  { %v1277_v58 = vsel %vm1274_vm15, %v1276_v16, %v1272_v46  ;;  %v6122_v16 = vld [vmem:[#allocation5 + $0xf8] sm:$0xff]  ;;  %v6149_v63 = vld [vmem:[#allocation5 + $0x68] sm:$0xff] }
 0x23d   :  { %v1319_v5 = vmul.f32 %v3962_v59, %v1277_v58  ;;  %1578 = vmatpush.msra.mxu1 %v6092_v45  ;;  %1618 = vmatpush.msra.mxu3 %v6095_v53  ;;  %v6128_v46 = vld [vmem:[#allocation5 + $0xd8] sm:$0xff]  ;;  %v1316_v22 = vsel %vm1313_vm3, %v1315_v3, %v1311_v48  ;;  %v6133_v58 = vld [vmem:[#allocation5 + $0xa8] sm:$0xff] }
 0x23e   :  { %v6157_v48 = vld [vmem:[#allocation5 + $0x48] sm:$0xff]  ;;  %v6160_v3 = vld [vmem:[#allocation5 + $0x58] sm:$0xff] }
 0x23f   :  { %v6098_v60 = vadd.f32 %v1319_v5, %v1318_v39  ;;  %1579 = vmatpush.msra.mxu1 %v6102_v13  ;;  %1619 = vmatpush.msra.mxu3 %v6105_v15  ;;  %v6136_v39 = vld [vmem:[#allocation5 + $0xb8] sm:$0xff]  ;;  %v6139_v5 = vld [vmem:[#allocation5 + $0x88] sm:$0xff] }
 0x241   :  { %3963 = vtanh.f32 %v6098_v60  ;;  %1580 = vmatpush.msra.mxu1 %v6112_v62  ;;  %1620 = vmatpush.msra.mxu3 %v6115_v19 }
 0x243   :  { %1581 = vmatpush.msra.mxu1 %v6119_v52  ;;  %1621 = vmatpush.msra.mxu3 %v6122_v16 }
 0x245   :  { %1582 = vmatpush.msra.mxu1 %v6125_v31  ;;  %1622 = vmatpush.msra.mxu3 %v6128_v46 }
 0x247   :  { %v3964_v59 = vpop.eup %3963  ;;  %1583 = vmatpush.msra.mxu1 %v6133_v58  ;;  %1623 = vmatpush.msra.mxu3 %v6136_v39 }
 0x248   :  { %v6131_v0 = vmul.f32 %v3964_v59, %v1316_v22  ;;  %v6246_v59 = vld [vmem:[#allocation7 + $0x308] sm:$0xff]  ;;  %v6250_v22 = vld [vmem:[#allocation7 + $0x2e0] sm:$0xff] }
 0x249   :  { %1584 = vmatpush.msra.mxu1 %v6139_v5  ;;  %1624 = vmatpush.msra.mxu3 %v6142_v10  ;;  %9574 = vst [vmem:[#allocation77_spill] sm:$0xff] %v6246_v59 }
 0x24a   :  { %1339 = vmatmul.f32.vlgmr.msra.gmra.mxu0 %v6131_v0  ;;  %1379 = vmatmul.f32.vlgmr.msra.gmra.mxu2 %v6131_v0  ;;  %9576 = vst [vmem:[#allocation78_spill] sm:$0xff] %v6250_v22 }
 0x24b   :  { %1553 = vmatpush.msra.mxu0 %v5788_v35  ;;  %1593 = vmatpush.msra.mxu2 %v5792_v50  ;;  %v6165_v35 = vld [vmem:[#allocation5 + $0x28] sm:$0xff]  ;;  %v6168_v50 = vld [vmem:[#allocation5 + $0x38] sm:$0xff] }
 0x24c   :  { %1585 = vmatpush.msra.mxu1 %v6149_v63  ;;  %1625 = vmatpush.msra.mxu3 %v6152_v7 }
 0x24d   :  { %1554 = vmatpush.msra.mxu0 %v5796_v14  ;;  %1594 = vmatpush.msra.mxu2 %v5800_v2  ;;  %v6173_v14 = vld [vmem:[#allocation5 + $0x8] sm:$0xff]  ;;  %v6176_v2 = vld [vmem:[#allocation5 + $0x18] sm:$0xff] }
 0x24e   :  { %1586 = vmatpush.msra.mxu1 %v6157_v48  ;;  %1626 = vmatpush.msra.mxu3 %v6160_v3 }
 0x24f   :  { %1555 = vmatpush.msra.mxu0 %v5804_v49  ;;  %1595 = vmatpush.msra.mxu2 %v5808_v21  ;;  %v6186_v49 = vld [vmem:[#allocation7 + $0x3e0] sm:$0xff]  ;;  %v6190_v21 = vld [vmem:[#allocation7 + $0x3e8] sm:$0xff] }
 0x250   :  { %1587 = vmatpush.msra.mxu1 %v6165_v35  ;;  %1627 = vmatpush.msra.mxu3 %v6168_v50 }
 0x251   :  { %1556 = vmatpush.msra.mxu0 %v5812_v43  ;;  %1596 = vmatpush.msra.mxu2 %v5816_v33  ;;  %v6194_v43 = vld [vmem:[#allocation7 + $0x3c0] sm:$0xff]  ;;  %v6198_v33 = vld [vmem:[#allocation7 + $0x3c8] sm:$0xff] }
 0x252   :  { %1588 = vmatpush.msra.mxu1 %v6173_v14  ;;  %1628 = vmatpush.msra.mxu3 %v6176_v2  ;;  %9559 = vst [vmem:[#allocation53_spill] sm:$0xff] %v6198_v33 }
 0x253   :  { %1419 = vmatmul.f32.vlgmr.msrb.gmra.mxu0 %v6131_v0  ;;  %1459 = vmatmul.f32.vlgmr.msrb.gmra.mxu2 %v6131_v0 }
 0x254   :  { %1557 = vmatpush.msra.mxu0 %v5821_v36  ;;  %1589 = vmatmul.f32.vlgmr.msra.gmra.mxu1 %v6131_v0  ;;  %v6202_v36 = vld [vmem:[#allocation7 + $0x3a0] sm:$0xff] }
 0x255   :  { %1597 = vmatpush.msra.mxu2 %v5824_v28  ;;  %1629 = vmatmul.f32.vlgmr.msra.gmra.mxu3 %v6131_v0  ;;  %9560 = vst [vmem:[#allocation54_spill] sm:$0xff] %v6202_v36  ;;  %v6206_v28 = vld [vmem:[#allocation7 + $0x3a8] sm:$0xff] }
 0x256   :  { %1558 = vmatpush.msra.mxu0 %v5828_v44  ;;  %1720 = vmatpush.msrb.mxu1 %v6186_v49  ;;  %9561 = vst [vmem:[#allocation55_spill] sm:$0xff] %v6206_v28  ;;  %v6210_v44 = vld [vmem:[#allocation7 + $0x380] sm:$0xff] }
 0x257   :  { %1598 = vmatpush.msra.mxu2 %v5832_v30  ;;  %1760 = vmatpush.msrb.mxu3 %v6190_v21  ;;  %9562 = vst [vmem:[#allocation56_spill] sm:$0xff] %v6210_v44  ;;  %v6214_v30 = vld [vmem:[#allocation7 + $0x388] sm:$0xff] }
 0x258   :  { %1559 = vmatpush.msra.mxu0 %v5836_v40  ;;  %1721 = vmatpush.msrb.mxu1 %v6194_v43  ;;  %9563 = vst [vmem:[#allocation57_spill] sm:$0xff] %v6214_v30  ;;  %v6218_v40 = vld [vmem:[#allocation7 + $0x360] sm:$0xff] }
 0x259   :  { %1599 = vmatpush.msra.mxu2 %v5840_v34  ;;  %1761 = vmatpush.msrb.mxu3 %v6198_v33  ;;  %9564 = vst [vmem:[#allocation58_spill] sm:$0xff] %v6218_v40  ;;  %v6222_v34 = vld [vmem:[#allocation7 + $0x368] sm:$0xff] }
 0x25a   :  { %1560 = vmatpush.msra.mxu0 %v5844_v25  ;;  %1722 = vmatpush.msrb.mxu1 %v6202_v36  ;;  %9565 = vst [vmem:[#allocation61_spill] sm:$0xff] %v6222_v34  ;;  %v6226_v25 = vld [vmem:[#allocation7 + $0x340] sm:$0xff] }
 0x25b   :  { %1600 = vmatpush.msra.mxu2 %v5848_v12  ;;  %1762 = vmatpush.msrb.mxu3 %v6206_v28  ;;  %9566 = vst [vmem:[#allocation64_spill] sm:$0xff] %v6226_v25  ;;  %v6230_v12 = vld [vmem:[#allocation7 + $0x348] sm:$0xff] }
 0x25c   :  { %1561 = vmatpush.msra.mxu0 %v5852_v47  ;;  %1723 = vmatpush.msrb.mxu1 %v6210_v44  ;;  %9567 = vst [vmem:[#allocation69_spill] sm:$0xff] %v6230_v12  ;;  %v6234_v47 = vld [vmem:[#allocation7 + $0x320] sm:$0xff] }
 0x25d   :  { %1601 = vmatpush.msra.mxu2 %v5856_v57  ;;  %1763 = vmatpush.msrb.mxu3 %v6214_v30  ;;  %9568 = vst [vmem:[#allocation70_spill] sm:$0xff] %v6234_v47  ;;  %v9569_v57 = vld [vmem:[#allocation36_spill] sm:$0xff] }
 0x25e   :  { %1562 = vmatpush.msra.mxu0 %v5860_v11  ;;  %1724 = vmatpush.msrb.mxu1 %v6218_v40  ;;  %v6238_v11 = vld [vmem:[#allocation7 + $0x328] sm:$0xff]  ;;  %v9694_v40 = vld [vmem:[#allocation17_spill] sm:$0xff] }
 0x25f   :  { %1602 = vmatpush.msra.mxu2 %v5864_v26  ;;  %1764 = vmatpush.msrb.mxu3 %v6222_v34  ;;  %9570 = vst [vmem:[#allocation73_spill] sm:$0xff] %v6238_v11  ;;  %v9571_v26 = vld [vmem:[#allocation37_spill] sm:$0xff] }
 0x260   :  { %1563 = vmatpush.msra.mxu0 %v5868_v29  ;;  %1725 = vmatpush.msrb.mxu1 %v6226_v25  ;;  %v6242_v29 = vld [vmem:[#allocation7 + $0x300] sm:$0xff] }
 0x261   :  { %1603 = vmatpush.msra.mxu2 %v5872_v8  ;;  %1765 = vmatpush.msrb.mxu3 %v6230_v12  ;;  %9572 = vst [vmem:[#allocation74_spill] sm:$0xff] %v6242_v29  ;;  %v9573_v8 = vld [vmem:[#allocation38_spill] sm:$0xff]  ;;  %v9693_v12 = vld [vmem:[#allocation16_spill] sm:$0xff] }
 0x262   :  { %1564 = vmatpush.msra.mxu0 %v5876_v61  ;;  %1726 = vmatpush.msrb.mxu1 %v6234_v47  ;;  %v9575_v61 = vld [vmem:[#allocation41_spill] sm:$0xff]  ;;  %v336_v25 = vadd.f32 %v9693_v12, %v9543_v41 }
 0x263   :  { %1604 = vmatpush.msra.mxu2 %v9569_v57  ;;  %1766 = vmatpush.msrb.mxu3 %v6238_v11  ;;  %v9577_v57 = vld [vmem:[#allocation42_spill] sm:$0xff]  ;;  %v6254_v11 = vld [vmem:[#allocation7 + $0x2e8] sm:$0xff] }
 0x264   :  { %1565 = vmatpush.msra.mxu0 %v9571_v26  ;;  %1727 = vmatpush.msrb.mxu1 %v6242_v29  ;;  %9578 = vst [vmem:[#allocation81_spill] sm:$0xff] %v6254_v11  ;;  %v9579_v26 = vld [vmem:[#allocation43_spill] sm:$0xff]  ;;  %v6258_v29 = vld [vmem:[#allocation7 + $0x2c0] sm:$0xff]  ;;  %v377_v30 = vadd.f32 %v9694_v40, %v336_v25 }
 0x265   :  { %1605 = vmatpush.msra.mxu2 %v9573_v8  ;;  %1767 = vmatpush.msrb.mxu3 %v6246_v59  ;;  %9580 = vst [vmem:[#allocation84_spill] sm:$0xff] %v6258_v29  ;;  %v9581_v8 = vld [vmem:[#allocation44_spill] sm:$0xff]  ;;  %v6262_v59 = vld [vmem:[#allocation7 + $0x2c8] sm:$0xff] }
 0x266   :  { %1566 = vmatpush.msra.mxu0 %v9575_v61  ;;  %1728 = vmatpush.msrb.mxu1 %v6250_v22  ;;  %9582 = vst [vmem:[#allocation89_spill] sm:$0xff] %v6262_v59  ;;  %v9583_v61 = vld [vmem:[#allocation45_spill] sm:$0xff]  ;;  %v6266_v22 = vld [vmem:[#allocation7 + $0x2a0] sm:$0xff]  ;;  %v9696_v25 = vld [vmem:[#allocation83_spill] sm:$0xff] }
 0x267   :  { %1606 = vmatpush.msra.mxu2 %v9577_v57  ;;  %1768 = vmatpush.msrb.mxu3 %v6254_v11  ;;  %9584 = vst [vmem:[#allocation90_spill] sm:$0xff] %v6266_v22  ;;  %v9585_v57 = vld [vmem:[#allocation46_spill] sm:$0xff] }
 0x268   :  { %1567 = vmatpush.msra.mxu0 %v9579_v26  ;;  %1729 = vmatpush.msrb.mxu1 %v6258_v29  ;;  %v6272_v26 = vld [vmem:[#allocation7 + $0x2a8] sm:$0xff] }
 0x269   :  { %1607 = vmatpush.msra.mxu2 %v9581_v8  ;;  %1769 = vmatpush.msrb.mxu3 %v6262_v59  ;;  %9586 = vst [vmem:[#allocation93_spill] sm:$0xff] %v6272_v26  ;;  %v6275_v8 = vld [vmem:[#allocation7 + $0x280] sm:$0xff] }
 0x26a   :  { %1568 = vmatpush.msra.mxu0 %v9583_v61  ;;  %1730 = vmatpush.msrb.mxu1 %v6266_v22  ;;  %9587 = vst [vmem:[#allocation94_spill] sm:$0xff] %v6275_v8  ;;  %v6278_v59 = vld [vmem:[#allocation7 + $0x1e0] sm:$0xff]  ;;  %v6281_v61 = vld [vmem:[#allocation7 + $0x288] sm:$0xff] }
 0x26b   :  { %1608 = vmatpush.msra.mxu2 %v9585_v57  ;;  %1569 = vmatmul.f32.vlgmr.msra.gmra.mxu0 %v6131_v0  ;;  %9588 = vst [vmem:[#allocation97_spill] sm:$0xff] %v6278_v59  ;;  %v6284_v57 = vld [vmem:[#allocation7 + $0x1e8] sm:$0xff] }
 0x26c   :  { %1609 = vmatmul.f32.vlgmr.msra.gmra.mxu2 %v6131_v0  ;;  %1770 = vmatpush.msrb.mxu3 %v6272_v26  ;;  %9589 = vst [vmem:[#allocation98_spill] sm:$0xff] %v6281_v61  ;;  %v6287_v0 = vld [vmem:[#allocation7 + $0x260] sm:$0xff] }
 0x26d   :  { %1731 = vmatpush.msrb.mxu1 %v6275_v8  ;;  %1700 = vmatpush.msrb.mxu0 %v6278_v59  ;;  %9590 = vst [vmem:[#allocation101_spill] sm:$0xff] %v6284_v57  ;;  %v6290_v26 = vld [vmem:[#allocation7 + $0x1c0] sm:$0xff]  ;;  %v6293_v8 = vld [vmem:[#allocation7 + $0x268] sm:$0xff] }
 0x26e   :  { %1771 = vmatpush.msrb.mxu3 %v6281_v61  ;;  %1740 = vmatpush.msrb.mxu2 %v6284_v57  ;;  %9591 = vst [vmem:[#allocation104_spill] sm:$0xff] %v6287_v0  ;;  %v6296_v59 = vld [vmem:[#allocation7 + $0x1c8] sm:$0xff]  ;;  %v6299_v61 = vld [vmem:[#allocation7 + $0x240] sm:$0xff] }
 0x26f   :  { %1732 = vmatpush.msrb.mxu1 %v6287_v0  ;;  %9592 = vst [vmem:[#allocation109_spill] sm:$0xff] %v6290_v26  ;;  %1701 = vmatpush.msrb.mxu0 %v6290_v26  ;;  %v6302_v57 = vld [vmem:[#allocation7 + $0x1a0] sm:$0xff]  ;;  %v6305_v0 = vld [vmem:[#allocation7 + $0x248] sm:$0xff] }
 0x270   :  { %9593 = vst [vmem:[#allocation110_spill] sm:$0xff] %v6293_v8  ;;  %1772 = vmatpush.msrb.mxu3 %v6293_v8  ;;  %1741 = vmatpush.msrb.mxu2 %v6296_v59  ;;  %v6308_v26 = vld [vmem:[#allocation7 + $0x1a8] sm:$0xff]  ;;  %v6311_v8 = vld [vmem:[#allocation7 + $0x220] sm:$0xff] }
 0x271   :  { %9594 = vst [vmem:[#allocation113_spill] sm:$0xff] %v6296_v59  ;;  %1733 = vmatpush.msrb.mxu1 %v6299_v61  ;;  %1702 = vmatpush.msrb.mxu0 %v6302_v57  ;;  %v6314_v59 = vld [vmem:[#allocation7 + $0x180] sm:$0xff] }
 0x272   :  { %9595 = vst [vmem:[#allocation114_spill] sm:$0xff] %v6299_v61  ;;  %1773 = vmatpush.msrb.mxu3 %v6305_v0  ;;  %1742 = vmatpush.msrb.mxu2 %v6308_v26  ;;  %v6317_v61 = vld [vmem:[#allocation7 + $0x228] sm:$0xff] }
 0x273   :  { %9596 = vst [vmem:[#allocation117_spill] sm:$0xff] %v6302_v57  ;;  %1734 = vmatpush.msrb.mxu1 %v6311_v8  ;;  %1703 = vmatpush.msrb.mxu0 %v6314_v59  ;;  %v6320_v57 = vld [vmem:[#allocation7 + $0x188] sm:$0xff] }
 0x274   :  { %9597 = vst [vmem:[#allocation59_spill] sm:$0xff] %v6305_v0  ;;  %1774 = vmatpush.msrb.mxu3 %v6317_v61  ;;  %1743 = vmatpush.msrb.mxu2 %v6320_v57  ;;  %v6323_v0 = vld [vmem:[#allocation7 + $0x200] sm:$0xff] }
 0x275   :  { %9598 = vst [vmem:[#allocation60_spill] sm:$0xff] %v6308_v26  ;;  %1735 = vmatpush.msrb.mxu1 %v6323_v0  ;;  %v6326_v26 = vld [vmem:[#allocation7 + $0x160] sm:$0xff] }
 0x276   :  { %9599 = vst [vmem:[#allocation118_spill] sm:$0xff] %v6311_v8  ;;  %1704 = vmatpush.msrb.mxu0 %v6326_v26  ;;  %v6329_v8 = vld [vmem:[#allocation7 + $0x208] sm:$0xff] }
 0x277   :  { %9600 = vst [vmem:[#allocation67_spill] sm:$0xff] %v6314_v59  ;;  %1775 = vmatpush.msrb.mxu3 %v6329_v8  ;;  %v6332_v59 = vld [vmem:[#allocation7 + $0x168] sm:$0xff] }
 0x278   :  { %9601 = vst [vmem:[#allocation68_spill] sm:$0xff] %v6317_v61  ;;  %1744 = vmatpush.msrb.mxu2 %v6332_v59  ;;  %v6335_v61 = vld [vmem:[#allocation7 + $0x3f0] sm:$0xff] }
 0x279   :  { %9602 = vst [vmem:[#allocation124_spill] sm:$0xff] %v6320_v57  ;;  %1800 = vmatpush.msra.mxu1 %v6335_v61  ;;  %v6338_v57 = vld [vmem:[#allocation7 + $0x3f8] sm:$0xff] }
 0x27a   :  { %9603 = vst [vmem:[#allocation71_spill] sm:$0xff] %v6323_v0  ;;  %1840 = vmatpush.msra.mxu3 %v6338_v57  ;;  %v6341_v0 = vld [vmem:[#allocation7 + $0x140] sm:$0xff] }
 0x27b   :  { %9604 = vst [vmem:[#allocation128_spill] sm:$0xff] %v6326_v26  ;;  %1705 = vmatpush.msrb.mxu0 %v6341_v0  ;;  %v6344_v26 = vld [vmem:[#allocation7 + $0x148] sm:$0xff] }
 0x27c   :  { %9605 = vst [vmem:[#allocation72_spill] sm:$0xff] %v6329_v8  ;;  %1745 = vmatpush.msrb.mxu2 %v6344_v26  ;;  %v6347_v8 = vld [vmem:[#allocation7 + $0x3d0] sm:$0xff] }
 0x27d   :  { %9606 = vst [vmem:[#allocation129_spill] sm:$0xff] %v6332_v59  ;;  %1801 = vmatpush.msra.mxu1 %v6347_v8  ;;  %v6350_v59 = vld [vmem:[#allocation7 + $0x3d8] sm:$0xff] }
 0x27e   :  { %9607 = vst [vmem:[#allocation75_spill] sm:$0xff] %v6335_v61  ;;  %1841 = vmatpush.msra.mxu3 %v6350_v59  ;;  %v6353_v61 = vld [vmem:[#allocation7 + $0x120] sm:$0xff] }
 0x27f   :  { %9608 = vst [vmem:[#allocation132_spill] sm:$0xff] %v6338_v57  ;;  %1706 = vmatpush.msrb.mxu0 %v6353_v61  ;;  %v6356_v57 = vld [vmem:[#allocation7 + $0x128] sm:$0xff] }
 0x280   :  { %9609 = vst [vmem:[#allocation76_spill] sm:$0xff] %v6341_v0  ;;  %1746 = vmatpush.msrb.mxu2 %v6356_v57  ;;  %v6359_v0 = vld [vmem:[#allocation7 + $0x3b0] sm:$0xff] }
 0x281   :  { %9610 = vst [vmem:[#allocation133_spill] sm:$0xff] %v6344_v26  ;;  %1802 = vmatpush.msra.mxu1 %v6359_v0  ;;  %v6362_v26 = vld [vmem:[#allocation7 + $0x3b8] sm:$0xff] }
 0x282   :  { %9611 = vst [vmem:[#allocation79_spill] sm:$0xff] %v6347_v8  ;;  %1842 = vmatpush.msra.mxu3 %v6362_v26  ;;  %v6365_v8 = vld [vmem:[#allocation7 + $0x100] sm:$0xff] }
 0x283   :  { %9612 = vst [vmem:[#allocation80_spill] sm:$0xff] %v6350_v59  ;;  %1707 = vmatpush.msrb.mxu0 %v6365_v8  ;;  %v6368_v59 = vld [vmem:[#allocation7 + $0x108] sm:$0xff] }
 0x284   :  { %9613 = vst [vmem:[#allocation87_spill] sm:$0xff] %v6353_v61  ;;  %1747 = vmatpush.msrb.mxu2 %v6368_v59  ;;  %v6371_v61 = vld [vmem:[#allocation7 + $0x390] sm:$0xff] }
 0x285   :  { %9614 = vst [vmem:[#allocation88_spill] sm:$0xff] %v6356_v57  ;;  %1803 = vmatpush.msra.mxu1 %v6371_v61  ;;  %v6374_v57 = vld [vmem:[#allocation7 + $0x398] sm:$0xff] }
 0x286   :  { %9615 = vst [vmem:[#allocation91_spill] sm:$0xff] %v6359_v0  ;;  %1843 = vmatpush.msra.mxu3 %v6374_v57  ;;  %v6377_v0 = vld [vmem:[#allocation7 + $0xe0] sm:$0xff] }
 0x287   :  { %9616 = vst [vmem:[#allocation92_spill] sm:$0xff] %v6362_v26  ;;  %1708 = vmatpush.msrb.mxu0 %v6377_v0  ;;  %v6380_v26 = vld [vmem:[#allocation7 + $0xe8] sm:$0xff] }
 0x288   :  { %9617 = vst [vmem:[#allocation95_spill] sm:$0xff] %v6365_v8  ;;  %1748 = vmatpush.msrb.mxu2 %v6380_v26  ;;  %v6383_v8 = vld [vmem:[#allocation7 + $0x370] sm:$0xff] }
 0x289   :  { %9618 = vst [vmem:[#allocation96_spill] sm:$0xff] %v6368_v59  ;;  %1804 = vmatpush.msra.mxu1 %v6383_v8  ;;  %v6386_v59 = vld [vmem:[#allocation7 + $0x378] sm:$0xff] }
 0x28a   :  { %9619 = vst [vmem:[#allocation99_spill] sm:$0xff] %v6371_v61  ;;  %1844 = vmatpush.msra.mxu3 %v6386_v59  ;;  %v6389_v61 = vld [vmem:[#allocation7 + $0xc0] sm:$0xff] }
 0x28b   :  { %9620 = vst [vmem:[#allocation100_spill] sm:$0xff] %v6374_v57  ;;  %1709 = vmatpush.msrb.mxu0 %v6389_v61  ;;  %v6392_v57 = vld [vmem:[#allocation7 + $0xc8] sm:$0xff] }
 0x28c   :  { %9621 = vst [vmem:[#allocation107_spill] sm:$0xff] %v6377_v0  ;;  %1749 = vmatpush.msrb.mxu2 %v6392_v57  ;;  %v6395_v0 = vld [vmem:[#allocation7 + $0x350] sm:$0xff] }
 0x28d   :  { %9622 = vst [vmem:[#allocation108_spill] sm:$0xff] %v6380_v26  ;;  %1805 = vmatpush.msra.mxu1 %v6395_v0  ;;  %v6398_v26 = vld [vmem:[#allocation7 + $0x358] sm:$0xff] }
 0x28e   :  { %9623 = vst [vmem:[#allocation111_spill] sm:$0xff] %v6383_v8  ;;  %1845 = vmatpush.msra.mxu3 %v6398_v26  ;;  %v6401_v8 = vld [vmem:[#allocation7 + $0xa0] sm:$0xff] }
 0x28f   :  { %9624 = vst [vmem:[#allocation112_spill] sm:$0xff] %v6386_v59  ;;  %1710 = vmatpush.msrb.mxu0 %v6401_v8  ;;  %v6404_v59 = vld [vmem:[#allocation7 + $0xa8] sm:$0xff] }
 0x290   :  { %9625 = vst [vmem:[#allocation115_spill] sm:$0xff] %v6389_v61  ;;  %1750 = vmatpush.msrb.mxu2 %v6404_v59  ;;  %v6407_v61 = vld [vmem:[#allocation7 + $0x330] sm:$0xff] }
 0x291   :  { %9626 = vst [vmem:[#allocation116_spill] sm:$0xff] %v6392_v57  ;;  %1806 = vmatpush.msra.mxu1 %v6407_v61  ;;  %v6410_v57 = vld [vmem:[#allocation7 + $0x338] sm:$0xff] }
 0x292   :  { %9627 = vst [vmem:[#allocation120_spill] sm:$0xff] %v6395_v0  ;;  %1846 = vmatpush.msra.mxu3 %v6410_v57  ;;  %v6413_v0 = vld [vmem:[#allocation7 + $0x80] sm:$0xff] }
 0x293   :  { %9628 = vst [vmem:[#allocation121_spill] sm:$0xff] %v6398_v26  ;;  %1711 = vmatpush.msrb.mxu0 %v6413_v0  ;;  %v6416_v26 = vld [vmem:[#allocation7 + $0x88] sm:$0xff] }
 0x294   :  { %9629 = vst [vmem:[#allocation126_spill] sm:$0xff] %v6401_v8  ;;  %1751 = vmatpush.msrb.mxu2 %v6416_v26  ;;  %v6419_v8 = vld [vmem:[#allocation7 + $0x310] sm:$0xff] }
 0x295   :  { %9630 = vst [vmem:[#allocation127_spill] sm:$0xff] %v6404_v59  ;;  %1807 = vmatpush.msra.mxu1 %v6419_v8  ;;  %v6422_v59 = vld [vmem:[#allocation7 + $0x318] sm:$0xff] }
 0x296   :  { %9631 = vst [vmem:[#allocation130_spill] sm:$0xff] %v6407_v61  ;;  %1847 = vmatpush.msra.mxu3 %v6422_v59  ;;  %v6425_v61 = vld [vmem:[#allocation7 + $0x60] sm:$0xff] }
 0x297   :  { %9632 = vst [vmem:[#allocation131_spill] sm:$0xff] %v6410_v57  ;;  %1712 = vmatpush.msrb.mxu0 %v6425_v61  ;;  %v6428_v57 = vld [vmem:[#allocation7 + $0x68] sm:$0xff] }
 0x298   :  { %9633 = vst [vmem:[#allocation134_spill] sm:$0xff] %v6413_v0  ;;  %1752 = vmatpush.msrb.mxu2 %v6428_v57  ;;  %v6431_v0 = vld [vmem:[#allocation7 + $0x2f0] sm:$0xff] }
 0x299   :  { %9634 = vst [vmem:[#allocation135_spill] sm:$0xff] %v6416_v26  ;;  %1808 = vmatpush.msra.mxu1 %v6431_v0  ;;  %v6434_v26 = vld [vmem:[#allocation7 + $0x2f8] sm:$0xff] }
 0x29a   :  { %9635 = vst [vmem:[#allocation139_spill] sm:$0xff] %v6419_v8  ;;  %1848 = vmatpush.msra.mxu3 %v6434_v26  ;;  %v6437_v8 = vld [vmem:[#allocation7 + $0x40] sm:$0xff] }
 0x29b   :  { %9636 = vst [vmem:[#allocation140_spill] sm:$0xff] %v6422_v59  ;;  %1713 = vmatpush.msrb.mxu0 %v6437_v8  ;;  %v6440_v59 = vld [vmem:[#allocation7 + $0x48] sm:$0xff] }
 0x29c   :  { %9637 = vst [vmem:[#allocation141_spill] sm:$0xff] %v6425_v61  ;;  %1753 = vmatpush.msrb.mxu2 %v6440_v59  ;;  %v6443_v61 = vld [vmem:[#allocation7 + $0x2d0] sm:$0xff] }
 0x29d   :  { %9638 = vst [vmem:[#allocation143_spill] sm:$0xff] %v6428_v57  ;;  %1809 = vmatpush.msra.mxu1 %v6443_v61  ;;  %v6446_v57 = vld [vmem:[#allocation7 + $0x2d8] sm:$0xff] }
 0x29e   :  { %9639 = vst [vmem:[#allocation144_spill] sm:$0xff] %v6431_v0  ;;  %1849 = vmatpush.msra.mxu3 %v6446_v57  ;;  %v6449_v0 = vld [vmem:[#allocation7 + $0x20] sm:$0xff] }
 0x29f   :  { %9640 = vst [vmem:[#allocation150_spill] sm:$0xff] %v6434_v26  ;;  %1714 = vmatpush.msrb.mxu0 %v6449_v0  ;;  %v6452_v26 = vld [vmem:[#allocation7 + $0x28] sm:$0xff] }
 0x2a0   :  { %9641 = vst [vmem:[#allocation151_spill] sm:$0xff] %v6437_v8  ;;  %1754 = vmatpush.msrb.mxu2 %v6452_v26  ;;  %v6455_v8 = vld [vmem:[#allocation7 + $0x2b0] sm:$0xff] }
 0x2a1   :  { %9642 = vst [vmem:[#allocation12_spill] sm:$0xff] %v6440_v59  ;;  %1810 = vmatpush.msra.mxu1 %v6455_v8  ;;  %v6458_v59 = vld [vmem:[#allocation7 + $0x2b8] sm:$0xff] }
 0x2a2   :  { %9643 = vst [vmem:[#allocation13_spill] sm:$0xff] %v6443_v61  ;;  %1850 = vmatpush.msra.mxu3 %v6458_v59  ;;  %v6461_v61 = vld [vmem:[#allocation7] sm:$0xff] }
 0x2a3   :  { %9644 = vst [vmem:[#allocation62_spill] sm:$0xff] %v6446_v57  ;;  %1715 = vmatpush.msrb.mxu0 %v6461_v61  ;;  %v6464_v57 = vld [vmem:[#allocation7 + $0x8] sm:$0xff] }
 0x2a4   :  { %9645 = vst [vmem:[#allocation63_spill] sm:$0xff] %v6449_v0  ;;  %1755 = vmatpush.msrb.mxu2 %v6464_v57  ;;  %v6467_v0 = vld [vmem:[#allocation7 + $0x290] sm:$0xff] }
 0x2a5   :  { %9646 = vst [vmem:[#allocation10_spill] sm:$0xff] %v6452_v26  ;;  %1811 = vmatpush.msra.mxu1 %v6467_v0  ;;  %v6470_v26 = vld [vmem:[#allocation7 + $0x298] sm:$0xff] }
 0x2a6   :  { %9647 = vst [vmem:[#allocation11_spill] sm:$0xff] %v6455_v8  ;;  %1851 = vmatpush.msra.mxu3 %v6470_v26  ;;  %v6473_v8 = vld [vmem:[#allocation7 + $0x1f0] sm:$0xff] }
 0x2a7   :  { %9648 = vst [vmem:[#allocation51_spill] sm:$0xff] %v6458_v59  ;;  %1780 = vmatpush.msra.mxu0 %v6473_v8  ;;  %v6476_v59 = vld [vmem:[#allocation7 + $0x1f8] sm:$0xff] }
 0x2a8   :  { %9649 = vst [vmem:[#allocation52_spill] sm:$0xff] %v6461_v61  ;;  %1820 = vmatpush.msra.mxu2 %v6476_v59  ;;  %v6479_v61 = vld [vmem:[#allocation7 + $0x270] sm:$0xff] }
 0x2a9   :  { %9650 = vst [vmem:[#allocation36_spill] sm:$0xff] %v6464_v57  ;;  %1812 = vmatpush.msra.mxu1 %v6479_v61  ;;  %v6482_v57 = vld [vmem:[#allocation7 + $0x278] sm:$0xff] }
 0x2aa   :  { %9651 = vst [vmem:[#allocation37_spill] sm:$0xff] %v6467_v0  ;;  %1852 = vmatpush.msra.mxu3 %v6482_v57  ;;  %v6485_v0 = vld [vmem:[#allocation7 + $0x1d0] sm:$0xff] }
 0x2ab   :  { %9652 = vst [vmem:[#allocation38_spill] sm:$0xff] %v6470_v26  ;;  %1781 = vmatpush.msra.mxu0 %v6485_v0  ;;  %v6488_v26 = vld [vmem:[#allocation7 + $0x1d8] sm:$0xff] }
 0x2ac   :  { %9653 = vst [vmem:[#allocation41_spill] sm:$0xff] %v6473_v8  ;;  %1821 = vmatpush.msra.mxu2 %v6488_v26  ;;  %v6491_v8 = vld [vmem:[#allocation7 + $0x250] sm:$0xff] }
 0x2ad   :  { %9654 = vst [vmem:[#allocation42_spill] sm:$0xff] %v6476_v59  ;;  %1813 = vmatpush.msra.mxu1 %v6491_v8  ;;  %v6494_v59 = vld [vmem:[#allocation7 + $0x258] sm:$0xff] }
 0x2ae   :  { %9655 = vst [vmem:[#allocation43_spill] sm:$0xff] %v6479_v61  ;;  %1853 = vmatpush.msra.mxu3 %v6494_v59  ;;  %v6497_v61 = vld [vmem:[#allocation7 + $0x1b0] sm:$0xff] }
 0x2af   :  { %9656 = vst [vmem:[#allocation44_spill] sm:$0xff] %v6482_v57  ;;  %1782 = vmatpush.msra.mxu0 %v6497_v61  ;;  %v6500_v57 = vld [vmem:[#allocation7 + $0x1b8] sm:$0xff] }
 0x2b0   :  { %9657 = vst [vmem:[#allocation45_spill] sm:$0xff] %v6485_v0  ;;  %1822 = vmatpush.msra.mxu2 %v6500_v57  ;;  %v6503_v0 = vld [vmem:[#allocation7 + $0x230] sm:$0xff] }
 0x2b1   :  { %9658 = vst [vmem:[#allocation46_spill] sm:$0xff] %v6488_v26  ;;  %1814 = vmatpush.msra.mxu1 %v6503_v0  ;;  %v6506_v26 = vld [vmem:[#allocation7 + $0x238] sm:$0xff] }
 0x2b2   :  { %9659 = vst [vmem:[#allocation156_spill] sm:$0xff] %v6491_v8  ;;  %1854 = vmatpush.msra.mxu3 %v6506_v26  ;;  %v6509_v8 = vld [vmem:[#allocation7 + $0x190] sm:$0xff] }
 0x2b3   :  { %9660 = vst [vmem:[#allocation157_spill] sm:$0xff] %v6494_v59  ;;  %1783 = vmatpush.msra.mxu0 %v6509_v8  ;;  %v6512_v59 = vld [vmem:[#allocation7 + $0x198] sm:$0xff] }
 0x2b4   :  { %9661 = vst [vmem:[#allocation158_spill] sm:$0xff] %v6497_v61  ;;  %1823 = vmatpush.msra.mxu2 %v6512_v59  ;;  %v6515_v61 = vld [vmem:[#allocation7 + $0x210] sm:$0xff] }
 0x2b5   :  { %9662 = vst [vmem:[#allocation159_spill] sm:$0xff] %v6500_v57  ;;  %1815 = vmatpush.msra.mxu1 %v6515_v61  ;;  %v6518_v57 = vld [vmem:[#allocation7 + $0x218] sm:$0xff]  ;;  %v1400_v29 = vpop.f32.mrf.mxu3 }
 0x2b6   :  { %9663 = vst [vmem:[#allocation160_spill] sm:$0xff] %v6503_v0  ;;  %1855 = vmatpush.msra.mxu3 %v6518_v57  ;;  %v6521_v0 = vld [vmem:[#allocation7 + $0x170] sm:$0xff] }
 0x2b7   :  { %9664 = vst [vmem:[#allocation161_spill] sm:$0xff] %v6506_v26  ;;  %1784 = vmatpush.msra.mxu0 %v6521_v0  ;;  %v6524_v26 = vld [vmem:[#allocation7 + $0x178] sm:$0xff] }
 0x2b8   :  { %9665 = vst [vmem:[#allocation162_spill] sm:$0xff] %v6509_v8  ;;  %1824 = vmatpush.msra.mxu2 %v6524_v26  ;;  %v6527_v8 = vld [vmem:[#allocation7 + $0x150] sm:$0xff] }
 0x2b9   :  { %9666 = vst [vmem:[#allocation163_spill] sm:$0xff] %v6512_v59  ;;  %1785 = vmatpush.msra.mxu0 %v6527_v8  ;;  %v6530_v59 = vld [vmem:[#allocation7 + $0x158] sm:$0xff] }
 0x2ba   :  { %9667 = vst [vmem:[#allocation164_spill] sm:$0xff] %v6515_v61  ;;  %1825 = vmatpush.msra.mxu2 %v6530_v59  ;;  %v6533_v61 = vld [vmem:[#allocation7 + $0x130] sm:$0xff] }
 0x2bb   :  { %9668 = vst [vmem:[#allocation165_spill] sm:$0xff] %v6518_v57  ;;  %1786 = vmatpush.msra.mxu0 %v6533_v61  ;;  %v6536_v57 = vld [vmem:[#allocation7 + $0x138] sm:$0xff] }
 0x2bc   :  { %9669 = vst [vmem:[#allocation166_spill] sm:$0xff] %v6521_v0  ;;  %1826 = vmatpush.msra.mxu2 %v6536_v57  ;;  %v6539_v0 = vld [vmem:[#allocation7 + $0x110] sm:$0xff] }
 0x2bd   :  { %9670 = vst [vmem:[#allocation167_spill] sm:$0xff] %v6524_v26  ;;  %1787 = vmatpush.msra.mxu0 %v6539_v0  ;;  %v6542_v26 = vld [vmem:[#allocation7 + $0x118] sm:$0xff]  ;;  %v1480_v28 = vpop.f32.mrf.mxu3 }
 0x2be   :  { %9671 = vst [vmem:[#allocation168_spill] sm:$0xff] %v6527_v8  ;;  %1827 = vmatpush.msra.mxu2 %v6542_v26  ;;  %v6545_v8 = vld [vmem:[#allocation7 + $0xf0] sm:$0xff] }
 0x2bf   :  { %9672 = vst [vmem:[#allocation169_spill] sm:$0xff] %v6530_v59  ;;  %1788 = vmatpush.msra.mxu0 %v6545_v8  ;;  %v6548_v59 = vld [vmem:[#allocation7 + $0xf8] sm:$0xff] }
 0x2c0   :  { %9673 = vst [vmem:[#allocation170_spill] sm:$0xff] %v6533_v61  ;;  %1828 = vmatpush.msra.mxu2 %v6548_v59  ;;  %v6551_v61 = vld [vmem:[#allocation7 + $0xd0] sm:$0xff] }
 0x2c1   :  { %9674 = vst [vmem:[#allocation171_spill] sm:$0xff] %v6536_v57  ;;  %1789 = vmatpush.msra.mxu0 %v6551_v61  ;;  %v6554_v57 = vld [vmem:[#allocation7 + $0xd8] sm:$0xff] }
 0x2c2   :  { %9675 = vst [vmem:[#allocation172_spill] sm:$0xff] %v6539_v0  ;;  %1829 = vmatpush.msra.mxu2 %v6554_v57  ;;  %v6557_v0 = vld [vmem:[#allocation7 + $0xb0] sm:$0xff] }
 0x2c3   :  { %9676 = vst [vmem:[#allocation173_spill] sm:$0xff] %v6542_v26  ;;  %1790 = vmatpush.msra.mxu0 %v6557_v0  ;;  %v6560_v26 = vld [vmem:[#allocation7 + $0xb8] sm:$0xff] }
 0x2c4   :  { %9677 = vst [vmem:[#allocation174_spill] sm:$0xff] %v6545_v8  ;;  %1830 = vmatpush.msra.mxu2 %v6560_v26  ;;  %v6563_v8 = vld [vmem:[#allocation7 + $0x90] sm:$0xff] }
 0x2c5   :  { %9678 = vst [vmem:[#allocation175_spill] sm:$0xff] %v6548_v59  ;;  %1791 = vmatpush.msra.mxu0 %v6563_v8  ;;  %v6566_v59 = vld [vmem:[#allocation7 + $0x98] sm:$0xff] }
 0x2c6   :  { %9679 = vst [vmem:[#allocation176_spill] sm:$0xff] %v6551_v61  ;;  %1831 = vmatpush.msra.mxu2 %v6566_v59  ;;  %v6569_v61 = vld [vmem:[#allocation7 + $0x70] sm:$0xff] }
 0x2c7   :  { %9680 = vst [vmem:[#allocation177_spill] sm:$0xff] %v6554_v57  ;;  %1792 = vmatpush.msra.mxu0 %v6569_v61  ;;  %v6572_v57 = vld [vmem:[#allocation7 + $0x78] sm:$0xff]  ;;  %v1340_v22 = vpop.f32.mrf.mxu0 }
 0x2c8   :  { %9681 = vst [vmem:[#allocation178_spill] sm:$0xff] %v6557_v0  ;;  %1832 = vmatpush.msra.mxu2 %v6572_v57  ;;  %v6575_v0 = vld [vmem:[#allocation7 + $0x50] sm:$0xff] }
 0x2c9   :  { %9682 = vst [vmem:[#allocation179_spill] sm:$0xff] %v6560_v26  ;;  %1793 = vmatpush.msra.mxu0 %v6575_v0  ;;  %v6578_v26 = vld [vmem:[#allocation7 + $0x58] sm:$0xff] }
 0x2ca   :  { %9683 = vst [vmem:[#allocation180_spill] sm:$0xff] %v6563_v8  ;;  %1833 = vmatpush.msra.mxu2 %v6578_v26  ;;  %v6581_v8 = vld [vmem:[#allocation7 + $0x30] sm:$0xff] }
 0x2cb   :  { %9684 = vst [vmem:[#allocation181_spill] sm:$0xff] %v6566_v59  ;;  %1794 = vmatpush.msra.mxu0 %v6581_v8  ;;  %v6584_v59 = vld [vmem:[#allocation7 + $0x38] sm:$0xff] }
 0x2cc   :  { %9685 = vst [vmem:[#allocation182_spill] sm:$0xff] %v6569_v61  ;;  %1834 = vmatpush.msra.mxu2 %v6584_v59  ;;  %v6587_v61 = vld [vmem:[#allocation7 + $0x10] sm:$0xff] }
 0x2cd   :  { %9686 = vst [vmem:[#allocation183_spill] sm:$0xff] %v6572_v57  ;;  %1795 = vmatpush.msra.mxu0 %v6587_v61  ;;  %v6590_v57 = vld [vmem:[#allocation7 + $0x18] sm:$0xff] }
 0x2ce   :  { %9687 = vst [vmem:[#allocation184_spill] sm:$0xff] %v6575_v0  ;;  %1835 = vmatpush.msra.mxu2 %v6590_v57  ;;  %v1360_v0 = vpop.f32.mrf.mxu1 }
 0x2cf   :  { %9688 = vst [vmem:[#allocation185_spill] sm:$0xff] %v6578_v26  ;;  %v1341_v26 = vadd.f32 %v1340_v22, %v5993_v18 }
 0x2d0   :  { %9689 = vst [vmem:[#allocation186_spill] sm:$0xff] %v6581_v8 }
 0x2d1   :  { %9690 = vst [vmem:[#allocation187_spill] sm:$0xff] %v6584_v59  ;;  %v1361_v47 = vadd.f32 %v1360_v0, %v1341_v26  ;;  %v1380_v59 = vpop.f32.mrf.mxu2  ;;  %v9695_v26 = vld [vmem:[#allocation82_spill] sm:$0xff] }
 0x2d2   :  { %9691 = vst [vmem:[#allocation188_spill] sm:$0xff] %v6587_v61  ;;  %v1381_v34 = vadd.f32 %v1380_v59, %v5996_v37  ;;  %v500_v12 = vadd.f32 %v9695_v26, %v5651_v56  ;;  %v1420_v59 = vpop.f32.mrf.mxu0 }
 0x2d3   :  { %9692 = vst [vmem:[#allocation189_spill] sm:$0xff] %v6590_v57  ;;  %v3871_v8 = vmul.f32 -1.442695, %v1361_v47 }
 0x2d4   :  { %v1401_v61 = vadd.f32 %v1400_v29, %v1381_v34 }
 0x2d5   :  { %3965 = vpow2.f32 %v3871_v8 }
 0x2d6   :  { %v1440_v11 = vpop.f32.mrf.mxu1  ;;  %v3872_v57 = vmul.f32 -1.442695, %v1401_v61  ;;  %v541_v61 = vadd.f32 %v9696_v25, %v500_v12 }
 0x2d8   :  { %3967 = vpow2.f32 %v3872_v57  ;;  %v1630_v40 = vpop.f32.mrf.mxu3 }
 0x2d9   :  { %v1460_v18 = vpop.f32.mrf.mxu2 }
 0x2da   :  { %v1461_v8 = vadd.f32 %v1460_v18, %v6002_v51 }
 0x2db   :  { %v3966_v33 = vpop.eup %3965 }
 0x2dc   :  { %v1486_v22 = vadd.f32 1.0, %v3966_v33  ;;  %v1481_v34 = vadd.f32 %v1480_v28, %v1461_v8  ;;  %v1421_v33 = vadd.f32 %v1420_v59, %v6008_v24  ;;  %v9697_v28 = vld [vmem:[#allocation14_spill] sm:$0xff] }
 0x2de   :  { %v1590_v44 = vpop.f32.mrf.mxu1  ;;  %3969 = vrcp.f32 %v1486_v22  ;;  %v3968_v0 = vpop.eup %3967  ;;  %v1441_v56 = vadd.f32 %v1440_v11, %v1421_v33  ;;  %v1498_v25 = vand.u32 2147483648, %v1486_v22  ;;  %vm1492_vm5 = vweird.f32 %v1486_v22  ;;  %v9698_v11 = vld [vmem:[#allocation15_spill] sm:$0xff] }
 0x2df   :  { %v1634_v36 = vadd.f32 %v1590_v44, %v377_v30  ;;  %v1505_v29 = vadd.f32 1.0, %v3968_v0  ;;  %v3873_v44 = vmul.f32 -1.442695, %v1481_v34 }
 0x2e1   :  { %v3875_v47 = vmul.f32 -1.442695, %v1634_v36  ;;  %v1636_v36 = vadd.f32 %v1630_v40, %v541_v61  ;;  %v1496_v40 = vand.u32 2147483647, %v1486_v22  ;;  %v1517_v61 = vand.u32 2147483648, %v1505_v29 }
 0x2e2   :  { %vm1511_vm8 = vweird.f32 %v1505_v29 }
 0x2e3   :  { %3971 = vpow2.f32 %v3875_v47  ;;  %v3876_v51 = vmul.f32 -1.442695, %v1636_v36  ;;  %v254_v47 = vadd.f32 %v9697_v28, %v9550_v23  ;;  %vm1497_vm9 = vcmp.eq.f32.partialorder %v1496_v40, 8.507059e+37 }
 0x2e4   :  { %v3970_v30 = vpop.eup %3969  ;;  %3973 = vrcp.f32 %v1505_v29 }
 0x2e5   :  { %v1488_v57 = vmul.f32 %v3970_v30, %v1486_v22  ;;  %3975 = vpow2.f32 %v3873_v44  ;;  %vm1493_vm4 = vweird.f32 %v3970_v30 }
 0x2e6   :  { %3977 = vtanh.f32 %v1441_v56  ;;  %vm6608_vm6 = vmor %vm1492_vm5, %vm1493_vm4 }
 0x2e7   :  { %v1489_v37 = vsub.f32 1.0, %v1488_v57  ;;  %3979 = vpow2.f32 %v3876_v51  ;;  %v1515_v57 = vand.u32 2147483647, %v1505_v29 }
 0x2e8   :  { %v1570_v56 = vpop.f32.mrf.mxu0 }
 0x2e9   :  { %v3972_v26 = vpop.eup %3971  ;;  %v1490_v18 = vmul.f32 %v3970_v30, %v1489_v37  ;;  %v295_v37 = vadd.f32 %v9698_v11, %v254_v47  ;;  %v1518_v47 = vor.u32 1.1754944e-38, %v1517_v61  ;;  %vm1516_vm11 = vcmp.eq.f32.partialorder %v1515_v57, 8.507059e+37 }
 0x2ea   :  { %v3974_v41 = vpop.eup %3973  ;;  %v6605_v34 = vadd.f32 1.0, %v3972_v26 }
 0x2eb   :  { %v3976_v8 = vpop.eup %3975  ;;  %v1507_v0 = vmul.f32 %v3974_v41, %v1505_v29  ;;  %v1491_v12 = vadd.f32 %v3970_v30, %v1490_v18  ;;  %vm1512_vm7 = vweird.f32 %v3974_v41  ;;  %v1499_v18 = vor.u32 1.1754944e-38, %v1498_v25 }
 0x2ec   :  { %v1525_v59 = vadd.f32 1.0, %v3976_v8  ;;  %v1633_v22 = vadd.f32 %v1570_v56, %v295_v37  ;;  %v3978_v28 = vpop.eup %3977  ;;  %vm1513_vm10 = vmor %vm1511_vm8, %vm1512_vm7  ;;  %vm1665_vm1 = vweird.f32 %v6605_v34 }
 0x2ed   :  { %v1508_v44 = vsub.f32 1.0, %v1507_v0  ;;  %v1495_v26 = vsel %vm6608_vm6, %v3970_v30, %v1491_v12  ;;  %v3980_v11 = vpop.eup %3979 }
 0x2ee   :  { %3981 = vrcp.f32 %v1525_v59  ;;  %v1500_v8 = vsel %vm1497_vm9, %v1499_v18, %v1495_v26  ;;  %v3874_v0 = vmul.f32 -1.442695, %v1633_v22  ;;  %v6622_v33 = vadd.f32 1.0, %v3980_v11 }
 0x2ef   :  { %v1509_v36 = vmul.f32 %v3974_v41, %v1508_v44  ;;  %3983 = vrcp.f32 %v6605_v34  ;;  %v1542_v25 = vmul.f32 %v3978_v28, %v1500_v8  ;;  %v1537_v57 = vand.u32 2147483648, %v1525_v59 }
 0x2f0   :  { %3985 = vpow2.f32 %v3874_v0  ;;  %vm1531_vm13 = vweird.f32 %v1525_v59  ;;  %v1610_v0 = vpop.f32.mrf.mxu2  ;;  %vm1685_vm9 = vweird.f32 %v6622_v33 }
 0x2f1   :  { %v1510_v51 = vadd.f32 %v3974_v41, %v1509_v36  ;;  %v1535_v36 = vand.u32 2147483647, %v1525_v59  ;;  %v1538_v22 = vor.u32 1.1754944e-38, %v1537_v57 }
 0x2f3   :  { %v1514_v23 = vsel %vm1513_vm10, %v3974_v41, %v1510_v51  ;;  %vm1536_vm15 = vcmp.eq.f32.partialorder %v1535_v36, 8.507059e+37 }
 0x2f4   :  { %v3982_v44 = vpop.eup %3981  ;;  %v1519_v24 = vsel %vm1516_vm11, %v1518_v47, %v1514_v23 }
 0x2f5   :  { %v6615_v30 = vpop.eup %3983  ;;  %v1541_v12 = vmul.f32 %v1519_v24, %v6029_v6  ;;  %v1527_v37 = vmul.f32 %v3982_v44, %v1525_v59  ;;  %vm1532_vm12 = vweird.f32 %v3982_v44  ;;  %v9701_v6 = vld [vmem:[#allocation65_spill] sm:$0xff] }
 0x2f6   :  { %v1661_v61 = vmul.f32 %v6615_v30, %v6605_v34  ;;  %v3986_v23 = vpop.eup %3985  ;;  %v418_v18 = vadd.f32 %v9701_v6, %v5711_v9  ;;  %vm1533_vm14 = vmor %vm1531_vm13, %vm1532_vm12  ;;  %vm1666_vm0 = vweird.f32 %v6615_v30 }
 0x2f7   :  { %v6618_v29 = vadd.f32 %v1542_v25, %v1541_v12  ;;  %v1528_v40 = vsub.f32 1.0, %v1527_v37  ;;  %v1640_v26 = vadd.f32 1.0, %v3986_v23  ;;  %v9702_v12 = vld [vmem:[#allocation66_spill] sm:$0xff]  ;;  %vm6643_vm2 = vmor %vm1665_vm1, %vm1666_vm0 }
 0x2f8   :  { %v1662_v24 = vsub.f32 1.0, %v1661_v61  ;;  %v459_v25 = vadd.f32 %v9702_v12, %v418_v18  ;;  %v9711_v12 = vld [vmem:[#allocation61_spill] sm:$0xff] }
 0x2f9   :  { %3987 = vtanh.f32 %v6618_v29  ;;  %v1529_v41 = vmul.f32 %v3982_v44, %v1528_v40  ;;  %v1652_v36 = vand.u32 2147483648, %v1640_v26  ;;  %vm1646_vm4 = vweird.f32 %v1640_v26 }
 0x2fa   :  { %3989 = vrcp.f32 %v6622_v33  ;;  %v1663_v8 = vmul.f32 %v6615_v30, %v1662_v24  ;;  %v1635_v40 = vadd.f32 %v1610_v0, %v459_v25  ;;  %v9710_v0 = vld [vmem:[#allocation58_spill] sm:$0xff] }
 0x2fb   :  { %v1530_v56 = vadd.f32 %v3982_v44, %v1529_v41  ;;  %3991 = vrcp.f32 %v1640_v26  ;;  %v1671_v41 = vand.u32 2147483648, %v6605_v34  ;;  %v6767_v25 = vld [vmem:[#allocation5 + $0xa0] sm:$0xff] }
 0x2fc   :  { %v1664_v61 = vadd.f32 %v6615_v30, %v1663_v8  ;;  %3993 = vtanh.f32 %v1635_v40  ;;  %v6759_v8 = vld [vmem:[#allocation5 + $0xc0] sm:$0xff]  ;;  %v9713_v40 = vld [vmem:[#allocation69_spill] sm:$0xff] }
 0x2fd   :  { %v1534_v51 = vsel %vm1533_vm14, %v3982_v44, %v1530_v56  ;;  %v1672_v24 = vor.u32 1.1754944e-38, %v1671_v41  ;;  %v6779_v41 = vld [vmem:[#allocation5 + $0x90] sm:$0xff] }
 0x2fe   :  { %v1539_v47 = vsel %vm1536_vm15, %v1538_v22, %v1534_v51  ;;  %v6751_v51 = vld [vmem:[#allocation5 + $0xe0] sm:$0xff] }
 0x2ff   :  { %v3988_v28 = vpop.eup %3987 }
 0x300   :  { %v1545_v11 = vmul.f32 %v3988_v28, %v1539_v47  ;;  %v6630_v37 = vpop.eup %3989  ;;  %v6755_v28 = vld [vmem:[#allocation5 + $0xf0] sm:$0xff]  ;;  %v9709_v47 = vld [vmem:[#allocation57_spill] sm:$0xff] }
 0x301   :  { %v3992_v59 = vpop.eup %3991  ;;  %v1681_v57 = vmul.f32 %v6630_v37, %v6622_v33  ;;  %vm1686_vm8 = vweird.f32 %v6630_v37 }
 0x302   :  { %1736 = vmatmul.f32.vlgmr.msrb.gmra.mxu1 %v1545_v11  ;;  %1776 = vmatmul.f32.vlgmr.msrb.gmra.mxu3 %v1545_v11  ;;  %v1642_v44 = vmul.f32 %v3992_v59, %v1640_v26  ;;  %vm1647_vm3 = vweird.f32 %v3992_v59  ;;  %vm1687_vm10 = vmor %vm1685_vm9, %vm1686_vm8 }
 0x303   :  { %1950 = vmatpush.msrb.mxu1 %v6048_v55  ;;  %1990 = vmatpush.msrb.mxu3 %v6051_v17  ;;  %v1669_v55 = vand.u32 2147483647, %v6605_v34  ;;  %v1682_v6 = vsub.f32 1.0, %v1681_v57  ;;  %vm1648_vm6 = vmor %vm1646_vm4, %vm1647_vm3  ;;  %v9715_v57 = vld [vmem:[#allocation73_spill] sm:$0xff]  ;;  %v6787_v17 = vld [vmem:[#allocation5 + $0x70] sm:$0xff] }
 0x304   :  { %v1643_v23 = vsub.f32 1.0, %v1642_v44  ;;  %v6775_v44 = vld [vmem:[#allocation5 + $0x80] sm:$0xff] }
 0x305   :  { %1951 = vmatpush.msrb.mxu1 %v6061_v27  ;;  %1991 = vmatpush.msrb.mxu3 %v6064_v42  ;;  %v1650_v27 = vand.u32 2147483647, %v1640_v26  ;;  %v1668_v42 = vsel %vm6643_vm2, %v6615_v30, %v1664_v61  ;;  %vm1670_vm5 = vcmp.eq.f32.partialorder %v1669_v55, 8.507059e+37  ;;  %v3994_v30 = vpop.eup %3993  ;;  %v1683_v22 = vmul.f32 %v6630_v37, %v1682_v6  ;;  %v9714_v61 = vld [vmem:[#allocation70_spill] sm:$0xff] }
 0x306   :  { %v1644_v56 = vmul.f32 %v3992_v59, %v1643_v23  ;;  %v6783_v23 = vld [vmem:[#allocation5 + $0x60] sm:$0xff] }
 0x307   :  { %1952 = vmatpush.msrb.mxu1 %v6071_v1  ;;  %1992 = vmatpush.msrb.mxu3 %v6074_v38  ;;  %v1653_v1 = vor.u32 1.1754944e-38, %v1652_v36  ;;  %v1673_v38 = vsel %vm1670_vm5, %v1672_v24, %v1668_v42  ;;  %vm1651_vm7 = vcmp.eq.f32.partialorder %v1650_v27, 8.507059e+37  ;;  %v9716_v55 = vld [vmem:[#allocation74_spill] sm:$0xff]  ;;  %v9717_v36 = vld [vmem:[#allocation77_spill] sm:$0xff]  ;;  %v6795_v42 = vld [vmem:[#allocation5 + $0x50] sm:$0xff] }
 0x308   :  { %v1645_v34 = vadd.f32 %v3992_v59, %v1644_v56  ;;  %v6791_v56 = vld [vmem:[#allocation5 + $0x40] sm:$0xff]  ;;  %v9719_v24 = vld [vmem:[#allocation81_spill] sm:$0xff] }
 0x309   :  { %1953 = vmatpush.msrb.mxu1 %v6078_v32  ;;  %1993 = vmatpush.msrb.mxu3 %v6081_v54  ;;  %v1695_v54 = vmul.f32 %v1673_v38, %v6098_v60  ;;  %v9718_v27 = vld [vmem:[#allocation78_spill] sm:$0xff]  ;;  %v9721_v38 = vld [vmem:[#allocation89_spill] sm:$0xff] }
 0x30a   :  { %1816 = vmatmul.f32.vlgmr.msra.gmra.mxu1 %v1545_v11  ;;  %1856 = vmatmul.f32.vlgmr.msra.gmra.mxu3 %v1545_v11  ;;  %v1649_v18 = vsel %vm1648_vm6, %v3992_v59, %v1645_v34  ;;  %v6763_v11 = vld [vmem:[#allocation5 + $0xd0] sm:$0xff]  ;;  %v6799_v6 = vld [vmem:[#allocation5 + $0x20] sm:$0xff] }
 0x30b   :  { %1954 = vmatpush.msrb.mxu1 %v6085_v20  ;;  %1994 = vmatpush.msrb.mxu3 %v6088_v4  ;;  %v1654_v32 = vsel %vm1651_vm7, %v1653_v1, %v1649_v18  ;;  %v1684_v4 = vadd.f32 %v6630_v37, %v1683_v22  ;;  %v6771_v59 = vld [vmem:[#allocation5 + $0xb0] sm:$0xff]  ;;  %v6807_v18 = vld [vmem:[#allocation5] sm:$0xff] }
 0x30c   :  { %v1696_v26 = vmul.f32 %v3994_v30, %v1654_v32  ;;  %v9720_v34 = vld [vmem:[#allocation84_spill] sm:$0xff]  ;;  %v9722_v30 = vld [vmem:[#allocation90_spill] sm:$0xff]  ;;  %v9723_v32 = vld [vmem:[#allocation93_spill] sm:$0xff] }
 0x30d   :  { %1955 = vmatpush.msrb.mxu1 %v6092_v45  ;;  %1995 = vmatpush.msrb.mxu3 %v6095_v53  ;;  %v1691_v45 = vand.u32 2147483648, %v6622_v33  ;;  %v1689_v53 = vand.u32 2147483647, %v6622_v33  ;;  %v1688_v60 = vsel %vm1687_vm10, %v6630_v37, %v1684_v4  ;;  %v6747_v33 = vld [vmem:[#allocation5 + $0x110] sm:$0xff]  ;;  %v9726_v4 = vld [vmem:[#allocation98_spill] sm:$0xff] }
 0x30e   :  { %v6662_v20 = vadd.f32 %v1696_v26, %v1695_v54  ;;  %v9712_v37 = vld [vmem:[#allocation64_spill] sm:$0xff]  ;;  %v9724_v54 = vld [vmem:[#allocation94_spill] sm:$0xff]  ;;  %v9725_v26 = vld [vmem:[#allocation97_spill] sm:$0xff] }
 0x30f   :  { %1956 = vmatpush.msrb.mxu1 %v6102_v13  ;;  %1996 = vmatpush.msrb.mxu3 %v6105_v15  ;;  %v1692_v13 = vor.u32 1.1754944e-38, %v1691_v45  ;;  %vm1690_vm11 = vcmp.eq.f32.partialorder %v1689_v53, 8.507059e+37  ;;  %v6803_v1 = vld [vmem:[#allocation5 + $0x30] sm:$0xff]  ;;  %v9727_v45 = vld [vmem:[#allocation101_spill] sm:$0xff] }
 0x310   :  { %3995 = vtanh.f32 %v6662_v20  ;;  %v6811_v22 = vld [vmem:[#allocation5 + $0x10] sm:$0xff] }
 0x311   :  { %1957 = vmatpush.msrb.mxu1 %v6112_v62  ;;  %1997 = vmatpush.msrb.mxu3 %v6115_v19  ;;  %v1693_v62 = vsel %vm1690_vm11, %v1692_v13, %v1688_v60  ;;  %v9728_v53 = vld [vmem:[#allocation104_spill] sm:$0xff]  ;;  %v9729_v60 = vld [vmem:[#allocation109_spill] sm:$0xff]  ;;  %v9730_v13 = vld [vmem:[#allocation110_spill] sm:$0xff] }
 0x313   :  { %1958 = vmatpush.msrb.mxu1 %v6119_v52  ;;  %1998 = vmatpush.msrb.mxu3 %v6122_v16  ;;  %v6685_v52 = vld [vmem:[#allocation5 + $0x1e0] sm:$0xff]  ;;  %v6688_v16 = vld [vmem:[#allocation5 + $0x1f0] sm:$0xff] }
 0x315   :  { %1959 = vmatpush.msrb.mxu1 %v6125_v31  ;;  %1999 = vmatpush.msrb.mxu3 %v6128_v46  ;;  %v6693_v31 = vld [vmem:[#allocation5 + $0x1c0] sm:$0xff]  ;;  %v6696_v46 = vld [vmem:[#allocation5 + $0x1d0] sm:$0xff] }
 0x316   :  { %v3996_v15 = vpop.eup %3995 }
 0x317   :  { %1960 = vmatpush.msrb.mxu1 %v6133_v58  ;;  %2000 = vmatpush.msrb.mxu3 %v6136_v39  ;;  %v6679_v19 = vmul.f32 %v3996_v15, %v1693_v62  ;;  %v6701_v58 = vld [vmem:[#allocation5 + $0x1a0] sm:$0xff]  ;;  %v6704_v39 = vld [vmem:[#allocation5 + $0x1b0] sm:$0xff]  ;;  %v9731_v15 = vld [vmem:[#allocation113_spill] sm:$0xff] }
 0x318   :  { %v9732_v62 = vld [vmem:[#allocation114_spill] sm:$0xff] }
 0x319   :  { %1961 = vmatpush.msrb.mxu1 %v6139_v5  ;;  %2001 = vmatpush.msrb.mxu3 %v6142_v10  ;;  %v6709_v5 = vld [vmem:[#allocation5 + $0x180] sm:$0xff]  ;;  %v6712_v10 = vld [vmem:[#allocation5 + $0x190] sm:$0xff] }
 0x31a   :  { %1716 = vmatmul.f32.vlgmr.msrb.gmra.mxu0 %v6679_v19  ;;  %1756 = vmatmul.f32.vlgmr.msrb.gmra.mxu2 %v6679_v19 }
 0x31b   :  { %1930 = vmatpush.msrb.mxu0 %v6685_v52  ;;  %1970 = vmatpush.msrb.mxu2 %v6688_v16 }
 0x31c   :  { %1962 = vmatpush.msrb.mxu1 %v6149_v63  ;;  %2002 = vmatpush.msrb.mxu3 %v6152_v7  ;;  %v6719_v63 = vld [vmem:[#allocation5 + $0x160] sm:$0xff]  ;;  %v6723_v7 = vld [vmem:[#allocation5 + $0x170] sm:$0xff] }
 0x31d   :  { %1931 = vmatpush.msrb.mxu0 %v6693_v31  ;;  %1971 = vmatpush.msrb.mxu2 %v6696_v46 }
 0x31e   :  { %1963 = vmatpush.msrb.mxu1 %v6157_v48  ;;  %2003 = vmatpush.msrb.mxu3 %v6160_v3  ;;  %v6727_v48 = vld [vmem:[#allocation5 + $0x140] sm:$0xff]  ;;  %v6731_v3 = vld [vmem:[#allocation5 + $0x150] sm:$0xff] }
 0x31f   :  { %1932 = vmatpush.msrb.mxu0 %v6701_v58  ;;  %1972 = vmatpush.msrb.mxu2 %v6704_v39 }
 0x320   :  { %1964 = vmatpush.msrb.mxu1 %v6165_v35  ;;  %2004 = vmatpush.msrb.mxu3 %v6168_v50  ;;  %v6735_v35 = vld [vmem:[#allocation5 + $0x120] sm:$0xff]  ;;  %v6739_v50 = vld [vmem:[#allocation5 + $0x130] sm:$0xff] }
 0x321   :  { %1933 = vmatpush.msrb.mxu0 %v6709_v5  ;;  %1973 = vmatpush.msrb.mxu2 %v6712_v10 }
 0x322   :  { %1965 = vmatpush.msrb.mxu1 %v6173_v14  ;;  %2005 = vmatpush.msrb.mxu3 %v6176_v2  ;;  %v9705_v14 = vld [vmem:[#allocation53_spill] sm:$0xff]  ;;  %v6743_v2 = vld [vmem:[#allocation5 + $0x100] sm:$0xff] }
 0x323   :  { %1796 = vmatmul.f32.vlgmr.msra.gmra.mxu0 %v6679_v19  ;;  %1836 = vmatmul.f32.vlgmr.msra.gmra.mxu2 %v6679_v19 }
 0x324   :  { %1934 = vmatpush.msrb.mxu0 %v6719_v63  ;;  %1966 = vmatmul.f32.vlgmr.msrb.gmra.mxu1 %v6679_v19 }
 0x325   :  { %1974 = vmatpush.msrb.mxu2 %v6723_v7  ;;  %2006 = vmatmul.f32.vlgmr.msrb.gmra.mxu3 %v6679_v19 }
 0x326   :  { %1935 = vmatpush.msrb.mxu0 %v6727_v48  ;;  %2097 = vmatpush.msra.mxu1 %v6186_v49  ;;  %v9706_v49 = vld [vmem:[#allocation54_spill] sm:$0xff] }
 0x327   :  { %1975 = vmatpush.msrb.mxu2 %v6731_v3  ;;  %2137 = vmatpush.msra.mxu3 %v6190_v21  ;;  %v9707_v21 = vld [vmem:[#allocation55_spill] sm:$0xff] }
 0x328   :  { %1936 = vmatpush.msrb.mxu0 %v6735_v35  ;;  %2098 = vmatpush.msra.mxu1 %v6194_v43  ;;  %v9708_v43 = vld [vmem:[#allocation56_spill] sm:$0xff] }
 0x329   :  { %1976 = vmatpush.msrb.mxu2 %v6739_v50  ;;  %2138 = vmatpush.msra.mxu3 %v9705_v14  ;;  %v9734_v14 = vld [vmem:[#allocation59_spill] sm:$0xff] }
 0x32a   :  { %1937 = vmatpush.msrb.mxu0 %v6743_v2  ;;  %2099 = vmatpush.msra.mxu1 %v9706_v49  ;;  %v9735_v49 = vld [vmem:[#allocation60_spill] sm:$0xff] }
 0x32b   :  { %1977 = vmatpush.msrb.mxu2 %v6747_v33  ;;  %2139 = vmatpush.msra.mxu3 %v9707_v21  ;;  %v9736_v21 = vld [vmem:[#allocation118_spill] sm:$0xff] }
 0x32c   :  { %1938 = vmatpush.msrb.mxu0 %v6751_v51  ;;  %2100 = vmatpush.msra.mxu1 %v9708_v43  ;;  %v9737_v43 = vld [vmem:[#allocation67_spill] sm:$0xff] }
 0x32d   :  { %1978 = vmatpush.msrb.mxu2 %v6755_v28  ;;  %2140 = vmatpush.msra.mxu3 %v9709_v47  ;;  %v9738_v47 = vld [vmem:[#allocation68_spill] sm:$0xff] }
 0x32e   :  { %1939 = vmatpush.msrb.mxu0 %v6759_v8  ;;  %2101 = vmatpush.msra.mxu1 %v9710_v0  ;;  %v9739_v0 = vld [vmem:[#allocation124_spill] sm:$0xff] }
 0x32f   :  { %1979 = vmatpush.msrb.mxu2 %v6763_v11  ;;  %2141 = vmatpush.msra.mxu3 %v9711_v12  ;;  %v9740_v12 = vld [vmem:[#allocation71_spill] sm:$0xff] }
 0x330   :  { %1940 = vmatpush.msrb.mxu0 %v6767_v25  ;;  %2102 = vmatpush.msra.mxu1 %v9712_v37  ;;  %v9741_v37 = vld [vmem:[#allocation128_spill] sm:$0xff] }
 0x331   :  { %1980 = vmatpush.msrb.mxu2 %v6771_v59  ;;  %2142 = vmatpush.msra.mxu3 %v9713_v40  ;;  %v9742_v40 = vld [vmem:[#allocation72_spill] sm:$0xff] }
 0x332   :  { %1941 = vmatpush.msrb.mxu0 %v6775_v44  ;;  %2103 = vmatpush.msra.mxu1 %v9714_v61  ;;  %v9743_v61 = vld [vmem:[#allocation129_spill] sm:$0xff] }
 0x333   :  { %1981 = vmatpush.msrb.mxu2 %v6779_v41  ;;  %2143 = vmatpush.msra.mxu3 %v9715_v57  ;;  %v9744_v57 = vld [vmem:[#allocation75_spill] sm:$0xff] }
 0x334   :  { %1942 = vmatpush.msrb.mxu0 %v6783_v23  ;;  %2104 = vmatpush.msra.mxu1 %v9716_v55  ;;  %v9745_v55 = vld [vmem:[#allocation132_spill] sm:$0xff] }
 0x335   :  { %1982 = vmatpush.msrb.mxu2 %v6787_v17  ;;  %2144 = vmatpush.msra.mxu3 %v9717_v36  ;;  %v9746_v36 = vld [vmem:[#allocation76_spill] sm:$0xff] }
 0x336   :  { %1943 = vmatpush.msrb.mxu0 %v6791_v56  ;;  %2105 = vmatpush.msra.mxu1 %v9718_v27  ;;  %v9747_v27 = vld [vmem:[#allocation133_spill] sm:$0xff] }
 0x337   :  { %1983 = vmatpush.msrb.mxu2 %v6795_v42  ;;  %2145 = vmatpush.msra.mxu3 %v9719_v24  ;;  %v9748_v24 = vld [vmem:[#allocation79_spill] sm:$0xff] }
 0x338   :  { %1944 = vmatpush.msrb.mxu0 %v6799_v6  ;;  %2106 = vmatpush.msra.mxu1 %v9720_v34  ;;  %v9749_v34 = vld [vmem:[#allocation80_spill] sm:$0xff] }
 0x339   :  { %1984 = vmatpush.msrb.mxu2 %v6803_v1  ;;  %2146 = vmatpush.msra.mxu3 %v9721_v38  ;;  %v9750_v38 = vld [vmem:[#allocation87_spill] sm:$0xff] }
 0x33a   :  { %1945 = vmatpush.msrb.mxu0 %v6807_v18  ;;  %2107 = vmatpush.msra.mxu1 %v9722_v30  ;;  %v9751_v30 = vld [vmem:[#allocation88_spill] sm:$0xff] }
 0x33b   :  { %1985 = vmatpush.msrb.mxu2 %v6811_v22  ;;  %1946 = vmatmul.f32.vlgmr.msrb.gmra.mxu0 %v6679_v19 }
 0x33c   :  { %1986 = vmatmul.f32.vlgmr.msrb.gmra.mxu2 %v6679_v19  ;;  %2147 = vmatpush.msra.mxu3 %v9723_v32  ;;  %v9733_v19 = vld [vmem:[#allocation117_spill] sm:$0xff]  ;;  %v9752_v32 = vld [vmem:[#allocation91_spill] sm:$0xff] }
 0x33d   :  { %2108 = vmatpush.msra.mxu1 %v9724_v54  ;;  %2077 = vmatpush.msra.mxu0 %v9725_v26  ;;  %v9753_v54 = vld [vmem:[#allocation92_spill] sm:$0xff]  ;;  %v9754_v26 = vld [vmem:[#allocation95_spill] sm:$0xff] }
 0x33e   :  { %2148 = vmatpush.msra.mxu3 %v9726_v4  ;;  %2117 = vmatpush.msra.mxu2 %v9727_v45  ;;  %v9755_v4 = vld [vmem:[#allocation96_spill] sm:$0xff]  ;;  %v9756_v45 = vld [vmem:[#allocation99_spill] sm:$0xff] }
 0x33f   :  { %2109 = vmatpush.msra.mxu1 %v9728_v53  ;;  %2078 = vmatpush.msra.mxu0 %v9729_v60  ;;  %v9757_v53 = vld [vmem:[#allocation100_spill] sm:$0xff]  ;;  %v9758_v60 = vld [vmem:[#allocation107_spill] sm:$0xff] }
 0x340   :  { %2149 = vmatpush.msra.mxu3 %v9730_v13  ;;  %2118 = vmatpush.msra.mxu2 %v9731_v15  ;;  %v9759_v13 = vld [vmem:[#allocation108_spill] sm:$0xff]  ;;  %v9760_v15 = vld [vmem:[#allocation111_spill] sm:$0xff] }
 0x341   :  { %2110 = vmatpush.msra.mxu1 %v9732_v62  ;;  %2079 = vmatpush.msra.mxu0 %v9733_v19  ;;  %v9761_v62 = vld [vmem:[#allocation112_spill] sm:$0xff]  ;;  %v9762_v19 = vld [vmem:[#allocation115_spill] sm:$0xff] }
 0x342   :  { %2150 = vmatpush.msra.mxu3 %v9734_v14  ;;  %2119 = vmatpush.msra.mxu2 %v9735_v49  ;;  %v9763_v14 = vld [vmem:[#allocation116_spill] sm:$0xff] }
 0x343   :  { %2111 = vmatpush.msra.mxu1 %v9736_v21  ;;  %2080 = vmatpush.msra.mxu0 %v9737_v43  ;;  %v9764_v49 = vld [vmem:[#allocation120_spill] sm:$0xff]  ;;  %v9765_v21 = vld [vmem:[#allocation121_spill] sm:$0xff]  ;;  %v9766_v43 = vld [vmem:[#allocation126_spill] sm:$0xff] }
 0x344   :  { %2151 = vmatpush.msra.mxu3 %v9738_v47  ;;  %2120 = vmatpush.msra.mxu2 %v9739_v0  ;;  %v9767_v47 = vld [vmem:[#allocation127_spill] sm:$0xff]  ;;  %v9768_v0 = vld [vmem:[#allocation130_spill] sm:$0xff] }
 0x345   :  { %2112 = vmatpush.msra.mxu1 %v9740_v12  ;;  %2081 = vmatpush.msra.mxu0 %v9741_v37  ;;  %v9769_v12 = vld [vmem:[#allocation131_spill] sm:$0xff]  ;;  %v9770_v37 = vld [vmem:[#allocation134_spill] sm:$0xff] }
 0x346   :  { %2152 = vmatpush.msra.mxu3 %v9742_v40  ;;  %2121 = vmatpush.msra.mxu2 %v9743_v61  ;;  %v9771_v40 = vld [vmem:[#allocation135_spill] sm:$0xff] }
 0x347   :  { %2177 = vmatpush.msrb.mxu1 %v9744_v57  ;;  %2082 = vmatpush.msra.mxu0 %v9746_v36  ;;  %v9772_v61 = vld [vmem:[#allocation139_spill] sm:$0xff]  ;;  %v9773_v57 = vld [vmem:[#allocation140_spill] sm:$0xff] }
 0x348   :  { %2217 = vmatpush.msrb.mxu3 %v9745_v55  ;;  %2122 = vmatpush.msra.mxu2 %v9747_v27  ;;  %v9774_v55 = vld [vmem:[#allocation141_spill] sm:$0xff]  ;;  %v9775_v36 = vld [vmem:[#allocation143_spill] sm:$0xff]  ;;  %v9776_v27 = vld [vmem:[#allocation144_spill] sm:$0xff] }
 0x349   :  { %2178 = vmatpush.msrb.mxu1 %v9748_v24  ;;  %2083 = vmatpush.msra.mxu0 %v9750_v38  ;;  %v9777_v24 = vld [vmem:[#allocation150_spill] sm:$0xff]  ;;  %v9779_v38 = vld [vmem:[#allocation12_spill] sm:$0xff] }
 0x34a   :  { %2218 = vmatpush.msrb.mxu3 %v9749_v34  ;;  %2123 = vmatpush.msra.mxu2 %v9751_v30  ;;  %v9778_v34 = vld [vmem:[#allocation151_spill] sm:$0xff]  ;;  %v9780_v30 = vld [vmem:[#allocation13_spill] sm:$0xff] }
 0x34b   :  { %2179 = vmatpush.msrb.mxu1 %v9752_v32  ;;  %2084 = vmatpush.msra.mxu0 %v9754_v26  ;;  %v9781_v32 = vld [vmem:[#allocation62_spill] sm:$0xff] }
 0x34c   :  { %2219 = vmatpush.msrb.mxu3 %v9753_v54  ;;  %2124 = vmatpush.msra.mxu2 %v9755_v4  ;;  %v9782_v54 = vld [vmem:[#allocation63_spill] sm:$0xff]  ;;  %v9783_v26 = vld [vmem:[#allocation10_spill] sm:$0xff] }
 0x34d   :  { %2180 = vmatpush.msrb.mxu1 %v9756_v45  ;;  %2085 = vmatpush.msra.mxu0 %v9758_v60  ;;  %v9784_v4 = vld [vmem:[#allocation11_spill] sm:$0xff]  ;;  %v9787_v60 = vld [vmem:[#allocation36_spill] sm:$0xff] }
 0x34e   :  { %2220 = vmatpush.msrb.mxu3 %v9757_v53  ;;  %2125 = vmatpush.msra.mxu2 %v9759_v13  ;;  %v9785_v45 = vld [vmem:[#allocation51_spill] sm:$0xff]  ;;  %v9786_v53 = vld [vmem:[#allocation52_spill] sm:$0xff]  ;;  %v9788_v13 = vld [vmem:[#allocation37_spill] sm:$0xff] }
 0x34f   :  { %2181 = vmatpush.msrb.mxu1 %v9760_v15  ;;  %2086 = vmatpush.msra.mxu0 %v9762_v19  ;;  %v9789_v15 = vld [vmem:[#allocation38_spill] sm:$0xff] }
 0x350   :  { %2221 = vmatpush.msrb.mxu3 %v9761_v62  ;;  %2126 = vmatpush.msra.mxu2 %v9763_v14  ;;  %v9790_v62 = vld [vmem:[#allocation41_spill] sm:$0xff]  ;;  %v9791_v19 = vld [vmem:[#allocation42_spill] sm:$0xff]  ;;  %v9792_v14 = vld [vmem:[#allocation43_spill] sm:$0xff] }
 0x351   :  { %2182 = vmatpush.msrb.mxu1 %v9764_v49  ;;  %2087 = vmatpush.msra.mxu0 %v9766_v43  ;;  %v9793_v49 = vld [vmem:[#allocation44_spill] sm:$0xff]  ;;  %v9795_v43 = vld [vmem:[#allocation46_spill] sm:$0xff] }
 0x352   :  { %2222 = vmatpush.msrb.mxu3 %v9765_v21  ;;  %2127 = vmatpush.msra.mxu2 %v9767_v47  ;;  %v9794_v21 = vld [vmem:[#allocation45_spill] sm:$0xff]  ;;  %v9796_v47 = vld [vmem:[#allocation156_spill] sm:$0xff] }
 0x353   :  { %2183 = vmatpush.msrb.mxu1 %v9768_v0  ;;  %2088 = vmatpush.msra.mxu0 %v9770_v37  ;;  %v9797_v0 = vld [vmem:[#allocation157_spill] sm:$0xff]  ;;  %v9799_v37 = vld [vmem:[#allocation159_spill] sm:$0xff] }
 0x354   :  { %2223 = vmatpush.msrb.mxu3 %v9769_v12  ;;  %2128 = vmatpush.msra.mxu2 %v9771_v40  ;;  %v9798_v12 = vld [vmem:[#allocation158_spill] sm:$0xff]  ;;  %v9800_v40 = vld [vmem:[#allocation160_spill] sm:$0xff] }
 0x355   :  { %2184 = vmatpush.msrb.mxu1 %v9772_v61  ;;  %2089 = vmatpush.msra.mxu0 %v9774_v55  ;;  %v9801_v61 = vld [vmem:[#allocation161_spill] sm:$0xff]  ;;  %v9803_v55 = vld [vmem:[#allocation163_spill] sm:$0xff] }
 0x356   :  { %2224 = vmatpush.msrb.mxu3 %v9773_v57  ;;  %2129 = vmatpush.msra.mxu2 %v9775_v36  ;;  %v9802_v57 = vld [vmem:[#allocation162_spill] sm:$0xff]  ;;  %v9804_v36 = vld [vmem:[#allocation164_spill] sm:$0xff] }
 0x357   :  { %2185 = vmatpush.msrb.mxu1 %v9776_v27  ;;  %2090 = vmatpush.msra.mxu0 %v9778_v34  ;;  %v9805_v27 = vld [vmem:[#allocation165_spill] sm:$0xff]  ;;  %v9807_v34 = vld [vmem:[#allocation167_spill] sm:$0xff] }
 0x358   :  { %2225 = vmatpush.msrb.mxu3 %v9777_v24  ;;  %2130 = vmatpush.msra.mxu2 %v9779_v38  ;;  %v9806_v24 = vld [vmem:[#allocation166_spill] sm:$0xff]  ;;  %v9808_v38 = vld [vmem:[#allocation168_spill] sm:$0xff] }
 0x359   :  { %2186 = vmatpush.msrb.mxu1 %v9780_v30  ;;  %2091 = vmatpush.msra.mxu0 %v9782_v54  ;;  %v9809_v30 = vld [vmem:[#allocation169_spill] sm:$0xff]  ;;  %v9811_v54 = vld [vmem:[#allocation171_spill] sm:$0xff] }
 0x35a   :  { %2226 = vmatpush.msrb.mxu3 %v9781_v32  ;;  %2131 = vmatpush.msra.mxu2 %v9783_v26  ;;  %v9810_v32 = vld [vmem:[#allocation170_spill] sm:$0xff]  ;;  %v9812_v26 = vld [vmem:[#allocation172_spill] sm:$0xff] }
 0x35b   :  { %2187 = vmatpush.msrb.mxu1 %v9784_v4  ;;  %2092 = vmatpush.msra.mxu0 %v9786_v53  ;;  %v9813_v4 = vld [vmem:[#allocation173_spill] sm:$0xff]  ;;  %v9815_v53 = vld [vmem:[#allocation175_spill] sm:$0xff] }
 0x35c   :  { %2227 = vmatpush.msrb.mxu3 %v9785_v45  ;;  %2132 = vmatpush.msra.mxu2 %v9787_v60  ;;  %v9814_v45 = vld [vmem:[#allocation174_spill] sm:$0xff]  ;;  %v9816_v60 = vld [vmem:[#allocation176_spill] sm:$0xff] }
 0x35d   :  { %2188 = vmatpush.msrb.mxu1 %v9788_v13  ;;  %2157 = vmatpush.msrb.mxu0 %v9790_v62  ;;  %v9817_v13 = vld [vmem:[#allocation177_spill] sm:$0xff]  ;;  %v9819_v62 = vld [vmem:[#allocation179_spill] sm:$0xff] }
 0x35e   :  { %2228 = vmatpush.msrb.mxu3 %v9789_v15  ;;  %2197 = vmatpush.msrb.mxu2 %v9791_v19  ;;  %v9818_v15 = vld [vmem:[#allocation178_spill] sm:$0xff]  ;;  %v9820_v19 = vld [vmem:[#allocation180_spill] sm:$0xff] }
 0x35f   :  { %2189 = vmatpush.msrb.mxu1 %v9792_v14  ;;  %2158 = vmatpush.msrb.mxu0 %v9794_v21  ;;  %v9821_v14 = vld [vmem:[#allocation181_spill] sm:$0xff]  ;;  %v9823_v21 = vld [vmem:[#allocation183_spill] sm:$0xff] }
 0x360   :  { %2229 = vmatpush.msrb.mxu3 %v9793_v49  ;;  %2198 = vmatpush.msrb.mxu2 %v9795_v43  ;;  %v9822_v49 = vld [vmem:[#allocation182_spill] sm:$0xff]  ;;  %v9824_v43 = vld [vmem:[#allocation184_spill] sm:$0xff] }
 0x361   :  { %2190 = vmatpush.msrb.mxu1 %v9796_v47  ;;  %2159 = vmatpush.msrb.mxu0 %v9798_v12  ;;  %v9825_v47 = vld [vmem:[#allocation185_spill] sm:$0xff]  ;;  %v9827_v12 = vld [vmem:[#allocation187_spill] sm:$0xff] }
 0x362   :  { %2230 = vmatpush.msrb.mxu3 %v9797_v0  ;;  %2199 = vmatpush.msrb.mxu2 %v9799_v37  ;;  %v9826_v0 = vld [vmem:[#allocation186_spill] sm:$0xff]  ;;  %v9828_v37 = vld [vmem:[#allocation188_spill] sm:$0xff] }
 0x363   :  { %2191 = vmatpush.msrb.mxu1 %v9800_v40  ;;  %2160 = vmatpush.msrb.mxu0 %v9802_v57  ;;  %v9829_v40 = vld [vmem:[#allocation189_spill] sm:$0xff] }
 0x364   :  { %2231 = vmatpush.msrb.mxu3 %v9801_v61  ;;  %2200 = vmatpush.msrb.mxu2 %v9803_v55  ;;  %v9830_v55 = vld [vmem:[#allocation47_spill] sm:$0xff] }
 0x365   :  { %2192 = vmatpush.msrb.mxu1 %v9804_v36  ;;  %2161 = vmatpush.msrb.mxu0 %v9806_v24 }
 0x366   :  { %2232 = vmatpush.msrb.mxu3 %v9805_v27  ;;  %2201 = vmatpush.msrb.mxu2 %v9807_v34 }
 0x367   :  { %2162 = vmatpush.msrb.mxu0 %v9808_v38 }
 0x368   :  { %2202 = vmatpush.msrb.mxu2 %v9809_v30  ;;  %v9831_v30 = vld [vmem:[#allocation146_spill] sm:$0xff] }
 0x369   :  { %2163 = vmatpush.msrb.mxu0 %v9810_v32  ;;  %v9832_v32 = vld [vmem:[#allocation20_spill] sm:$0xff] }
 0x36a   :  { %2203 = vmatpush.msrb.mxu2 %v9811_v54  ;;  %v339_v54 = vadd.f32 %v9832_v32, %v9831_v30  ;;  %v9838_v32 = vld [vmem:[#allocation103_spill] sm:$0xff] }
 0x36b   :  { %2164 = vmatpush.msrb.mxu0 %v9812_v26 }
 0x36c   :  { %2204 = vmatpush.msrb.mxu2 %v9813_v4  ;;  %v9833_v4 = vld [vmem:[#allocation48_spill] sm:$0xff] }
 0x36d   :  { %2165 = vmatpush.msrb.mxu0 %v9814_v45 }
 0x36e   :  { %2205 = vmatpush.msrb.mxu2 %v9815_v53 }
 0x36f   :  { %2166 = vmatpush.msrb.mxu0 %v9816_v60  ;;  %v9834_v60 = vld [vmem:[#allocation21_spill] sm:$0xff] }
 0x370   :  { %2206 = vmatpush.msrb.mxu2 %v9817_v13  ;;  %v380_v13 = vadd.f32 %v9834_v60, %v339_v54 }
 0x371   :  { %2167 = vmatpush.msrb.mxu0 %v9818_v15 }
 0x372   :  { %2207 = vmatpush.msrb.mxu2 %v9819_v62 }
 0x373   :  { %2168 = vmatpush.msrb.mxu0 %v9820_v19 }
 0x374   :  { %2208 = vmatpush.msrb.mxu2 %v9821_v14 }
 0x375   :  { %2169 = vmatpush.msrb.mxu0 %v9822_v49 }
 0x376   :  { %2209 = vmatpush.msrb.mxu2 %v9823_v21 }
 0x377   :  { %2170 = vmatpush.msrb.mxu0 %v9824_v43 }
 0x378   :  { %2210 = vmatpush.msrb.mxu2 %v9825_v47 }
 0x379   :  { %2171 = vmatpush.msrb.mxu0 %v9826_v0  ;;  %v9835_v0 = vld [vmem:[#allocation153_spill] sm:$0xff] }
 0x37a   :  { %2211 = vmatpush.msrb.mxu2 %v9827_v12  ;;  %v9836_v12 = vld [vmem:[#allocation102_spill] sm:$0xff] }
 0x37b   :  { %2172 = vmatpush.msrb.mxu0 %v9828_v37  ;;  %v503_v37 = vadd.f32 %v9836_v12, %v9835_v0 }
 0x37c   :  { %2212 = vmatpush.msrb.mxu2 %v9829_v40  ;;  %v9837_v40 = vld [vmem:[#allocation49_spill] sm:$0xff] }
 0x37d   :  { %v544_v54 = vadd.f32 %v9838_v32, %v503_v37 }
 0x37f   :  { %v1737_v61 = vpop.f32.mrf.mxu1 }
 0x385   :  { %v1777_v27 = vpop.f32.mrf.mxu3 }
 0x387   :  { %v1817_v24 = vpop.f32.mrf.mxu1 }
 0x38d   :  { %v1857_v19 = vpop.f32.mrf.mxu3 }
 0x397   :  { %v1717_v57 = vpop.f32.mrf.mxu0 }
 0x398   :  { %v1718_v36 = vadd.f32 %v1717_v57, %v9830_v55 }
 0x39a   :  { %v1738_v34 = vadd.f32 %v1737_v61, %v1718_v36 }
 0x39c   :  { %v3877_v38 = vmul.f32 -1.442695, %v1738_v34 }
 0x39d   :  { %v1757_v26 = vpop.f32.mrf.mxu2 }
 0x39e   :  { %3997 = vpow2.f32 %v3877_v38  ;;  %v1758_v45 = vadd.f32 %v1757_v26, %v9833_v4 }
 0x3a0   :  { %v1778_v53 = vadd.f32 %v1777_v27, %v1758_v45  ;;  %v1797_v36 = vpop.f32.mrf.mxu0 }
 0x3a1   :  { %v1967_v15 = vpop.f32.mrf.mxu1 }
 0x3a2   :  { %v3878_v62 = vmul.f32 -1.442695, %v1778_v53  ;;  %v2011_v14 = vadd.f32 %v1967_v15, %v380_v13  ;;  %v9839_v53 = vld [vmem:[#allocation50_spill] sm:$0xff] }
 0x3a3   :  { %v1798_v60 = vadd.f32 %v1797_v36, %v9839_v53 }
 0x3a4   :  { %v3998_v49 = vpop.eup %3997  ;;  %3999 = vpow2.f32 %v3878_v62  ;;  %v3881_v47 = vmul.f32 -1.442695, %v2011_v14 }
 0x3a5   :  { %v1863_v21 = vadd.f32 1.0, %v3998_v49  ;;  %v1818_v49 = vadd.f32 %v1817_v24, %v1798_v60  ;;  %v9842_v24 = vld [vmem:[#allocation19_spill] sm:$0xff] }
 0x3a6   :  { %v1837_v43 = vpop.f32.mrf.mxu2 }
 0x3a7   :  { %4001 = vrcp.f32 %v1863_v21  ;;  %v1838_v61 = vadd.f32 %v1837_v43, %v9837_v40  ;;  %v1875_v32 = vand.u32 2147483648, %v1863_v21  ;;  %vm1869_vm13 = vweird.f32 %v1863_v21 }
 0x3a8   :  { %4003 = vpow2.f32 %v3881_v47  ;;  %v2007_v38 = vpop.f32.mrf.mxu3 }
 0x3a9   :  { %v1858_v27 = vadd.f32 %v1857_v19, %v1838_v61  ;;  %v2013_v15 = vadd.f32 %v2007_v38, %v544_v54  ;;  %v9840_v19 = vld [vmem:[#allocation145_spill] sm:$0xff]  ;;  %v9841_v61 = vld [vmem:[#allocation18_spill] sm:$0xff]  ;;  %v1873_v38 = vand.u32 2147483647, %v1863_v21 }
 0x3aa   :  { %v4000_v57 = vpop.eup %3999  ;;  %v257_v47 = vadd.f32 %v9841_v61, %v9840_v19 }
 0x3ab   :  { %v1882_v34 = vadd.f32 1.0, %v4000_v57  ;;  %v3879_v26 = vmul.f32 -1.442695, %v1858_v27  ;;  %v3882_v12 = vmul.f32 -1.442695, %v2013_v15  ;;  %vm1874_vm1 = vcmp.eq.f32.partialorder %v1873_v38, 8.507059e+37 }
 0x3ac   :  { %v298_v54 = vadd.f32 %v9842_v24, %v257_v47 }
 0x3ad   :  { %v4002_v45 = vpop.eup %4001  ;;  %4005 = vrcp.f32 %v1882_v34  ;;  %v1894_v60 = vand.u32 2147483648, %v1882_v34  ;;  %v1892_v15 = vand.u32 2147483647, %v1882_v34  ;;  %vm1888_vm0 = vweird.f32 %v1882_v34 }
 0x3ae   :  { %v1865_v13 = vmul.f32 %v4002_v45, %v1863_v21  ;;  %4007 = vpow2.f32 %v3879_v26  ;;  %v4004_v14 = vpop.eup %4003  ;;  %vm1870_vm12 = vweird.f32 %v4002_v45 }
 0x3af   :  { %v6935_v27 = vadd.f32 1.0, %v4004_v14  ;;  %4009 = vtanh.f32 %v1818_v49  ;;  %vm6938_vm14 = vmor %vm1869_vm13, %vm1870_vm12  ;;  %v1876_v49 = vor.u32 1.1754944e-38, %v1875_v32  ;;  %v1895_v61 = vor.u32 1.1754944e-38, %v1894_v60 }
 0x3b0   :  { %v1866_v62 = vsub.f32 1.0, %v1865_v13  ;;  %4011 = vpow2.f32 %v3882_v12  ;;  %vm1893_vm3 = vcmp.eq.f32.partialorder %v1892_v15, 8.507059e+37 }
 0x3b1   :  { %vm2042_vm9 = vweird.f32 %v6935_v27 }
 0x3b2   :  { %v1867_v43 = vmul.f32 %v4002_v45, %v1866_v62 }
 0x3b3   :  { %v4006_v0 = vpop.eup %4005 }
 0x3b4   :  { %v4008_v57 = vpop.eup %4007  ;;  %v1884_v40 = vmul.f32 %v4006_v0, %v1882_v34  ;;  %v1868_v37 = vadd.f32 %v4002_v45, %v1867_v43  ;;  %vm1889_vm15 = vweird.f32 %v4006_v0 }
 0x3b5   :  { %v1902_v36 = vadd.f32 1.0, %v4008_v57  ;;  %v4010_v12 = vpop.eup %4009  ;;  %vm1890_vm2 = vmor %vm1888_vm0, %vm1889_vm15 }
 0x3b6   :  { %v1885_v26 = vsub.f32 1.0, %v1884_v40  ;;  %v1872_v14 = vsel %vm6938_vm14, %v4002_v45, %v1868_v37  ;;  %v4012_v57 = vpop.eup %4011 }
 0x3b7   :  { %4013 = vrcp.f32 %v1902_v36  ;;  %v1877_v47 = vsel %vm1874_vm1, %v1876_v49, %v1872_v14  ;;  %v6952_v60 = vadd.f32 1.0, %v4012_v57  ;;  %v1914_v15 = vand.u32 2147483648, %v1902_v36 }
 0x3b8   :  { %v1886_v62 = vmul.f32 %v4006_v0, %v1885_v26  ;;  %4015 = vrcp.f32 %v6935_v27  ;;  %v1947_v40 = vpop.f32.mrf.mxu0  ;;  %v1919_v37 = vmul.f32 %v4010_v12, %v1877_v47  ;;  %vm1908_vm5 = vweird.f32 %v1902_v36 }
 0x3b9   :  { %v2010_v43 = vadd.f32 %v1947_v40, %v298_v54  ;;  %vm2062_vm1 = vweird.f32 %v6952_v60 }
 0x3ba   :  { %v1887_v21 = vadd.f32 %v4006_v0, %v1886_v62  ;;  %v1912_v62 = vand.u32 2147483647, %v1902_v36 }
 0x3bb   :  { %v3880_v26 = vmul.f32 -1.442695, %v2010_v43  ;;  %v9845_v43 = vld [vmem:[#allocation85_spill] sm:$0xff] }
 0x3bc   :  { %v1891_v24 = vsel %vm1890_vm2, %v4006_v0, %v1887_v21  ;;  %v1915_v21 = vor.u32 1.1754944e-38, %v1914_v15  ;;  %v421_v12 = vadd.f32 %v9845_v43, %v5711_v9  ;;  %vm1913_vm7 = vcmp.eq.f32.partialorder %v1912_v62, 8.507059e+37  ;;  %v6974_v62 = vld [vmem:[#allocation5 + $0x1c8] sm:$0xff] }
 0x3bd   :  { %v4014_v19 = vpop.eup %4013  ;;  %v1896_v53 = vsel %vm1893_vm3, %v1895_v61, %v1891_v24  ;;  %4017 = vpow2.f32 %v3880_v26  ;;  %v9846_v26 = vld [vmem:[#allocation86_spill] sm:$0xff]  ;;  %v6985_v43 = vld [vmem:[#allocation5 + $0x1a8] sm:$0xff] }
 0x3be   :  { %v6945_v13 = vpop.eup %4015  ;;  %v1918_v45 = vmul.f32 %v1896_v53, %v6618_v29  ;;  %v1904_v32 = vmul.f32 %v4014_v19, %v1902_v36  ;;  %vm1909_vm4 = vweird.f32 %v4014_v19 }
 0x3bf   :  { %v2038_v54 = vmul.f32 %v6945_v13, %v6935_v27  ;;  %vm1910_vm6 = vmor %vm1908_vm5, %vm1909_vm4  ;;  %v1987_v24 = vpop.f32.mrf.mxu2  ;;  %vm2043_vm8 = vweird.f32 %v6945_v13 }
 0x3c0   :  { %v6948_v34 = vadd.f32 %v1919_v37, %v1918_v45  ;;  %v1905_v38 = vsub.f32 1.0, %v1904_v32  ;;  %v462_v45 = vadd.f32 %v9846_v26, %v421_v12  ;;  %v6968_v32 = vld [vmem:[#allocation5 + $0x1f8] sm:$0xff]  ;;  %vm6993_vm10 = vmor %vm2042_vm9, %vm2043_vm8  ;;  %v7002_v26 = vld [vmem:[#allocation5 + $0x188] sm:$0xff] }
 0x3c1   :  { %v2039_v40 = vsub.f32 1.0, %v2038_v54  ;;  %v6988_v12 = vld [vmem:[#allocation5 + $0x1b8] sm:$0xff] }
 0x3c2   :  { %4019 = vtanh.f32 %v6948_v34  ;;  %v1906_v0 = vmul.f32 %v4014_v19, %v1905_v38  ;;  %v2012_v54 = vadd.f32 %v1987_v24, %v462_v45  ;;  %9847 = vst [vmem:[#allocation16_spill] sm:$0xff] %v6988_v12  ;;  %v7005_v45 = vld [vmem:[#allocation5 + $0x198] sm:$0xff] }
 0x3c3   :  { %v4018_v14 = vpop.eup %4017  ;;  %4021 = vrcp.f32 %v6952_v60  ;;  %v2040_v36 = vmul.f32 %v6945_v13, %v2039_v40  ;;  %9850 = vst [vmem:[#allocation17_spill] sm:$0xff] %v7005_v45 }
 0x3c4   :  { %v1907_v29 = vadd.f32 %v4014_v19, %v1906_v0  ;;  %v6955_v53 = vadd.f32 1.0, %v4018_v14  ;;  %v6977_v14 = vld [vmem:[#allocation5 + $0x1d8] sm:$0xff] }
 0x3c5   :  { %v2041_v15 = vadd.f32 %v6945_v13, %v2040_v36 }
 0x3c6   :  { %v1911_v49 = vsel %vm1910_vm6, %v4014_v19, %v1907_v29  ;;  %4023 = vrcp.f32 %v6955_v53  ;;  %v6965_v19 = vld [vmem:[#allocation5 + $0x1e8] sm:$0xff]  ;;  %v2048_v29 = vand.u32 2147483648, %v6935_v27  ;;  %vm2023_vm12 = vweird.f32 %v6955_v53 }
 0x3c7   :  { %v1916_v47 = vsel %vm1913_vm7, %v1915_v21, %v1911_v49  ;;  %v2046_v21 = vand.u32 2147483647, %v6935_v27  ;;  %4025 = vtanh.f32 %v2012_v54  ;;  %v2027_v27 = vand.u32 2147483647, %v6955_v53 }
 0x3c8   :  { %v4020_v61 = vpop.eup %4019  ;;  %v2045_v24 = vsel %vm6993_vm10, %v6945_v13, %v2041_v15  ;;  %v7012_v13 = vld [vmem:[#allocation5 + $0x178] sm:$0xff] }
 0x3c9   :  { %v1922_v57 = vmul.f32 %v4020_v61, %v1916_v47  ;;  %v6963_v37 = vpop.eup %4021  ;;  %v2029_v47 = vand.u32 2147483648, %v6955_v53  ;;  %vm2047_vm13 = vcmp.eq.f32.partialorder %v2046_v21, 8.507059e+37  ;;  %9852 = vst [vmem:[#allocation83_spill] sm:$0xff] %v7012_v13  ;;  %vm2028_vm15 = vcmp.eq.f32.partialorder %v2027_v27, 8.507059e+37  ;;  %v7032_v27 = vld [vmem:[#allocation5 + $0x108] sm:$0xff] }
 0x3ca   :  { %v2058_v40 = vmul.f32 %v6963_v37, %v6952_v60  ;;  %vm2063_vm0 = vweird.f32 %v6963_v37 }
 0x3cb   :  { %2113 = vmatmul.f32.vlgmr.msra.gmra.mxu1 %v1922_v57  ;;  %2153 = vmatmul.f32.vlgmr.msra.gmra.mxu3 %v1922_v57  ;;  %v2030_v15 = vor.u32 1.1754944e-38, %v2029_v47  ;;  %vm2064_vm2 = vmor %vm2062_vm1, %vm2063_vm0 }
 0x3cc   :  { %2327 = vmatpush.msra.mxu1 %v6965_v19  ;;  %2367 = vmatpush.msra.mxu3 %v6968_v32  ;;  %v4024_v38 = vpop.eup %4023 }
 0x3cd   :  { %v2019_v0 = vmul.f32 %v4024_v38, %v6955_v53  ;;  %vm2024_vm11 = vweird.f32 %v4024_v38  ;;  %v7019_v53 = vld [vmem:[#allocation5 + $0x158] sm:$0xff] }
 0x3ce   :  { %2328 = vmatpush.msra.mxu1 %v6974_v62  ;;  %2368 = vmatpush.msra.mxu3 %v6977_v14  ;;  %vm2025_vm14 = vmor %vm2023_vm12, %vm2024_vm11 }
 0x3cf   :  { %v2020_v49 = vsub.f32 1.0, %v2019_v0  ;;  %v2049_v0 = vor.u32 1.1754944e-38, %v2048_v29 }
 0x3d0   :  { %2329 = vmatpush.msra.mxu1 %v6985_v43  ;;  %2369 = vmatpush.msra.mxu3 %v6988_v12  ;;  %v2059_v12 = vsub.f32 1.0, %v2058_v40  ;;  %v7016_v40 = vld [vmem:[#allocation5 + $0x148] sm:$0xff] }
 0x3d1   :  { %v2021_v36 = vmul.f32 %v4024_v38, %v2020_v49  ;;  %v7009_v49 = vld [vmem:[#allocation5 + $0x168] sm:$0xff]  ;;  %v2050_v61 = vsel %vm2047_vm13, %v2049_v0, %v2045_v24  ;;  %v7035_v24 = vld [vmem:[#allocation5 + $0x118] sm:$0xff] }
 0x3d2   :  { %2330 = vmatpush.msra.mxu1 %v7002_v26  ;;  %2370 = vmatpush.msra.mxu3 %v7005_v45  ;;  %9851 = vst [vmem:[#allocation82_spill] sm:$0xff] %v7009_v49  ;;  %v2060_v21 = vmul.f32 %v6963_v37, %v2059_v12  ;;  %v7024_v45 = vld [vmem:[#allocation5 + $0x128] sm:$0xff]  ;;  %v2068_v12 = vand.u32 2147483648, %v6952_v60 }
 0x3d3   :  { %2193 = vmatmul.f32.vlgmr.msrb.gmra.mxu1 %v1922_v57  ;;  %2233 = vmatmul.f32.vlgmr.msrb.gmra.mxu3 %v1922_v57  ;;  %v2022_v54 = vadd.f32 %v4024_v38, %v2021_v36  ;;  %v4026_v57 = vpop.eup %4025  ;;  %v7042_v0 = vld [vmem:[#allocation5 + $0xe8] sm:$0xff] }
 0x3d4   :  { %2331 = vmatpush.msra.mxu1 %v7009_v49  ;;  %2371 = vmatpush.msra.mxu3 %v7012_v13  ;;  %v2072_v13 = vmul.f32 %v2050_v61, %v6662_v20  ;;  %v2061_v20 = vadd.f32 %v6963_v37, %v2060_v21  ;;  %v7060_v21 = vld [vmem:[#allocation5 + $0xb8] sm:$0xff] }
 0x3d5   :  { %v2026_v29 = vsel %vm2025_vm14, %v4024_v38, %v2022_v54  ;;  %v7027_v38 = vld [vmem:[#allocation5 + $0x138] sm:$0xff] }
 0x3d6   :  { %2332 = vmatpush.msra.mxu1 %v7016_v40  ;;  %2372 = vmatpush.msra.mxu3 %v7019_v53  ;;  %v2031_v36 = vsel %vm2028_vm15, %v2030_v15, %v2026_v29  ;;  %v7045_v54 = vld [vmem:[#allocation5 + $0xf8] sm:$0xff]  ;;  %v2065_v61 = vsel %vm2064_vm2, %v6963_v37, %v2061_v20  ;;  %v2069_v29 = vor.u32 1.1754944e-38, %v2068_v12  ;;  %v7071_v20 = vld [vmem:[#allocation5 + $0x68] sm:$0xff] }
 0x3d7   :  { %v2073_v49 = vmul.f32 %v4026_v57, %v2031_v36  ;;  %9853 = vst [vmem:[#allocation14_spill] sm:$0xff] %v7045_v54  ;;  %v7053_v15 = vld [vmem:[#allocation5 + $0xd8] sm:$0xff]  ;;  %v7057_v57 = vld [vmem:[#allocation5 + $0xa8] sm:$0xff] }
 0x3d8   :  { %2333 = vmatpush.msra.mxu1 %v7024_v45  ;;  %2373 = vmatpush.msra.mxu3 %v7027_v38  ;;  %v7074_v12 = vld [vmem:[#allocation5 + $0x78] sm:$0xff] }
 0x3d9   :  { %v7030_v47 = vadd.f32 %v2073_v49, %v2072_v13  ;;  %v2066_v49 = vand.u32 2147483647, %v6952_v60  ;;  %v7050_v13 = vld [vmem:[#allocation5 + $0xc8] sm:$0xff] }
 0x3da   :  { %2334 = vmatpush.msra.mxu1 %v7032_v27  ;;  %2374 = vmatpush.msra.mxu3 %v7035_v24  ;;  %9854 = vst [vmem:[#allocation15_spill] sm:$0xff] %v7050_v13 }
 0x3db   :  { %4027 = vtanh.f32 %v7030_v47  ;;  %vm2067_vm3 = vcmp.eq.f32.partialorder %v2066_v49, 8.507059e+37  ;;  %v7081_v49 = vld [vmem:[#allocation5 + $0x48] sm:$0xff] }
 0x3dc   :  { %2335 = vmatpush.msra.mxu1 %v7042_v0  ;;  %2375 = vmatpush.msra.mxu3 %v7045_v54  ;;  %v2070_v36 = vsel %vm2067_vm3, %v2069_v29, %v2065_v61  ;;  %v7063_v54 = vld [vmem:[#allocation5 + $0x88] sm:$0xff]  ;;  %v7084_v61 = vld [vmem:[#allocation5 + $0x58] sm:$0xff] }
 0x3dd   :  { %v7089_v29 = vld [vmem:[#allocation5 + $0x28] sm:$0xff] }
 0x3de   :  { %2336 = vmatpush.msra.mxu1 %v7050_v13  ;;  %2376 = vmatpush.msra.mxu3 %v7053_v15  ;;  %v7066_v13 = vld [vmem:[#allocation5 + $0x98] sm:$0xff] }
 0x3e0   :  { %2337 = vmatpush.msra.mxu1 %v7057_v57  ;;  %2377 = vmatpush.msra.mxu3 %v7060_v21 }
 0x3e1   :  { %v4028_v60 = vpop.eup %4027 }
 0x3e2   :  { %2338 = vmatpush.msra.mxu1 %v7063_v54  ;;  %2378 = vmatpush.msra.mxu3 %v7066_v13  ;;  %v7069_v37 = vmul.f32 %v4028_v60, %v2070_v36  ;;  %v7092_v60 = vld [vmem:[#allocation5 + $0x38] sm:$0xff]  ;;  %v7225_v36 = vld [vmem:[#allocation7 + $0x240] sm:$0xff] }
 0x3e3   :  { %9877 = vst [vmem:[#allocation97_spill] sm:$0xff] %v7225_v36 }
 0x3e4   :  { %2339 = vmatpush.msra.mxu1 %v7071_v20  ;;  %2379 = vmatpush.msra.mxu3 %v7074_v12 }
 0x3e5   :  { %2093 = vmatmul.f32.vlgmr.msra.gmra.mxu0 %v7069_v37  ;;  %2133 = vmatmul.f32.vlgmr.msra.gmra.mxu2 %v7069_v37 }
 0x3e6   :  { %2307 = vmatpush.msra.mxu0 %v6685_v52  ;;  %2347 = vmatpush.msra.mxu2 %v6688_v16  ;;  %v7097_v52 = vld [vmem:[#allocation5 + $0x8] sm:$0xff]  ;;  %v7100_v16 = vld [vmem:[#allocation5 + $0x18] sm:$0xff] }
 0x3e7   :  { %2340 = vmatpush.msra.mxu1 %v7081_v49  ;;  %2380 = vmatpush.msra.mxu3 %v7084_v61 }
 0x3e8   :  { %2308 = vmatpush.msra.mxu0 %v6693_v31  ;;  %2348 = vmatpush.msra.mxu2 %v6696_v46  ;;  %v7112_v31 = vld [vmem:[#allocation7 + $0x3e0] sm:$0xff]  ;;  %v7116_v46 = vld [vmem:[#allocation7 + $0x3e8] sm:$0xff] }
 0x3e9   :  { %2341 = vmatpush.msra.mxu1 %v7089_v29  ;;  %2381 = vmatpush.msra.mxu3 %v7092_v60 }
 0x3ea   :  { %2309 = vmatpush.msra.mxu0 %v6701_v58  ;;  %2349 = vmatpush.msra.mxu2 %v6704_v39  ;;  %v7120_v58 = vld [vmem:[#allocation7 + $0x3c0] sm:$0xff]  ;;  %v7124_v39 = vld [vmem:[#allocation7 + $0x3c8] sm:$0xff] }
 0x3eb   :  { %2342 = vmatpush.msra.mxu1 %v7097_v52  ;;  %2382 = vmatpush.msra.mxu3 %v7100_v16 }
 0x3ec   :  { %2310 = vmatpush.msra.mxu0 %v6709_v5  ;;  %2350 = vmatpush.msra.mxu2 %v6712_v10  ;;  %v7128_v5 = vld [vmem:[#allocation7 + $0x3a0] sm:$0xff]  ;;  %v7132_v10 = vld [vmem:[#allocation7 + $0x3a8] sm:$0xff] }
 0x3ed   :  { %2173 = vmatmul.f32.vlgmr.msrb.gmra.mxu0 %v7069_v37  ;;  %2213 = vmatmul.f32.vlgmr.msrb.gmra.mxu2 %v7069_v37 }
 0x3ee   :  { %2311 = vmatpush.msra.mxu0 %v6719_v63  ;;  %2343 = vmatmul.f32.vlgmr.msra.gmra.mxu1 %v7069_v37  ;;  %v7136_v63 = vld [vmem:[#allocation7 + $0x380] sm:$0xff] }
 0x3ef   :  { %2351 = vmatpush.msra.mxu2 %v6723_v7  ;;  %2383 = vmatmul.f32.vlgmr.msra.gmra.mxu3 %v7069_v37  ;;  %v7140_v7 = vld [vmem:[#allocation7 + $0x388] sm:$0xff] }
 0x3f0   :  { %2312 = vmatpush.msra.mxu0 %v6727_v48  ;;  %2474 = vmatpush.msrb.mxu1 %v7112_v31  ;;  %v7144_v48 = vld [vmem:[#allocation7 + $0x360] sm:$0xff] }
 0x3f1   :  { %2352 = vmatpush.msra.mxu2 %v6731_v3  ;;  %2514 = vmatpush.msrb.mxu3 %v7116_v46  ;;  %9855 = vst [vmem:[#allocation65_spill] sm:$0xff] %v7144_v48  ;;  %v7148_v3 = vld [vmem:[#allocation7 + $0x368] sm:$0xff] }
 0x3f2   :  { %2313 = vmatpush.msra.mxu0 %v6735_v35  ;;  %2475 = vmatpush.msrb.mxu1 %v7120_v58  ;;  %9856 = vst [vmem:[#allocation66_spill] sm:$0xff] %v7148_v3  ;;  %v7152_v35 = vld [vmem:[#allocation7 + $0x340] sm:$0xff] }
 0x3f3   :  { %2353 = vmatpush.msra.mxu2 %v6739_v50  ;;  %2515 = vmatpush.msrb.mxu3 %v7124_v39  ;;  %9857 = vst [vmem:[#allocation53_spill] sm:$0xff] %v7152_v35  ;;  %v7156_v50 = vld [vmem:[#allocation7 + $0x348] sm:$0xff] }
 0x3f4   :  { %2314 = vmatpush.msra.mxu0 %v6743_v2  ;;  %2476 = vmatpush.msrb.mxu1 %v7128_v5  ;;  %9858 = vst [vmem:[#allocation54_spill] sm:$0xff] %v7156_v50  ;;  %v7160_v2 = vld [vmem:[#allocation7 + $0x320] sm:$0xff] }
 0x3f5   :  { %2354 = vmatpush.msra.mxu2 %v6747_v33  ;;  %2516 = vmatpush.msrb.mxu3 %v7132_v10  ;;  %9859 = vst [vmem:[#allocation55_spill] sm:$0xff] %v7160_v2  ;;  %v7164_v33 = vld [vmem:[#allocation7 + $0x328] sm:$0xff] }
 0x3f6   :  { %2315 = vmatpush.msra.mxu0 %v6751_v51  ;;  %2477 = vmatpush.msrb.mxu1 %v7136_v63  ;;  %9860 = vst [vmem:[#allocation56_spill] sm:$0xff] %v7164_v33  ;;  %v7168_v51 = vld [vmem:[#allocation7 + $0x300] sm:$0xff] }
 0x3f7   :  { %2355 = vmatpush.msra.mxu2 %v6755_v28  ;;  %2517 = vmatpush.msrb.mxu3 %v7140_v7  ;;  %9861 = vst [vmem:[#allocation57_spill] sm:$0xff] %v7168_v51  ;;  %v7172_v28 = vld [vmem:[#allocation7 + $0x308] sm:$0xff] }
 0x3f8   :  { %2316 = vmatpush.msra.mxu0 %v6759_v8  ;;  %2478 = vmatpush.msrb.mxu1 %v7144_v48  ;;  %9862 = vst [vmem:[#allocation58_spill] sm:$0xff] %v7172_v28  ;;  %v7176_v8 = vld [vmem:[#allocation7 + $0x2e0] sm:$0xff] }
 0x3f9   :  { %2356 = vmatpush.msra.mxu2 %v6763_v11  ;;  %2518 = vmatpush.msrb.mxu3 %v7148_v3  ;;  %9863 = vst [vmem:[#allocation61_spill] sm:$0xff] %v7176_v8  ;;  %v7180_v11 = vld [vmem:[#allocation7 + $0x2e8] sm:$0xff] }
 0x3fa   :  { %2317 = vmatpush.msra.mxu0 %v6767_v25  ;;  %2479 = vmatpush.msrb.mxu1 %v7152_v35  ;;  %9864 = vst [vmem:[#allocation64_spill] sm:$0xff] %v7180_v11  ;;  %v7184_v25 = vld [vmem:[#allocation7 + $0x2c0] sm:$0xff] }
 0x3fb   :  { %2357 = vmatpush.msra.mxu2 %v6771_v59  ;;  %2519 = vmatpush.msrb.mxu3 %v7156_v50  ;;  %9865 = vst [vmem:[#allocation69_spill] sm:$0xff] %v7184_v25  ;;  %v7188_v59 = vld [vmem:[#allocation7 + $0x2c8] sm:$0xff] }
 0x3fc   :  { %2318 = vmatpush.msra.mxu0 %v6775_v44  ;;  %2480 = vmatpush.msrb.mxu1 %v7160_v2  ;;  %9866 = vst [vmem:[#allocation70_spill] sm:$0xff] %v7188_v59  ;;  %v7192_v44 = vld [vmem:[#allocation7 + $0x2a0] sm:$0xff] }
 0x3fd   :  { %2358 = vmatpush.msra.mxu2 %v6779_v41  ;;  %2520 = vmatpush.msrb.mxu3 %v7164_v33  ;;  %9867 = vst [vmem:[#allocation73_spill] sm:$0xff] %v7192_v44  ;;  %v7198_v41 = vld [vmem:[#allocation7 + $0x2a8] sm:$0xff] }
 0x3fe   :  { %2319 = vmatpush.msra.mxu0 %v6783_v23  ;;  %2481 = vmatpush.msrb.mxu1 %v7168_v51  ;;  %9868 = vst [vmem:[#allocation74_spill] sm:$0xff] %v7198_v41  ;;  %v7201_v23 = vld [vmem:[#allocation7 + $0x280] sm:$0xff] }
 0x3ff   :  { %2359 = vmatpush.msra.mxu2 %v6787_v17  ;;  %2521 = vmatpush.msrb.mxu3 %v7172_v28  ;;  %9869 = vst [vmem:[#allocation77_spill] sm:$0xff] %v7201_v23  ;;  %v7204_v17 = vld [vmem:[#allocation7 + $0x1e0] sm:$0xff] }
 0x400   :  { %2320 = vmatpush.msra.mxu0 %v6791_v56  ;;  %2482 = vmatpush.msrb.mxu1 %v7176_v8  ;;  %9870 = vst [vmem:[#allocation78_spill] sm:$0xff] %v7204_v17  ;;  %v7207_v56 = vld [vmem:[#allocation7 + $0x288] sm:$0xff] }
 0x401   :  { %2360 = vmatpush.msra.mxu2 %v6795_v42  ;;  %2522 = vmatpush.msrb.mxu3 %v7180_v11  ;;  %9871 = vst [vmem:[#allocation81_spill] sm:$0xff] %v7207_v56  ;;  %v7210_v42 = vld [vmem:[#allocation7 + $0x1e8] sm:$0xff]  ;;  %v9976_v11 = vld [vmem:[#allocation25_spill] sm:$0xff] }
 0x402   :  { %2321 = vmatpush.msra.mxu0 %v6799_v6  ;;  %2483 = vmatpush.msrb.mxu1 %v7184_v25  ;;  %9872 = vst [vmem:[#allocation84_spill] sm:$0xff] %v7210_v42  ;;  %v7213_v6 = vld [vmem:[#allocation7 + $0x260] sm:$0xff] }
 0x403   :  { %2361 = vmatpush.msra.mxu2 %v6803_v1  ;;  %2523 = vmatpush.msrb.mxu3 %v7188_v59  ;;  %9873 = vst [vmem:[#allocation89_spill] sm:$0xff] %v7213_v6  ;;  %v7216_v1 = vld [vmem:[#allocation7 + $0x1c0] sm:$0xff] }
 0x404   :  { %2322 = vmatpush.msra.mxu0 %v6807_v18  ;;  %2484 = vmatpush.msrb.mxu1 %v7192_v44  ;;  %9874 = vst [vmem:[#allocation90_spill] sm:$0xff] %v7216_v1  ;;  %v7219_v18 = vld [vmem:[#allocation7 + $0x268] sm:$0xff] }
 0x405   :  { %2362 = vmatpush.msra.mxu2 %v6811_v22  ;;  %2323 = vmatmul.f32.vlgmr.msra.gmra.mxu0 %v7069_v37  ;;  %9875 = vst [vmem:[#allocation93_spill] sm:$0xff] %v7219_v18  ;;  %v7222_v22 = vld [vmem:[#allocation7 + $0x1c8] sm:$0xff] }
 0x406   :  { %2363 = vmatmul.f32.vlgmr.msra.gmra.mxu2 %v7069_v37  ;;  %2524 = vmatpush.msrb.mxu3 %v7198_v41  ;;  %9876 = vst [vmem:[#allocation94_spill] sm:$0xff] %v7222_v22  ;;  %v7228_v37 = vld [vmem:[#allocation7 + $0x1a0] sm:$0xff]  ;;  %v9975_v41 = vld [vmem:[#allocation24_spill] sm:$0xff] }
 0x407   :  { %2485 = vmatpush.msrb.mxu1 %v7201_v23  ;;  %2454 = vmatpush.msrb.mxu0 %v7204_v17  ;;  %9878 = vst [vmem:[#allocation98_spill] sm:$0xff] %v7228_v37  ;;  %v342_v44 = vadd.f32 %v9975_v41, %v9831_v30  ;;  %v9978_v30 = vld [vmem:[#allocation153_spill] sm:$0xff] }
 0x408   :  { %2525 = vmatpush.msrb.mxu3 %v7207_v56  ;;  %2494 = vmatpush.msrb.mxu2 %v7210_v42 }
 0x409   :  { %2486 = vmatpush.msrb.mxu1 %v7213_v6  ;;  %2455 = vmatpush.msrb.mxu0 %v7216_v1  ;;  %v7231_v6 = vld [vmem:[#allocation7 + $0x248] sm:$0xff]  ;;  %v383_v8 = vadd.f32 %v9976_v11, %v342_v44 }
 0x40a   :  { %2526 = vmatpush.msrb.mxu3 %v7219_v18  ;;  %2495 = vmatpush.msrb.mxu2 %v7222_v22  ;;  %9879 = vst [vmem:[#allocation101_spill] sm:$0xff] %v7231_v6  ;;  %v7234_v1 = vld [vmem:[#allocation7 + $0x1a8] sm:$0xff]  ;;  %v7237_v18 = vld [vmem:[#allocation7 + $0x220] sm:$0xff] }
 0x40b   :  { %2487 = vmatpush.msrb.mxu1 %v7225_v36  ;;  %2456 = vmatpush.msrb.mxu0 %v7228_v37  ;;  %9880 = vst [vmem:[#allocation104_spill] sm:$0xff] %v7234_v1  ;;  %v7240_v22 = vld [vmem:[#allocation7 + $0x180] sm:$0xff]  ;;  %v7243_v36 = vld [vmem:[#allocation7 + $0x228] sm:$0xff] }
 0x40c   :  { %2527 = vmatpush.msrb.mxu3 %v7231_v6  ;;  %2496 = vmatpush.msrb.mxu2 %v7234_v1  ;;  %9881 = vst [vmem:[#allocation109_spill] sm:$0xff] %v7237_v18  ;;  %v7246_v37 = vld [vmem:[#allocation7 + $0x188] sm:$0xff]  ;;  %v7249_v6 = vld [vmem:[#allocation7 + $0x200] sm:$0xff] }
 0x40d   :  { %2488 = vmatpush.msrb.mxu1 %v7237_v18  ;;  %9882 = vst [vmem:[#allocation110_spill] sm:$0xff] %v7240_v22  ;;  %2457 = vmatpush.msrb.mxu0 %v7240_v22  ;;  %v7252_v1 = vld [vmem:[#allocation7 + $0x160] sm:$0xff]  ;;  %v7255_v18 = vld [vmem:[#allocation7 + $0x208] sm:$0xff] }
 0x40e   :  { %9883 = vst [vmem:[#allocation113_spill] sm:$0xff] %v7243_v36  ;;  %2528 = vmatpush.msrb.mxu3 %v7243_v36  ;;  %2497 = vmatpush.msrb.mxu2 %v7246_v37  ;;  %v7258_v22 = vld [vmem:[#allocation7 + $0x168] sm:$0xff]  ;;  %v7261_v36 = vld [vmem:[#allocation7 + $0x3f0] sm:$0xff] }
 0x40f   :  { %9884 = vst [vmem:[#allocation114_spill] sm:$0xff] %v7246_v37  ;;  %2489 = vmatpush.msrb.mxu1 %v7249_v6  ;;  %2458 = vmatpush.msrb.mxu0 %v7252_v1  ;;  %v7264_v37 = vld [vmem:[#allocation7 + $0x3f8] sm:$0xff] }
 0x410   :  { %9885 = vst [vmem:[#allocation117_spill] sm:$0xff] %v7249_v6  ;;  %2529 = vmatpush.msrb.mxu3 %v7255_v18  ;;  %2498 = vmatpush.msrb.mxu2 %v7258_v22  ;;  %v7267_v6 = vld [vmem:[#allocation7 + $0x140] sm:$0xff] }
 0x411   :  { %9886 = vst [vmem:[#allocation59_spill] sm:$0xff] %v7252_v1  ;;  %2554 = vmatpush.msra.mxu1 %v7261_v36  ;;  %2459 = vmatpush.msrb.mxu0 %v7267_v6  ;;  %v7270_v1 = vld [vmem:[#allocation7 + $0x148] sm:$0xff] }
 0x412   :  { %9887 = vst [vmem:[#allocation60_spill] sm:$0xff] %v7255_v18  ;;  %2594 = vmatpush.msra.mxu3 %v7264_v37  ;;  %2499 = vmatpush.msrb.mxu2 %v7270_v1  ;;  %v7273_v18 = vld [vmem:[#allocation7 + $0x3d0] sm:$0xff] }
 0x413   :  { %9888 = vst [vmem:[#allocation118_spill] sm:$0xff] %v7258_v22  ;;  %2555 = vmatpush.msra.mxu1 %v7273_v18  ;;  %v7276_v22 = vld [vmem:[#allocation7 + $0x3d8] sm:$0xff] }
 0x414   :  { %9889 = vst [vmem:[#allocation67_spill] sm:$0xff] %v7261_v36  ;;  %2595 = vmatpush.msra.mxu3 %v7276_v22  ;;  %v7279_v36 = vld [vmem:[#allocation7 + $0x120] sm:$0xff] }
 0x415   :  { %9890 = vst [vmem:[#allocation68_spill] sm:$0xff] %v7264_v37  ;;  %2460 = vmatpush.msrb.mxu0 %v7279_v36  ;;  %v7282_v37 = vld [vmem:[#allocation7 + $0x128] sm:$0xff] }
 0x416   :  { %9891 = vst [vmem:[#allocation124_spill] sm:$0xff] %v7267_v6  ;;  %2500 = vmatpush.msrb.mxu2 %v7282_v37  ;;  %v7285_v6 = vld [vmem:[#allocation7 + $0x3b0] sm:$0xff] }
 0x417   :  { %9892 = vst [vmem:[#allocation71_spill] sm:$0xff] %v7270_v1  ;;  %2556 = vmatpush.msra.mxu1 %v7285_v6  ;;  %v7288_v1 = vld [vmem:[#allocation7 + $0x3b8] sm:$0xff] }
 0x418   :  { %9893 = vst [vmem:[#allocation128_spill] sm:$0xff] %v7273_v18  ;;  %2596 = vmatpush.msra.mxu3 %v7288_v1  ;;  %v7291_v18 = vld [vmem:[#allocation7 + $0x100] sm:$0xff] }
 0x419   :  { %9894 = vst [vmem:[#allocation72_spill] sm:$0xff] %v7276_v22  ;;  %2461 = vmatpush.msrb.mxu0 %v7291_v18  ;;  %v7294_v22 = vld [vmem:[#allocation7 + $0x108] sm:$0xff] }
 0x41a   :  { %9895 = vst [vmem:[#allocation129_spill] sm:$0xff] %v7279_v36  ;;  %2501 = vmatpush.msrb.mxu2 %v7294_v22  ;;  %v7297_v36 = vld [vmem:[#allocation7 + $0x390] sm:$0xff] }
 0x41b   :  { %9896 = vst [vmem:[#allocation75_spill] sm:$0xff] %v7282_v37  ;;  %2557 = vmatpush.msra.mxu1 %v7297_v36  ;;  %v7300_v37 = vld [vmem:[#allocation7 + $0x398] sm:$0xff] }
 0x41c   :  { %9897 = vst [vmem:[#allocation132_spill] sm:$0xff] %v7285_v6  ;;  %2597 = vmatpush.msra.mxu3 %v7300_v37  ;;  %v7303_v6 = vld [vmem:[#allocation7 + $0xe0] sm:$0xff] }
 0x41d   :  { %9898 = vst [vmem:[#allocation76_spill] sm:$0xff] %v7288_v1  ;;  %2462 = vmatpush.msrb.mxu0 %v7303_v6  ;;  %v7306_v1 = vld [vmem:[#allocation7 + $0xe8] sm:$0xff] }
 0x41e   :  { %9899 = vst [vmem:[#allocation133_spill] sm:$0xff] %v7291_v18  ;;  %2502 = vmatpush.msrb.mxu2 %v7306_v1  ;;  %v7309_v18 = vld [vmem:[#allocation7 + $0x370] sm:$0xff] }
 0x41f   :  { %9900 = vst [vmem:[#allocation79_spill] sm:$0xff] %v7294_v22  ;;  %2558 = vmatpush.msra.mxu1 %v7309_v18  ;;  %v7312_v22 = vld [vmem:[#allocation7 + $0x378] sm:$0xff] }
 0x420   :  { %9901 = vst [vmem:[#allocation80_spill] sm:$0xff] %v7297_v36  ;;  %2598 = vmatpush.msra.mxu3 %v7312_v22  ;;  %v7315_v36 = vld [vmem:[#allocation7 + $0xc0] sm:$0xff] }
 0x421   :  { %9902 = vst [vmem:[#allocation87_spill] sm:$0xff] %v7300_v37  ;;  %2463 = vmatpush.msrb.mxu0 %v7315_v36  ;;  %v7318_v37 = vld [vmem:[#allocation7 + $0xc8] sm:$0xff] }
 0x422   :  { %9903 = vst [vmem:[#allocation88_spill] sm:$0xff] %v7303_v6  ;;  %2503 = vmatpush.msrb.mxu2 %v7318_v37  ;;  %v7321_v6 = vld [vmem:[#allocation7 + $0x350] sm:$0xff] }
 0x423   :  { %9904 = vst [vmem:[#allocation91_spill] sm:$0xff] %v7306_v1  ;;  %2559 = vmatpush.msra.mxu1 %v7321_v6  ;;  %v7324_v1 = vld [vmem:[#allocation7 + $0x358] sm:$0xff] }
 0x424   :  { %9905 = vst [vmem:[#allocation92_spill] sm:$0xff] %v7309_v18  ;;  %2599 = vmatpush.msra.mxu3 %v7324_v1  ;;  %v7327_v18 = vld [vmem:[#allocation7 + $0xa0] sm:$0xff] }
 0x425   :  { %9906 = vst [vmem:[#allocation95_spill] sm:$0xff] %v7312_v22  ;;  %2464 = vmatpush.msrb.mxu0 %v7327_v18  ;;  %v7330_v22 = vld [vmem:[#allocation7 + $0xa8] sm:$0xff] }
 0x426   :  { %9907 = vst [vmem:[#allocation96_spill] sm:$0xff] %v7315_v36  ;;  %2504 = vmatpush.msrb.mxu2 %v7330_v22  ;;  %v7333_v36 = vld [vmem:[#allocation7 + $0x330] sm:$0xff] }
 0x427   :  { %9908 = vst [vmem:[#allocation99_spill] sm:$0xff] %v7318_v37  ;;  %2560 = vmatpush.msra.mxu1 %v7333_v36  ;;  %v7336_v37 = vld [vmem:[#allocation7 + $0x338] sm:$0xff] }
 0x428   :  { %9909 = vst [vmem:[#allocation100_spill] sm:$0xff] %v7321_v6  ;;  %2600 = vmatpush.msra.mxu3 %v7336_v37  ;;  %v7339_v6 = vld [vmem:[#allocation7 + $0x80] sm:$0xff] }
 0x429   :  { %9910 = vst [vmem:[#allocation107_spill] sm:$0xff] %v7324_v1  ;;  %2465 = vmatpush.msrb.mxu0 %v7339_v6  ;;  %v7342_v1 = vld [vmem:[#allocation7 + $0x88] sm:$0xff] }
 0x42a   :  { %9911 = vst [vmem:[#allocation108_spill] sm:$0xff] %v7327_v18  ;;  %2505 = vmatpush.msrb.mxu2 %v7342_v1  ;;  %v7345_v18 = vld [vmem:[#allocation7 + $0x310] sm:$0xff] }
 0x42b   :  { %9912 = vst [vmem:[#allocation111_spill] sm:$0xff] %v7330_v22  ;;  %2561 = vmatpush.msra.mxu1 %v7345_v18  ;;  %v7348_v22 = vld [vmem:[#allocation7 + $0x318] sm:$0xff] }
 0x42c   :  { %9913 = vst [vmem:[#allocation112_spill] sm:$0xff] %v7333_v36  ;;  %2601 = vmatpush.msra.mxu3 %v7348_v22  ;;  %v7351_v36 = vld [vmem:[#allocation7 + $0x60] sm:$0xff] }
 0x42d   :  { %9914 = vst [vmem:[#allocation115_spill] sm:$0xff] %v7336_v37  ;;  %2466 = vmatpush.msrb.mxu0 %v7351_v36  ;;  %v7354_v37 = vld [vmem:[#allocation7 + $0x68] sm:$0xff] }
 0x42e   :  { %9915 = vst [vmem:[#allocation116_spill] sm:$0xff] %v7339_v6  ;;  %2506 = vmatpush.msrb.mxu2 %v7354_v37  ;;  %v7357_v6 = vld [vmem:[#allocation7 + $0x2f0] sm:$0xff] }
 0x42f   :  { %9916 = vst [vmem:[#allocation120_spill] sm:$0xff] %v7342_v1  ;;  %2562 = vmatpush.msra.mxu1 %v7357_v6  ;;  %v7360_v1 = vld [vmem:[#allocation7 + $0x2f8] sm:$0xff] }
 0x430   :  { %9917 = vst [vmem:[#allocation121_spill] sm:$0xff] %v7345_v18  ;;  %2602 = vmatpush.msra.mxu3 %v7360_v1  ;;  %v7363_v18 = vld [vmem:[#allocation7 + $0x40] sm:$0xff] }
 0x431   :  { %9918 = vst [vmem:[#allocation126_spill] sm:$0xff] %v7348_v22  ;;  %2467 = vmatpush.msrb.mxu0 %v7363_v18  ;;  %v7366_v22 = vld [vmem:[#allocation7 + $0x48] sm:$0xff] }
 0x432   :  { %9919 = vst [vmem:[#allocation127_spill] sm:$0xff] %v7351_v36  ;;  %2507 = vmatpush.msrb.mxu2 %v7366_v22  ;;  %v7369_v36 = vld [vmem:[#allocation7 + $0x2d0] sm:$0xff] }
 0x433   :  { %9920 = vst [vmem:[#allocation130_spill] sm:$0xff] %v7354_v37  ;;  %2563 = vmatpush.msra.mxu1 %v7369_v36  ;;  %v7372_v37 = vld [vmem:[#allocation7 + $0x2d8] sm:$0xff] }
 0x434   :  { %9921 = vst [vmem:[#allocation131_spill] sm:$0xff] %v7357_v6  ;;  %2603 = vmatpush.msra.mxu3 %v7372_v37  ;;  %v7375_v6 = vld [vmem:[#allocation7 + $0x20] sm:$0xff] }
 0x435   :  { %9922 = vst [vmem:[#allocation134_spill] sm:$0xff] %v7360_v1  ;;  %2468 = vmatpush.msrb.mxu0 %v7375_v6  ;;  %v7378_v1 = vld [vmem:[#allocation7 + $0x28] sm:$0xff] }
 0x436   :  { %9923 = vst [vmem:[#allocation135_spill] sm:$0xff] %v7363_v18  ;;  %2508 = vmatpush.msrb.mxu2 %v7378_v1  ;;  %v7381_v18 = vld [vmem:[#allocation7 + $0x2b0] sm:$0xff] }
 0x437   :  { %9924 = vst [vmem:[#allocation139_spill] sm:$0xff] %v7366_v22  ;;  %2564 = vmatpush.msra.mxu1 %v7381_v18  ;;  %v7384_v22 = vld [vmem:[#allocation7 + $0x2b8] sm:$0xff] }
 0x438   :  { %9925 = vst [vmem:[#allocation140_spill] sm:$0xff] %v7369_v36  ;;  %2604 = vmatpush.msra.mxu3 %v7384_v22  ;;  %v7387_v36 = vld [vmem:[#allocation7] sm:$0xff] }
 0x439   :  { %9926 = vst [vmem:[#allocation141_spill] sm:$0xff] %v7372_v37  ;;  %2469 = vmatpush.msrb.mxu0 %v7387_v36  ;;  %v7390_v37 = vld [vmem:[#allocation7 + $0x8] sm:$0xff] }
 0x43a   :  { %9927 = vst [vmem:[#allocation143_spill] sm:$0xff] %v7375_v6  ;;  %2509 = vmatpush.msrb.mxu2 %v7390_v37  ;;  %v7393_v6 = vld [vmem:[#allocation7 + $0x290] sm:$0xff] }
 0x43b   :  { %9928 = vst [vmem:[#allocation144_spill] sm:$0xff] %v7378_v1  ;;  %2565 = vmatpush.msra.mxu1 %v7393_v6  ;;  %v7396_v1 = vld [vmem:[#allocation7 + $0x298] sm:$0xff] }
 0x43c   :  { %9929 = vst [vmem:[#allocation150_spill] sm:$0xff] %v7381_v18  ;;  %2605 = vmatpush.msra.mxu3 %v7396_v1  ;;  %v7399_v18 = vld [vmem:[#allocation7 + $0x1f0] sm:$0xff] }
 0x43d   :  { %9930 = vst [vmem:[#allocation151_spill] sm:$0xff] %v7384_v22  ;;  %2534 = vmatpush.msra.mxu0 %v7399_v18  ;;  %v7402_v22 = vld [vmem:[#allocation7 + $0x1f8] sm:$0xff] }
 0x43e   :  { %9931 = vst [vmem:[#allocation12_spill] sm:$0xff] %v7387_v36  ;;  %2574 = vmatpush.msra.mxu2 %v7402_v22  ;;  %v7405_v36 = vld [vmem:[#allocation7 + $0x270] sm:$0xff] }
 0x43f   :  { %9932 = vst [vmem:[#allocation13_spill] sm:$0xff] %v7390_v37  ;;  %2566 = vmatpush.msra.mxu1 %v7405_v36  ;;  %v7408_v37 = vld [vmem:[#allocation7 + $0x278] sm:$0xff] }
 0x440   :  { %9933 = vst [vmem:[#allocation62_spill] sm:$0xff] %v7393_v6  ;;  %2606 = vmatpush.msra.mxu3 %v7408_v37  ;;  %v7411_v6 = vld [vmem:[#allocation7 + $0x1d0] sm:$0xff] }
 0x441   :  { %9934 = vst [vmem:[#allocation63_spill] sm:$0xff] %v7396_v1  ;;  %2535 = vmatpush.msra.mxu0 %v7411_v6  ;;  %v7414_v1 = vld [vmem:[#allocation7 + $0x1d8] sm:$0xff] }
 0x442   :  { %9935 = vst [vmem:[#allocation10_spill] sm:$0xff] %v7399_v18  ;;  %2575 = vmatpush.msra.mxu2 %v7414_v1  ;;  %v7417_v18 = vld [vmem:[#allocation7 + $0x250] sm:$0xff] }
 0x443   :  { %9936 = vst [vmem:[#allocation11_spill] sm:$0xff] %v7402_v22  ;;  %2567 = vmatpush.msra.mxu1 %v7417_v18  ;;  %v7420_v22 = vld [vmem:[#allocation7 + $0x258] sm:$0xff] }
 0x444   :  { %9937 = vst [vmem:[#allocation51_spill] sm:$0xff] %v7405_v36  ;;  %2607 = vmatpush.msra.mxu3 %v7420_v22  ;;  %v7423_v36 = vld [vmem:[#allocation7 + $0x1b0] sm:$0xff] }
 0x445   :  { %9938 = vst [vmem:[#allocation52_spill] sm:$0xff] %v7408_v37  ;;  %2536 = vmatpush.msra.mxu0 %v7423_v36  ;;  %v7426_v37 = vld [vmem:[#allocation7 + $0x1b8] sm:$0xff] }
 0x446   :  { %9939 = vst [vmem:[#allocation36_spill] sm:$0xff] %v7411_v6  ;;  %2576 = vmatpush.msra.mxu2 %v7426_v37  ;;  %v7429_v6 = vld [vmem:[#allocation7 + $0x230] sm:$0xff] }
 0x447   :  { %9940 = vst [vmem:[#allocation37_spill] sm:$0xff] %v7414_v1  ;;  %2568 = vmatpush.msra.mxu1 %v7429_v6  ;;  %v7432_v1 = vld [vmem:[#allocation7 + $0x238] sm:$0xff] }
 0x448   :  { %9941 = vst [vmem:[#allocation38_spill] sm:$0xff] %v7417_v18  ;;  %2608 = vmatpush.msra.mxu3 %v7432_v1  ;;  %v7435_v18 = vld [vmem:[#allocation7 + $0x190] sm:$0xff] }
 0x449   :  { %9942 = vst [vmem:[#allocation41_spill] sm:$0xff] %v7420_v22  ;;  %2537 = vmatpush.msra.mxu0 %v7435_v18  ;;  %v7438_v22 = vld [vmem:[#allocation7 + $0x198] sm:$0xff] }
 0x44a   :  { %9943 = vst [vmem:[#allocation42_spill] sm:$0xff] %v7423_v36  ;;  %2577 = vmatpush.msra.mxu2 %v7438_v22  ;;  %v7441_v36 = vld [vmem:[#allocation7 + $0x210] sm:$0xff] }
 0x44b   :  { %9944 = vst [vmem:[#allocation43_spill] sm:$0xff] %v7426_v37  ;;  %2569 = vmatpush.msra.mxu1 %v7441_v36  ;;  %v7444_v37 = vld [vmem:[#allocation7 + $0x218] sm:$0xff] }
 0x44c   :  { %9945 = vst [vmem:[#allocation44_spill] sm:$0xff] %v7429_v6  ;;  %2609 = vmatpush.msra.mxu3 %v7444_v37  ;;  %v7447_v6 = vld [vmem:[#allocation7 + $0x170] sm:$0xff] }
 0x44d   :  { %9946 = vst [vmem:[#allocation45_spill] sm:$0xff] %v7432_v1  ;;  %2538 = vmatpush.msra.mxu0 %v7447_v6  ;;  %v7450_v1 = vld [vmem:[#allocation7 + $0x178] sm:$0xff] }
 0x44e   :  { %9947 = vst [vmem:[#allocation46_spill] sm:$0xff] %v7435_v18  ;;  %2578 = vmatpush.msra.mxu2 %v7450_v1  ;;  %v7453_v18 = vld [vmem:[#allocation7 + $0x150] sm:$0xff]  ;;  %v2154_v17 = vpop.f32.mrf.mxu3 }
 0x44f   :  { %9948 = vst [vmem:[#allocation156_spill] sm:$0xff] %v7438_v22  ;;  %2539 = vmatpush.msra.mxu0 %v7453_v18  ;;  %v7456_v22 = vld [vmem:[#allocation7 + $0x158] sm:$0xff] }
 0x450   :  { %9949 = vst [vmem:[#allocation157_spill] sm:$0xff] %v7441_v36  ;;  %2579 = vmatpush.msra.mxu2 %v7456_v22  ;;  %v7459_v36 = vld [vmem:[#allocation7 + $0x130] sm:$0xff] }
 0x451   :  { %9950 = vst [vmem:[#allocation158_spill] sm:$0xff] %v7444_v37  ;;  %2540 = vmatpush.msra.mxu0 %v7459_v36  ;;  %v7462_v37 = vld [vmem:[#allocation7 + $0x138] sm:$0xff] }
 0x452   :  { %9951 = vst [vmem:[#allocation159_spill] sm:$0xff] %v7447_v6  ;;  %2580 = vmatpush.msra.mxu2 %v7462_v37  ;;  %v7465_v6 = vld [vmem:[#allocation7 + $0x110] sm:$0xff] }
 0x453   :  { %9952 = vst [vmem:[#allocation160_spill] sm:$0xff] %v7450_v1  ;;  %2541 = vmatpush.msra.mxu0 %v7465_v6  ;;  %v7468_v1 = vld [vmem:[#allocation7 + $0x118] sm:$0xff] }
 0x454   :  { %9953 = vst [vmem:[#allocation161_spill] sm:$0xff] %v7453_v18  ;;  %2581 = vmatpush.msra.mxu2 %v7468_v1  ;;  %v7471_v18 = vld [vmem:[#allocation7 + $0xf0] sm:$0xff] }
 0x455   :  { %9954 = vst [vmem:[#allocation162_spill] sm:$0xff] %v7456_v22  ;;  %2542 = vmatpush.msra.mxu0 %v7471_v18  ;;  %v7474_v22 = vld [vmem:[#allocation7 + $0xf8] sm:$0xff] }
 0x456   :  { %9955 = vst [vmem:[#allocation163_spill] sm:$0xff] %v7459_v36  ;;  %2582 = vmatpush.msra.mxu2 %v7474_v22  ;;  %v7477_v36 = vld [vmem:[#allocation7 + $0xd0] sm:$0xff]  ;;  %v2234_v33 = vpop.f32.mrf.mxu3 }
 0x457   :  { %9956 = vst [vmem:[#allocation164_spill] sm:$0xff] %v7462_v37  ;;  %2543 = vmatpush.msra.mxu0 %v7477_v36  ;;  %v7480_v37 = vld [vmem:[#allocation7 + $0xd8] sm:$0xff] }
 0x458   :  { %9957 = vst [vmem:[#allocation165_spill] sm:$0xff] %v7465_v6  ;;  %2583 = vmatpush.msra.mxu2 %v7480_v37  ;;  %v7483_v6 = vld [vmem:[#allocation7 + $0xb0] sm:$0xff] }
 0x459   :  { %9958 = vst [vmem:[#allocation166_spill] sm:$0xff] %v7468_v1  ;;  %2544 = vmatpush.msra.mxu0 %v7483_v6  ;;  %v7486_v1 = vld [vmem:[#allocation7 + $0xb8] sm:$0xff] }
 0x45a   :  { %9959 = vst [vmem:[#allocation167_spill] sm:$0xff] %v7471_v18  ;;  %2584 = vmatpush.msra.mxu2 %v7486_v1  ;;  %v7489_v18 = vld [vmem:[#allocation7 + $0x90] sm:$0xff] }
 0x45b   :  { %9960 = vst [vmem:[#allocation168_spill] sm:$0xff] %v7474_v22  ;;  %2545 = vmatpush.msra.mxu0 %v7489_v18  ;;  %v7492_v22 = vld [vmem:[#allocation7 + $0x98] sm:$0xff] }
 0x45c   :  { %9961 = vst [vmem:[#allocation169_spill] sm:$0xff] %v7477_v36  ;;  %2585 = vmatpush.msra.mxu2 %v7492_v22  ;;  %v7495_v36 = vld [vmem:[#allocation7 + $0x70] sm:$0xff] }
 0x45d   :  { %9962 = vst [vmem:[#allocation170_spill] sm:$0xff] %v7480_v37  ;;  %2546 = vmatpush.msra.mxu0 %v7495_v36  ;;  %v7498_v37 = vld [vmem:[#allocation7 + $0x78] sm:$0xff] }
 0x45e   :  { %9963 = vst [vmem:[#allocation171_spill] sm:$0xff] %v7483_v6  ;;  %2586 = vmatpush.msra.mxu2 %v7498_v37  ;;  %v7501_v6 = vld [vmem:[#allocation7 + $0x50] sm:$0xff] }
 0x45f   :  { %9964 = vst [vmem:[#allocation172_spill] sm:$0xff] %v7486_v1  ;;  %2547 = vmatpush.msra.mxu0 %v7501_v6  ;;  %v7504_v1 = vld [vmem:[#allocation7 + $0x58] sm:$0xff] }
 0x460   :  { %9965 = vst [vmem:[#allocation173_spill] sm:$0xff] %v7489_v18  ;;  %2587 = vmatpush.msra.mxu2 %v7504_v1  ;;  %v7507_v18 = vld [vmem:[#allocation7 + $0x30] sm:$0xff] }
 0x461   :  { %9966 = vst [vmem:[#allocation174_spill] sm:$0xff] %v7492_v22  ;;  %2548 = vmatpush.msra.mxu0 %v7507_v18  ;;  %v7510_v22 = vld [vmem:[#allocation7 + $0x38] sm:$0xff] }
 0x462   :  { %9967 = vst [vmem:[#allocation175_spill] sm:$0xff] %v7495_v36  ;;  %2588 = vmatpush.msra.mxu2 %v7510_v22  ;;  %v7513_v36 = vld [vmem:[#allocation7 + $0x10] sm:$0xff]  ;;  %v2094_v42 = vpop.f32.mrf.mxu0 }
 0x463   :  { %9968 = vst [vmem:[#allocation176_spill] sm:$0xff] %v7498_v37  ;;  %2549 = vmatpush.msra.mxu0 %v7513_v36  ;;  %v7516_v37 = vld [vmem:[#allocation7 + $0x18] sm:$0xff] }
 0x464   :  { %9969 = vst [vmem:[#allocation177_spill] sm:$0xff] %v7501_v6  ;;  %2589 = vmatpush.msra.mxu2 %v7516_v37  ;;  %v2114_v6 = vpop.f32.mrf.mxu1 }
 0x465   :  { %9970 = vst [vmem:[#allocation178_spill] sm:$0xff] %v7504_v1  ;;  %v2095_v1 = vadd.f32 %v2094_v42, %v9830_v55 }
 0x466   :  { %9971 = vst [vmem:[#allocation179_spill] sm:$0xff] %v7507_v18 }
 0x467   :  { %9972 = vst [vmem:[#allocation180_spill] sm:$0xff] %v7510_v22  ;;  %v2115_v23 = vadd.f32 %v2114_v6, %v2095_v1  ;;  %v9977_v6 = vld [vmem:[#allocation49_spill] sm:$0xff] }
 0x468   :  { %9973 = vst [vmem:[#allocation181_spill] sm:$0xff] %v7513_v36  ;;  %v2134_v22 = vpop.f32.mrf.mxu2 }
 0x469   :  { %9974 = vst [vmem:[#allocation182_spill] sm:$0xff] %v7516_v37  ;;  %v3883_v18 = vmul.f32 -1.442695, %v2115_v23  ;;  %v2135_v59 = vadd.f32 %v2134_v22, %v9833_v4 }
 0x46a   :  { %v2174_v4 = vpop.f32.mrf.mxu0 }
 0x46b   :  { %4029 = vpow2.f32 %v3883_v18  ;;  %v2155_v36 = vadd.f32 %v2154_v17, %v2135_v59  ;;  %v9979_v18 = vld [vmem:[#allocation125_spill] sm:$0xff] }
 0x46c   :  { %v2194_v56 = vpop.f32.mrf.mxu1  ;;  %v506_v2 = vadd.f32 %v9979_v18, %v9978_v30 }
 0x46d   :  { %v3884_v37 = vmul.f32 -1.442695, %v2155_v36  ;;  %v9981_v36 = vld [vmem:[#allocation50_spill] sm:$0xff] }
 0x46f   :  { %4031 = vpow2.f32 %v3884_v37 }
 0x470   :  { %v2214_v55 = vpop.f32.mrf.mxu2 }
 0x471   :  { %v4030_v51 = vpop.eup %4029  ;;  %v2215_v23 = vadd.f32 %v2214_v55, %v9977_v6  ;;  %v2175_v55 = vadd.f32 %v2174_v4, %v9981_v36 }
 0x472   :  { %v2240_v42 = vadd.f32 1.0, %v4030_v51 }
 0x473   :  { %v2235_v41 = vadd.f32 %v2234_v33, %v2215_v23  ;;  %v2195_v6 = vadd.f32 %v2194_v56, %v2175_v55 }
 0x474   :  { %v2344_v25 = vpop.f32.mrf.mxu1  ;;  %4033 = vrcp.f32 %v2240_v42  ;;  %vm2246_vm5 = vweird.f32 %v2240_v42 }
 0x475   :  { %v2388_v28 = vadd.f32 %v2344_v25, %v383_v8  ;;  %v4032_v22 = vpop.eup %4031  ;;  %v3885_v59 = vmul.f32 -1.442695, %v2235_v41  ;;  %v2384_v8 = vpop.f32.mrf.mxu3  ;;  %v9980_v25 = vld [vmem:[#allocation119_spill] sm:$0xff]  ;;  %v9982_v41 = vld [vmem:[#allocation145_spill] sm:$0xff] }
 0x476   :  { %v2259_v17 = vadd.f32 1.0, %v4032_v22  ;;  %v547_v44 = vadd.f32 %v9980_v25, %v506_v2  ;;  %v9983_v22 = vld [vmem:[#allocation22_spill] sm:$0xff]  ;;  %v2252_v25 = vand.u32 2147483648, %v2240_v42 }
 0x477   :  { %v3887_v1 = vmul.f32 -1.442695, %v2388_v28  ;;  %v260_v50 = vadd.f32 %v9983_v22, %v9982_v41 }
 0x478   :  { %v2390_v37 = vadd.f32 %v2384_v8, %v547_v44  ;;  %v2250_v8 = vand.u32 2147483647, %v2240_v42  ;;  %v9984_v44 = vld [vmem:[#allocation23_spill] sm:$0xff]  ;;  %vm2265_vm8 = vweird.f32 %v2259_v17 }
 0x479   :  { %4035 = vpow2.f32 %v3887_v1  ;;  %v301_v56 = vadd.f32 %v9984_v44, %v260_v50 }
 0x47a   :  { %4037 = vpow2.f32 %v3885_v59  ;;  %v4034_v11 = vpop.eup %4033  ;;  %v3888_v59 = vmul.f32 -1.442695, %v2390_v37  ;;  %vm2251_vm9 = vcmp.eq.f32.partialorder %v2250_v8, 8.507059e+37 }
 0x47b   :  { %4039 = vrcp.f32 %v2259_v17  ;;  %v2242_v51 = vmul.f32 %v4034_v11, %v2240_v42  ;;  %vm2247_vm4 = vweird.f32 %v4034_v11 }
 0x47c   :  { %vm7534_vm6 = vmor %vm2246_vm5, %vm2247_vm4 }
 0x47d   :  { %v2243_v28 = vsub.f32 1.0, %v2242_v51  ;;  %v2271_v51 = vand.u32 2147483648, %v2259_v17 }
 0x47f   :  { %v4036_v33 = vpop.eup %4035  ;;  %v2244_v18 = vmul.f32 %v4034_v11, %v2243_v28  ;;  %v2269_v28 = vand.u32 2147483647, %v2259_v17 }
 0x480   :  { %v4038_v23 = vpop.eup %4037  ;;  %v7531_v2 = vadd.f32 1.0, %v4036_v33 }
 0x481   :  { %v4040_v30 = vpop.eup %4039  ;;  %v2279_v1 = vadd.f32 1.0, %v4038_v23  ;;  %v2245_v3 = vadd.f32 %v4034_v11, %v2244_v18  ;;  %v2272_v18 = vor.u32 1.1754944e-38, %v2271_v51  ;;  %vm2270_vm11 = vcmp.eq.f32.partialorder %v2269_v28, 8.507059e+37 }
 0x482   :  { %v2261_v35 = vmul.f32 %v4040_v30, %v2259_v17  ;;  %v2324_v37 = vpop.f32.mrf.mxu0  ;;  %vm2266_vm7 = vweird.f32 %v4040_v30  ;;  %vm2419_vm1 = vweird.f32 %v7531_v2 }
 0x483   :  { %4041 = vrcp.f32 %v2279_v1  ;;  %v2249_v33 = vsel %vm7534_vm6, %v4034_v11, %v2245_v3  ;;  %v2387_v42 = vadd.f32 %v2324_v37, %v301_v56  ;;  %vm2267_vm10 = vmor %vm2265_vm8, %vm2266_vm7  ;;  %vm2285_vm13 = vweird.f32 %v2279_v1 }
 0x484   :  { %v2262_v4 = vsub.f32 1.0, %v2261_v35  ;;  %4043 = vtanh.f32 %v2195_v6  ;;  %v2253_v35 = vor.u32 1.1754944e-38, %v2252_v25 }
 0x485   :  { %4045 = vpow2.f32 %v3888_v59  ;;  %v3886_v44 = vmul.f32 -1.442695, %v2387_v42 }
 0x486   :  { %v2263_v23 = vmul.f32 %v4040_v30, %v2262_v4  ;;  %4047 = vrcp.f32 %v7531_v2  ;;  %v2254_v22 = vsel %vm2251_vm9, %v2253_v35, %v2249_v33 }
 0x487   :  { %4049 = vpow2.f32 %v3886_v44 }
 0x488   :  { %v2264_v50 = vadd.f32 %v4040_v30, %v2263_v23  ;;  %v2289_v23 = vand.u32 2147483647, %v2279_v1 }
 0x489   :  { %v4042_v6 = vpop.eup %4041 }
 0x48a   :  { %v4044_v41 = vpop.eup %4043  ;;  %v2268_v59 = vsel %vm2267_vm10, %v4040_v30, %v2264_v50  ;;  %v2281_v4 = vmul.f32 %v4042_v6, %v2279_v1  ;;  %vm2286_vm12 = vweird.f32 %v4042_v6  ;;  %v2291_v30 = vand.u32 2147483648, %v2279_v1 }
 0x48b   :  { %v4046_v36 = vpop.eup %4045  ;;  %v2273_v48 = vsel %vm2270_vm11, %v2272_v18, %v2268_v59  ;;  %v2296_v25 = vmul.f32 %v4044_v41, %v2254_v22  ;;  %vm2287_vm14 = vmor %vm2285_vm13, %vm2286_vm12  ;;  %v9987_v41 = vld [vmem:[#allocation105_spill] sm:$0xff]  ;;  %vm2290_vm15 = vcmp.eq.f32.partialorder %v2289_v23, 8.507059e+37  ;;  %v2364_v22 = vpop.f32.mrf.mxu2  ;;  %v9988_v59 = vld [vmem:[#allocation106_spill] sm:$0xff] }
 0x48c   :  { %v7541_v3 = vpop.eup %4047  ;;  %v2295_v11 = vmul.f32 %v2273_v48, %v6948_v34  ;;  %v2282_v17 = vsub.f32 1.0, %v2281_v4  ;;  %v7548_v55 = vadd.f32 1.0, %v4046_v36  ;;  %v424_v35 = vadd.f32 %v9987_v41, %v5711_v9 }
 0x48d   :  { %v2415_v51 = vmul.f32 %v7541_v3, %v7531_v2  ;;  %v4050_v37 = vpop.eup %4049  ;;  %v2292_v36 = vor.u32 1.1754944e-38, %v2291_v30  ;;  %vm2420_vm0 = vweird.f32 %v7541_v3 }
 0x48e   :  { %v7544_v8 = vadd.f32 %v2296_v25, %v2295_v11  ;;  %v2283_v56 = vmul.f32 %v4042_v6, %v2282_v17  ;;  %v2394_v33 = vadd.f32 1.0, %v4050_v37  ;;  %v465_v1 = vadd.f32 %v9988_v59, %v424_v35  ;;  %vm7569_vm2 = vmor %vm2419_vm1, %vm2420_vm0  ;;  %v9991_v37 = vld [vmem:[#allocation16_spill] sm:$0xff] }
 0x48f   :  { %v2416_v34 = vsub.f32 1.0, %v2415_v51  ;;  %vm2439_vm9 = vweird.f32 %v7548_v55 }
 0x490   :  { %4051 = vtanh.f32 %v7544_v8  ;;  %v2284_v28 = vadd.f32 %v4042_v6, %v2283_v56  ;;  %v2425_v56 = vand.u32 2147483648, %v7531_v2  ;;  %vm2400_vm4 = vweird.f32 %v2394_v33 }
 0x491   :  { %4053 = vrcp.f32 %v7548_v55  ;;  %v2417_v18 = vmul.f32 %v7541_v3, %v2416_v34 }
 0x492   :  { %v2288_v48 = vsel %vm2287_vm14, %v4042_v6, %v2284_v28  ;;  %4055 = vrcp.f32 %v2394_v33  ;;  %v2389_v6 = vadd.f32 %v2364_v22, %v465_v1  ;;  %v2406_v28 = vand.u32 2147483648, %v2394_v33 }
 0x493   :  { %v2293_v50 = vsel %vm2290_vm15, %v2292_v36, %v2288_v48  ;;  %v2418_v17 = vadd.f32 %v7541_v3, %v2417_v18  ;;  %v2426_v34 = vor.u32 1.1754944e-38, %v2425_v56  ;;  %v9993_v36 = vld [vmem:[#allocation82_spill] sm:$0xff]  ;;  %v10001_v56 = vld [vmem:[#allocation55_spill] sm:$0xff] }
 0x494   :  { %4057 = vtanh.f32 %v2389_v6  ;;  %v7693_v6 = vld [vmem:[#allocation5 + $0xa0] sm:$0xff] }
 0x496   :  { %v4052_v42 = vpop.eup %4051 }
 0x497   :  { %v2299_v44 = vmul.f32 %v4052_v42, %v2293_v50  ;;  %v7556_v4 = vpop.eup %4053  ;;  %v9994_v42 = vld [vmem:[#allocation83_spill] sm:$0xff] }
 0x498   :  { %v4056_v11 = vpop.eup %4055  ;;  %v2435_v51 = vmul.f32 %v7556_v4, %v7548_v55  ;;  %vm2440_vm8 = vweird.f32 %v7556_v4 }
 0x499   :  { %2490 = vmatmul.f32.vlgmr.msrb.gmra.mxu1 %v2299_v44  ;;  %2530 = vmatmul.f32.vlgmr.msrb.gmra.mxu3 %v2299_v44  ;;  %v2396_v25 = vmul.f32 %v4056_v11, %v2394_v33  ;;  %vm2401_vm3 = vweird.f32 %v4056_v11  ;;  %vm2441_vm10 = vmor %vm2439_vm9, %vm2440_vm8 }
 0x49a   :  { %2704 = vmatpush.msrb.mxu1 %v6965_v19  ;;  %2744 = vmatpush.msrb.mxu3 %v6968_v32  ;;  %v2423_v19 = vand.u32 2147483647, %v7531_v2  ;;  %v2436_v48 = vsub.f32 1.0, %v2435_v51  ;;  %v9992_v2 = vld [vmem:[#allocation17_spill] sm:$0xff]  ;;  %vm2402_vm6 = vmor %vm2400_vm4, %vm2401_vm3  ;;  %v7705_v51 = vld [vmem:[#allocation5 + $0x90] sm:$0xff] }
 0x49b   :  { %v2397_v30 = vsub.f32 1.0, %v2396_v25  ;;  %v7697_v25 = vld [vmem:[#allocation5 + $0xb0] sm:$0xff]  ;;  %v10003_v32 = vld [vmem:[#allocation57_spill] sm:$0xff] }
 0x49c   :  { %2705 = vmatpush.msrb.mxu1 %v6974_v62  ;;  %2745 = vmatpush.msrb.mxu3 %v6977_v14  ;;  %v2404_v62 = vand.u32 2147483647, %v2394_v33  ;;  %v2422_v14 = vsel %vm7569_vm2, %v7541_v3, %v2418_v17  ;;  %vm2424_vm5 = vcmp.eq.f32.partialorder %v2423_v19, 8.507059e+37  ;;  %v4058_v3 = vpop.eup %4057  ;;  %v2437_v18 = vmul.f32 %v7556_v4, %v2436_v48  ;;  %v7701_v17 = vld [vmem:[#allocation5 + $0x80] sm:$0xff] }
 0x49d   :  { %v2398_v23 = vmul.f32 %v4056_v11, %v2397_v30  ;;  %v2427_v35 = vsel %vm2424_vm5, %v2426_v34, %v2422_v14  ;;  %v10002_v30 = vld [vmem:[#allocation56_spill] sm:$0xff]  ;;  %v7709_v19 = vld [vmem:[#allocation5 + $0x60] sm:$0xff] }
 0x49e   :  { %2706 = vmatpush.msrb.mxu1 %v6985_v43  ;;  %2746 = vmatpush.msrb.mxu3 %v9991_v37  ;;  %v2407_v43 = vor.u32 1.1754944e-38, %v2406_v28  ;;  %vm2405_vm7 = vcmp.eq.f32.partialorder %v2404_v62, 8.507059e+37  ;;  %v2449_v33 = vmul.f32 %v2427_v35, %v7030_v47  ;;  %v2438_v59 = vadd.f32 %v7556_v4, %v2437_v18  ;;  %v9996_v47 = vld [vmem:[#allocation15_spill] sm:$0xff]  ;;  %v7713_v28 = vld [vmem:[#allocation5 + $0x70] sm:$0xff]  ;;  %v10004_v37 = vld [vmem:[#allocation58_spill] sm:$0xff] }
 0x49f   :  { %v2399_v41 = vadd.f32 %v4056_v11, %v2398_v23  ;;  %v7717_v23 = vld [vmem:[#allocation5 + $0x40] sm:$0xff]  ;;  %v10005_v62 = vld [vmem:[#allocation61_spill] sm:$0xff]  ;;  %v7721_v14 = vld [vmem:[#allocation5 + $0x50] sm:$0xff] }
 0x4a0   :  { %2707 = vmatpush.msrb.mxu1 %v7002_v26  ;;  %2747 = vmatpush.msrb.mxu3 %v9992_v2  ;;  %v10006_v34 = vld [vmem:[#allocation64_spill] sm:$0xff]  ;;  %v7725_v48 = vld [vmem:[#allocation5 + $0x20] sm:$0xff]  ;;  %v10007_v2 = vld [vmem:[#allocation69_spill] sm:$0xff] }
 0x4a1   :  { %2570 = vmatmul.f32.vlgmr.msra.gmra.mxu1 %v2299_v44  ;;  %2610 = vmatmul.f32.vlgmr.msra.gmra.mxu3 %v2299_v44  ;;  %v2403_v50 = vsel %vm2402_vm6, %v4056_v11, %v2399_v41  ;;  %v7689_v11 = vld [vmem:[#allocation5 + $0xd0] sm:$0xff]  ;;  %v7733_v35 = vld [vmem:[#allocation5] sm:$0xff] }
 0x4a2   :  { %2708 = vmatpush.msrb.mxu1 %v9993_v36  ;;  %2748 = vmatpush.msrb.mxu3 %v9994_v42  ;;  %v2408_v26 = vsel %vm2405_vm7, %v2407_v43, %v2403_v50  ;;  %v7729_v41 = vld [vmem:[#allocation5 + $0x30] sm:$0xff]  ;;  %v10008_v43 = vld [vmem:[#allocation70_spill] sm:$0xff]  ;;  %v10009_v36 = vld [vmem:[#allocation73_spill] sm:$0xff] }
 0x4a3   :  { %v2450_v22 = vmul.f32 %v4058_v3, %v2408_v26  ;;  %v7737_v42 = vld [vmem:[#allocation5 + $0x10] sm:$0xff]  ;;  %v10010_v50 = vld [vmem:[#allocation74_spill] sm:$0xff]  ;;  %v10011_v3 = vld [vmem:[#allocation77_spill] sm:$0xff] }
 0x4a4   :  { %2709 = vmatpush.msrb.mxu1 %v7016_v40  ;;  %2749 = vmatpush.msrb.mxu3 %v7019_v53  ;;  %v2445_v40 = vand.u32 2147483648, %v7548_v55  ;;  %v9995_v53 = vld [vmem:[#allocation14_spill] sm:$0xff]  ;;  %v10013_v26 = vld [vmem:[#allocation81_spill] sm:$0xff] }
 0x4a5   :  { %v7588_v44 = vadd.f32 %v2450_v22, %v2449_v33  ;;  %v10012_v18 = vld [vmem:[#allocation78_spill] sm:$0xff]  ;;  %v10014_v33 = vld [vmem:[#allocation84_spill] sm:$0xff]  ;;  %v10015_v22 = vld [vmem:[#allocation89_spill] sm:$0xff] }
 0x4a6   :  { %2710 = vmatpush.msrb.mxu1 %v7024_v45  ;;  %2750 = vmatpush.msrb.mxu3 %v7027_v38  ;;  %v2443_v45 = vand.u32 2147483647, %v7548_v55  ;;  %v2442_v38 = vsel %vm2441_vm10, %v7556_v4, %v2438_v59  ;;  %v7669_v4 = vld [vmem:[#allocation5 + $0x100] sm:$0xff] }
 0x4a7   :  { %4059 = vtanh.f32 %v7588_v44  ;;  %v10016_v59 = vld [vmem:[#allocation90_spill] sm:$0xff] }
 0x4a8   :  { %2711 = vmatpush.msrb.mxu1 %v7032_v27  ;;  %2751 = vmatpush.msrb.mxu3 %v7035_v24  ;;  %v2446_v27 = vor.u32 1.1754944e-38, %v2445_v40  ;;  %vm2444_vm11 = vcmp.eq.f32.partialorder %v2443_v45, 8.507059e+37  ;;  %v10017_v40 = vld [vmem:[#allocation93_spill] sm:$0xff]  ;;  %v10018_v45 = vld [vmem:[#allocation94_spill] sm:$0xff] }
 0x4aa   :  { %2712 = vmatpush.msrb.mxu1 %v7042_v0  ;;  %2752 = vmatpush.msrb.mxu3 %v9995_v53  ;;  %v2447_v1 = vsel %vm2444_vm11, %v2446_v27, %v2442_v38  ;;  %v7611_v0 = vld [vmem:[#allocation5 + $0x1e0] sm:$0xff]  ;;  %v10019_v53 = vld [vmem:[#allocation97_spill] sm:$0xff]  ;;  %v10022_v27 = vld [vmem:[#allocation104_spill] sm:$0xff] }
 0x4ab   :  { %v10020_v38 = vld [vmem:[#allocation98_spill] sm:$0xff] }
 0x4ac   :  { %2713 = vmatpush.msrb.mxu1 %v9996_v47  ;;  %2753 = vmatpush.msrb.mxu3 %v7053_v15  ;;  %v7614_v15 = vld [vmem:[#allocation5 + $0x1f0] sm:$0xff]  ;;  %v10021_v47 = vld [vmem:[#allocation101_spill] sm:$0xff] }
 0x4ad   :  { %v4060_v24 = vpop.eup %4059 }
 0x4ae   :  { %2714 = vmatpush.msrb.mxu1 %v7057_v57  ;;  %2754 = vmatpush.msrb.mxu3 %v7060_v21  ;;  %v7605_v55 = vmul.f32 %v4060_v24, %v2447_v1  ;;  %v7619_v57 = vld [vmem:[#allocation5 + $0x1c0] sm:$0xff]  ;;  %v7630_v21 = vld [vmem:[#allocation5 + $0x1b0] sm:$0xff]  ;;  %v10023_v24 = vld [vmem:[#allocation109_spill] sm:$0xff] }
 0x4af   :  { %v10024_v1 = vld [vmem:[#allocation110_spill] sm:$0xff] }
 0x4b0   :  { %2715 = vmatpush.msrb.mxu1 %v7063_v54  ;;  %2755 = vmatpush.msrb.mxu3 %v7066_v13  ;;  %v7622_v54 = vld [vmem:[#allocation5 + $0x1d0] sm:$0xff]  ;;  %v7627_v13 = vld [vmem:[#allocation5 + $0x1a0] sm:$0xff] }
 0x4b1   :  { %2470 = vmatmul.f32.vlgmr.msrb.gmra.mxu0 %v7605_v55  ;;  %2510 = vmatmul.f32.vlgmr.msrb.gmra.mxu2 %v7605_v55 }
 0x4b2   :  { %2684 = vmatpush.msrb.mxu0 %v7611_v0  ;;  %2724 = vmatpush.msrb.mxu2 %v7614_v15 }
 0x4b3   :  { %2716 = vmatpush.msrb.mxu1 %v7071_v20  ;;  %2756 = vmatpush.msrb.mxu3 %v7074_v12  ;;  %v7635_v20 = vld [vmem:[#allocation5 + $0x180] sm:$0xff]  ;;  %v7638_v12 = vld [vmem:[#allocation5 + $0x190] sm:$0xff] }
 0x4b4   :  { %2685 = vmatpush.msrb.mxu0 %v7619_v57  ;;  %2725 = vmatpush.msrb.mxu2 %v7622_v54 }
 0x4b5   :  { %2717 = vmatpush.msrb.mxu1 %v7081_v49  ;;  %2757 = vmatpush.msrb.mxu3 %v7084_v61  ;;  %v7645_v49 = vld [vmem:[#allocation5 + $0x160] sm:$0xff]  ;;  %v7649_v61 = vld [vmem:[#allocation5 + $0x170] sm:$0xff] }
 0x4b6   :  { %2686 = vmatpush.msrb.mxu0 %v7627_v13  ;;  %2726 = vmatpush.msrb.mxu2 %v7630_v21 }
 0x4b7   :  { %2718 = vmatpush.msrb.mxu1 %v7089_v29  ;;  %2758 = vmatpush.msrb.mxu3 %v7092_v60  ;;  %v7653_v29 = vld [vmem:[#allocation5 + $0x140] sm:$0xff]  ;;  %v7657_v60 = vld [vmem:[#allocation5 + $0x150] sm:$0xff] }
 0x4b8   :  { %2687 = vmatpush.msrb.mxu0 %v7635_v20  ;;  %2727 = vmatpush.msrb.mxu2 %v7638_v12 }
 0x4b9   :  { %2719 = vmatpush.msrb.mxu1 %v7097_v52  ;;  %2759 = vmatpush.msrb.mxu3 %v7100_v16  ;;  %v7661_v52 = vld [vmem:[#allocation5 + $0x120] sm:$0xff]  ;;  %v7665_v16 = vld [vmem:[#allocation5 + $0x130] sm:$0xff] }
 0x4ba   :  { %2550 = vmatmul.f32.vlgmr.msra.gmra.mxu0 %v7605_v55  ;;  %2590 = vmatmul.f32.vlgmr.msra.gmra.mxu2 %v7605_v55 }
 0x4bb   :  { %2688 = vmatpush.msrb.mxu0 %v7645_v49  ;;  %2720 = vmatmul.f32.vlgmr.msrb.gmra.mxu1 %v7605_v55 }
 0x4bc   :  { %2728 = vmatpush.msrb.mxu2 %v7649_v61  ;;  %2760 = vmatmul.f32.vlgmr.msrb.gmra.mxu3 %v7605_v55 }
 0x4bd   :  { %2689 = vmatpush.msrb.mxu0 %v7653_v29  ;;  %2851 = vmatpush.msra.mxu1 %v7112_v31  ;;  %v7673_v31 = vld [vmem:[#allocation5 + $0x110] sm:$0xff] }
 0x4be   :  { %2729 = vmatpush.msrb.mxu2 %v7657_v60  ;;  %2891 = vmatpush.msra.mxu3 %v7116_v46  ;;  %v7677_v46 = vld [vmem:[#allocation5 + $0xe0] sm:$0xff] }
 0x4bf   :  { %2690 = vmatpush.msrb.mxu0 %v7661_v52  ;;  %2852 = vmatpush.msra.mxu1 %v7120_v58  ;;  %v7681_v58 = vld [vmem:[#allocation5 + $0xf0] sm:$0xff] }
 0x4c0   :  { %2730 = vmatpush.msrb.mxu2 %v7665_v16  ;;  %2892 = vmatpush.msra.mxu3 %v7124_v39  ;;  %v7685_v39 = vld [vmem:[#allocation5 + $0xc0] sm:$0xff] }
 0x4c1   :  { %2691 = vmatpush.msrb.mxu0 %v7669_v4  ;;  %2853 = vmatpush.msra.mxu1 %v7128_v5  ;;  %v9997_v5 = vld [vmem:[#allocation65_spill] sm:$0xff] }
 0x4c2   :  { %2731 = vmatpush.msrb.mxu2 %v7673_v31  ;;  %2893 = vmatpush.msra.mxu3 %v7132_v10  ;;  %v9998_v10 = vld [vmem:[#allocation66_spill] sm:$0xff] }
 0x4c3   :  { %2692 = vmatpush.msrb.mxu0 %v7677_v46  ;;  %2854 = vmatpush.msra.mxu1 %v7136_v63  ;;  %v9999_v63 = vld [vmem:[#allocation53_spill] sm:$0xff] }
 0x4c4   :  { %2732 = vmatpush.msrb.mxu2 %v7681_v58  ;;  %2894 = vmatpush.msra.mxu3 %v7140_v7  ;;  %v10000_v7 = vld [vmem:[#allocation54_spill] sm:$0xff] }
 0x4c5   :  { %2693 = vmatpush.msrb.mxu0 %v7685_v39  ;;  %2855 = vmatpush.msra.mxu1 %v9997_v5  ;;  %v10026_v5 = vld [vmem:[#allocation114_spill] sm:$0xff] }
 0x4c6   :  { %2733 = vmatpush.msrb.mxu2 %v7689_v11  ;;  %2895 = vmatpush.msra.mxu3 %v9998_v10  ;;  %v10027_v10 = vld [vmem:[#allocation117_spill] sm:$0xff] }
 0x4c7   :  { %2694 = vmatpush.msrb.mxu0 %v7693_v6  ;;  %2856 = vmatpush.msra.mxu1 %v9999_v63  ;;  %v10028_v63 = vld [vmem:[#allocation59_spill] sm:$0xff] }
 0x4c8   :  { %2734 = vmatpush.msrb.mxu2 %v7697_v25  ;;  %2896 = vmatpush.msra.mxu3 %v10000_v7  ;;  %v10029_v7 = vld [vmem:[#allocation60_spill] sm:$0xff] }
 0x4c9   :  { %2695 = vmatpush.msrb.mxu0 %v7701_v17  ;;  %2857 = vmatpush.msra.mxu1 %v10001_v56  ;;  %v10030_v56 = vld [vmem:[#allocation118_spill] sm:$0xff] }
 0x4ca   :  { %2735 = vmatpush.msrb.mxu2 %v7705_v51  ;;  %2897 = vmatpush.msra.mxu3 %v10002_v30  ;;  %v10031_v30 = vld [vmem:[#allocation67_spill] sm:$0xff] }
 0x4cb   :  { %2696 = vmatpush.msrb.mxu0 %v7709_v19  ;;  %2858 = vmatpush.msra.mxu1 %v10003_v32  ;;  %v10032_v32 = vld [vmem:[#allocation68_spill] sm:$0xff] }
 0x4cc   :  { %2736 = vmatpush.msrb.mxu2 %v7713_v28  ;;  %2898 = vmatpush.msra.mxu3 %v10004_v37  ;;  %v10033_v37 = vld [vmem:[#allocation124_spill] sm:$0xff] }
 0x4cd   :  { %2697 = vmatpush.msrb.mxu0 %v7717_v23  ;;  %2859 = vmatpush.msra.mxu1 %v10005_v62  ;;  %v10034_v62 = vld [vmem:[#allocation71_spill] sm:$0xff] }
 0x4ce   :  { %2737 = vmatpush.msrb.mxu2 %v7721_v14  ;;  %2899 = vmatpush.msra.mxu3 %v10006_v34  ;;  %v10035_v34 = vld [vmem:[#allocation128_spill] sm:$0xff] }
 0x4cf   :  { %2698 = vmatpush.msrb.mxu0 %v7725_v48  ;;  %2860 = vmatpush.msra.mxu1 %v10007_v2  ;;  %v10036_v2 = vld [vmem:[#allocation72_spill] sm:$0xff] }
 0x4d0   :  { %2738 = vmatpush.msrb.mxu2 %v7729_v41  ;;  %2900 = vmatpush.msra.mxu3 %v10008_v43  ;;  %v10037_v43 = vld [vmem:[#allocation129_spill] sm:$0xff] }
 0x4d1   :  { %2699 = vmatpush.msrb.mxu0 %v7733_v35  ;;  %2861 = vmatpush.msra.mxu1 %v10009_v36  ;;  %v10038_v36 = vld [vmem:[#allocation75_spill] sm:$0xff] }
 0x4d2   :  { %2739 = vmatpush.msrb.mxu2 %v7737_v42  ;;  %2700 = vmatmul.f32.vlgmr.msrb.gmra.mxu0 %v7605_v55 }
 0x4d3   :  { %2740 = vmatmul.f32.vlgmr.msrb.gmra.mxu2 %v7605_v55  ;;  %2901 = vmatpush.msra.mxu3 %v10010_v50  ;;  %v10025_v55 = vld [vmem:[#allocation113_spill] sm:$0xff]  ;;  %v10039_v50 = vld [vmem:[#allocation132_spill] sm:$0xff] }
 0x4d4   :  { %2862 = vmatpush.msra.mxu1 %v10011_v3  ;;  %2831 = vmatpush.msra.mxu0 %v10012_v18  ;;  %v10040_v3 = vld [vmem:[#allocation76_spill] sm:$0xff]  ;;  %v10041_v18 = vld [vmem:[#allocation133_spill] sm:$0xff] }
 0x4d5   :  { %2902 = vmatpush.msra.mxu3 %v10013_v26  ;;  %2871 = vmatpush.msra.mxu2 %v10014_v33  ;;  %v10042_v26 = vld [vmem:[#allocation79_spill] sm:$0xff]  ;;  %v10043_v33 = vld [vmem:[#allocation80_spill] sm:$0xff] }
 0x4d6   :  { %2863 = vmatpush.msra.mxu1 %v10015_v22  ;;  %2832 = vmatpush.msra.mxu0 %v10016_v59  ;;  %v10044_v22 = vld [vmem:[#allocation87_spill] sm:$0xff]  ;;  %v10045_v59 = vld [vmem:[#allocation88_spill] sm:$0xff] }
 0x4d7   :  { %2903 = vmatpush.msra.mxu3 %v10017_v40  ;;  %2872 = vmatpush.msra.mxu2 %v10018_v45  ;;  %v10046_v40 = vld [vmem:[#allocation91_spill] sm:$0xff]  ;;  %v10047_v45 = vld [vmem:[#allocation92_spill] sm:$0xff] }
 0x4d8   :  { %2864 = vmatpush.msra.mxu1 %v10019_v53  ;;  %2833 = vmatpush.msra.mxu0 %v10020_v38  ;;  %v10048_v53 = vld [vmem:[#allocation95_spill] sm:$0xff]  ;;  %v10049_v38 = vld [vmem:[#allocation96_spill] sm:$0xff] }
 0x4d9   :  { %2904 = vmatpush.msra.mxu3 %v10021_v47  ;;  %2873 = vmatpush.msra.mxu2 %v10022_v27  ;;  %v10050_v47 = vld [vmem:[#allocation99_spill] sm:$0xff]  ;;  %v10051_v27 = vld [vmem:[#allocation100_spill] sm:$0xff] }
 0x4da   :  { %2865 = vmatpush.msra.mxu1 %v10023_v24  ;;  %2834 = vmatpush.msra.mxu0 %v10024_v1  ;;  %v10052_v24 = vld [vmem:[#allocation107_spill] sm:$0xff]  ;;  %v10053_v1 = vld [vmem:[#allocation108_spill] sm:$0xff] }
 0x4db   :  { %2905 = vmatpush.msra.mxu3 %v10025_v55  ;;  %2874 = vmatpush.msra.mxu2 %v10026_v5  ;;  %v10054_v55 = vld [vmem:[#allocation111_spill] sm:$0xff]  ;;  %v10055_v5 = vld [vmem:[#allocation112_spill] sm:$0xff] }
 0x4dc   :  { %2866 = vmatpush.msra.mxu1 %v10027_v10  ;;  %2835 = vmatpush.msra.mxu0 %v10028_v63  ;;  %v10056_v10 = vld [vmem:[#allocation115_spill] sm:$0xff]  ;;  %v10057_v63 = vld [vmem:[#allocation116_spill] sm:$0xff] }
 0x4dd   :  { %2906 = vmatpush.msra.mxu3 %v10029_v7  ;;  %2875 = vmatpush.msra.mxu2 %v10030_v56  ;;  %v10058_v7 = vld [vmem:[#allocation120_spill] sm:$0xff]  ;;  %v10059_v56 = vld [vmem:[#allocation121_spill] sm:$0xff] }
 0x4de   :  { %2931 = vmatpush.msrb.mxu1 %v10031_v30  ;;  %2836 = vmatpush.msra.mxu0 %v10033_v37  ;;  %v10060_v30 = vld [vmem:[#allocation126_spill] sm:$0xff] }
 0x4df   :  { %2971 = vmatpush.msrb.mxu3 %v10032_v32  ;;  %2876 = vmatpush.msra.mxu2 %v10034_v62  ;;  %v10061_v32 = vld [vmem:[#allocation127_spill] sm:$0xff]  ;;  %v10062_v37 = vld [vmem:[#allocation130_spill] sm:$0xff] }
 0x4e0   :  { %2932 = vmatpush.msrb.mxu1 %v10035_v34  ;;  %2837 = vmatpush.msra.mxu0 %v10037_v43  ;;  %v10063_v62 = vld [vmem:[#allocation131_spill] sm:$0xff]  ;;  %v10064_v34 = vld [vmem:[#allocation134_spill] sm:$0xff] }
 0x4e1   :  { %2972 = vmatpush.msrb.mxu3 %v10036_v2  ;;  %2877 = vmatpush.msra.mxu2 %v10038_v36  ;;  %v10065_v2 = vld [vmem:[#allocation135_spill] sm:$0xff]  ;;  %v10067_v36 = vld [vmem:[#allocation140_spill] sm:$0xff] }
 0x4e2   :  { %2933 = vmatpush.msrb.mxu1 %v10039_v50  ;;  %2838 = vmatpush.msra.mxu0 %v10041_v18  ;;  %v10066_v43 = vld [vmem:[#allocation139_spill] sm:$0xff]  ;;  %v10068_v50 = vld [vmem:[#allocation141_spill] sm:$0xff]  ;;  %v10070_v18 = vld [vmem:[#allocation144_spill] sm:$0xff] }
 0x4e3   :  { %2973 = vmatpush.msrb.mxu3 %v10040_v3  ;;  %2878 = vmatpush.msra.mxu2 %v10042_v26  ;;  %v10069_v3 = vld [vmem:[#allocation143_spill] sm:$0xff]  ;;  %v10071_v26 = vld [vmem:[#allocation150_spill] sm:$0xff] }
 0x4e4   :  { %2934 = vmatpush.msrb.mxu1 %v10043_v33  ;;  %2839 = vmatpush.msra.mxu0 %v10045_v59  ;;  %v10072_v33 = vld [vmem:[#allocation151_spill] sm:$0xff]  ;;  %v10074_v59 = vld [vmem:[#allocation13_spill] sm:$0xff] }
 0x4e5   :  { %2974 = vmatpush.msrb.mxu3 %v10044_v22  ;;  %2879 = vmatpush.msra.mxu2 %v10046_v40  ;;  %v10073_v22 = vld [vmem:[#allocation12_spill] sm:$0xff]  ;;  %v10075_v40 = vld [vmem:[#allocation62_spill] sm:$0xff] }
 0x4e6   :  { %2935 = vmatpush.msrb.mxu1 %v10047_v45  ;;  %2840 = vmatpush.msra.mxu0 %v10049_v38  ;;  %v10076_v45 = vld [vmem:[#allocation63_spill] sm:$0xff] }
 0x4e7   :  { %2975 = vmatpush.msrb.mxu3 %v10048_v53  ;;  %2880 = vmatpush.msra.mxu2 %v10050_v47  ;;  %v10077_v53 = vld [vmem:[#allocation10_spill] sm:$0xff]  ;;  %v10078_v38 = vld [vmem:[#allocation11_spill] sm:$0xff] }
 0x4e8   :  { %2936 = vmatpush.msrb.mxu1 %v10051_v27  ;;  %2841 = vmatpush.msra.mxu0 %v10053_v1  ;;  %v10079_v47 = vld [vmem:[#allocation51_spill] sm:$0xff]  ;;  %v10080_v27 = vld [vmem:[#allocation52_spill] sm:$0xff]  ;;  %v10082_v1 = vld [vmem:[#allocation37_spill] sm:$0xff] }
 0x4e9   :  { %2976 = vmatpush.msrb.mxu3 %v10052_v24  ;;  %2881 = vmatpush.msra.mxu2 %v10054_v55  ;;  %v10081_v24 = vld [vmem:[#allocation36_spill] sm:$0xff]  ;;  %v10083_v55 = vld [vmem:[#allocation38_spill] sm:$0xff] }
 0x4ea   :  { %2937 = vmatpush.msrb.mxu1 %v10055_v5  ;;  %2842 = vmatpush.msra.mxu0 %v10057_v63  ;;  %v10084_v5 = vld [vmem:[#allocation41_spill] sm:$0xff]  ;;  %v10086_v63 = vld [vmem:[#allocation43_spill] sm:$0xff] }
 0x4eb   :  { %2977 = vmatpush.msrb.mxu3 %v10056_v10  ;;  %2882 = vmatpush.msra.mxu2 %v10058_v7  ;;  %v10085_v10 = vld [vmem:[#allocation42_spill] sm:$0xff]  ;;  %v10087_v7 = vld [vmem:[#allocation44_spill] sm:$0xff] }
 0x4ec   :  { %2938 = vmatpush.msrb.mxu1 %v10059_v56  ;;  %2843 = vmatpush.msra.mxu0 %v10061_v32  ;;  %v10088_v56 = vld [vmem:[#allocation45_spill] sm:$0xff]  ;;  %v10090_v32 = vld [vmem:[#allocation156_spill] sm:$0xff] }
 0x4ed   :  { %2978 = vmatpush.msrb.mxu3 %v10060_v30  ;;  %2883 = vmatpush.msra.mxu2 %v10062_v37  ;;  %v10089_v30 = vld [vmem:[#allocation46_spill] sm:$0xff]  ;;  %v10091_v37 = vld [vmem:[#allocation157_spill] sm:$0xff] }
 0x4ee   :  { %2939 = vmatpush.msrb.mxu1 %v10063_v62  ;;  %2844 = vmatpush.msra.mxu0 %v10065_v2  ;;  %v10092_v62 = vld [vmem:[#allocation158_spill] sm:$0xff]  ;;  %v10094_v2 = vld [vmem:[#allocation160_spill] sm:$0xff] }
 0x4ef   :  { %2979 = vmatpush.msrb.mxu3 %v10064_v34  ;;  %2884 = vmatpush.msra.mxu2 %v10066_v43  ;;  %v10093_v34 = vld [vmem:[#allocation159_spill] sm:$0xff]  ;;  %v10095_v43 = vld [vmem:[#allocation161_spill] sm:$0xff] }
 0x4f0   :  { %2940 = vmatpush.msrb.mxu1 %v10067_v36  ;;  %2845 = vmatpush.msra.mxu0 %v10069_v3  ;;  %v10096_v36 = vld [vmem:[#allocation162_spill] sm:$0xff]  ;;  %v10098_v3 = vld [vmem:[#allocation164_spill] sm:$0xff] }
 0x4f1   :  { %2980 = vmatpush.msrb.mxu3 %v10068_v50  ;;  %2885 = vmatpush.msra.mxu2 %v10070_v18  ;;  %v10097_v50 = vld [vmem:[#allocation163_spill] sm:$0xff]  ;;  %v10099_v18 = vld [vmem:[#allocation165_spill] sm:$0xff] }
 0x4f2   :  { %2941 = vmatpush.msrb.mxu1 %v10071_v26  ;;  %2846 = vmatpush.msra.mxu0 %v10073_v22  ;;  %v10100_v26 = vld [vmem:[#allocation166_spill] sm:$0xff]  ;;  %v10102_v22 = vld [vmem:[#allocation168_spill] sm:$0xff] }
 0x4f3   :  { %2981 = vmatpush.msrb.mxu3 %v10072_v33  ;;  %2886 = vmatpush.msra.mxu2 %v10074_v59  ;;  %v10101_v33 = vld [vmem:[#allocation167_spill] sm:$0xff]  ;;  %v10103_v59 = vld [vmem:[#allocation169_spill] sm:$0xff] }
 0x4f4   :  { %2942 = vmatpush.msrb.mxu1 %v10075_v40  ;;  %2911 = vmatpush.msrb.mxu0 %v10077_v53  ;;  %v10104_v40 = vld [vmem:[#allocation170_spill] sm:$0xff]  ;;  %v10106_v53 = vld [vmem:[#allocation172_spill] sm:$0xff] }
 0x4f5   :  { %2982 = vmatpush.msrb.mxu3 %v10076_v45  ;;  %2951 = vmatpush.msrb.mxu2 %v10078_v38  ;;  %v10105_v45 = vld [vmem:[#allocation171_spill] sm:$0xff]  ;;  %v10107_v38 = vld [vmem:[#allocation173_spill] sm:$0xff] }
 0x4f6   :  { %2943 = vmatpush.msrb.mxu1 %v10079_v47  ;;  %2912 = vmatpush.msrb.mxu0 %v10081_v24  ;;  %v10108_v47 = vld [vmem:[#allocation174_spill] sm:$0xff]  ;;  %v10110_v24 = vld [vmem:[#allocation176_spill] sm:$0xff] }
 0x4f7   :  { %2983 = vmatpush.msrb.mxu3 %v10080_v27  ;;  %2952 = vmatpush.msrb.mxu2 %v10082_v1  ;;  %v10109_v27 = vld [vmem:[#allocation175_spill] sm:$0xff]  ;;  %v10111_v1 = vld [vmem:[#allocation177_spill] sm:$0xff] }
 0x4f8   :  { %2944 = vmatpush.msrb.mxu1 %v10083_v55  ;;  %2913 = vmatpush.msrb.mxu0 %v10085_v10  ;;  %v10112_v55 = vld [vmem:[#allocation178_spill] sm:$0xff]  ;;  %v10114_v10 = vld [vmem:[#allocation180_spill] sm:$0xff] }
 0x4f9   :  { %2984 = vmatpush.msrb.mxu3 %v10084_v5  ;;  %2953 = vmatpush.msrb.mxu2 %v10086_v63  ;;  %v10113_v5 = vld [vmem:[#allocation179_spill] sm:$0xff]  ;;  %v10115_v63 = vld [vmem:[#allocation181_spill] sm:$0xff] }
 0x4fa   :  { %2945 = vmatpush.msrb.mxu1 %v10087_v7  ;;  %2914 = vmatpush.msrb.mxu0 %v10089_v30  ;;  %v10116_v7 = vld [vmem:[#allocation182_spill] sm:$0xff] }
 0x4fb   :  { %2985 = vmatpush.msrb.mxu3 %v10088_v56  ;;  %2954 = vmatpush.msrb.mxu2 %v10090_v32  ;;  %v10117_v32 = vld [vmem:[#allocation47_spill] sm:$0xff] }
 0x4fc   :  { %2946 = vmatpush.msrb.mxu1 %v10091_v37  ;;  %2915 = vmatpush.msrb.mxu0 %v10093_v34 }
 0x4fd   :  { %2986 = vmatpush.msrb.mxu3 %v10092_v62  ;;  %2955 = vmatpush.msrb.mxu2 %v10094_v2 }
 0x4fe   :  { %2916 = vmatpush.msrb.mxu0 %v10095_v43 }
 0x4ff   :  { %2956 = vmatpush.msrb.mxu2 %v10096_v36  ;;  %v10118_v36 = vld [vmem:[#allocation146_spill] sm:$0xff] }
 0x500   :  { %2917 = vmatpush.msrb.mxu0 %v10097_v50  ;;  %v10119_v50 = vld [vmem:[#allocation28_spill] sm:$0xff] }
 0x501   :  { %2957 = vmatpush.msrb.mxu2 %v10098_v3  ;;  %v345_v3 = vadd.f32 %v10119_v50, %v10118_v36  ;;  %v10125_v50 = vld [vmem:[#allocation136_spill] sm:$0xff] }
 0x502   :  { %2918 = vmatpush.msrb.mxu0 %v10099_v18 }
 0x503   :  { %2958 = vmatpush.msrb.mxu2 %v10100_v26  ;;  %v10120_v26 = vld [vmem:[#allocation48_spill] sm:$0xff] }
 0x504   :  { %2919 = vmatpush.msrb.mxu0 %v10101_v33 }
 0x505   :  { %2959 = vmatpush.msrb.mxu2 %v10102_v22 }
 0x506   :  { %2920 = vmatpush.msrb.mxu0 %v10103_v59  ;;  %v10121_v59 = vld [vmem:[#allocation29_spill] sm:$0xff] }
 0x507   :  { %2960 = vmatpush.msrb.mxu2 %v10104_v40  ;;  %v386_v40 = vadd.f32 %v10121_v59, %v345_v3 }
 0x508   :  { %2921 = vmatpush.msrb.mxu0 %v10105_v45 }
 0x509   :  { %2961 = vmatpush.msrb.mxu2 %v10106_v53 }
 0x50a   :  { %2922 = vmatpush.msrb.mxu0 %v10107_v38 }
 0x50b   :  { %2962 = vmatpush.msrb.mxu2 %v10108_v47 }
 0x50c   :  { %2923 = vmatpush.msrb.mxu0 %v10109_v27 }
 0x50d   :  { %2963 = vmatpush.msrb.mxu2 %v10110_v24 }
 0x50e   :  { %2924 = vmatpush.msrb.mxu0 %v10111_v1 }
 0x50f   :  { %2964 = vmatpush.msrb.mxu2 %v10112_v55 }
 0x510   :  { %2925 = vmatpush.msrb.mxu0 %v10113_v5  ;;  %v10122_v5 = vld [vmem:[#allocation153_spill] sm:$0xff] }
 0x511   :  { %2965 = vmatpush.msrb.mxu2 %v10114_v10  ;;  %v10123_v10 = vld [vmem:[#allocation142_spill] sm:$0xff] }
 0x512   :  { %2926 = vmatpush.msrb.mxu0 %v10115_v63  ;;  %v509_v63 = vadd.f32 %v10123_v10, %v10122_v5 }
 0x513   :  { %2966 = vmatpush.msrb.mxu2 %v10116_v7  ;;  %v10124_v7 = vld [vmem:[#allocation49_spill] sm:$0xff] }
 0x514   :  { %v550_v3 = vadd.f32 %v10125_v50, %v509_v63 }
 0x516   :  { %v2491_v56 = vpop.f32.mrf.mxu1 }
 0x51c   :  { %v2531_v62 = vpop.f32.mrf.mxu3 }
 0x51e   :  { %v2571_v34 = vpop.f32.mrf.mxu1 }
 0x524   :  { %v2611_v38 = vpop.f32.mrf.mxu3 }
 0x52e   :  { %v2471_v30 = vpop.f32.mrf.mxu0 }
 0x52f   :  { %v2472_v37 = vadd.f32 %v2471_v30, %v10117_v32 }
 0x531   :  { %v2492_v2 = vadd.f32 %v2491_v56, %v2472_v37 }
 0x533   :  { %v3889_v43 = vmul.f32 -1.442695, %v2492_v2 }
 0x534   :  { %v2511_v18 = vpop.f32.mrf.mxu2 }
 0x535   :  { %4061 = vpow2.f32 %v3889_v43  ;;  %v2512_v33 = vadd.f32 %v2511_v18, %v10120_v26 }
 0x537   :  { %v2532_v22 = vadd.f32 %v2531_v62, %v2512_v33  ;;  %v2551_v37 = vpop.f32.mrf.mxu0 }
 0x538   :  { %v2721_v45 = vpop.f32.mrf.mxu1 }
 0x539   :  { %v3890_v53 = vmul.f32 -1.442695, %v2532_v22  ;;  %v2765_v47 = vadd.f32 %v2721_v45, %v386_v40  ;;  %v10126_v22 = vld [vmem:[#allocation50_spill] sm:$0xff] }
 0x53a   :  { %v2552_v59 = vadd.f32 %v2551_v37, %v10126_v22 }
 0x53b   :  { %v4062_v27 = vpop.eup %4061  ;;  %4063 = vpow2.f32 %v3890_v53  ;;  %v3893_v55 = vmul.f32 -1.442695, %v2765_v47 }
 0x53c   :  { %v2617_v24 = vadd.f32 1.0, %v4062_v27  ;;  %v2572_v27 = vadd.f32 %v2571_v34, %v2552_v59  ;;  %v10129_v34 = vld [vmem:[#allocation27_spill] sm:$0xff] }
 0x53d   :  { %v2591_v1 = vpop.f32.mrf.mxu2 }
 0x53e   :  { %4065 = vrcp.f32 %v2617_v24  ;;  %v2592_v56 = vadd.f32 %v2591_v1, %v10124_v7  ;;  %v2629_v50 = vand.u32 2147483648, %v2617_v24  ;;  %vm2623_vm13 = vweird.f32 %v2617_v24 }
 0x53f   :  { %4067 = vpow2.f32 %v3893_v55  ;;  %v2761_v43 = vpop.f32.mrf.mxu3 }
 0x540   :  { %v2612_v62 = vadd.f32 %v2611_v38, %v2592_v56  ;;  %v2767_v45 = vadd.f32 %v2761_v43, %v550_v3  ;;  %v10127_v38 = vld [vmem:[#allocation145_spill] sm:$0xff]  ;;  %v10128_v56 = vld [vmem:[#allocation26_spill] sm:$0xff]  ;;  %v2627_v43 = vand.u32 2147483647, %v2617_v24 }
 0x541   :  { %v4064_v30 = vpop.eup %4063  ;;  %v263_v55 = vadd.f32 %v10128_v56, %v10127_v38 }
 0x542   :  { %v2636_v2 = vadd.f32 1.0, %v4064_v30  ;;  %v3891_v18 = vmul.f32 -1.442695, %v2612_v62  ;;  %v3894_v10 = vmul.f32 -1.442695, %v2767_v45  ;;  %vm2628_vm1 = vcmp.eq.f32.partialorder %v2627_v43, 8.507059e+37 }
 0x543   :  { %v304_v3 = vadd.f32 %v10129_v34, %v263_v55 }
 0x544   :  { %v4066_v33 = vpop.eup %4065  ;;  %4069 = vrcp.f32 %v2636_v2  ;;  %v2648_v59 = vand.u32 2147483648, %v2636_v2  ;;  %v2646_v45 = vand.u32 2147483647, %v2636_v2  ;;  %vm2642_vm0 = vweird.f32 %v2636_v2 }
 0x545   :  { %v2619_v40 = vmul.f32 %v4066_v33, %v2617_v24  ;;  %4071 = vpow2.f32 %v3891_v18  ;;  %v4068_v47 = vpop.eup %4067  ;;  %vm2624_vm12 = vweird.f32 %v4066_v33 }
 0x546   :  { %v7861_v62 = vadd.f32 1.0, %v4068_v47  ;;  %4073 = vtanh.f32 %v2572_v27  ;;  %vm7864_vm14 = vmor %vm2623_vm13, %vm2624_vm12  ;;  %v2630_v27 = vor.u32 1.1754944e-38, %v2629_v50  ;;  %v2649_v56 = vor.u32 1.1754944e-38, %v2648_v59 }
 0x547   :  { %v2620_v53 = vsub.f32 1.0, %v2619_v40  ;;  %4075 = vpow2.f32 %v3894_v10  ;;  %vm2647_vm3 = vcmp.eq.f32.partialorder %v2646_v45, 8.507059e+37 }
 0x548   :  { %vm2796_vm9 = vweird.f32 %v7861_v62 }
 0x549   :  { %v2621_v1 = vmul.f32 %v4066_v33, %v2620_v53 }
 0x54a   :  { %v4070_v5 = vpop.eup %4069 }
 0x54b   :  { %v4072_v30 = vpop.eup %4071  ;;  %v2638_v7 = vmul.f32 %v4070_v5, %v2636_v2  ;;  %v2622_v63 = vadd.f32 %v4066_v33, %v2621_v1  ;;  %vm2643_vm15 = vweird.f32 %v4070_v5 }
 0x54c   :  { %v2656_v37 = vadd.f32 1.0, %v4072_v30  ;;  %v4074_v10 = vpop.eup %4073  ;;  %vm2644_vm2 = vmor %vm2642_vm0, %vm2643_vm15 }
 0x54d   :  { %v2639_v18 = vsub.f32 1.0, %v2638_v7  ;;  %v2626_v47 = vsel %vm7864_vm14, %v4066_v33, %v2622_v63  ;;  %v4076_v30 = vpop.eup %4075 }
 0x54e   :  { %4077 = vrcp.f32 %v2656_v37  ;;  %v2631_v55 = vsel %vm2628_vm1, %v2630_v27, %v2626_v47  ;;  %v7878_v59 = vadd.f32 1.0, %v4076_v30  ;;  %v2668_v45 = vand.u32 2147483648, %v2656_v37 }
 0x54f   :  { %v2640_v53 = vmul.f32 %v4070_v5, %v2639_v18  ;;  %4079 = vrcp.f32 %v7861_v62  ;;  %v2701_v7 = vpop.f32.mrf.mxu0  ;;  %v2673_v63 = vmul.f32 %v4074_v10, %v2631_v55  ;;  %vm2662_vm5 = vweird.f32 %v2656_v37 }
 0x550   :  { %v2764_v1 = vadd.f32 %v2701_v7, %v304_v3  ;;  %vm2816_vm1 = vweird.f32 %v7878_v59 }
 0x551   :  { %v2641_v24 = vadd.f32 %v4070_v5, %v2640_v53  ;;  %v2666_v53 = vand.u32 2147483647, %v2656_v37 }
 0x552   :  { %v3892_v18 = vmul.f32 -1.442695, %v2764_v1  ;;  %v10132_v1 = vld [vmem:[#allocation122_spill] sm:$0xff] }
 0x553   :  { %v2645_v34 = vsel %vm2644_vm2, %v4070_v5, %v2641_v24  ;;  %v2669_v24 = vor.u32 1.1754944e-38, %v2668_v45  ;;  %v427_v10 = vadd.f32 %v10132_v1, %v5711_v9  ;;  %vm2667_vm7 = vcmp.eq.f32.partialorder %v2666_v53, 8.507059e+37  ;;  %v7900_v53 = vld [vmem:[#allocation5 + $0x1c8] sm:$0xff] }
 0x554   :  { %v4078_v38 = vpop.eup %4077  ;;  %v2650_v22 = vsel %vm2647_vm3, %v2649_v56, %v2645_v34  ;;  %4081 = vpow2.f32 %v3892_v18  ;;  %v10133_v18 = vld [vmem:[#allocation123_spill] sm:$0xff] }
 0x555   :  { %v7871_v40 = vpop.eup %4079  ;;  %v2672_v33 = vmul.f32 %v2650_v22, %v7544_v8  ;;  %v2658_v50 = vmul.f32 %v4078_v38, %v2656_v37  ;;  %vm2663_vm4 = vweird.f32 %v4078_v38  ;;  %v7911_v1 = vld [vmem:[#allocation5 + $0x1a8] sm:$0xff] }
 0x556   :  { %v2792_v3 = vmul.f32 %v7871_v40, %v7861_v62  ;;  %vm2664_vm6 = vmor %vm2662_vm5, %vm2663_vm4  ;;  %v2741_v34 = vpop.f32.mrf.mxu2  ;;  %vm2797_vm8 = vweird.f32 %v7871_v40 }
 0x557   :  { %v7874_v2 = vadd.f32 %v2673_v63, %v2672_v33  ;;  %v2659_v43 = vsub.f32 1.0, %v2658_v50  ;;  %v468_v33 = vadd.f32 %v10133_v18, %v427_v10  ;;  %v7894_v50 = vld [vmem:[#allocation5 + $0x1f8] sm:$0xff]  ;;  %vm7919_vm10 = vmor %vm2796_vm9, %vm2797_vm8  ;;  %v7928_v18 = vld [vmem:[#allocation5 + $0x188] sm:$0xff] }
 0x558   :  { %v2793_v7 = vsub.f32 1.0, %v2792_v3  ;;  %v7914_v10 = vld [vmem:[#allocation5 + $0x1b8] sm:$0xff] }
 0x559   :  { %4083 = vtanh.f32 %v7874_v2  ;;  %v2660_v5 = vmul.f32 %v4078_v38, %v2659_v43  ;;  %v2766_v3 = vadd.f32 %v2741_v34, %v468_v33  ;;  %10134 = vst [vmem:[#allocation183_spill] sm:$0xff] %v7914_v10  ;;  %v7931_v33 = vld [vmem:[#allocation5 + $0x198] sm:$0xff] }
 0x55a   :  { %v4082_v47 = vpop.eup %4081  ;;  %4085 = vrcp.f32 %v7878_v59  ;;  %v2794_v37 = vmul.f32 %v7871_v40, %v2793_v7  ;;  %10137 = vst [vmem:[#allocation184_spill] sm:$0xff] %v7931_v33 }
 0x55b   :  { %v2661_v8 = vadd.f32 %v4078_v38, %v2660_v5  ;;  %v7881_v22 = vadd.f32 1.0, %v4082_v47  ;;  %v7903_v47 = vld [vmem:[#allocation5 + $0x1d8] sm:$0xff] }
 0x55c   :  { %v2795_v45 = vadd.f32 %v7871_v40, %v2794_v37 }
 0x55d   :  { %v2665_v27 = vsel %vm2664_vm6, %v4078_v38, %v2661_v8  ;;  %4087 = vrcp.f32 %v7881_v22  ;;  %v7891_v38 = vld [vmem:[#allocation5 + $0x1e8] sm:$0xff]  ;;  %v2802_v8 = vand.u32 2147483648, %v7861_v62  ;;  %vm2777_vm12 = vweird.f32 %v7881_v22 }
 0x55e   :  { %v2670_v55 = vsel %vm2667_vm7, %v2669_v24, %v2665_v27  ;;  %v2800_v24 = vand.u32 2147483647, %v7861_v62  ;;  %4089 = vtanh.f32 %v2766_v3  ;;  %v2781_v62 = vand.u32 2147483647, %v7881_v22 }
 0x55f   :  { %v4084_v56 = vpop.eup %4083  ;;  %v2799_v34 = vsel %vm7919_vm10, %v7871_v40, %v2795_v45  ;;  %v7938_v40 = vld [vmem:[#allocation5 + $0x178] sm:$0xff] }
 0x560   :  { %v2676_v30 = vmul.f32 %v4084_v56, %v2670_v55  ;;  %v7889_v63 = vpop.eup %4085  ;;  %v2783_v55 = vand.u32 2147483648, %v7881_v22  ;;  %vm2801_vm13 = vcmp.eq.f32.partialorder %v2800_v24, 8.507059e+37  ;;  %10139 = vst [vmem:[#allocation186_spill] sm:$0xff] %v7938_v40  ;;  %vm2782_vm15 = vcmp.eq.f32.partialorder %v2781_v62, 8.507059e+37  ;;  %v7958_v62 = vld [vmem:[#allocation5 + $0x108] sm:$0xff] }
 0x561   :  { %v2812_v7 = vmul.f32 %v7889_v63, %v7878_v59  ;;  %vm2817_vm0 = vweird.f32 %v7889_v63 }
 0x562   :  { %2867 = vmatmul.f32.vlgmr.msra.gmra.mxu1 %v2676_v30  ;;  %2907 = vmatmul.f32.vlgmr.msra.gmra.mxu3 %v2676_v30  ;;  %v2784_v45 = vor.u32 1.1754944e-38, %v2783_v55  ;;  %vm2818_vm2 = vmor %vm2816_vm1, %vm2817_vm0 }
 0x563   :  { %3081 = vmatpush.msra.mxu1 %v7891_v38  ;;  %3121 = vmatpush.msra.mxu3 %v7894_v50  ;;  %v4088_v43 = vpop.eup %4087 }
 0x564   :  { %v2773_v5 = vmul.f32 %v4088_v43, %v7881_v22  ;;  %vm2778_vm11 = vweird.f32 %v4088_v43  ;;  %v7945_v22 = vld [vmem:[#allocation5 + $0x158] sm:$0xff] }
 0x565   :  { %3082 = vmatpush.msra.mxu1 %v7900_v53  ;;  %3122 = vmatpush.msra.mxu3 %v7903_v47  ;;  %vm2779_vm14 = vmor %vm2777_vm12, %vm2778_vm11 }
 0x566   :  { %v2774_v27 = vsub.f32 1.0, %v2773_v5  ;;  %v2803_v5 = vor.u32 1.1754944e-38, %v2802_v8 }
 0x567   :  { %3083 = vmatpush.msra.mxu1 %v7911_v1  ;;  %3123 = vmatpush.msra.mxu3 %v7914_v10  ;;  %v2813_v10 = vsub.f32 1.0, %v2812_v7  ;;  %v7942_v7 = vld [vmem:[#allocation5 + $0x148] sm:$0xff] }
 0x568   :  { %v2775_v37 = vmul.f32 %v4088_v43, %v2774_v27  ;;  %v7935_v27 = vld [vmem:[#allocation5 + $0x168] sm:$0xff]  ;;  %v2804_v56 = vsel %vm2801_vm13, %v2803_v5, %v2799_v34  ;;  %v7961_v34 = vld [vmem:[#allocation5 + $0x118] sm:$0xff] }
 0x569   :  { %3084 = vmatpush.msra.mxu1 %v7928_v18  ;;  %3124 = vmatpush.msra.mxu3 %v7931_v33  ;;  %10138 = vst [vmem:[#allocation185_spill] sm:$0xff] %v7935_v27  ;;  %v2814_v24 = vmul.f32 %v7889_v63, %v2813_v10  ;;  %v7950_v33 = vld [vmem:[#allocation5 + $0x128] sm:$0xff]  ;;  %v2822_v10 = vand.u32 2147483648, %v7878_v59 }
 0x56a   :  { %2947 = vmatmul.f32.vlgmr.msrb.gmra.mxu1 %v2676_v30  ;;  %2987 = vmatmul.f32.vlgmr.msrb.gmra.mxu3 %v2676_v30  ;;  %v2776_v3 = vadd.f32 %v4088_v43, %v2775_v37  ;;  %v4090_v30 = vpop.eup %4089  ;;  %v7968_v5 = vld [vmem:[#allocation5 + $0xe8] sm:$0xff] }
 0x56b   :  { %3085 = vmatpush.msra.mxu1 %v7935_v27  ;;  %3125 = vmatpush.msra.mxu3 %v7938_v40  ;;  %v2826_v40 = vmul.f32 %v2804_v56, %v7588_v44  ;;  %v2815_v44 = vadd.f32 %v7889_v63, %v2814_v24  ;;  %v7986_v24 = vld [vmem:[#allocation5 + $0xb8] sm:$0xff] }
 0x56c   :  { %v2780_v8 = vsel %vm2779_vm14, %v4088_v43, %v2776_v3  ;;  %v7953_v43 = vld [vmem:[#allocation5 + $0x138] sm:$0xff] }
 0x56d   :  { %3086 = vmatpush.msra.mxu1 %v7942_v7  ;;  %3126 = vmatpush.msra.mxu3 %v7945_v22  ;;  %v2785_v37 = vsel %vm2782_vm15, %v2784_v45, %v2780_v8  ;;  %v7971_v3 = vld [vmem:[#allocation5 + $0xf8] sm:$0xff]  ;;  %v2819_v56 = vsel %vm2818_vm2, %v7889_v63, %v2815_v44  ;;  %v2823_v8 = vor.u32 1.1754944e-38, %v2822_v10  ;;  %v7997_v44 = vld [vmem:[#allocation5 + $0x68] sm:$0xff] }
 0x56e   :  { %v2827_v27 = vmul.f32 %v4090_v30, %v2785_v37  ;;  %10140 = vst [vmem:[#allocation187_spill] sm:$0xff] %v7971_v3  ;;  %v7979_v45 = vld [vmem:[#allocation5 + $0xd8] sm:$0xff]  ;;  %v7983_v30 = vld [vmem:[#allocation5 + $0xa8] sm:$0xff] }
 0x56f   :  { %3087 = vmatpush.msra.mxu1 %v7950_v33  ;;  %3127 = vmatpush.msra.mxu3 %v7953_v43  ;;  %v8000_v10 = vld [vmem:[#allocation5 + $0x78] sm:$0xff] }
 0x570   :  { %v7956_v55 = vadd.f32 %v2827_v27, %v2826_v40  ;;  %v2820_v27 = vand.u32 2147483647, %v7878_v59  ;;  %v7976_v40 = vld [vmem:[#allocation5 + $0xc8] sm:$0xff] }
 0x571   :  { %3088 = vmatpush.msra.mxu1 %v7958_v62  ;;  %3128 = vmatpush.msra.mxu3 %v7961_v34  ;;  %10141 = vst [vmem:[#allocation188_spill] sm:$0xff] %v7976_v40 }
 0x572   :  { %4091 = vtanh.f32 %v7956_v55  ;;  %vm2821_vm3 = vcmp.eq.f32.partialorder %v2820_v27, 8.507059e+37  ;;  %v8007_v27 = vld [vmem:[#allocation5 + $0x48] sm:$0xff] }
 0x573   :  { %3089 = vmatpush.msra.mxu1 %v7968_v5  ;;  %3129 = vmatpush.msra.mxu3 %v7971_v3  ;;  %v2824_v37 = vsel %vm2821_vm3, %v2823_v8, %v2819_v56  ;;  %v7989_v3 = vld [vmem:[#allocation5 + $0x88] sm:$0xff]  ;;  %v8010_v56 = vld [vmem:[#allocation5 + $0x58] sm:$0xff] }
 0x574   :  { %v8015_v8 = vld [vmem:[#allocation5 + $0x28] sm:$0xff] }
 0x575   :  { %3090 = vmatpush.msra.mxu1 %v7976_v40  ;;  %3130 = vmatpush.msra.mxu3 %v7979_v45  ;;  %v7992_v40 = vld [vmem:[#allocation5 + $0x98] sm:$0xff] }
 0x577   :  { %3091 = vmatpush.msra.mxu1 %v7983_v30  ;;  %3131 = vmatpush.msra.mxu3 %v7986_v24 }
 0x578   :  { %v4092_v59 = vpop.eup %4091 }
 0x579   :  { %3092 = vmatpush.msra.mxu1 %v7989_v3  ;;  %3132 = vmatpush.msra.mxu3 %v7992_v40  ;;  %v7995_v63 = vmul.f32 %v4092_v59, %v2824_v37  ;;  %v8018_v59 = vld [vmem:[#allocation5 + $0x38] sm:$0xff]  ;;  %v8151_v37 = vld [vmem:[#allocation7 + $0x240] sm:$0xff] }
 0x57a   :  { %10164 = vst [vmem:[#allocation15_spill] sm:$0xff] %v8151_v37 }
 0x57b   :  { %3093 = vmatpush.msra.mxu1 %v7997_v44  ;;  %3133 = vmatpush.msra.mxu3 %v8000_v10 }
 0x57c   :  { %2847 = vmatmul.f32.vlgmr.msra.gmra.mxu0 %v7995_v63  ;;  %2887 = vmatmul.f32.vlgmr.msra.gmra.mxu2 %v7995_v63 }
 0x57d   :  { %3061 = vmatpush.msra.mxu0 %v7611_v0  ;;  %3101 = vmatpush.msra.mxu2 %v7614_v15  ;;  %v8023_v0 = vld [vmem:[#allocation5 + $0x8] sm:$0xff]  ;;  %v8026_v15 = vld [vmem:[#allocation5 + $0x18] sm:$0xff] }
 0x57e   :  { %3094 = vmatpush.msra.mxu1 %v8007_v27  ;;  %3134 = vmatpush.msra.mxu3 %v8010_v56 }
 0x57f   :  { %3062 = vmatpush.msra.mxu0 %v7619_v57  ;;  %3102 = vmatpush.msra.mxu2 %v7622_v54  ;;  %v8038_v57 = vld [vmem:[#allocation7 + $0x3e0] sm:$0xff]  ;;  %v8042_v54 = vld [vmem:[#allocation7 + $0x3e8] sm:$0xff] }
 0x580   :  { %3095 = vmatpush.msra.mxu1 %v8015_v8  ;;  %3135 = vmatpush.msra.mxu3 %v8018_v59 }
 0x581   :  { %3063 = vmatpush.msra.mxu0 %v7627_v13  ;;  %3103 = vmatpush.msra.mxu2 %v7630_v21  ;;  %v8046_v13 = vld [vmem:[#allocation7 + $0x3c0] sm:$0xff]  ;;  %v8050_v21 = vld [vmem:[#allocation7 + $0x3c8] sm:$0xff] }
 0x582   :  { %3096 = vmatpush.msra.mxu1 %v8023_v0  ;;  %3136 = vmatpush.msra.mxu3 %v8026_v15 }
 0x583   :  { %3064 = vmatpush.msra.mxu0 %v7635_v20  ;;  %3104 = vmatpush.msra.mxu2 %v7638_v12  ;;  %v8054_v20 = vld [vmem:[#allocation7 + $0x3a0] sm:$0xff]  ;;  %v8058_v12 = vld [vmem:[#allocation7 + $0x3a8] sm:$0xff] }
 0x584   :  { %2927 = vmatmul.f32.vlgmr.msrb.gmra.mxu0 %v7995_v63  ;;  %2967 = vmatmul.f32.vlgmr.msrb.gmra.mxu2 %v7995_v63 }
 0x585   :  { %3065 = vmatpush.msra.mxu0 %v7645_v49  ;;  %3097 = vmatmul.f32.vlgmr.msra.gmra.mxu1 %v7995_v63  ;;  %v8062_v49 = vld [vmem:[#allocation7 + $0x380] sm:$0xff] }
 0x586   :  { %3105 = vmatpush.msra.mxu2 %v7649_v61  ;;  %3137 = vmatmul.f32.vlgmr.msra.gmra.mxu3 %v7995_v63  ;;  %v8066_v61 = vld [vmem:[#allocation7 + $0x388] sm:$0xff] }
 0x587   :  { %3066 = vmatpush.msra.mxu0 %v7653_v29  ;;  %3228 = vmatpush.msrb.mxu1 %v8038_v57  ;;  %v8070_v29 = vld [vmem:[#allocation7 + $0x360] sm:$0xff] }
 0x588   :  { %3106 = vmatpush.msra.mxu2 %v7657_v60  ;;  %3268 = vmatpush.msrb.mxu3 %v8042_v54  ;;  %10142 = vst [vmem:[#allocation189_spill] sm:$0xff] %v8070_v29  ;;  %v8074_v60 = vld [vmem:[#allocation7 + $0x368] sm:$0xff] }
 0x589   :  { %3067 = vmatpush.msra.mxu0 %v7661_v52  ;;  %3229 = vmatpush.msrb.mxu1 %v8046_v13  ;;  %10143 = vst [vmem:[#allocation20_spill] sm:$0xff] %v8074_v60  ;;  %v8078_v52 = vld [vmem:[#allocation7 + $0x340] sm:$0xff] }
 0x58a   :  { %3107 = vmatpush.msra.mxu2 %v7665_v16  ;;  %3269 = vmatpush.msrb.mxu3 %v8050_v21  ;;  %10144 = vst [vmem:[#allocation21_spill] sm:$0xff] %v8078_v52  ;;  %v8082_v16 = vld [vmem:[#allocation7 + $0x348] sm:$0xff] }
 0x58b   :  { %3068 = vmatpush.msra.mxu0 %v7669_v4  ;;  %3230 = vmatpush.msrb.mxu1 %v8054_v20  ;;  %10145 = vst [vmem:[#allocation102_spill] sm:$0xff] %v8082_v16  ;;  %v8086_v4 = vld [vmem:[#allocation7 + $0x320] sm:$0xff] }
 0x58c   :  { %3108 = vmatpush.msra.mxu2 %v7673_v31  ;;  %3270 = vmatpush.msrb.mxu3 %v8058_v12  ;;  %10146 = vst [vmem:[#allocation103_spill] sm:$0xff] %v8086_v4  ;;  %v8090_v31 = vld [vmem:[#allocation7 + $0x328] sm:$0xff] }
 0x58d   :  { %3069 = vmatpush.msra.mxu0 %v7677_v46  ;;  %3231 = vmatpush.msrb.mxu1 %v8062_v49  ;;  %10147 = vst [vmem:[#allocation18_spill] sm:$0xff] %v8090_v31  ;;  %v8094_v46 = vld [vmem:[#allocation7 + $0x300] sm:$0xff] }
 0x58e   :  { %3109 = vmatpush.msra.mxu2 %v7681_v58  ;;  %3271 = vmatpush.msrb.mxu3 %v8066_v61  ;;  %10148 = vst [vmem:[#allocation19_spill] sm:$0xff] %v8094_v46  ;;  %v8098_v58 = vld [vmem:[#allocation7 + $0x308] sm:$0xff] }
 0x58f   :  { %3070 = vmatpush.msra.mxu0 %v7685_v39  ;;  %3232 = vmatpush.msrb.mxu1 %v8070_v29  ;;  %10149 = vst [vmem:[#allocation85_spill] sm:$0xff] %v8098_v58  ;;  %v8102_v39 = vld [vmem:[#allocation7 + $0x2e0] sm:$0xff] }
 0x590   :  { %3110 = vmatpush.msra.mxu2 %v7689_v11  ;;  %3272 = vmatpush.msrb.mxu3 %v8074_v60  ;;  %10150 = vst [vmem:[#allocation86_spill] sm:$0xff] %v8102_v39  ;;  %v8106_v11 = vld [vmem:[#allocation7 + $0x2e8] sm:$0xff] }
 0x591   :  { %3071 = vmatpush.msra.mxu0 %v7693_v6  ;;  %3233 = vmatpush.msrb.mxu1 %v8078_v52  ;;  %10151 = vst [vmem:[#allocation24_spill] sm:$0xff] %v8106_v11  ;;  %v8110_v6 = vld [vmem:[#allocation7 + $0x2c0] sm:$0xff] }
 0x592   :  { %3111 = vmatpush.msra.mxu2 %v7697_v25  ;;  %3273 = vmatpush.msrb.mxu3 %v8082_v16  ;;  %10152 = vst [vmem:[#allocation25_spill] sm:$0xff] %v8110_v6  ;;  %v8114_v25 = vld [vmem:[#allocation7 + $0x2c8] sm:$0xff] }
 0x593   :  { %3072 = vmatpush.msra.mxu0 %v7701_v17  ;;  %3234 = vmatpush.msrb.mxu1 %v8086_v4  ;;  %10153 = vst [vmem:[#allocation125_spill] sm:$0xff] %v8114_v25  ;;  %v8118_v17 = vld [vmem:[#allocation7 + $0x2a0] sm:$0xff] }
 0x594   :  { %3112 = vmatpush.msra.mxu2 %v7705_v51  ;;  %3274 = vmatpush.msrb.mxu3 %v8090_v31  ;;  %10154 = vst [vmem:[#allocation119_spill] sm:$0xff] %v8118_v17  ;;  %v8124_v51 = vld [vmem:[#allocation7 + $0x2a8] sm:$0xff] }
 0x595   :  { %3073 = vmatpush.msra.mxu0 %v7709_v19  ;;  %3235 = vmatpush.msrb.mxu1 %v8094_v46  ;;  %10155 = vst [vmem:[#allocation22_spill] sm:$0xff] %v8124_v51  ;;  %v8127_v19 = vld [vmem:[#allocation7 + $0x280] sm:$0xff] }
 0x596   :  { %3113 = vmatpush.msra.mxu2 %v7713_v28  ;;  %3275 = vmatpush.msrb.mxu3 %v8098_v58  ;;  %10156 = vst [vmem:[#allocation23_spill] sm:$0xff] %v8127_v19  ;;  %v8130_v28 = vld [vmem:[#allocation7 + $0x1e0] sm:$0xff] }
 0x597   :  { %3074 = vmatpush.msra.mxu0 %v7717_v23  ;;  %3236 = vmatpush.msrb.mxu1 %v8102_v39  ;;  %10157 = vst [vmem:[#allocation105_spill] sm:$0xff] %v8130_v28  ;;  %v8133_v23 = vld [vmem:[#allocation7 + $0x288] sm:$0xff] }
 0x598   :  { %3114 = vmatpush.msra.mxu2 %v7721_v14  ;;  %3276 = vmatpush.msrb.mxu3 %v8106_v11  ;;  %10158 = vst [vmem:[#allocation106_spill] sm:$0xff] %v8133_v23  ;;  %v8136_v14 = vld [vmem:[#allocation7 + $0x1e8] sm:$0xff]  ;;  %v10263_v11 = vld [vmem:[#allocation33_spill] sm:$0xff] }
 0x599   :  { %3075 = vmatpush.msra.mxu0 %v7725_v48  ;;  %3237 = vmatpush.msrb.mxu1 %v8110_v6  ;;  %10159 = vst [vmem:[#allocation16_spill] sm:$0xff] %v8136_v14  ;;  %v8139_v48 = vld [vmem:[#allocation7 + $0x260] sm:$0xff] }
 0x59a   :  { %3115 = vmatpush.msra.mxu2 %v7729_v41  ;;  %3277 = vmatpush.msrb.mxu3 %v8114_v25  ;;  %10160 = vst [vmem:[#allocation17_spill] sm:$0xff] %v8139_v48  ;;  %v8142_v41 = vld [vmem:[#allocation7 + $0x1c0] sm:$0xff] }
 0x59b   :  { %3076 = vmatpush.msra.mxu0 %v7733_v35  ;;  %3238 = vmatpush.msrb.mxu1 %v8118_v17  ;;  %10161 = vst [vmem:[#allocation82_spill] sm:$0xff] %v8142_v41  ;;  %v8145_v35 = vld [vmem:[#allocation7 + $0x268] sm:$0xff] }
 0x59c   :  { %3116 = vmatpush.msra.mxu2 %v7737_v42  ;;  %3077 = vmatmul.f32.vlgmr.msra.gmra.mxu0 %v7995_v63  ;;  %10162 = vst [vmem:[#allocation83_spill] sm:$0xff] %v8145_v35  ;;  %v8148_v42 = vld [vmem:[#allocation7 + $0x1c8] sm:$0xff] }
 0x59d   :  { %3117 = vmatmul.f32.vlgmr.msra.gmra.mxu2 %v7995_v63  ;;  %3278 = vmatpush.msrb.mxu3 %v8124_v51  ;;  %10163 = vst [vmem:[#allocation14_spill] sm:$0xff] %v8148_v42  ;;  %v8154_v63 = vld [vmem:[#allocation7 + $0x1a0] sm:$0xff]  ;;  %v10262_v51 = vld [vmem:[#allocation32_spill] sm:$0xff] }
 0x59e   :  { %3239 = vmatpush.msrb.mxu1 %v8127_v19  ;;  %3208 = vmatpush.msrb.mxu0 %v8130_v28  ;;  %10165 = vst [vmem:[#allocation65_spill] sm:$0xff] %v8154_v63  ;;  %v348_v17 = vadd.f32 %v10262_v51, %v10118_v36  ;;  %v10265_v36 = vld [vmem:[#allocation153_spill] sm:$0xff] }
 0x59f   :  { %3279 = vmatpush.msrb.mxu3 %v8133_v23  ;;  %3248 = vmatpush.msrb.mxu2 %v8136_v14 }
 0x5a0   :  { %3240 = vmatpush.msrb.mxu1 %v8139_v48  ;;  %3209 = vmatpush.msrb.mxu0 %v8142_v41  ;;  %v8157_v48 = vld [vmem:[#allocation7 + $0x248] sm:$0xff]  ;;  %v389_v39 = vadd.f32 %v10263_v11, %v348_v17 }
 0x5a1   :  { %3280 = vmatpush.msrb.mxu3 %v8145_v35  ;;  %3249 = vmatpush.msrb.mxu2 %v8148_v42  ;;  %10166 = vst [vmem:[#allocation66_spill] sm:$0xff] %v8157_v48  ;;  %v8160_v41 = vld [vmem:[#allocation7 + $0x1a8] sm:$0xff]  ;;  %v8163_v35 = vld [vmem:[#allocation7 + $0x220] sm:$0xff] }
 0x5a2   :  { %3241 = vmatpush.msrb.mxu1 %v8151_v37  ;;  %3210 = vmatpush.msrb.mxu0 %v8154_v63  ;;  %10167 = vst [vmem:[#allocation53_spill] sm:$0xff] %v8160_v41  ;;  %v8166_v42 = vld [vmem:[#allocation7 + $0x180] sm:$0xff]  ;;  %v8169_v37 = vld [vmem:[#allocation7 + $0x228] sm:$0xff] }
 0x5a3   :  { %3281 = vmatpush.msrb.mxu3 %v8157_v48  ;;  %3250 = vmatpush.msrb.mxu2 %v8160_v41  ;;  %10168 = vst [vmem:[#allocation54_spill] sm:$0xff] %v8163_v35  ;;  %v8172_v63 = vld [vmem:[#allocation7 + $0x188] sm:$0xff]  ;;  %v8175_v48 = vld [vmem:[#allocation7 + $0x200] sm:$0xff] }
 0x5a4   :  { %3242 = vmatpush.msrb.mxu1 %v8163_v35  ;;  %10169 = vst [vmem:[#allocation55_spill] sm:$0xff] %v8166_v42  ;;  %3211 = vmatpush.msrb.mxu0 %v8166_v42  ;;  %v8178_v41 = vld [vmem:[#allocation7 + $0x160] sm:$0xff]  ;;  %v8181_v35 = vld [vmem:[#allocation7 + $0x208] sm:$0xff] }
 0x5a5   :  { %10170 = vst [vmem:[#allocation56_spill] sm:$0xff] %v8169_v37  ;;  %3282 = vmatpush.msrb.mxu3 %v8169_v37  ;;  %3251 = vmatpush.msrb.mxu2 %v8172_v63  ;;  %v8184_v42 = vld [vmem:[#allocation7 + $0x168] sm:$0xff]  ;;  %v8187_v37 = vld [vmem:[#allocation7 + $0x3f0] sm:$0xff] }
 0x5a6   :  { %10171 = vst [vmem:[#allocation57_spill] sm:$0xff] %v8172_v63  ;;  %3243 = vmatpush.msrb.mxu1 %v8175_v48  ;;  %3212 = vmatpush.msrb.mxu0 %v8178_v41  ;;  %v8190_v63 = vld [vmem:[#allocation7 + $0x3f8] sm:$0xff] }
 0x5a7   :  { %10172 = vst [vmem:[#allocation58_spill] sm:$0xff] %v8175_v48  ;;  %3283 = vmatpush.msrb.mxu3 %v8181_v35  ;;  %3252 = vmatpush.msrb.mxu2 %v8184_v42  ;;  %v8193_v48 = vld [vmem:[#allocation7 + $0x140] sm:$0xff] }
 0x5a8   :  { %10173 = vst [vmem:[#allocation61_spill] sm:$0xff] %v8178_v41  ;;  %3308 = vmatpush.msra.mxu1 %v8187_v37  ;;  %3213 = vmatpush.msrb.mxu0 %v8193_v48  ;;  %v8196_v41 = vld [vmem:[#allocation7 + $0x148] sm:$0xff] }
 0x5a9   :  { %10174 = vst [vmem:[#allocation64_spill] sm:$0xff] %v8181_v35  ;;  %3348 = vmatpush.msra.mxu3 %v8190_v63  ;;  %3253 = vmatpush.msrb.mxu2 %v8196_v41  ;;  %v8199_v35 = vld [vmem:[#allocation7 + $0x3d0] sm:$0xff] }
 0x5aa   :  { %10175 = vst [vmem:[#allocation69_spill] sm:$0xff] %v8184_v42  ;;  %3309 = vmatpush.msra.mxu1 %v8199_v35  ;;  %v8202_v42 = vld [vmem:[#allocation7 + $0x3d8] sm:$0xff] }
 0x5ab   :  { %10176 = vst [vmem:[#allocation70_spill] sm:$0xff] %v8187_v37  ;;  %3349 = vmatpush.msra.mxu3 %v8202_v42  ;;  %v8205_v37 = vld [vmem:[#allocation7 + $0x120] sm:$0xff] }
 0x5ac   :  { %10177 = vst [vmem:[#allocation73_spill] sm:$0xff] %v8190_v63  ;;  %3214 = vmatpush.msrb.mxu0 %v8205_v37  ;;  %v8208_v63 = vld [vmem:[#allocation7 + $0x128] sm:$0xff] }
 0x5ad   :  { %10178 = vst [vmem:[#allocation74_spill] sm:$0xff] %v8193_v48  ;;  %3254 = vmatpush.msrb.mxu2 %v8208_v63  ;;  %v8211_v48 = vld [vmem:[#allocation7 + $0x3b0] sm:$0xff] }
 0x5ae   :  { %10179 = vst [vmem:[#allocation77_spill] sm:$0xff] %v8196_v41  ;;  %3310 = vmatpush.msra.mxu1 %v8211_v48  ;;  %v8214_v41 = vld [vmem:[#allocation7 + $0x3b8] sm:$0xff] }
 0x5af   :  { %10180 = vst [vmem:[#allocation78_spill] sm:$0xff] %v8199_v35  ;;  %3350 = vmatpush.msra.mxu3 %v8214_v41  ;;  %v8217_v35 = vld [vmem:[#allocation7 + $0x100] sm:$0xff] }
 0x5b0   :  { %10181 = vst [vmem:[#allocation81_spill] sm:$0xff] %v8202_v42  ;;  %3215 = vmatpush.msrb.mxu0 %v8217_v35  ;;  %v8220_v42 = vld [vmem:[#allocation7 + $0x108] sm:$0xff] }
 0x5b1   :  { %10182 = vst [vmem:[#allocation84_spill] sm:$0xff] %v8205_v37  ;;  %3255 = vmatpush.msrb.mxu2 %v8220_v42  ;;  %v8223_v37 = vld [vmem:[#allocation7 + $0x390] sm:$0xff] }
 0x5b2   :  { %10183 = vst [vmem:[#allocation89_spill] sm:$0xff] %v8208_v63  ;;  %3311 = vmatpush.msra.mxu1 %v8223_v37  ;;  %v8226_v63 = vld [vmem:[#allocation7 + $0x398] sm:$0xff] }
 0x5b3   :  { %10184 = vst [vmem:[#allocation90_spill] sm:$0xff] %v8211_v48  ;;  %3351 = vmatpush.msra.mxu3 %v8226_v63  ;;  %v8229_v48 = vld [vmem:[#allocation7 + $0xe0] sm:$0xff] }
 0x5b4   :  { %10185 = vst [vmem:[#allocation93_spill] sm:$0xff] %v8214_v41  ;;  %3216 = vmatpush.msrb.mxu0 %v8229_v48  ;;  %v8232_v41 = vld [vmem:[#allocation7 + $0xe8] sm:$0xff] }
 0x5b5   :  { %10186 = vst [vmem:[#allocation94_spill] sm:$0xff] %v8217_v35  ;;  %3256 = vmatpush.msrb.mxu2 %v8232_v41  ;;  %v8235_v35 = vld [vmem:[#allocation7 + $0x370] sm:$0xff] }
 0x5b6   :  { %10187 = vst [vmem:[#allocation97_spill] sm:$0xff] %v8220_v42  ;;  %3312 = vmatpush.msra.mxu1 %v8235_v35  ;;  %v8238_v42 = vld [vmem:[#allocation7 + $0x378] sm:$0xff] }
 0x5b7   :  { %10188 = vst [vmem:[#allocation98_spill] sm:$0xff] %v8223_v37  ;;  %3352 = vmatpush.msra.mxu3 %v8238_v42  ;;  %v8241_v37 = vld [vmem:[#allocation7 + $0xc0] sm:$0xff] }
 0x5b8   :  { %10189 = vst [vmem:[#allocation101_spill] sm:$0xff] %v8226_v63  ;;  %3217 = vmatpush.msrb.mxu0 %v8241_v37  ;;  %v8244_v63 = vld [vmem:[#allocation7 + $0xc8] sm:$0xff] }
 0x5b9   :  { %10190 = vst [vmem:[#allocation104_spill] sm:$0xff] %v8229_v48  ;;  %3257 = vmatpush.msrb.mxu2 %v8244_v63  ;;  %v8247_v48 = vld [vmem:[#allocation7 + $0x350] sm:$0xff] }
 0x5ba   :  { %10191 = vst [vmem:[#allocation109_spill] sm:$0xff] %v8232_v41  ;;  %3313 = vmatpush.msra.mxu1 %v8247_v48  ;;  %v8250_v41 = vld [vmem:[#allocation7 + $0x358] sm:$0xff] }
 0x5bb   :  { %10192 = vst [vmem:[#allocation110_spill] sm:$0xff] %v8235_v35  ;;  %3353 = vmatpush.msra.mxu3 %v8250_v41  ;;  %v8253_v35 = vld [vmem:[#allocation7 + $0xa0] sm:$0xff] }
 0x5bc   :  { %10193 = vst [vmem:[#allocation113_spill] sm:$0xff] %v8238_v42  ;;  %3218 = vmatpush.msrb.mxu0 %v8253_v35  ;;  %v8256_v42 = vld [vmem:[#allocation7 + $0xa8] sm:$0xff] }
 0x5bd   :  { %10194 = vst [vmem:[#allocation114_spill] sm:$0xff] %v8241_v37  ;;  %3258 = vmatpush.msrb.mxu2 %v8256_v42  ;;  %v8259_v37 = vld [vmem:[#allocation7 + $0x330] sm:$0xff] }
 0x5be   :  { %10195 = vst [vmem:[#allocation117_spill] sm:$0xff] %v8244_v63  ;;  %3314 = vmatpush.msra.mxu1 %v8259_v37  ;;  %v8262_v63 = vld [vmem:[#allocation7 + $0x338] sm:$0xff] }
 0x5bf   :  { %10196 = vst [vmem:[#allocation59_spill] sm:$0xff] %v8247_v48  ;;  %3354 = vmatpush.msra.mxu3 %v8262_v63  ;;  %v8265_v48 = vld [vmem:[#allocation7 + $0x80] sm:$0xff] }
 0x5c0   :  { %10197 = vst [vmem:[#allocation60_spill] sm:$0xff] %v8250_v41  ;;  %3219 = vmatpush.msrb.mxu0 %v8265_v48  ;;  %v8268_v41 = vld [vmem:[#allocation7 + $0x88] sm:$0xff] }
 0x5c1   :  { %10198 = vst [vmem:[#allocation118_spill] sm:$0xff] %v8253_v35  ;;  %3259 = vmatpush.msrb.mxu2 %v8268_v41  ;;  %v8271_v35 = vld [vmem:[#allocation7 + $0x310] sm:$0xff] }
 0x5c2   :  { %10199 = vst [vmem:[#allocation67_spill] sm:$0xff] %v8256_v42  ;;  %3315 = vmatpush.msra.mxu1 %v8271_v35  ;;  %v8274_v42 = vld [vmem:[#allocation7 + $0x318] sm:$0xff] }
 0x5c3   :  { %10200 = vst [vmem:[#allocation68_spill] sm:$0xff] %v8259_v37  ;;  %3355 = vmatpush.msra.mxu3 %v8274_v42  ;;  %v8277_v37 = vld [vmem:[#allocation7 + $0x60] sm:$0xff] }
 0x5c4   :  { %10201 = vst [vmem:[#allocation124_spill] sm:$0xff] %v8262_v63  ;;  %3220 = vmatpush.msrb.mxu0 %v8277_v37  ;;  %v8280_v63 = vld [vmem:[#allocation7 + $0x68] sm:$0xff] }
 0x5c5   :  { %10202 = vst [vmem:[#allocation71_spill] sm:$0xff] %v8265_v48  ;;  %3260 = vmatpush.msrb.mxu2 %v8280_v63  ;;  %v8283_v48 = vld [vmem:[#allocation7 + $0x2f0] sm:$0xff] }
 0x5c6   :  { %10203 = vst [vmem:[#allocation128_spill] sm:$0xff] %v8268_v41  ;;  %3316 = vmatpush.msra.mxu1 %v8283_v48  ;;  %v8286_v41 = vld [vmem:[#allocation7 + $0x2f8] sm:$0xff] }
 0x5c7   :  { %10204 = vst [vmem:[#allocation72_spill] sm:$0xff] %v8271_v35  ;;  %3356 = vmatpush.msra.mxu3 %v8286_v41  ;;  %v8289_v35 = vld [vmem:[#allocation7 + $0x40] sm:$0xff] }
 0x5c8   :  { %10205 = vst [vmem:[#allocation129_spill] sm:$0xff] %v8274_v42  ;;  %3221 = vmatpush.msrb.mxu0 %v8289_v35  ;;  %v8292_v42 = vld [vmem:[#allocation7 + $0x48] sm:$0xff] }
 0x5c9   :  { %10206 = vst [vmem:[#allocation75_spill] sm:$0xff] %v8277_v37  ;;  %3261 = vmatpush.msrb.mxu2 %v8292_v42  ;;  %v8295_v37 = vld [vmem:[#allocation7 + $0x2d0] sm:$0xff] }
 0x5ca   :  { %10207 = vst [vmem:[#allocation132_spill] sm:$0xff] %v8280_v63  ;;  %3317 = vmatpush.msra.mxu1 %v8295_v37  ;;  %v8298_v63 = vld [vmem:[#allocation7 + $0x2d8] sm:$0xff] }
 0x5cb   :  { %10208 = vst [vmem:[#allocation76_spill] sm:$0xff] %v8283_v48  ;;  %3357 = vmatpush.msra.mxu3 %v8298_v63  ;;  %v8301_v48 = vld [vmem:[#allocation7 + $0x20] sm:$0xff] }
 0x5cc   :  { %10209 = vst [vmem:[#allocation133_spill] sm:$0xff] %v8286_v41  ;;  %3222 = vmatpush.msrb.mxu0 %v8301_v48  ;;  %v8304_v41 = vld [vmem:[#allocation7 + $0x28] sm:$0xff] }
 0x5cd   :  { %10210 = vst [vmem:[#allocation79_spill] sm:$0xff] %v8289_v35  ;;  %3262 = vmatpush.msrb.mxu2 %v8304_v41  ;;  %v8307_v35 = vld [vmem:[#allocation7 + $0x2b0] sm:$0xff] }
 0x5ce   :  { %10211 = vst [vmem:[#allocation80_spill] sm:$0xff] %v8292_v42  ;;  %3318 = vmatpush.msra.mxu1 %v8307_v35  ;;  %v8310_v42 = vld [vmem:[#allocation7 + $0x2b8] sm:$0xff] }
 0x5cf   :  { %10212 = vst [vmem:[#allocation87_spill] sm:$0xff] %v8295_v37  ;;  %3358 = vmatpush.msra.mxu3 %v8310_v42  ;;  %v8313_v37 = vld [vmem:[#allocation7] sm:$0xff] }
 0x5d0   :  { %10213 = vst [vmem:[#allocation88_spill] sm:$0xff] %v8298_v63  ;;  %3223 = vmatpush.msrb.mxu0 %v8313_v37  ;;  %v8316_v63 = vld [vmem:[#allocation7 + $0x8] sm:$0xff] }
 0x5d1   :  { %10214 = vst [vmem:[#allocation91_spill] sm:$0xff] %v8301_v48  ;;  %3263 = vmatpush.msrb.mxu2 %v8316_v63  ;;  %v8319_v48 = vld [vmem:[#allocation7 + $0x290] sm:$0xff] }
 0x5d2   :  { %10215 = vst [vmem:[#allocation92_spill] sm:$0xff] %v8304_v41  ;;  %3319 = vmatpush.msra.mxu1 %v8319_v48  ;;  %v8322_v41 = vld [vmem:[#allocation7 + $0x298] sm:$0xff] }
 0x5d3   :  { %10216 = vst [vmem:[#allocation95_spill] sm:$0xff] %v8307_v35  ;;  %3359 = vmatpush.msra.mxu3 %v8322_v41  ;;  %v8325_v35 = vld [vmem:[#allocation7 + $0x1f0] sm:$0xff] }
 0x5d4   :  { %10217 = vst [vmem:[#allocation96_spill] sm:$0xff] %v8310_v42  ;;  %3288 = vmatpush.msra.mxu0 %v8325_v35  ;;  %v8328_v42 = vld [vmem:[#allocation7 + $0x1f8] sm:$0xff] }
 0x5d5   :  { %10218 = vst [vmem:[#allocation99_spill] sm:$0xff] %v8313_v37  ;;  %3328 = vmatpush.msra.mxu2 %v8328_v42  ;;  %v8331_v37 = vld [vmem:[#allocation7 + $0x270] sm:$0xff] }
 0x5d6   :  { %10219 = vst [vmem:[#allocation100_spill] sm:$0xff] %v8316_v63  ;;  %3320 = vmatpush.msra.mxu1 %v8331_v37  ;;  %v8334_v63 = vld [vmem:[#allocation7 + $0x278] sm:$0xff] }
 0x5d7   :  { %10220 = vst [vmem:[#allocation107_spill] sm:$0xff] %v8319_v48  ;;  %3360 = vmatpush.msra.mxu3 %v8334_v63  ;;  %v8337_v48 = vld [vmem:[#allocation7 + $0x1d0] sm:$0xff] }
 0x5d8   :  { %10221 = vst [vmem:[#allocation108_spill] sm:$0xff] %v8322_v41  ;;  %3289 = vmatpush.msra.mxu0 %v8337_v48  ;;  %v8340_v41 = vld [vmem:[#allocation7 + $0x1d8] sm:$0xff] }
 0x5d9   :  { %10222 = vst [vmem:[#allocation111_spill] sm:$0xff] %v8325_v35  ;;  %3329 = vmatpush.msra.mxu2 %v8340_v41  ;;  %v8343_v35 = vld [vmem:[#allocation7 + $0x250] sm:$0xff] }
 0x5da   :  { %10223 = vst [vmem:[#allocation112_spill] sm:$0xff] %v8328_v42  ;;  %3321 = vmatpush.msra.mxu1 %v8343_v35  ;;  %v8346_v42 = vld [vmem:[#allocation7 + $0x258] sm:$0xff] }
 0x5db   :  { %10224 = vst [vmem:[#allocation115_spill] sm:$0xff] %v8331_v37  ;;  %3361 = vmatpush.msra.mxu3 %v8346_v42  ;;  %v8349_v37 = vld [vmem:[#allocation7 + $0x1b0] sm:$0xff] }
 0x5dc   :  { %10225 = vst [vmem:[#allocation116_spill] sm:$0xff] %v8334_v63  ;;  %3290 = vmatpush.msra.mxu0 %v8349_v37  ;;  %v8352_v63 = vld [vmem:[#allocation7 + $0x1b8] sm:$0xff] }
 0x5dd   :  { %10226 = vst [vmem:[#allocation120_spill] sm:$0xff] %v8337_v48  ;;  %3330 = vmatpush.msra.mxu2 %v8352_v63  ;;  %v8355_v48 = vld [vmem:[#allocation7 + $0x230] sm:$0xff] }
 0x5de   :  { %10227 = vst [vmem:[#allocation121_spill] sm:$0xff] %v8340_v41  ;;  %3322 = vmatpush.msra.mxu1 %v8355_v48  ;;  %v8358_v41 = vld [vmem:[#allocation7 + $0x238] sm:$0xff] }
 0x5df   :  { %10228 = vst [vmem:[#allocation126_spill] sm:$0xff] %v8343_v35  ;;  %3362 = vmatpush.msra.mxu3 %v8358_v41  ;;  %v8361_v35 = vld [vmem:[#allocation7 + $0x190] sm:$0xff] }
 0x5e0   :  { %10229 = vst [vmem:[#allocation127_spill] sm:$0xff] %v8346_v42  ;;  %3291 = vmatpush.msra.mxu0 %v8361_v35  ;;  %v8364_v42 = vld [vmem:[#allocation7 + $0x198] sm:$0xff] }
 0x5e1   :  { %10230 = vst [vmem:[#allocation130_spill] sm:$0xff] %v8349_v37  ;;  %3331 = vmatpush.msra.mxu2 %v8364_v42  ;;  %v8367_v37 = vld [vmem:[#allocation7 + $0x210] sm:$0xff] }
 0x5e2   :  { %10231 = vst [vmem:[#allocation131_spill] sm:$0xff] %v8352_v63  ;;  %3323 = vmatpush.msra.mxu1 %v8367_v37  ;;  %v8370_v63 = vld [vmem:[#allocation7 + $0x218] sm:$0xff] }
 0x5e3   :  { %10232 = vst [vmem:[#allocation134_spill] sm:$0xff] %v8355_v48  ;;  %3363 = vmatpush.msra.mxu3 %v8370_v63  ;;  %v8373_v48 = vld [vmem:[#allocation7 + $0x170] sm:$0xff] }
 0x5e4   :  { %10233 = vst [vmem:[#allocation135_spill] sm:$0xff] %v8358_v41  ;;  %3292 = vmatpush.msra.mxu0 %v8373_v48  ;;  %v8376_v41 = vld [vmem:[#allocation7 + $0x178] sm:$0xff] }
 0x5e5   :  { %10234 = vst [vmem:[#allocation139_spill] sm:$0xff] %v8361_v35  ;;  %3332 = vmatpush.msra.mxu2 %v8376_v41  ;;  %v8379_v35 = vld [vmem:[#allocation7 + $0x150] sm:$0xff]  ;;  %v2908_v28 = vpop.f32.mrf.mxu3 }
 0x5e6   :  { %10235 = vst [vmem:[#allocation140_spill] sm:$0xff] %v8364_v42  ;;  %3293 = vmatpush.msra.mxu0 %v8379_v35  ;;  %v8382_v42 = vld [vmem:[#allocation7 + $0x158] sm:$0xff] }
 0x5e7   :  { %10236 = vst [vmem:[#allocation141_spill] sm:$0xff] %v8367_v37  ;;  %3333 = vmatpush.msra.mxu2 %v8382_v42  ;;  %v8385_v37 = vld [vmem:[#allocation7 + $0x130] sm:$0xff] }
 0x5e8   :  { %10237 = vst [vmem:[#allocation143_spill] sm:$0xff] %v8370_v63  ;;  %3294 = vmatpush.msra.mxu0 %v8385_v37  ;;  %v8388_v63 = vld [vmem:[#allocation7 + $0x138] sm:$0xff] }
 0x5e9   :  { %10238 = vst [vmem:[#allocation144_spill] sm:$0xff] %v8373_v48  ;;  %3334 = vmatpush.msra.mxu2 %v8388_v63  ;;  %v8391_v48 = vld [vmem:[#allocation7 + $0x110] sm:$0xff] }
 0x5ea   :  { %10239 = vst [vmem:[#allocation150_spill] sm:$0xff] %v8376_v41  ;;  %3295 = vmatpush.msra.mxu0 %v8391_v48  ;;  %v8394_v41 = vld [vmem:[#allocation7 + $0x118] sm:$0xff] }
 0x5eb   :  { %10240 = vst [vmem:[#allocation151_spill] sm:$0xff] %v8379_v35  ;;  %3335 = vmatpush.msra.mxu2 %v8394_v41  ;;  %v8397_v35 = vld [vmem:[#allocation7 + $0xf0] sm:$0xff] }
 0x5ec   :  { %10241 = vst [vmem:[#allocation12_spill] sm:$0xff] %v8382_v42  ;;  %3296 = vmatpush.msra.mxu0 %v8397_v35  ;;  %v8400_v42 = vld [vmem:[#allocation7 + $0xf8] sm:$0xff] }
 0x5ed   :  { %10242 = vst [vmem:[#allocation13_spill] sm:$0xff] %v8385_v37  ;;  %3336 = vmatpush.msra.mxu2 %v8400_v42  ;;  %v8403_v37 = vld [vmem:[#allocation7 + $0xd0] sm:$0xff]  ;;  %v2988_v31 = vpop.f32.mrf.mxu3 }
 0x5ee   :  { %10243 = vst [vmem:[#allocation62_spill] sm:$0xff] %v8388_v63  ;;  %3297 = vmatpush.msra.mxu0 %v8403_v37  ;;  %v8406_v63 = vld [vmem:[#allocation7 + $0xd8] sm:$0xff] }
 0x5ef   :  { %10244 = vst [vmem:[#allocation63_spill] sm:$0xff] %v8391_v48  ;;  %3337 = vmatpush.msra.mxu2 %v8406_v63  ;;  %v8409_v48 = vld [vmem:[#allocation7 + $0xb0] sm:$0xff] }
 0x5f0   :  { %10245 = vst [vmem:[#allocation10_spill] sm:$0xff] %v8394_v41  ;;  %3298 = vmatpush.msra.mxu0 %v8409_v48  ;;  %v8412_v41 = vld [vmem:[#allocation7 + $0xb8] sm:$0xff] }
 0x5f1   :  { %10246 = vst [vmem:[#allocation11_spill] sm:$0xff] %v8397_v35  ;;  %3338 = vmatpush.msra.mxu2 %v8412_v41  ;;  %v8415_v35 = vld [vmem:[#allocation7 + $0x90] sm:$0xff] }
 0x5f2   :  { %10247 = vst [vmem:[#allocation51_spill] sm:$0xff] %v8400_v42  ;;  %3299 = vmatpush.msra.mxu0 %v8415_v35  ;;  %v8418_v42 = vld [vmem:[#allocation7 + $0x98] sm:$0xff] }
 0x5f3   :  { %10248 = vst [vmem:[#allocation52_spill] sm:$0xff] %v8403_v37  ;;  %3339 = vmatpush.msra.mxu2 %v8418_v42  ;;  %v8421_v37 = vld [vmem:[#allocation7 + $0x70] sm:$0xff] }
 0x5f4   :  { %10249 = vst [vmem:[#allocation36_spill] sm:$0xff] %v8406_v63  ;;  %3300 = vmatpush.msra.mxu0 %v8421_v37  ;;  %v8424_v63 = vld [vmem:[#allocation7 + $0x78] sm:$0xff] }
 0x5f5   :  { %10250 = vst [vmem:[#allocation37_spill] sm:$0xff] %v8409_v48  ;;  %3340 = vmatpush.msra.mxu2 %v8424_v63  ;;  %v8427_v48 = vld [vmem:[#allocation7 + $0x50] sm:$0xff] }
 0x5f6   :  { %10251 = vst [vmem:[#allocation38_spill] sm:$0xff] %v8412_v41  ;;  %3301 = vmatpush.msra.mxu0 %v8427_v48  ;;  %v8430_v41 = vld [vmem:[#allocation7 + $0x58] sm:$0xff] }
 0x5f7   :  { %10252 = vst [vmem:[#allocation41_spill] sm:$0xff] %v8415_v35  ;;  %3341 = vmatpush.msra.mxu2 %v8430_v41  ;;  %v8433_v35 = vld [vmem:[#allocation7 + $0x30] sm:$0xff] }
 0x5f8   :  { %10253 = vst [vmem:[#allocation42_spill] sm:$0xff] %v8418_v42  ;;  %3302 = vmatpush.msra.mxu0 %v8433_v35  ;;  %v8436_v42 = vld [vmem:[#allocation7 + $0x38] sm:$0xff] }
 0x5f9   :  { %10254 = vst [vmem:[#allocation43_spill] sm:$0xff] %v8421_v37  ;;  %3342 = vmatpush.msra.mxu2 %v8436_v42  ;;  %v8439_v37 = vld [vmem:[#allocation7 + $0x10] sm:$0xff]  ;;  %v2848_v14 = vpop.f32.mrf.mxu0 }
 0x5fa   :  { %10255 = vst [vmem:[#allocation44_spill] sm:$0xff] %v8424_v63  ;;  %3303 = vmatpush.msra.mxu0 %v8439_v37  ;;  %v8442_v63 = vld [vmem:[#allocation7 + $0x18] sm:$0xff] }
 0x5fb   :  { %10256 = vst [vmem:[#allocation45_spill] sm:$0xff] %v8427_v48  ;;  %3343 = vmatpush.msra.mxu2 %v8442_v63  ;;  %v2868_v48 = vpop.f32.mrf.mxu1 }
 0x5fc   :  { %10257 = vst [vmem:[#allocation46_spill] sm:$0xff] %v8430_v41  ;;  %v2849_v41 = vadd.f32 %v2848_v14, %v10117_v32 }
 0x5fd   :  { %10258 = vst [vmem:[#allocation156_spill] sm:$0xff] %v8433_v35 }
 0x5fe   :  { %10259 = vst [vmem:[#allocation157_spill] sm:$0xff] %v8436_v42  ;;  %v2869_v19 = vadd.f32 %v2868_v48, %v2849_v41  ;;  %v10264_v48 = vld [vmem:[#allocation49_spill] sm:$0xff] }
 0x5ff   :  { %10260 = vst [vmem:[#allocation158_spill] sm:$0xff] %v8439_v37  ;;  %v2888_v42 = vpop.f32.mrf.mxu2 }
 0x600   :  { %10261 = vst [vmem:[#allocation159_spill] sm:$0xff] %v8442_v63  ;;  %v3895_v35 = vmul.f32 -1.442695, %v2869_v19  ;;  %v2889_v25 = vadd.f32 %v2888_v42, %v10120_v26 }
 0x601   :  { %v2928_v26 = vpop.f32.mrf.mxu0 }
 0x602   :  { %4093 = vpow2.f32 %v3895_v35  ;;  %v2909_v37 = vadd.f32 %v2908_v28, %v2889_v25  ;;  %v10266_v35 = vld [vmem:[#allocation152_spill] sm:$0xff] }
 0x603   :  { %v2948_v23 = vpop.f32.mrf.mxu1  ;;  %v512_v4 = vadd.f32 %v10266_v35, %v10265_v36 }
 0x604   :  { %v3896_v63 = vmul.f32 -1.442695, %v2909_v37  ;;  %v10268_v37 = vld [vmem:[#allocation50_spill] sm:$0xff] }
 0x606   :  { %4095 = vpow2.f32 %v3896_v63 }
 0x607   :  { %v2968_v32 = vpop.f32.mrf.mxu2 }
 0x608   :  { %v4094_v46 = vpop.eup %4093  ;;  %v2969_v19 = vadd.f32 %v2968_v32, %v10264_v48  ;;  %v2929_v32 = vadd.f32 %v2928_v26, %v10268_v37 }
 0x609   :  { %v2994_v14 = vadd.f32 1.0, %v4094_v46 }
 0x60a   :  { %v2989_v51 = vadd.f32 %v2988_v31, %v2969_v19  ;;  %v2949_v48 = vadd.f32 %v2948_v23, %v2929_v32 }
 0x60b   :  { %v3098_v6 = vpop.f32.mrf.mxu1  ;;  %4097 = vrcp.f32 %v2994_v14  ;;  %vm3000_vm5 = vweird.f32 %v2994_v14 }
 0x60c   :  { %v3142_v58 = vadd.f32 %v3098_v6, %v389_v39  ;;  %v4096_v42 = vpop.eup %4095  ;;  %v3897_v25 = vmul.f32 -1.442695, %v2989_v51  ;;  %v3138_v39 = vpop.f32.mrf.mxu3  ;;  %v10267_v6 = vld [vmem:[#allocation147_spill] sm:$0xff]  ;;  %v10269_v51 = vld [vmem:[#allocation145_spill] sm:$0xff] }
 0x60d   :  { %v3013_v28 = vadd.f32 1.0, %v4096_v42  ;;  %v553_v17 = vadd.f32 %v10267_v6, %v512_v4  ;;  %v10270_v42 = vld [vmem:[#allocation30_spill] sm:$0xff]  ;;  %v3006_v6 = vand.u32 2147483648, %v2994_v14 }
 0x60e   :  { %v3899_v41 = vmul.f32 -1.442695, %v3142_v58  ;;  %v266_v16 = vadd.f32 %v10270_v42, %v10269_v51 }
 0x60f   :  { %v3144_v63 = vadd.f32 %v3138_v39, %v553_v17  ;;  %v3004_v39 = vand.u32 2147483647, %v2994_v14  ;;  %v10271_v17 = vld [vmem:[#allocation31_spill] sm:$0xff]  ;;  %vm3019_vm8 = vweird.f32 %v3013_v28 }
 0x610   :  { %4099 = vpow2.f32 %v3899_v41  ;;  %v307_v23 = vadd.f32 %v10271_v17, %v266_v16 }
 0x611   :  { %4101 = vpow2.f32 %v3897_v25  ;;  %v4098_v11 = vpop.eup %4097  ;;  %v3900_v25 = vmul.f32 -1.442695, %v3144_v63  ;;  %vm3005_vm9 = vcmp.eq.f32.partialorder %v3004_v39, 8.507059e+37 }
 0x612   :  { %4103 = vrcp.f32 %v3013_v28  ;;  %v2996_v46 = vmul.f32 %v4098_v11, %v2994_v14  ;;  %vm3001_vm4 = vweird.f32 %v4098_v11 }
 0x613   :  { %vm8460_vm6 = vmor %vm3000_vm5, %vm3001_vm4 }
 0x614   :  { %v2997_v58 = vsub.f32 1.0, %v2996_v46  ;;  %v3025_v46 = vand.u32 2147483648, %v3013_v28 }
 0x616   :  { %v4100_v31 = vpop.eup %4099  ;;  %v2998_v35 = vmul.f32 %v4098_v11, %v2997_v58  ;;  %v3023_v58 = vand.u32 2147483647, %v3013_v28 }
 0x617   :  { %v4102_v19 = vpop.eup %4101  ;;  %v8457_v4 = vadd.f32 1.0, %v4100_v31 }
 0x618   :  { %v4104_v36 = vpop.eup %4103  ;;  %v3033_v41 = vadd.f32 1.0, %v4102_v19  ;;  %v2999_v60 = vadd.f32 %v4098_v11, %v2998_v35  ;;  %v3026_v35 = vor.u32 1.1754944e-38, %v3025_v46  ;;  %vm3024_vm11 = vcmp.eq.f32.partialorder %v3023_v58, 8.507059e+37 }
 0x619   :  { %v3015_v52 = vmul.f32 %v4104_v36, %v3013_v28  ;;  %v3078_v63 = vpop.f32.mrf.mxu0  ;;  %vm3020_vm7 = vweird.f32 %v4104_v36  ;;  %vm3173_vm1 = vweird.f32 %v8457_v4 }
 0x61a   :  { %4105 = vrcp.f32 %v3033_v41  ;;  %v3003_v31 = vsel %vm8460_vm6, %v4098_v11, %v2999_v60  ;;  %v3141_v14 = vadd.f32 %v3078_v63, %v307_v23  ;;  %vm3021_vm10 = vmor %vm3019_vm8, %vm3020_vm7  ;;  %vm3039_vm13 = vweird.f32 %v3033_v41 }
 0x61b   :  { %v3016_v26 = vsub.f32 1.0, %v3015_v52  ;;  %4107 = vtanh.f32 %v2949_v48  ;;  %v3007_v52 = vor.u32 1.1754944e-38, %v3006_v6 }
 0x61c   :  { %4109 = vpow2.f32 %v3900_v25  ;;  %v3898_v17 = vmul.f32 -1.442695, %v3141_v14 }
 0x61d   :  { %v3017_v19 = vmul.f32 %v4104_v36, %v3016_v26  ;;  %4111 = vrcp.f32 %v8457_v4  ;;  %v3008_v42 = vsel %vm3005_vm9, %v3007_v52, %v3003_v31 }
 0x61e   :  { %4113 = vpow2.f32 %v3898_v17 }
 0x61f   :  { %v3018_v16 = vadd.f32 %v4104_v36, %v3017_v19  ;;  %v3043_v19 = vand.u32 2147483647, %v3033_v41 }
 0x620   :  { %v4106_v48 = vpop.eup %4105 }
 0x621   :  { %v4108_v51 = vpop.eup %4107  ;;  %v3022_v25 = vsel %vm3021_vm10, %v4104_v36, %v3018_v16  ;;  %v3035_v26 = vmul.f32 %v4106_v48, %v3033_v41  ;;  %vm3040_vm12 = vweird.f32 %v4106_v48  ;;  %v3045_v36 = vand.u32 2147483648, %v3033_v41 }
 0x622   :  { %v4110_v37 = vpop.eup %4109  ;;  %v3027_v29 = vsel %vm3024_vm11, %v3026_v35, %v3022_v25  ;;  %v3050_v6 = vmul.f32 %v4108_v51, %v3008_v42  ;;  %vm3041_vm14 = vmor %vm3039_vm13, %vm3040_vm12  ;;  %v10274_v51 = vld [vmem:[#allocation137_spill] sm:$0xff]  ;;  %vm3044_vm15 = vcmp.eq.f32.partialorder %v3043_v19, 8.507059e+37  ;;  %v3118_v42 = vpop.f32.mrf.mxu2  ;;  %v10275_v25 = vld [vmem:[#allocation138_spill] sm:$0xff] }
 0x623   :  { %v8467_v60 = vpop.eup %4111  ;;  %v3049_v11 = vmul.f32 %v3027_v29, %v7874_v2  ;;  %v3036_v28 = vsub.f32 1.0, %v3035_v26  ;;  %v8474_v32 = vadd.f32 1.0, %v4110_v37  ;;  %v430_v52 = vadd.f32 %v10274_v51, %v5711_v9 }
 0x624   :  { %v3169_v46 = vmul.f32 %v8467_v60, %v8457_v4  ;;  %v4114_v63 = vpop.eup %4113  ;;  %v3046_v37 = vor.u32 1.1754944e-38, %v3045_v36  ;;  %vm3174_vm0 = vweird.f32 %v8467_v60 }
 0x625   :  { %v8470_v39 = vadd.f32 %v3050_v6, %v3049_v11  ;;  %v3037_v23 = vmul.f32 %v4106_v48, %v3036_v28  ;;  %v3148_v31 = vadd.f32 1.0, %v4114_v63  ;;  %v471_v41 = vadd.f32 %v10275_v25, %v430_v52  ;;  %vm8495_vm2 = vmor %vm3173_vm1, %vm3174_vm0  ;;  %v10278_v63 = vld [vmem:[#allocation183_spill] sm:$0xff] }
 0x626   :  { %v3170_v2 = vsub.f32 1.0, %v3169_v46  ;;  %vm3193_vm9 = vweird.f32 %v8474_v32 }
 0x627   :  { %4115 = vtanh.f32 %v8470_v39  ;;  %v3038_v58 = vadd.f32 %v4106_v48, %v3037_v23  ;;  %v3179_v23 = vand.u32 2147483648, %v8457_v4  ;;  %vm3154_vm4 = vweird.f32 %v3148_v31 }
 0x628   :  { %4117 = vrcp.f32 %v8474_v32  ;;  %v3171_v35 = vmul.f32 %v8467_v60, %v3170_v2 }
 0x629   :  { %v3042_v29 = vsel %vm3041_vm14, %v4106_v48, %v3038_v58  ;;  %4119 = vrcp.f32 %v3148_v31  ;;  %v3143_v48 = vadd.f32 %v3118_v42, %v471_v41  ;;  %v3160_v58 = vand.u32 2147483648, %v3148_v31 }
 0x62a   :  { %v3047_v16 = vsel %vm3044_vm15, %v3046_v37, %v3042_v29  ;;  %v3172_v28 = vadd.f32 %v8467_v60, %v3171_v35  ;;  %v3180_v2 = vor.u32 1.1754944e-38, %v3179_v23  ;;  %v10280_v37 = vld [vmem:[#allocation185_spill] sm:$0xff]  ;;  %v10287_v23 = vld [vmem:[#allocation102_spill] sm:$0xff] }
 0x62b   :  { %4121 = vtanh.f32 %v3143_v48  ;;  %v10284_v48 = vld [vmem:[#allocation189_spill] sm:$0xff] }
 0x62d   :  { %v4116_v14 = vpop.eup %4115 }
 0x62e   :  { %v3053_v17 = vmul.f32 %v4116_v14, %v3047_v16  ;;  %v8482_v26 = vpop.eup %4117  ;;  %v10281_v14 = vld [vmem:[#allocation186_spill] sm:$0xff] }
 0x62f   :  { %v4120_v11 = vpop.eup %4119  ;;  %v3189_v46 = vmul.f32 %v8482_v26, %v8474_v32  ;;  %vm3194_vm8 = vweird.f32 %v8482_v26 }
 0x630   :  { %3244 = vmatmul.f32.vlgmr.msrb.gmra.mxu1 %v3053_v17  ;;  %3284 = vmatmul.f32.vlgmr.msrb.gmra.mxu3 %v3053_v17  ;;  %v3150_v6 = vmul.f32 %v4120_v11, %v3148_v31  ;;  %vm3155_vm3 = vweird.f32 %v4120_v11  ;;  %vm3195_vm10 = vmor %vm3193_vm9, %vm3194_vm8 }
 0x631   :  { %3458 = vmatpush.msrb.mxu1 %v7891_v38  ;;  %3498 = vmatpush.msrb.mxu3 %v7894_v50  ;;  %v3177_v38 = vand.u32 2147483647, %v8457_v4  ;;  %v3190_v29 = vsub.f32 1.0, %v3189_v46  ;;  %v10279_v4 = vld [vmem:[#allocation184_spill] sm:$0xff]  ;;  %vm3156_vm6 = vmor %vm3154_vm4, %vm3155_vm3  ;;  %v10288_v46 = vld [vmem:[#allocation103_spill] sm:$0xff] }
 0x632   :  { %v3151_v36 = vsub.f32 1.0, %v3150_v6  ;;  %v10285_v6 = vld [vmem:[#allocation20_spill] sm:$0xff]  ;;  %v10290_v50 = vld [vmem:[#allocation19_spill] sm:$0xff] }
 0x633   :  { %3459 = vmatpush.msrb.mxu1 %v7900_v53  ;;  %3499 = vmatpush.msrb.mxu3 %v7903_v47  ;;  %v3158_v53 = vand.u32 2147483647, %v3148_v31  ;;  %v3176_v47 = vsel %vm8495_vm2, %v8467_v60, %v3172_v28  ;;  %vm3178_vm5 = vcmp.eq.f32.partialorder %v3177_v38, 8.507059e+37  ;;  %v4122_v60 = vpop.eup %4121  ;;  %v3191_v35 = vmul.f32 %v8482_v26, %v3190_v29  ;;  %v10286_v28 = vld [vmem:[#allocation21_spill] sm:$0xff]  ;;  %v4773_v38 = vld [vmem:[#allocation5 + $0x60] sm:$0xff] }
 0x634   :  { %v3152_v19 = vmul.f32 %v4120_v11, %v3151_v36  ;;  %v3181_v52 = vsel %vm3178_vm5, %v3180_v2, %v3176_v47  ;;  %v10289_v36 = vld [vmem:[#allocation18_spill] sm:$0xff]  ;;  %v4776_v47 = vld [vmem:[#allocation5 + $0x50] sm:$0xff] }
 0x635   :  { %3460 = vmatpush.msrb.mxu1 %v7911_v1  ;;  %3500 = vmatpush.msrb.mxu3 %v10278_v63  ;;  %v3161_v1 = vor.u32 1.1754944e-38, %v3160_v58  ;;  %vm3159_vm7 = vcmp.eq.f32.partialorder %v3158_v53, 8.507059e+37  ;;  %v3203_v31 = vmul.f32 %v3181_v52, %v7956_v55  ;;  %v3192_v25 = vadd.f32 %v8482_v26, %v3191_v35  ;;  %v10283_v55 = vld [vmem:[#allocation188_spill] sm:$0xff]  ;;  %v10291_v63 = vld [vmem:[#allocation85_spill] sm:$0xff]  ;;  %v10292_v53 = vld [vmem:[#allocation86_spill] sm:$0xff] }
 0x636   :  { %v3153_v51 = vadd.f32 %v4120_v11, %v3152_v19  ;;  %v4774_v58 = vld [vmem:[#allocation5 + $0x70] sm:$0xff]  ;;  %v4775_v19 = vld [vmem:[#allocation5 + $0x40] sm:$0xff]  ;;  %v10299_v35 = vld [vmem:[#allocation105_spill] sm:$0xff] }
 0x637   :  { %3461 = vmatpush.msrb.mxu1 %v7928_v18  ;;  %3501 = vmatpush.msrb.mxu3 %v10279_v4  ;;  %v10293_v2 = vld [vmem:[#allocation24_spill] sm:$0xff]  ;;  %v4777_v29 = vld [vmem:[#allocation5 + $0x20] sm:$0xff]  ;;  %v10294_v4 = vld [vmem:[#allocation25_spill] sm:$0xff] }
 0x638   :  { %3324 = vmatmul.f32.vlgmr.msra.gmra.mxu1 %v3053_v17  ;;  %3364 = vmatmul.f32.vlgmr.msra.gmra.mxu3 %v3053_v17  ;;  %v3157_v16 = vsel %vm3156_vm6, %v4120_v11, %v3153_v51  ;;  %v4764_v11 = vld [vmem:[#allocation5 + $0x110] sm:$0xff]  ;;  %v4779_v52 = vld [vmem:[#allocation5] sm:$0xff] }
 0x639   :  { %3462 = vmatpush.msrb.mxu1 %v10280_v37  ;;  %3502 = vmatpush.msrb.mxu3 %v10281_v14  ;;  %v3162_v18 = vsel %vm3159_vm7, %v3161_v1, %v3157_v16  ;;  %v4778_v51 = vld [vmem:[#allocation5 + $0x30] sm:$0xff]  ;;  %v10295_v1 = vld [vmem:[#allocation125_spill] sm:$0xff]  ;;  %v10296_v37 = vld [vmem:[#allocation119_spill] sm:$0xff] }
 0x63a   :  { %v3204_v42 = vmul.f32 %v4122_v60, %v3162_v18  ;;  %v4780_v14 = vld [vmem:[#allocation5 + $0x10] sm:$0xff]  ;;  %v10297_v16 = vld [vmem:[#allocation22_spill] sm:$0xff]  ;;  %v10298_v60 = vld [vmem:[#allocation23_spill] sm:$0xff] }
 0x63b   :  { %3463 = vmatpush.msrb.mxu1 %v7942_v7  ;;  %3503 = vmatpush.msrb.mxu3 %v7945_v22  ;;  %v3199_v7 = vand.u32 2147483648, %v8474_v32  ;;  %v10282_v22 = vld [vmem:[#allocation187_spill] sm:$0xff]  ;;  %v10300_v18 = vld [vmem:[#allocation106_spill] sm:$0xff] }
 0x63c   :  { %v8514_v17 = vadd.f32 %v3204_v42, %v3203_v31  ;;  %v10301_v31 = vld [vmem:[#allocation16_spill] sm:$0xff]  ;;  %v10302_v42 = vld [vmem:[#allocation17_spill] sm:$0xff] }
 0x63d   :  { %3464 = vmatpush.msrb.mxu1 %v7950_v33  ;;  %3504 = vmatpush.msrb.mxu3 %v7953_v43  ;;  %v3197_v33 = vand.u32 2147483647, %v8474_v32  ;;  %v3196_v43 = vsel %vm3195_vm10, %v8482_v26, %v3192_v25  ;;  %v4755_v26 = vld [vmem:[#allocation5 + $0x180] sm:$0xff] }
 0x63e   :  { %4123 = vtanh.f32 %v8514_v17  ;;  %v10303_v25 = vld [vmem:[#allocation82_spill] sm:$0xff] }
 0x63f   :  { %3465 = vmatpush.msrb.mxu1 %v7958_v62  ;;  %3505 = vmatpush.msrb.mxu3 %v7961_v34  ;;  %v3200_v62 = vor.u32 1.1754944e-38, %v3199_v7  ;;  %vm3198_vm11 = vcmp.eq.f32.partialorder %v3197_v33, 8.507059e+37  ;;  %v10304_v7 = vld [vmem:[#allocation83_spill] sm:$0xff]  ;;  %v10305_v33 = vld [vmem:[#allocation14_spill] sm:$0xff] }
 0x641   :  { %3466 = vmatpush.msrb.mxu1 %v7968_v5  ;;  %3506 = vmatpush.msrb.mxu3 %v10282_v22  ;;  %v3201_v41 = vsel %vm3198_vm11, %v3200_v62, %v3196_v43  ;;  %v4749_v5 = vld [vmem:[#allocation5 + $0x1e0] sm:$0xff]  ;;  %v10306_v22 = vld [vmem:[#allocation15_spill] sm:$0xff]  ;;  %v10307_v43 = vld [vmem:[#allocation65_spill] sm:$0xff] }
 0x642   :  { %v10309_v62 = vld [vmem:[#allocation53_spill] sm:$0xff] }
 0x643   :  { %3467 = vmatpush.msrb.mxu1 %v10283_v55  ;;  %3507 = vmatpush.msrb.mxu3 %v7979_v45  ;;  %v4750_v45 = vld [vmem:[#allocation5 + $0x1f0] sm:$0xff]  ;;  %v10308_v55 = vld [vmem:[#allocation66_spill] sm:$0xff] }
 0x644   :  { %v4124_v34 = vpop.eup %4123 }
 0x645   :  { %3468 = vmatpush.msrb.mxu1 %v7983_v30  ;;  %3508 = vmatpush.msrb.mxu3 %v7986_v24  ;;  %v8531_v32 = vmul.f32 %v4124_v34, %v3201_v41  ;;  %v4751_v30 = vld [vmem:[#allocation5 + $0x1c0] sm:$0xff]  ;;  %v4752_v24 = vld [vmem:[#allocation5 + $0x1d0] sm:$0xff]  ;;  %v10311_v41 = vld [vmem:[#allocation55_spill] sm:$0xff] }
 0x646   :  { %v10310_v34 = vld [vmem:[#allocation54_spill] sm:$0xff] }
 0x647   :  { %3469 = vmatpush.msrb.mxu1 %v7989_v3  ;;  %3509 = vmatpush.msrb.mxu3 %v7992_v40  ;;  %v4753_v3 = vld [vmem:[#allocation5 + $0x1a0] sm:$0xff]  ;;  %v4754_v40 = vld [vmem:[#allocation5 + $0x1b0] sm:$0xff] }
 0x648   :  { %3224 = vmatmul.f32.vlgmr.msrb.gmra.mxu0 %v8531_v32  ;;  %3264 = vmatmul.f32.vlgmr.msrb.gmra.mxu2 %v8531_v32 }
 0x649   :  { %3438 = vmatpush.msrb.mxu0 %v4749_v5  ;;  %3478 = vmatpush.msrb.mxu2 %v4750_v45  ;;  %v10313_v5 = vld [vmem:[#allocation57_spill] sm:$0xff]  ;;  %v10314_v45 = vld [vmem:[#allocation58_spill] sm:$0xff] }
 0x64a   :  { %3470 = vmatpush.msrb.mxu1 %v7997_v44  ;;  %3510 = vmatpush.msrb.mxu3 %v8000_v10  ;;  %v4756_v44 = vld [vmem:[#allocation5 + $0x190] sm:$0xff]  ;;  %v4757_v10 = vld [vmem:[#allocation5 + $0x160] sm:$0xff] }
 0x64b   :  { %3439 = vmatpush.msrb.mxu0 %v4751_v30  ;;  %3479 = vmatpush.msrb.mxu2 %v4752_v24  ;;  %v10315_v30 = vld [vmem:[#allocation61_spill] sm:$0xff]  ;;  %v10316_v24 = vld [vmem:[#allocation64_spill] sm:$0xff] }
 0x64c   :  { %3471 = vmatpush.msrb.mxu1 %v8007_v27  ;;  %3511 = vmatpush.msrb.mxu3 %v8010_v56  ;;  %v4758_v27 = vld [vmem:[#allocation5 + $0x170] sm:$0xff]  ;;  %v4759_v56 = vld [vmem:[#allocation5 + $0x140] sm:$0xff] }
 0x64d   :  { %3440 = vmatpush.msrb.mxu0 %v4753_v3  ;;  %3480 = vmatpush.msrb.mxu2 %v4754_v40  ;;  %v10317_v3 = vld [vmem:[#allocation69_spill] sm:$0xff]  ;;  %v10318_v40 = vld [vmem:[#allocation70_spill] sm:$0xff] }
 0x64e   :  { %3472 = vmatpush.msrb.mxu1 %v8015_v8  ;;  %3512 = vmatpush.msrb.mxu3 %v8018_v59  ;;  %v4760_v8 = vld [vmem:[#allocation5 + $0x150] sm:$0xff]  ;;  %v4761_v59 = vld [vmem:[#allocation5 + $0x120] sm:$0xff] }
 0x64f   :  { %3441 = vmatpush.msrb.mxu0 %v4755_v26  ;;  %3481 = vmatpush.msrb.mxu2 %v4756_v44  ;;  %v10319_v26 = vld [vmem:[#allocation73_spill] sm:$0xff]  ;;  %v10320_v44 = vld [vmem:[#allocation74_spill] sm:$0xff] }
 0x650   :  { %3473 = vmatpush.msrb.mxu1 %v8023_v0  ;;  %3513 = vmatpush.msrb.mxu3 %v8026_v15  ;;  %v4762_v0 = vld [vmem:[#allocation5 + $0x130] sm:$0xff]  ;;  %v4763_v15 = vld [vmem:[#allocation5 + $0x100] sm:$0xff] }
 0x651   :  { %3304 = vmatmul.f32.vlgmr.msra.gmra.mxu0 %v8531_v32  ;;  %3344 = vmatmul.f32.vlgmr.msra.gmra.mxu2 %v8531_v32 }
 0x652   :  { %3442 = vmatpush.msrb.mxu0 %v4757_v10  ;;  %3474 = vmatmul.f32.vlgmr.msrb.gmra.mxu1 %v8531_v32  ;;  %v10321_v10 = vld [vmem:[#allocation77_spill] sm:$0xff] }
 0x653   :  { %3482 = vmatpush.msrb.mxu2 %v4758_v27  ;;  %3514 = vmatmul.f32.vlgmr.msrb.gmra.mxu3 %v8531_v32  ;;  %v10322_v27 = vld [vmem:[#allocation78_spill] sm:$0xff] }
 0x654   :  { %3443 = vmatpush.msrb.mxu0 %v4759_v56  ;;  %3605 = vmatpush.msra.mxu1 %v8038_v57  ;;  %v4765_v57 = vld [vmem:[#allocation5 + $0xe0] sm:$0xff]  ;;  %v10323_v56 = vld [vmem:[#allocation81_spill] sm:$0xff] }
 0x655   :  { %3483 = vmatpush.msrb.mxu2 %v4760_v8  ;;  %3645 = vmatpush.msra.mxu3 %v8042_v54  ;;  %v4766_v54 = vld [vmem:[#allocation5 + $0xf0] sm:$0xff] }
 0x656   :  { %3444 = vmatpush.msrb.mxu0 %v4761_v59  ;;  %3606 = vmatpush.msra.mxu1 %v8046_v13  ;;  %v4767_v13 = vld [vmem:[#allocation5 + $0xc0] sm:$0xff]  ;;  %v10324_v8 = vld [vmem:[#allocation84_spill] sm:$0xff]  ;;  %v10325_v59 = vld [vmem:[#allocation89_spill] sm:$0xff] }
 0x657   :  { %3484 = vmatpush.msrb.mxu2 %v4762_v0  ;;  %3646 = vmatpush.msra.mxu3 %v8050_v21  ;;  %v4768_v21 = vld [vmem:[#allocation5 + $0xd0] sm:$0xff]  ;;  %v10326_v0 = vld [vmem:[#allocation90_spill] sm:$0xff] }
 0x658   :  { %3445 = vmatpush.msrb.mxu0 %v4763_v15  ;;  %3607 = vmatpush.msra.mxu1 %v8054_v20  ;;  %v4769_v20 = vld [vmem:[#allocation5 + $0xa0] sm:$0xff]  ;;  %v10327_v15 = vld [vmem:[#allocation93_spill] sm:$0xff] }
 0x659   :  { %3485 = vmatpush.msrb.mxu2 %v4764_v11  ;;  %3647 = vmatpush.msra.mxu3 %v8058_v12  ;;  %v4770_v12 = vld [vmem:[#allocation5 + $0xb0] sm:$0xff]  ;;  %v10328_v11 = vld [vmem:[#allocation94_spill] sm:$0xff] }
 0x65a   :  { %3446 = vmatpush.msrb.mxu0 %v4765_v57  ;;  %3608 = vmatpush.msra.mxu1 %v8062_v49  ;;  %v4771_v49 = vld [vmem:[#allocation5 + $0x80] sm:$0xff]  ;;  %v10329_v57 = vld [vmem:[#allocation97_spill] sm:$0xff] }
 0x65b   :  { %3486 = vmatpush.msrb.mxu2 %v4766_v54  ;;  %3648 = vmatpush.msra.mxu3 %v8066_v61  ;;  %v4772_v61 = vld [vmem:[#allocation5 + $0x90] sm:$0xff]  ;;  %v10330_v54 = vld [vmem:[#allocation98_spill] sm:$0xff] }
 0x65c   :  { %3447 = vmatpush.msrb.mxu0 %v4767_v13  ;;  %3609 = vmatpush.msra.mxu1 %v10284_v48  ;;  %v10331_v13 = vld [vmem:[#allocation101_spill] sm:$0xff]  ;;  %v10332_v48 = vld [vmem:[#allocation104_spill] sm:$0xff] }
 0x65d   :  { %3487 = vmatpush.msrb.mxu2 %v4768_v21  ;;  %3649 = vmatpush.msra.mxu3 %v10285_v6  ;;  %v10333_v21 = vld [vmem:[#allocation109_spill] sm:$0xff]  ;;  %v10334_v6 = vld [vmem:[#allocation110_spill] sm:$0xff] }
 0x65e   :  { %3448 = vmatpush.msrb.mxu0 %v4769_v20  ;;  %3610 = vmatpush.msra.mxu1 %v10286_v28  ;;  %v10335_v20 = vld [vmem:[#allocation113_spill] sm:$0xff]  ;;  %v10336_v28 = vld [vmem:[#allocation114_spill] sm:$0xff] }
 0x65f   :  { %3488 = vmatpush.msrb.mxu2 %v4770_v12  ;;  %3650 = vmatpush.msra.mxu3 %v10287_v23  ;;  %v10337_v12 = vld [vmem:[#allocation117_spill] sm:$0xff]  ;;  %v10338_v23 = vld [vmem:[#allocation59_spill] sm:$0xff] }
 0x660   :  { %3449 = vmatpush.msrb.mxu0 %v4771_v49  ;;  %3611 = vmatpush.msra.mxu1 %v10288_v46  ;;  %v10339_v49 = vld [vmem:[#allocation60_spill] sm:$0xff]  ;;  %v10340_v46 = vld [vmem:[#allocation118_spill] sm:$0xff] }
 0x661   :  { %3489 = vmatpush.msrb.mxu2 %v4772_v61  ;;  %3651 = vmatpush.msra.mxu3 %v10289_v36  ;;  %v10341_v61 = vld [vmem:[#allocation67_spill] sm:$0xff]  ;;  %v10342_v36 = vld [vmem:[#allocation68_spill] sm:$0xff] }
 0x662   :  { %3450 = vmatpush.msrb.mxu0 %v4773_v38  ;;  %3612 = vmatpush.msra.mxu1 %v10290_v50  ;;  %v10343_v38 = vld [vmem:[#allocation124_spill] sm:$0xff]  ;;  %v10344_v50 = vld [vmem:[#allocation71_spill] sm:$0xff] }
 0x663   :  { %3490 = vmatpush.msrb.mxu2 %v4774_v58  ;;  %3652 = vmatpush.msra.mxu3 %v10291_v63  ;;  %v10345_v58 = vld [vmem:[#allocation128_spill] sm:$0xff] }
 0x664   :  { %3451 = vmatpush.msrb.mxu0 %v4775_v19  ;;  %3613 = vmatpush.msra.mxu1 %v10292_v53  ;;  %v10346_v63 = vld [vmem:[#allocation72_spill] sm:$0xff]  ;;  %v10347_v19 = vld [vmem:[#allocation129_spill] sm:$0xff]  ;;  %v10348_v53 = vld [vmem:[#allocation75_spill] sm:$0xff] }
 0x665   :  { %3491 = vmatpush.msrb.mxu2 %v4776_v47  ;;  %3653 = vmatpush.msra.mxu3 %v10293_v2  ;;  %v10349_v47 = vld [vmem:[#allocation132_spill] sm:$0xff] }
 0x666   :  { %3452 = vmatpush.msrb.mxu0 %v4777_v29  ;;  %3614 = vmatpush.msra.mxu1 %v10294_v4  ;;  %v10350_v2 = vld [vmem:[#allocation76_spill] sm:$0xff]  ;;  %v10351_v29 = vld [vmem:[#allocation133_spill] sm:$0xff]  ;;  %v10352_v4 = vld [vmem:[#allocation79_spill] sm:$0xff] }
 0x667   :  { %3492 = vmatpush.msrb.mxu2 %v4778_v51  ;;  %3654 = vmatpush.msra.mxu3 %v10295_v1  ;;  %v10353_v51 = vld [vmem:[#allocation80_spill] sm:$0xff]  ;;  %v10354_v1 = vld [vmem:[#allocation87_spill] sm:$0xff] }
 0x668   :  { %3453 = vmatpush.msrb.mxu0 %v4779_v52  ;;  %3615 = vmatpush.msra.mxu1 %v10296_v37  ;;  %v10355_v52 = vld [vmem:[#allocation88_spill] sm:$0xff]  ;;  %v10356_v37 = vld [vmem:[#allocation91_spill] sm:$0xff] }
 0x669   :  { %3493 = vmatpush.msrb.mxu2 %v4780_v14  ;;  %3454 = vmatmul.f32.vlgmr.msrb.gmra.mxu0 %v8531_v32  ;;  %v10357_v14 = vld [vmem:[#allocation92_spill] sm:$0xff] }
 0x66a   :  { %3494 = vmatmul.f32.vlgmr.msrb.gmra.mxu2 %v8531_v32  ;;  %3655 = vmatpush.msra.mxu3 %v10297_v16  ;;  %v10312_v32 = vld [vmem:[#allocation56_spill] sm:$0xff]  ;;  %v10358_v16 = vld [vmem:[#allocation95_spill] sm:$0xff] }
 0x66b   :  { %3616 = vmatpush.msra.mxu1 %v10298_v60  ;;  %3585 = vmatpush.msra.mxu0 %v10299_v35  ;;  %v10359_v60 = vld [vmem:[#allocation96_spill] sm:$0xff]  ;;  %v10360_v35 = vld [vmem:[#allocation99_spill] sm:$0xff] }
 0x66c   :  { %3656 = vmatpush.msra.mxu3 %v10300_v18  ;;  %3625 = vmatpush.msra.mxu2 %v10301_v31  ;;  %v10361_v18 = vld [vmem:[#allocation100_spill] sm:$0xff]  ;;  %v10362_v31 = vld [vmem:[#allocation107_spill] sm:$0xff] }
 0x66d   :  { %3617 = vmatpush.msra.mxu1 %v10302_v42  ;;  %3586 = vmatpush.msra.mxu0 %v10303_v25  ;;  %v10363_v42 = vld [vmem:[#allocation108_spill] sm:$0xff]  ;;  %v10364_v25 = vld [vmem:[#allocation111_spill] sm:$0xff] }
 0x66e   :  { %3657 = vmatpush.msra.mxu3 %v10304_v7  ;;  %3626 = vmatpush.msra.mxu2 %v10305_v33  ;;  %v10365_v7 = vld [vmem:[#allocation112_spill] sm:$0xff]  ;;  %v10366_v33 = vld [vmem:[#allocation115_spill] sm:$0xff] }
 0x66f   :  { %3618 = vmatpush.msra.mxu1 %v10306_v22  ;;  %3587 = vmatpush.msra.mxu0 %v10307_v43  ;;  %v10367_v22 = vld [vmem:[#allocation116_spill] sm:$0xff] }
 0x670   :  { %3658 = vmatpush.msra.mxu3 %v10308_v55  ;;  %3627 = vmatpush.msra.mxu2 %v10309_v62  ;;  %v10368_v43 = vld [vmem:[#allocation120_spill] sm:$0xff]  ;;  %v10369_v55 = vld [vmem:[#allocation121_spill] sm:$0xff]  ;;  %v10370_v62 = vld [vmem:[#allocation126_spill] sm:$0xff] }
 0x671   :  { %3619 = vmatpush.msra.mxu1 %v10310_v34  ;;  %3588 = vmatpush.msra.mxu0 %v10311_v41  ;;  %v10371_v34 = vld [vmem:[#allocation127_spill] sm:$0xff]  ;;  %v10372_v41 = vld [vmem:[#allocation130_spill] sm:$0xff] }
 0x672   :  { %3659 = vmatpush.msra.mxu3 %v10312_v32  ;;  %3628 = vmatpush.msra.mxu2 %v10313_v5  ;;  %v10373_v32 = vld [vmem:[#allocation131_spill] sm:$0xff]  ;;  %v10374_v5 = vld [vmem:[#allocation134_spill] sm:$0xff] }
 0x673   :  { %3620 = vmatpush.msra.mxu1 %v10314_v45  ;;  %3589 = vmatpush.msra.mxu0 %v10315_v30  ;;  %v10375_v45 = vld [vmem:[#allocation135_spill] sm:$0xff] }
 0x674   :  { %3660 = vmatpush.msra.mxu3 %v10316_v24  ;;  %3629 = vmatpush.msra.mxu2 %v10317_v3  ;;  %v10376_v30 = vld [vmem:[#allocation139_spill] sm:$0xff]  ;;  %v10377_v24 = vld [vmem:[#allocation140_spill] sm:$0xff]  ;;  %v10378_v3 = vld [vmem:[#allocation141_spill] sm:$0xff] }
 0x675   :  { %3685 = vmatpush.msrb.mxu1 %v10318_v40  ;;  %3590 = vmatpush.msra.mxu0 %v10320_v44  ;;  %v10379_v40 = vld [vmem:[#allocation143_spill] sm:$0xff]  ;;  %v10381_v44 = vld [vmem:[#allocation150_spill] sm:$0xff] }
 0x676   :  { %3725 = vmatpush.msrb.mxu3 %v10319_v26  ;;  %3630 = vmatpush.msra.mxu2 %v10321_v10  ;;  %v10380_v26 = vld [vmem:[#allocation144_spill] sm:$0xff]  ;;  %v10382_v10 = vld [vmem:[#allocation151_spill] sm:$0xff] }
 0x677   :  { %3686 = vmatpush.msrb.mxu1 %v10322_v27  ;;  %3591 = vmatpush.msra.mxu0 %v10324_v8  ;;  %v10383_v27 = vld [vmem:[#allocation12_spill] sm:$0xff]  ;;  %v10385_v8 = vld [vmem:[#allocation62_spill] sm:$0xff] }
 0x678   :  { %3726 = vmatpush.msrb.mxu3 %v10323_v56  ;;  %3631 = vmatpush.msra.mxu2 %v10325_v59  ;;  %v10384_v56 = vld [vmem:[#allocation13_spill] sm:$0xff]  ;;  %v10386_v59 = vld [vmem:[#allocation63_spill] sm:$0xff] }
 0x679   :  { %3687 = vmatpush.msrb.mxu1 %v10326_v0  ;;  %3592 = vmatpush.msra.mxu0 %v10328_v11  ;;  %v10387_v0 = vld [vmem:[#allocation10_spill] sm:$0xff]  ;;  %v10389_v11 = vld [vmem:[#allocation51_spill] sm:$0xff] }
 0x67a   :  { %3727 = vmatpush.msrb.mxu3 %v10327_v15  ;;  %3632 = vmatpush.msra.mxu2 %v10329_v57  ;;  %v10388_v15 = vld [vmem:[#allocation11_spill] sm:$0xff]  ;;  %v10390_v57 = vld [vmem:[#allocation52_spill] sm:$0xff] }
 0x67b   :  { %3688 = vmatpush.msrb.mxu1 %v10330_v54  ;;  %3593 = vmatpush.msra.mxu0 %v10332_v48  ;;  %v10391_v54 = vld [vmem:[#allocation36_spill] sm:$0xff]  ;;  %v10393_v48 = vld [vmem:[#allocation38_spill] sm:$0xff] }
 0x67c   :  { %3728 = vmatpush.msrb.mxu3 %v10331_v13  ;;  %3633 = vmatpush.msra.mxu2 %v10333_v21  ;;  %v10392_v13 = vld [vmem:[#allocation37_spill] sm:$0xff] }
 0x67d   :  { %3689 = vmatpush.msrb.mxu1 %v10334_v6  ;;  %3594 = vmatpush.msra.mxu0 %v10336_v28  ;;  %v10394_v21 = vld [vmem:[#allocation41_spill] sm:$0xff]  ;;  %v10395_v6 = vld [vmem:[#allocation42_spill] sm:$0xff]  ;;  %v10397_v28 = vld [vmem:[#allocation44_spill] sm:$0xff] }
 0x67e   :  { %3729 = vmatpush.msrb.mxu3 %v10335_v20  ;;  %3634 = vmatpush.msra.mxu2 %v10337_v12  ;;  %v10396_v20 = vld [vmem:[#allocation43_spill] sm:$0xff]  ;;  %v10398_v12 = vld [vmem:[#allocation45_spill] sm:$0xff] }
 0x67f   :  { %3690 = vmatpush.msrb.mxu1 %v10338_v23  ;;  %3595 = vmatpush.msra.mxu0 %v10340_v46  ;;  %v10399_v23 = vld [vmem:[#allocation46_spill] sm:$0xff]  ;;  %v10401_v46 = vld [vmem:[#allocation157_spill] sm:$0xff] }
 0x680   :  { %3730 = vmatpush.msrb.mxu3 %v10339_v49  ;;  %3635 = vmatpush.msra.mxu2 %v10341_v61  ;;  %v10400_v49 = vld [vmem:[#allocation156_spill] sm:$0xff]  ;;  %v10402_v61 = vld [vmem:[#allocation158_spill] sm:$0xff] }
 0x681   :  { %3691 = vmatpush.msrb.mxu1 %v10342_v36  ;;  %3596 = vmatpush.msra.mxu0 %v10344_v50  ;;  %v10403_v36 = vld [vmem:[#allocation159_spill] sm:$0xff] }
 0x682   :  { %3731 = vmatpush.msrb.mxu3 %v10343_v38  ;;  %3636 = vmatpush.msra.mxu2 %v10345_v58  ;;  %v10404_v58 = vld [vmem:[#allocation47_spill] sm:$0xff] }
 0x683   :  { %3692 = vmatpush.msrb.mxu1 %v10346_v63  ;;  %3597 = vmatpush.msra.mxu0 %v10348_v53 }
 0x684   :  { %3732 = vmatpush.msrb.mxu3 %v10347_v19  ;;  %3637 = vmatpush.msra.mxu2 %v10349_v47 }
 0x685   :  { %3693 = vmatpush.msrb.mxu1 %v10350_v2  ;;  %3598 = vmatpush.msra.mxu0 %v10352_v4  ;;  %v10406_v4 = vld [vmem:[#allocation39_spill] sm:$0xff] }
 0x686   :  { %3733 = vmatpush.msrb.mxu3 %v10351_v29  ;;  %3638 = vmatpush.msra.mxu2 %v10353_v51  ;;  %v10405_v29 = vld [vmem:[#allocation146_spill] sm:$0xff] }
 0x687   :  { %3694 = vmatpush.msrb.mxu1 %v10354_v1  ;;  %3599 = vmatpush.msra.mxu0 %v10356_v37  ;;  %v351_v51 = vadd.f32 %v10406_v4, %v10405_v29 }
 0x688   :  { %3734 = vmatpush.msrb.mxu3 %v10355_v52  ;;  %3639 = vmatpush.msra.mxu2 %v10357_v14  ;;  %v10407_v52 = vld [vmem:[#allocation48_spill] sm:$0xff] }
 0x689   :  { %3695 = vmatpush.msrb.mxu1 %v10358_v16  ;;  %3600 = vmatpush.msra.mxu0 %v10360_v35  ;;  %v10408_v16 = vld [vmem:[#allocation40_spill] sm:$0xff] }
 0x68a   :  { %3735 = vmatpush.msrb.mxu3 %v10359_v60  ;;  %3640 = vmatpush.msra.mxu2 %v10361_v18  ;;  %v392_v60 = vadd.f32 %v10408_v16, %v351_v51 }
 0x68b   :  { %3696 = vmatpush.msrb.mxu1 %v10362_v31  ;;  %3665 = vmatpush.msrb.mxu0 %v10364_v25 }
 0x68c   :  { %3736 = vmatpush.msrb.mxu3 %v10363_v42  ;;  %3705 = vmatpush.msrb.mxu2 %v10365_v7 }
 0x68d   :  { %3697 = vmatpush.msrb.mxu1 %v10366_v33  ;;  %3666 = vmatpush.msrb.mxu0 %v10368_v43  ;;  %v10409_v43 = vld [vmem:[#allocation153_spill] sm:$0xff] }
 0x68e   :  { %3737 = vmatpush.msrb.mxu3 %v10367_v22  ;;  %3706 = vmatpush.msrb.mxu2 %v10369_v55  ;;  %v10410_v55 = vld [vmem:[#allocation155_spill] sm:$0xff] }
 0x68f   :  { %3698 = vmatpush.msrb.mxu1 %v10370_v62  ;;  %3667 = vmatpush.msrb.mxu0 %v10372_v41  ;;  %v515_v62 = vadd.f32 %v10410_v55, %v10409_v43 }
 0x690   :  { %3738 = vmatpush.msrb.mxu3 %v10371_v34  ;;  %3707 = vmatpush.msrb.mxu2 %v10373_v32  ;;  %v10411_v34 = vld [vmem:[#allocation49_spill] sm:$0xff] }
 0x691   :  { %3699 = vmatpush.msrb.mxu1 %v10374_v5  ;;  %3668 = vmatpush.msrb.mxu0 %v10376_v30 }
 0x692   :  { %3739 = vmatpush.msrb.mxu3 %v10375_v45  ;;  %3708 = vmatpush.msrb.mxu2 %v10377_v24 }
 0x693   :  { %3700 = vmatpush.msrb.mxu1 %v10378_v3  ;;  %3669 = vmatpush.msrb.mxu0 %v10380_v26  ;;  %v10412_v3 = vld [vmem:[#allocation154_spill] sm:$0xff] }
 0x694   :  { %3740 = vmatpush.msrb.mxu3 %v10379_v40  ;;  %3709 = vmatpush.msrb.mxu2 %v10381_v44  ;;  %v556_v40 = vadd.f32 %v10412_v3, %v515_v62 }
 0x695   :  { %3670 = vmatpush.msrb.mxu0 %v10382_v10  ;;  %v10413_v10 = vld [vmem:[#allocation50_spill] sm:$0xff] }
 0x696   :  { %3710 = vmatpush.msrb.mxu2 %v10383_v27 }
 0x697   :  { %3671 = vmatpush.msrb.mxu0 %v10384_v56 }
 0x698   :  { %3711 = vmatpush.msrb.mxu2 %v10385_v8 }
 0x699   :  { %3672 = vmatpush.msrb.mxu0 %v10386_v59 }
 0x69a   :  { %3712 = vmatpush.msrb.mxu2 %v10387_v0 }
 0x69b   :  { %3673 = vmatpush.msrb.mxu0 %v10388_v15 }
 0x69c   :  { %3713 = vmatpush.msrb.mxu2 %v10389_v11 }
 0x69d   :  { %3674 = vmatpush.msrb.mxu0 %v10390_v57 }
 0x69e   :  { %3714 = vmatpush.msrb.mxu2 %v10391_v54 }
 0x69f   :  { %3675 = vmatpush.msrb.mxu0 %v10392_v13  ;;  %v10414_v13 = vld [vmem:[#allocation145_spill] sm:$0xff] }
 0x6a0   :  { %3715 = vmatpush.msrb.mxu2 %v10393_v48  ;;  %v10415_v48 = vld [vmem:[#allocation34_spill] sm:$0xff] }
 0x6a1   :  { %3676 = vmatpush.msrb.mxu0 %v10394_v21  ;;  %v269_v21 = vadd.f32 %v10415_v48, %v10414_v13 }
 0x6a2   :  { %3716 = vmatpush.msrb.mxu2 %v10395_v6 }
 0x6a3   :  { %3677 = vmatpush.msrb.mxu0 %v10396_v20 }
 0x6a4   :  { %3717 = vmatpush.msrb.mxu2 %v10397_v28 }
 0x6a5   :  { %3678 = vmatpush.msrb.mxu0 %v10398_v12 }
 0x6a6   :  { %3718 = vmatpush.msrb.mxu2 %v10399_v23 }
 0x6a7   :  { %3679 = vmatpush.msrb.mxu0 %v10400_v49 }
 0x6a8   :  { %3719 = vmatpush.msrb.mxu2 %v10401_v46 }
 0x6a9   :  { %3680 = vmatpush.msrb.mxu0 %v10402_v61 }
 0x6aa   :  { %3720 = vmatpush.msrb.mxu2 %v10403_v36  ;;  %v10416_v36 = vld [vmem:[#allocation35_spill] sm:$0xff] }
 0x6ad   :  { %v3245_v38 = vpop.f32.mrf.mxu1 }
 0x6b3   :  { %v3285_v19 = vpop.f32.mrf.mxu3 }
 0x6b5   :  { %v3325_v53 = vpop.f32.mrf.mxu1 }
 0x6bb   :  { %v3365_v31 = vpop.f32.mrf.mxu3 }
 0x6c5   :  { %v3225_v50 = vpop.f32.mrf.mxu0 }
 0x6c6   :  { %v3226_v63 = vadd.f32 %v3225_v50, %v10404_v58 }
 0x6c8   :  { %v3246_v47 = vadd.f32 %v3245_v38, %v3226_v63  ;;  %v310_v38 = vadd.f32 %v10416_v36, %v269_v21 }
 0x6ca   :  { %v3901_v2 = vmul.f32 -1.442695, %v3246_v47 }
 0x6cb   :  { %v3265_v1 = vpop.f32.mrf.mxu2 }
 0x6cc   :  { %4125 = vpow2.f32 %v3901_v2  ;;  %v3266_v37 = vadd.f32 %v3265_v1, %v10407_v52 }
 0x6ce   :  { %v3286_v14 = vadd.f32 %v3285_v19, %v3266_v37  ;;  %v3305_v5 = vpop.f32.mrf.mxu0 }
 0x6cf   :  { %v3475_v35 = vpop.f32.mrf.mxu1  ;;  %v3306_v27 = vadd.f32 %v3305_v5, %v10413_v10 }
 0x6d0   :  { %v3902_v18 = vmul.f32 -1.442695, %v3286_v14  ;;  %v3519_v42 = vadd.f32 %v3475_v35, %v392_v60 }
 0x6d1   :  { %v3326_v15 = vadd.f32 %v3325_v53, %v3306_v27 }
 0x6d2   :  { %v4126_v25 = vpop.eup %4125  ;;  %4127 = vpow2.f32 %v3902_v18  ;;  %v3905_v22 = vmul.f32 -1.442695, %v3519_v42 }
 0x6d3   :  { %v3371_v7 = vadd.f32 1.0, %v4126_v25 }
 0x6d4   :  { %v3345_v33 = vpop.f32.mrf.mxu2 }
 0x6d5   :  { %4129 = vrcp.f32 %v3371_v7  ;;  %v3346_v41 = vadd.f32 %v3345_v33, %v10411_v34  ;;  %v3383_v23 = vand.u32 2147483648, %v3371_v7  ;;  %vm3377_vm13 = vweird.f32 %v3371_v7 }
 0x6d6   :  { %4131 = vpow2.f32 %v3905_v22  ;;  %v3515_v24 = vpop.f32.mrf.mxu3  ;;  %v3381_v61 = vand.u32 2147483647, %v3371_v7 }
 0x6d7   :  { %v3366_v45 = vadd.f32 %v3365_v31, %v3346_v41  ;;  %v3521_v8 = vadd.f32 %v3515_v24, %v556_v40  ;;  %v3384_v29 = vor.u32 1.1754944e-38, %v3383_v23 }
 0x6d8   :  { %v4128_v32 = vpop.eup %4127  ;;  %vm3382_vm1 = vcmp.eq.f32.partialorder %v3381_v61, 8.507059e+37 }
 0x6d9   :  { %v3390_v30 = vadd.f32 1.0, %v4128_v32  ;;  %v3903_v26 = vmul.f32 -1.442695, %v3366_v45  ;;  %v3906_v57 = vmul.f32 -1.442695, %v3521_v8 }
 0x6db   :  { %v4130_v44 = vpop.eup %4129  ;;  %4133 = vrcp.f32 %v3390_v30  ;;  %v3402_v50 = vand.u32 2147483648, %v3390_v30  ;;  %v3400_v19 = vand.u32 2147483647, %v3390_v30  ;;  %vm3396_vm0 = vweird.f32 %v3390_v30 }
 0x6dc   :  { %v3373_v56 = vmul.f32 %v4130_v44, %v3371_v7  ;;  %4135 = vpow2.f32 %v3903_v26  ;;  %v4132_v0 = vpop.eup %4131  ;;  %vm3378_vm12 = vweird.f32 %v4130_v44  ;;  %v10419_v26 = vld [vmem:[#allocation148_spill] sm:$0xff] }
 0x6dd   :  { %v8691_v12 = vadd.f32 1.0, %v4132_v0  ;;  %4137 = vtanh.f32 %v3326_v15  ;;  %vm8694_vm14 = vmor %vm3377_vm13, %vm3378_vm12  ;;  %v3403_v37 = vor.u32 1.1754944e-38, %v3402_v50  ;;  %vm3401_vm3 = vcmp.eq.f32.partialorder %v3400_v19, 8.507059e+37  ;;  %v10420_v15 = vld [vmem:[#allocation149_spill] sm:$0xff] }
 0x6de   :  { %v3374_v59 = vsub.f32 1.0, %v3373_v56  ;;  %4139 = vpow2.f32 %v3906_v57 }
 0x6df   :  { %v3556_v21 = vand.u32 2147483648, %v8691_v12  ;;  %vm3550_vm9 = vweird.f32 %v8691_v12 }
 0x6e0   :  { %v3375_v11 = vmul.f32 %v4130_v44, %v3374_v59 }
 0x6e1   :  { %v4134_v54 = vpop.eup %4133 }
 0x6e2   :  { %v4136_v6 = vpop.eup %4135  ;;  %v3392_v20 = vmul.f32 %v4134_v54, %v3390_v30  ;;  %v3376_v28 = vadd.f32 %v4130_v44, %v3375_v11  ;;  %vm3397_vm15 = vweird.f32 %v4134_v54 }
 0x6e3   :  { %v3410_v49 = vadd.f32 1.0, %v4136_v6  ;;  %v4138_v1 = vpop.eup %4137  ;;  %vm3398_vm2 = vmor %vm3396_vm0, %vm3397_vm15 }
 0x6e4   :  { %v3393_v46 = vsub.f32 1.0, %v3392_v20  ;;  %v3380_v47 = vsel %vm8694_vm14, %v4130_v44, %v3376_v28  ;;  %v4140_v16 = vpop.eup %4139  ;;  %v433_v44 = vadd.f32 %v10419_v26, %v5711_v9  ;;  %v3554_v28 = vand.u32 2147483647, %v8691_v12  ;;  %v3815_v26 = vld [vmem:[%s8798_s6 + $0x38] sm:$0xff] }
 0x6e5   :  { %4141 = vrcp.f32 %v3410_v49  ;;  %v3385_v14 = vsel %vm3382_vm1, %v3384_v29, %v3380_v47  ;;  %v8708_v62 = vadd.f32 1.0, %v4140_v16  ;;  %v3422_v32 = vand.u32 2147483648, %v3410_v49 }
 0x6e6   :  { %v3394_v53 = vmul.f32 %v4134_v54, %v3393_v46  ;;  %4143 = vrcp.f32 %v8691_v12  ;;  %v3455_v2 = vpop.f32.mrf.mxu0  ;;  %v3427_v7 = vmul.f32 %v4138_v1, %v3385_v14  ;;  %v3420_v5 = vand.u32 2147483647, %v3410_v49 }
 0x6e7   :  { %v3518_v51 = vadd.f32 %v3455_v2, %v310_v38  ;;  %vm3416_vm5 = vweird.f32 %v3410_v49  ;;  %v3423_v40 = vor.u32 1.1754944e-38, %v3422_v32  ;;  %v474_v11 = vadd.f32 %v10420_v15, %v433_v44 }
 0x6e8   :  { %v3395_v4 = vadd.f32 %v4134_v54, %v3394_v53  ;;  %vm3421_vm7 = vcmp.eq.f32.partialorder %v3420_v5, 8.507059e+37  ;;  %v3557_v38 = vor.u32 1.1754944e-38, %v3556_v21  ;;  %vm3555_vm13 = vcmp.eq.f32.partialorder %v3554_v28, 8.507059e+37  ;;  %v3818_v5 = vld [vmem:[%s8798_s6 + $0x50] sm:$0xff]  ;;  %v3809_v21 = vld [vmem:[%s8798_s6 + $0x8] sm:$0xff] }
 0x6e9   :  { %v3904_v35 = vmul.f32 -1.442695, %v3518_v51  ;;  %v3576_v14 = vand.u32 2147483648, %v8708_v62  ;;  %vm3570_vm1 = vweird.f32 %v8708_v62  ;;  %v3574_v16 = vand.u32 2147483647, %v8708_v62 }
 0x6ea   :  { %v3399_v60 = vsel %vm3398_vm2, %v4134_v54, %v3395_v4 }
 0x6eb   :  { %v4142_v18 = vpop.eup %4141  ;;  %v3404_v31 = vsel %vm3401_vm3, %v3403_v37, %v3399_v60  ;;  %4145 = vpow2.f32 %v3904_v35  ;;  %v3577_v35 = vor.u32 1.1754944e-38, %v3576_v14  ;;  %vm3575_vm3 = vcmp.eq.f32.partialorder %v3574_v16, 8.507059e+37 }
 0x6ec   :  { %v8701_v42 = vpop.eup %4143  ;;  %v3426_v25 = vmul.f32 %v3404_v31, %v8470_v39  ;;  %v3412_v33 = vmul.f32 %v4142_v18, %v3410_v49  ;;  %vm3417_vm4 = vweird.f32 %v4142_v18 }
 0x6ed   :  { %v3546_v55 = vmul.f32 %v8701_v42, %v8691_v12  ;;  %vm3418_vm6 = vmor %vm3416_vm5, %vm3417_vm4  ;;  %v3495_v0 = vpop.f32.mrf.mxu2  ;;  %vm3551_vm8 = vweird.f32 %v8701_v42 }
 0x6ee   :  { %v8704_v22 = vadd.f32 %v3427_v7, %v3426_v25  ;;  %v3413_v43 = vsub.f32 1.0, %v3412_v33  ;;  %v3520_v13 = vadd.f32 %v3495_v0, %v474_v11  ;;  %vm8722_vm10 = vmor %vm3550_vm9, %vm3551_vm8  ;;  %v3822_v25 = vld [vmem:[%s8798_s6 + $0x70] sm:$0xff]  ;;  %v3821_v7 = vld [vmem:[%s8798_s6 + $0x68] sm:$0xff] }
 0x6ef   :  { %v3547_v24 = vsub.f32 1.0, %v3546_v55  ;;  %v3820_v33 = vld [vmem:[%s8798_s6 + $0x60] sm:$0xff]  ;;  %v3811_v11 = vld [vmem:[%s8798_s6 + $0x18] sm:$0xff] }
 0x6f0   :  { %4147 = vtanh.f32 %v8704_v22  ;;  %v3414_v41 = vmul.f32 %v4142_v18, %v3413_v43 }
 0x6f1   :  { %v4146_v45 = vpop.eup %4145  ;;  %4149 = vrcp.f32 %v8708_v62  ;;  %v3548_v59 = vmul.f32 %v8701_v42, %v3547_v24 }
 0x6f2   :  { %v3415_v39 = vadd.f32 %v4142_v18, %v3414_v41  ;;  %v3525_v30 = vadd.f32 1.0, %v4146_v45 }
 0x6f3   :  { %v3549_v9 = vadd.f32 %v8701_v42, %v3548_v59 }
 0x6f4   :  { %v3419_v3 = vsel %vm3418_vm6, %v4142_v18, %v3415_v39  ;;  %4151 = vrcp.f32 %v3525_v30  ;;  %v3537_v49 = vand.u32 2147483648, %v3525_v30  ;;  %v3535_v61 = vand.u32 2147483647, %v3525_v30  ;;  %v3817_v39 = vld [vmem:[%s8798_s6 + $0x48] sm:$0xff] }
 0x6f5   :  { %v3424_v56 = vsel %vm3421_vm7, %v3423_v40, %v3419_v3  ;;  %4153 = vtanh.f32 %v3520_v13  ;;  %v3553_v36 = vsel %vm8722_vm10, %v8701_v42, %v3549_v9  ;;  %vm3531_vm12 = vweird.f32 %v3525_v30  ;;  %v3816_v3 = vld [vmem:[%s8798_s6 + $0x40] sm:$0xff]  ;;  %v3810_v13 = vld [vmem:[%s8798_s6 + $0x10] sm:$0xff] }
 0x6f6   :  { %v4148_v27 = vpop.eup %4147  ;;  %v3538_v12 = vor.u32 1.1754944e-38, %v3537_v49  ;;  %v3558_v19 = vsel %vm3555_vm13, %v3557_v38, %v3553_v36  ;;  %vm3536_vm15 = vcmp.eq.f32.partialorder %v3535_v61, 8.507059e+37 }
 0x6f7   :  { %v3430_v8 = vmul.f32 %v4148_v27, %v3424_v56  ;;  %v4150_v57 = vpop.eup %4149  ;;  %v3580_v4 = vmul.f32 %v3558_v19, %v8514_v17  ;;  %v3823_v17 = vld [vmem:[%s8798_s6 + $0x78] sm:$0xff]  ;;  %v3814_v27 = vld [vmem:[%s8798_s6 + $0x30] sm:$0xff] }
 0x6f8   :  { %v3566_v6 = vmul.f32 %v4150_v57, %v8708_v62  ;;  %vm3571_vm0 = vweird.f32 %v4150_v57  ;;  %v3819_v62 = vld [vmem:[%s8798_s6 + $0x58] sm:$0xff] }
 0x6f9   :  { %3621 = vmatmul.f32.vlgmr.msra.gmra.mxu1 %v3430_v8  ;;  %3661 = vmatmul.f32.vlgmr.msra.gmra.mxu3 %v3430_v8  ;;  %vm3572_vm2 = vmor %vm3570_vm1, %vm3571_vm0 }
 0x6fa   :  { %v4152_v54 = vpop.eup %4151  ;;  %v3567_v50 = vsub.f32 1.0, %v3566_v6 }
 0x6fb   :  { %v3527_v48 = vmul.f32 %v4152_v54, %v3525_v30  ;;  %vm3532_vm11 = vweird.f32 %v4152_v54  ;;  %v4154_v47 = vpop.eup %4153 }
 0x6fc   :  { %vm3533_vm14 = vmor %vm3531_vm12, %vm3532_vm11  ;;  %v3568_v2 = vmul.f32 %v4150_v57, %v3567_v50 }
 0x6fd   :  { %v3528_v20 = vsub.f32 1.0, %v3527_v48 }
 0x6fe   :  { %v3569_v37 = vadd.f32 %v4150_v57, %v3568_v2 }
 0x6ff   :  { %v3529_v46 = vmul.f32 %v4152_v54, %v3528_v20  ;;  %v3808_v20 = vld [vmem:[%s8798_s6] sm:$0xff] }
 0x700   :  { %v3573_v60 = vsel %vm3572_vm2, %v4150_v57, %v3569_v37 }
 0x701   :  { %3701 = vmatmul.f32.vlgmr.msrb.gmra.mxu1 %v3430_v8  ;;  %3741 = vmatmul.f32.vlgmr.msrb.gmra.mxu3 %v3430_v8  ;;  %v3530_v63 = vadd.f32 %v4152_v54, %v3529_v46  ;;  %v3578_v31 = vsel %vm3575_vm3, %v3577_v35, %v3573_v60  ;;  %v3812_v8 = vld [vmem:[%s8798_s6 + $0x20] sm:$0xff] }
 0x703   :  { %v3534_v53 = vsel %vm3533_vm14, %v4152_v54, %v3530_v63 }
 0x704   :  { %v3539_v29 = vsel %vm3536_vm15, %v3538_v12, %v3534_v53 }
 0x705   :  { %v3581_v51 = vmul.f32 %v4154_v47, %v3539_v29 }
 0x707   :  { %v3582_v1 = vadd.f32 %v3581_v51, %v3580_v4 }
 0x709   :  { %4155 = vtanh.f32 %v3582_v1 }
 0x70f   :  { %v4156_v18 = vpop.eup %4155 }
 0x710   :  { %v3584_v42 = vmul.f32 %v4156_v18, %v3578_v31 }
 0x712   :  { %3601 = vmatmul.f32.vlgmr.msra.gmra.mxu0 %v3584_v42  ;;  %3641 = vmatmul.f32.vlgmr.msra.gmra.mxu2 %v3584_v42 }
 0x713   :  { %3828 = vmatpush.msra.mxu0 %v3823_v17 }
 0x715   :  { %3829 = vmatpush.msra.mxu0 %v3822_v25 }
 0x717   :  { %3830 = vmatpush.msra.mxu0 %v3821_v7 }
 0x719   :  { %3831 = vmatpush.msra.mxu0 %v3820_v33 }
 0x71a   :  { %3681 = vmatmul.f32.vlgmr.msrb.gmra.mxu0 %v3584_v42  ;;  %3721 = vmatmul.f32.vlgmr.msrb.gmra.mxu2 %v3584_v42 }
 0x71b   :  { %3832 = vmatpush.msra.mxu0 %v3819_v62 }
 0x71d   :  { %3833 = vmatpush.msra.mxu0 %v3818_v5 }
 0x71f   :  { %3834 = vmatpush.msra.mxu0 %v3817_v39 }
 0x721   :  { %3835 = vmatpush.msra.mxu0 %v3816_v3 }
 0x723   :  { %3836 = vmatpush.msra.mxu0 %v3815_v26 }
 0x725   :  { %3837 = vmatpush.msra.mxu0 %v3814_v27 }
 0x776   :  { %v3622_v41 = vpop.f32.mrf.mxu1 }
 0x77c   :  { %v3662_v30 = vpop.f32.mrf.mxu3 }
 0x77e   :  { %v3702_v36 = vpop.f32.mrf.mxu1 }
 0x784   :  { %v3742_v57 = vpop.f32.mrf.mxu3 }
 0x78f   :  { %v3602_v43 = vpop.f32.mrf.mxu0 }
 0x790   :  { %v3603_v55 = vadd.f32 %v3602_v43, %v10404_v58 }
 0x792   :  { %v3623_v32 = vadd.f32 %v3622_v41, %v3603_v55 }
 0x794   :  { %v3907_v45 = vmul.f32 -1.442695, %v3623_v32 }
 0x795   :  { %v3642_v24 = vpop.f32.mrf.mxu2 }
 0x796   :  { %4157 = vpow2.f32 %v3907_v45  ;;  %v3643_v58 = vadd.f32 %v3642_v24, %v10407_v52  ;;  %v3813_v52 = vld [vmem:[%s8798_s6 + $0x28] sm:$0xff] }
 0x797   :  { %3838 = vmatpush.msra.mxu0 %v3813_v52  ;;  %v3682_v6 = vpop.f32.mrf.mxu0 }
 0x798   :  { %v3663_v40 = vadd.f32 %v3662_v30, %v3643_v58  ;;  %v3683_v49 = vadd.f32 %v3682_v6, %v10413_v10 }
 0x799   :  { %3839 = vmatpush.msra.mxu0 %v3812_v8 }
 0x79a   :  { %v3908_v44 = vmul.f32 -1.442695, %v3663_v40  ;;  %v3703_v63 = vadd.f32 %v3702_v36, %v3683_v49 }
 0x79b   :  { %3840 = vmatpush.msra.mxu0 %v3811_v11 }
 0x79c   :  { %v4158_v56 = vpop.eup %4157  ;;  %4159 = vpow2.f32 %v3908_v44 }
 0x79d   :  { %v3748_v59 = vadd.f32 1.0, %v4158_v56  ;;  %v3722_v0 = vpop.f32.mrf.mxu2  ;;  %3841 = vmatpush.msra.mxu0 %v3810_v13 }
 0x79e   :  { %v3723_v15 = vadd.f32 %v3722_v0, %v10411_v34 }
 0x79f   :  { %4161 = vrcp.f32 %v3748_v59  ;;  %3842 = vmatpush.msra.mxu0 %v3809_v21  ;;  %v3760_v47 = vand.u32 2147483648, %v3748_v59  ;;  %vm3754_vm5 = vweird.f32 %v3748_v59  ;;  %v3758_v29 = vand.u32 2147483647, %v3748_v59 }
 0x7a0   :  { %v3743_v54 = vadd.f32 %v3742_v57, %v3723_v15 }
 0x7a1   :  { %3843 = vmatpush.msra.mxu0 %v3808_v20  ;;  %v3761_v37 = vor.u32 1.1754944e-38, %v3760_v47  ;;  %vm3759_vm9 = vcmp.eq.f32.partialorder %v3758_v29, 8.507059e+37 }
 0x7a2   :  { %v4160_v48 = vpop.eup %4159  ;;  %v3909_v9 = vmul.f32 -1.442695, %v3743_v54 }
 0x7a3   :  { %v3767_v34 = vadd.f32 1.0, %v4160_v48 }
 0x7a4   :  { %4163 = vpow2.f32 %v3909_v9 }
 0x7a5   :  { %v4162_v28 = vpop.eup %4161  ;;  %4165 = vrcp.f32 %v3767_v34  ;;  %v3779_v4 = vand.u32 2147483648, %v3767_v34  ;;  %v3777_v1 = vand.u32 2147483647, %v3767_v34  ;;  %vm3773_vm8 = vweird.f32 %v3767_v34 }
 0x7a6   :  { %v3750_v23 = vmul.f32 %v4162_v28, %v3748_v59  ;;  %vm3755_vm4 = vweird.f32 %v4162_v28 }
 0x7a7   :  { %vm3756_vm6 = vmor %vm3754_vm5, %vm3755_vm4  ;;  %v3780_v60 = vor.u32 1.1754944e-38, %v3779_v4  ;;  %vm3778_vm11 = vcmp.eq.f32.partialorder %v3777_v1, 8.507059e+37 }
 0x7a8   :  { %v3751_v46 = vsub.f32 1.0, %v3750_v23 }
 0x7aa   :  { %v4164_v61 = vpop.eup %4163  ;;  %v3752_v38 = vmul.f32 %v4162_v28, %v3751_v46 }
 0x7ab   :  { %v4166_v50 = vpop.eup %4165  ;;  %v3787_v12 = vadd.f32 1.0, %v4164_v61 }
 0x7ac   :  { %v3769_v19 = vmul.f32 %v4166_v50, %v3767_v34  ;;  %v3753_v53 = vadd.f32 %v4162_v28, %v3752_v38  ;;  %vm3774_vm7 = vweird.f32 %v4166_v50 }
 0x7ad   :  { %4167 = vrcp.f32 %v3787_v12  ;;  %vm3775_vm10 = vmor %vm3773_vm8, %vm3774_vm7  ;;  %v3799_v62 = vand.u32 2147483648, %v3787_v12  ;;  %vm3793_vm13 = vweird.f32 %v3787_v12  ;;  %v3797_v32 = vand.u32 2147483647, %v3787_v12 }
 0x7ae   :  { %v3770_v2 = vsub.f32 1.0, %v3769_v19  ;;  %4169 = vtanh.f32 %v3703_v63  ;;  %v3757_v51 = vsel %vm3756_vm6, %v4162_v28, %v3753_v53 }
 0x7af   :  { %v3762_v35 = vsel %vm3759_vm9, %v3761_v37, %v3757_v51  ;;  %v3800_v45 = vor.u32 1.1754944e-38, %v3799_v62  ;;  %vm3798_vm15 = vcmp.eq.f32.partialorder %v3797_v32, 8.507059e+37 }
 0x7b0   :  { %v3771_v10 = vmul.f32 %v4166_v50, %v3770_v2 }
 0x7b2   :  { %v3772_v14 = vadd.f32 %v4166_v50, %v3771_v10 }
 0x7b3   :  { %v4168_v16 = vpop.eup %4167 }
 0x7b4   :  { %v3776_v18 = vsel %vm3775_vm10, %v4166_v50, %v3772_v14  ;;  %v3789_v31 = vmul.f32 %v4168_v16, %v3787_v12  ;;  %v4170_v42 = vpop.eup %4169  ;;  %vm3794_vm12 = vweird.f32 %v4168_v16 }
 0x7b5   :  { %v3781_v17 = vsel %vm3778_vm11, %v3780_v60, %v3776_v18  ;;  %v3804_v7 = vmul.f32 %v4170_v42, %v3762_v35  ;;  %vm3795_vm14 = vmor %vm3793_vm13, %vm3794_vm12 }
 0x7b6   :  { %v3803_v25 = vmul.f32 %v3781_v17, %v8704_v22  ;;  %v3790_v33 = vsub.f32 1.0, %v3789_v31  ;;  %v3916_v22 = vld [vmem:[%s8799_s7] ss:$0 sm:$0xff] }
 0x7b8   :  { %v3805_v43 = vadd.f32 %v3804_v7, %v3803_v25  ;;  %v3791_v55 = vmul.f32 %v4168_v16, %v3790_v33 }
 0x7ba   :  { %4171 = vtanh.f32 %v3805_v43  ;;  %v3792_v41 = vadd.f32 %v4168_v16, %v3791_v55 }
 0x7bc   :  { %v3796_v5 = vsel %vm3795_vm14, %v4168_v16, %v3792_v41 }
 0x7bd   :  { %v3801_v30 = vsel %vm3798_vm15, %v3800_v45, %v3796_v5 }
 0x7c0   :  { %v4172_v39 = vpop.eup %4171 }
 0x7c1   :  { %v3807_v24 = vmul.f32 %v4172_v39, %v3801_v30 }
 0x7c3   :  { %3844 = vmatmul.f32.vlgmr.msra.gmra.mxu0 %v3807_v24 }
 0x840   :  { %v3845_v58 = vpop.f32.mrf.mxu0 }
 0x841   :  { %v3846_v3 = vadd.f32 %v3916_v22, %v3845_v58 }
 0x843   :  { %3848 = vst [vmem:[%s8800_s8] sm:$0xff] %v3846_v3 }
 0x844   :  { %3853 = vsyncpa [#allocation4], 1 }
 0x845   :  { %3854 = vsyncpa [#allocation6], 1 }

</bundles_post_ra>
